<compile_context>
chip_gen: v7x
topology: tpu7x:2x2x1
jax: 0.10.0
libtpu: 0.0.40
codegen_flags: <defaults>
</compile_context>

<pallas_src>
import jax
import jax.numpy as jnp
from jax.experimental import pallas as pl
from jax.experimental.pallas import tpu as pltpu

IN_F = 1024
HID_F = 1024
OUT_F = 1103
OUT_PAD = 1152  # 1103 -> next multiple of 128 for a lane-dense MXU output


def mlp_kernel(x_ref, w1_ref, b1_ref, w2_ref, b2_ref, w3_ref, b3_ref, o_ref):
    # MXU operands in bf16 (no-op if the producer already feeds bf16);
    # accumulation + bias/ReLU/sigmoid epilogues in f32.
    x = x_ref[...].astype(jnp.bfloat16)
    h1 = jnp.dot(x, w1_ref[...], preferred_element_type=jnp.float32)
    h1 = jnp.maximum(h1 + b1_ref[...], 0.0)

    h2 = jnp.dot(h1.astype(jnp.bfloat16), w2_ref[...],
                 preferred_element_type=jnp.float32)
    h2 = jnp.maximum(h2 + b2_ref[...], 0.0)

    # Dropout(p=0.5): identity in eval mode.
    logits = jnp.dot(h2.astype(jnp.bfloat16), w3_ref[...],
                     preferred_element_type=jnp.float32) + b3_ref[...]

    # sigmoid(z) == 0.5*tanh(z/2) + 0.5  -> single EUP op per element, no VALU divide.
    o_ref[...] = 0.5 * jnp.tanh(0.5 * logits) + 0.5


def init_params(key):
    """PyTorch-style init: U(-1/sqrt(fan_in), 1/sqrt(fan_in)); weights stored (in, out)."""
    ks = jax.random.split(key, 6)
    bound = 1.0 / jnp.sqrt(IN_F)
    w1 = jax.random.uniform(ks[0], (IN_F, HID_F), jnp.float32, -bound, bound)
    b1 = jax.random.uniform(ks[1], (1, HID_F), jnp.float32, -bound, bound)
    w2 = jax.random.uniform(ks[2], (HID_F, HID_F), jnp.float32, -bound, bound)
    b2 = jax.random.uniform(ks[3], (1, HID_F), jnp.float32, -bound, bound)
    w3 = jax.random.uniform(ks[4], (HID_F, OUT_F), jnp.float32, -bound, bound)
    b3 = jax.random.uniform(ks[5], (1, OUT_F), jnp.float32, -bound, bound)
    return w1, b1, w2, b2, w3, b3


def prepare_params(w1, b1, w2, b2, w3, b3):
    """One-time prep (NOT in the forward path): pad w3/b3 to 1152 lanes, cast weights to
    bf16 (halves weight HBM traffic).  Biases stay f32 for the f32 epilogues."""
    w3p = jnp.zeros((HID_F, OUT_PAD), jnp.float32).at[:, :OUT_F].set(w3)
    b3p = jnp.zeros((1, OUT_PAD), jnp.float32).at[:, :OUT_F].set(b3)
    return (w1.astype(jnp.bfloat16), b1.astype(jnp.float32),
            w2.astype(jnp.bfloat16), b2.astype(jnp.float32),
            w3p.astype(jnp.bfloat16), b3p.astype(jnp.float32))


def _pick_batch_tile(B):
    if B <= 256:
        return B  # single full-extent tile
    # Largest tile that still gives >= 2 grid steps: keeps both v7x TensorCores busy,
    # while bigger tiles amortize the ~0.35 us/step overhead on v5e/v6e.
    for tb in (512, 256):
        if B >= 2 * tb:
            return tb
    return 256


def mlp_forward(x, params, *, batch_tile=None, return_padded=False):
    """x: (B, 1024), f32 or bf16. params: output of prepare_params."""
    w1, b1, w2, b2, w3p, b3p = params
    B = x.shape[0]
    tb = batch_tile if batch_tile is not None else _pick_batch_tile(B)
    grid = (pl.cdiv(B, tb),)  # ragged last tile handled by Pallas masked boundary DMA

    # VMEM budget derived from the chosen tile (+50% compiler headroom).
    x_bytes = jnp.dtype(x.dtype).itemsize
    wgt_vmem = 2 * 2 * (IN_F * HID_F + HID_F * HID_F + HID_F * OUT_PAD)   # 2 bufs, bf16
    io_vmem = 2 * tb * (IN_F * x_bytes + OUT_PAD * 4)                     # x/out, 2 bufs
    scratch = tb * ((2 * HID_F + OUT_PAD) * 4 + (IN_F + 2 * HID_F) * 2)   # f32 + bf16 temps
    vmem_limit = int(1.5 * (wgt_vmem + io_vmem + scratch))

    weight_bytes = 2 * (IN_F * HID_F + HID_F * HID_F + HID_F * OUT_PAD) + 4 * (2 * HID_F + OUT_PAD)
    cost = pl.CostEstimate(
        flops=2 * B * (IN_F * HID_F + HID_F * HID_F + HID_F * OUT_PAD),
        transcendentals=B * OUT_PAD,
        bytes_accessed=B * IN_F * x_bytes + weight_bytes + B * OUT_PAD * 4,
    )

    out = pl.pallas_call(
        mlp_kernel,
        out_shape=jax.ShapeDtypeStruct((B, OUT_PAD), jnp.float32),
        grid=grid,
        in_specs=[
            pl.BlockSpec((tb, IN_F), lambda i: (i, 0)),        # x: tiled on batch
            pl.BlockSpec((IN_F, HID_F), lambda i: (0, 0)),     # w1: VMEM-resident
            pl.BlockSpec((1, HID_F), lambda i: (0, 0)),        # b1
            pl.BlockSpec((HID_F, HID_F), lambda i: (0, 0)),    # w2
            pl.BlockSpec((1, HID_F), lambda i: (0, 0)),        # b2
            pl.BlockSpec((HID_F, OUT_PAD), lambda i: (0, 0)),  # w3 (lane-padded)
            pl.BlockSpec((1, OUT_PAD), lambda i: (0, 0)),      # b3 (lane-padded)
        ],
        out_specs=pl.BlockSpec((tb, OUT_PAD), lambda i: (i, 0)),
        compiler_params=pltpu.CompilerParams(
            dimension_semantics=("parallel",),   # megacore: tiles split across v7x's 2 TCs
            vmem_limit_bytes=vmem_limit,
        ),
        cost_estimate=cost,
    )(x, w1, b1, w2, b2, w3p, b3p)

    if return_padded:
        # (B, 1152) slab; lanes 1103..1151 hold sigmoid(0)=0.5 — consumers must ignore them.
        return out
    return out[:, :OUT_F]


def reference_bf16(x, params):
    """Plain-JAX reference mirroring the kernel's numerics (bf16 MXU, f32 accumulate)."""
    w1, b1, w2, b2, w3p, b3p = params
    h1 = jnp.maximum(
        jnp.dot(x.astype(jnp.bfloat16), w1, preferred_element_type=jnp.float32) + b1, 0.0)
    h2 = jnp.maximum(
        jnp.dot(h1.astype(jnp.bfloat16), w2, preferred_element_type=jnp.float32) + b2, 0.0)
    logits = jnp.dot(h2.astype(jnp.bfloat16), w3p, preferred_element_type=jnp.float32) + b3p
    return jax.nn.sigmoid(logits)[:, :OUT_F]


def reference_f32(x, raw_params):
    """True f32 reference matching the PyTorch module (Precision.HIGHEST matmuls)."""
    w1, b1, w2, b2, w3, b3 = raw_params
    hp = jax.lax.Precision.HIGHEST
    h1 = jnp.maximum(jnp.dot(x, w1, precision=hp) + b1, 0.0)
    h2 = jnp.maximum(jnp.dot(h1, w2, precision=hp) + b2, 0.0)
    return jax.nn.sigmoid(jnp.dot(h2, w3, precision=hp) + b3)


if __name__ == "__main__":
    key = jax.random.PRNGKey(0)
    k_x, k_p = jax.random.split(key)

    raw_params = init_params(k_p)
    params = prepare_params(*raw_params)          # one-time pad + bf16 cast
    fwd = jax.jit(lambda xx: mlp_forward(xx, params))

    # B=8: single tile; B=384: ragged multi-tile (masked boundary store); B=512: 2 full tiles.
    for B in (8, 384, 512):
        x = jax.random.normal(jax.random.fold_in(k_x, B), (B, IN_F), jnp.float32)
        out = jax.block_until_ready(fwd(x))
        assert out.shape == (B, OUT_F), out.shape

        err_bf16 = float(jnp.max(jnp.abs(out - reference_bf16(x, params))))
        assert err_bf16 < 2e-3, f"B={B}: vs bf16 reference max abs err {err_bf16}"

        err_f32 = float(jnp.max(jnp.abs(out - reference_f32(x, raw_params))))
        assert err_f32 < 2.5e-2, f"B={B}: vs f32 reference max abs err {err_f32}"

    print("KERNEL_OK")
</pallas_src>

<mosaic_0001>
module attributes {stable_mosaic.version = 11 : i64} {
  func.func @mlp_kernel(%arg0: i32, %arg1: memref<8x1024xf32, #tpu.memory_space<vmem>>, %arg2: memref<1024x1024xbf16, #tpu.memory_space<vmem>>, %arg3: memref<1x1024xf32, #tpu.memory_space<vmem>>, %arg4: memref<1024x1024xbf16, #tpu.memory_space<vmem>>, %arg5: memref<1x1024xf32, #tpu.memory_space<vmem>>, %arg6: memref<1024x1152xbf16, #tpu.memory_space<vmem>>, %arg7: memref<1x1152xf32, #tpu.memory_space<vmem>>, %arg8: memref<8x1152xf32, #tpu.memory_space<vmem>>) attributes {dimension_semantics = [#tpu.dimension_semantics<parallel>], iteration_bounds = array<i64: 1>, scalar_prefetch = 0 : i64, scratch_operands = 0 : i64, tpu.core_type = #tpu.core_type<tc>, window_params = [{transform_indices = @transform_0, window_bounds = array<i64: 8, 1024>}, {pipeline_mode = #tpu.pipeline_mode<synchronous>, transform_indices = @transform_1, window_bounds = array<i64: 1024, 1024>}, {pipeline_mode = #tpu.pipeline_mode<synchronous>, transform_indices = @transform_2, window_bounds = array<i64: 1, 1024>}, {pipeline_mode = #tpu.pipeline_mode<synchronous>, transform_indices = @transform_3, window_bounds = array<i64: 1024, 1024>}, {pipeline_mode = #tpu.pipeline_mode<synchronous>, transform_indices = @transform_4, window_bounds = array<i64: 1, 1024>}, {pipeline_mode = #tpu.pipeline_mode<synchronous>, transform_indices = @transform_5, window_bounds = array<i64: 1024, 1152>}, {pipeline_mode = #tpu.pipeline_mode<synchronous>, transform_indices = @transform_6, window_bounds = array<i64: 1, 1152>}, {transform_indices = @transform_7, window_bounds = array<i64: 8, 1152>}]} {
    %c0 = arith.constant 0 : index
    %c0_0 = arith.constant 0 : index
    %0 = vector.load %arg1[%c0, %c0_0] : memref<8x1024xf32, #tpu.memory_space<vmem>>, vector<8x1024xf32>
    %1 = arith.truncf %0 : vector<8x1024xf32> to vector<8x1024xbf16>
    %c0_1 = arith.constant 0 : index
    %c0_2 = arith.constant 0 : index
    %2 = vector.load %arg2[%c0_1, %c0_2] : memref<1024x1024xbf16, #tpu.memory_space<vmem>>, vector<1024x1024xbf16>
    %cst = arith.constant dense<0.000000e+00> : vector<8x1024xf32>
    %3 = tpu.matmul %1, %2, %cst {dimension_numbers = #tpu.dot_dimension_numbers<[1], [0], [0], [1], [0, 0, 1, 1], [], []>} : vector<8x1024xbf16>, vector<1024x1024xbf16>, vector<8x1024xf32> -> vector<8x1024xf32>
    %c0_3 = arith.constant 0 : index
    %c0_4 = arith.constant 0 : index
    %4 = vector.load %arg3[%c0_3, %c0_4] : memref<1x1024xf32, #tpu.memory_space<vmem>>, vector<1x1024xf32>
    %5 = vector.broadcast %4 : vector<1x1024xf32> to vector<8x1024xf32>
    %6 = arith.addf %3, %5 : vector<8x1024xf32>
    %cst_5 = arith.constant 0.000000e+00 : f32
    %7 = vector.broadcast %cst_5 : f32 to vector<8x1024xf32>
    %8 = arith.maximumf %6, %7 : vector<8x1024xf32>
    %9 = arith.truncf %8 : vector<8x1024xf32> to vector<8x1024xbf16>
    %c0_6 = arith.constant 0 : index
    %c0_7 = arith.constant 0 : index
    %10 = vector.load %arg4[%c0_6, %c0_7] : memref<1024x1024xbf16, #tpu.memory_space<vmem>>, vector<1024x1024xbf16>
    %cst_8 = arith.constant dense<0.000000e+00> : vector<8x1024xf32>
    %11 = tpu.matmul %9, %10, %cst_8 {dimension_numbers = #tpu.dot_dimension_numbers<[1], [0], [0], [1], [0, 0, 1, 1], [], []>} : vector<8x1024xbf16>, vector<1024x1024xbf16>, vector<8x1024xf32> -> vector<8x1024xf32>
    %c0_9 = arith.constant 0 : index
    %c0_10 = arith.constant 0 : index
    %12 = vector.load %arg5[%c0_9, %c0_10] : memref<1x1024xf32, #tpu.memory_space<vmem>>, vector<1x1024xf32>
    %13 = vector.broadcast %12 : vector<1x1024xf32> to vector<8x1024xf32>
    %14 = arith.addf %11, %13 : vector<8x1024xf32>
    %cst_11 = arith.constant 0.000000e+00 : f32
    %15 = vector.broadcast %cst_11 : f32 to vector<8x1024xf32>
    %16 = arith.maximumf %14, %15 : vector<8x1024xf32>
    %17 = arith.truncf %16 : vector<8x1024xf32> to vector<8x1024xbf16>
    %c0_12 = arith.constant 0 : index
    %c0_13 = arith.constant 0 : index
    %18 = vector.load %arg6[%c0_12, %c0_13] : memref<1024x1152xbf16, #tpu.memory_space<vmem>>, vector<1024x1152xbf16>
    %cst_14 = arith.constant dense<0.000000e+00> : vector<8x1152xf32>
    %19 = tpu.matmul %17, %18, %cst_14 {dimension_numbers = #tpu.dot_dimension_numbers<[1], [0], [0], [1], [0, 0, 1, 1], [], []>} : vector<8x1024xbf16>, vector<1024x1152xbf16>, vector<8x1152xf32> -> vector<8x1152xf32>
    %c0_15 = arith.constant 0 : index
    %c0_16 = arith.constant 0 : index
    %20 = vector.load %arg7[%c0_15, %c0_16] : memref<1x1152xf32, #tpu.memory_space<vmem>>, vector<1x1152xf32>
    %21 = vector.broadcast %20 : vector<1x1152xf32> to vector<8x1152xf32>
    %22 = arith.addf %19, %21 : vector<8x1152xf32>
    %cst_17 = arith.constant 5.000000e-01 : f32
    %23 = vector.broadcast %cst_17 : f32 to vector<8x1152xf32>
    %24 = arith.mulf %23, %22 : vector<8x1152xf32>
    %25 = math.tanh %24 : vector<8x1152xf32>
    %cst_18 = arith.constant 5.000000e-01 : f32
    %26 = vector.broadcast %cst_18 : f32 to vector<8x1152xf32>
    %27 = arith.mulf %26, %25 : vector<8x1152xf32>
    %cst_19 = arith.constant 5.000000e-01 : f32
    %28 = vector.broadcast %cst_19 : f32 to vector<8x1152xf32>
    %29 = arith.addf %27, %28 : vector<8x1152xf32>
    %c0_20 = arith.constant 0 : index
    %c0_21 = arith.constant 0 : index
    %30 = vector.load %arg8[%c0_20, %c0_21] : memref<8x1152xf32, #tpu.memory_space<vmem>>, vector<8x1152xf32>
    tpu.vector_store %arg8[%c0_20, %c0_21], %29 {strides = array<i32>} : memref<8x1152xf32, #tpu.memory_space<vmem>>, vector<8x1152xf32>,
    return
  }
  func.func @transform_0(%arg0: i32) -> (i32, i32) {
    %c0_i32 = arith.constant 0 : i32
    %c0_i32_0 = arith.constant 0 : i32
    return %arg0, %c0_i32 : i32, i32
  }
  func.func @transform_1(%arg0: i32) -> (i32, i32) {
    %c0_i32 = arith.constant 0 : i32
    %c0_i32_0 = arith.constant 0 : i32
    %c0_i32_1 = arith.constant 0 : i32
    return %c0_i32, %c0_i32_0 : i32, i32
  }
  func.func @transform_2(%arg0: i32) -> (i32, i32) {
    %c0_i32 = arith.constant 0 : i32
    %c0_i32_0 = arith.constant 0 : i32
    %c0_i32_1 = arith.constant 0 : i32
    return %c0_i32, %c0_i32_0 : i32, i32
  }
  func.func @transform_3(%arg0: i32) -> (i32, i32) {
    %c0_i32 = arith.constant 0 : i32
    %c0_i32_0 = arith.constant 0 : i32
    %c0_i32_1 = arith.constant 0 : i32
    return %c0_i32, %c0_i32_0 : i32, i32
  }
  func.func @transform_4(%arg0: i32) -> (i32, i32) {
    %c0_i32 = arith.constant 0 : i32
    %c0_i32_0 = arith.constant 0 : i32
    %c0_i32_1 = arith.constant 0 : i32
    return %c0_i32, %c0_i32_0 : i32, i32
  }
  func.func @transform_5(%arg0: i32) -> (i32, i32) {
    %c0_i32 = arith.constant 0 : i32
    %c0_i32_0 = arith.constant 0 : i32
    %c0_i32_1 = arith.constant 0 : i32
    return %c0_i32, %c0_i32_0 : i32, i32
  }
  func.func @transform_6(%arg0: i32) -> (i32, i32) {
    %c0_i32 = arith.constant 0 : i32
    %c0_i32_0 = arith.constant 0 : i32
    %c0_i32_1 = arith.constant 0 : i32
    return %c0_i32, %c0_i32_0 : i32, i32
  }
  func.func @transform_7(%arg0: i32) -> (i32, i32) {
    %c0_i32 = arith.constant 0 : i32
    %c0_i32_0 = arith.constant 0 : i32
    return %arg0, %c0_i32 : i32, i32
  }
}

</mosaic_0001>

<bundles_post_ra>
// kernel: _lambda_.1
= control target key start
LH: loop header
LB: loop body
LE: loop exit
PB: predicated region body
PF: predicated region fallthrough
CT: control target
= control target key end

     0   :  { %s20016_s0 = inlined_call_operand.vmem [shape: f32[8,1024], index: 0, kind: input, shape index: {}]   ;;  %s20017_s1 = inlined_call_operand.vmem [shape: bf16[1024,1024], index: 1, kind: input, shape index: {}]   ;;  %s20018_s2 = inlined_call_operand.vmem [shape: f32[1,1024], index: 2, kind: input, shape index: {}]   ;;  %s20019_s3 = inlined_call_operand.vmem [shape: bf16[1024,1024], index: 3, kind: input, shape index: {}]   ;;  %s20020_s4 = inlined_call_operand.vmem [shape: f32[1,1024], index: 4, kind: input, shape index: {}]   ;;  %s20021_s5 = inlined_call_operand.vmem [shape: bf16[1024,1152], index: 5, kind: input, shape index: {}]   ;;  %s20022_s6 = inlined_call_operand.vmem [shape: f32[1,1152], index: 6, kind: input, shape index: {}]   ;;  %s20023_s7 = inlined_call_operand.hbm [shape: f32[8,1152], index: 7, kind: output, shape index: {}]  }
   0x1   :  { %v44_v0 = vld [vmem:[%s20017_s1] sm:$0xff]  ;;  %v45_v2 = vld [vmem:[%s20017_s1 + $0x8] sm:$0xff] }
   0x2   :  { %v48_v1 = vld [vmem:[%s20017_s1 + $0x20] sm:$0xff]  ;;  %v49_v4 = vld [vmem:[%s20017_s1 + $0x28] sm:$0xff] }
   0x3   :  { %v12125_v3 = vcombine.high %v44_v0, %v48_v1  ;;  %v12124_v5 = vcombine.low %v44_v0, %v48_v1  ;;  %v52_v6 = vld [vmem:[%s20017_s1 + $0x40] sm:$0xff]  ;;  %v12127_v8 = vcombine.high %v45_v2, %v49_v4  ;;  %v12126_v9 = vcombine.low %v45_v2, %v49_v4  ;;  %v53_v11 = vld [vmem:[%s20017_s1 + $0x48] sm:$0xff] }
   0x4   :  { %v56_v7 = vld [vmem:[%s20017_s1 + $0x60] sm:$0xff]  ;;  %v57_v12 = vld [vmem:[%s20017_s1 + $0x68] sm:$0xff] }
   0x5   :  { %v12133_v10 = vcombine.high %v52_v6, %v56_v7  ;;  %v60_v13 = vld [vmem:[%s20017_s1 + $0x80] sm:$0xff]  ;;  %3158 = vmatprep.subr.bf16.mxu0 %v12125_v3  ;;  %v12135_v14 = vcombine.high %v53_v11, %v57_v12  ;;  %v61_v16 = vld [vmem:[%s20017_s1 + $0x88] sm:$0xff]  ;;  %3322 = vmatprep.subr.bf16.mxu1 %v12127_v8  ;;  %v12132_v18 = vcombine.low %v52_v6, %v56_v7 }
   0x6   :  { %v64_v15 = vld [vmem:[%s20017_s1 + $0xa0] sm:$0xff]  ;;  %v65_v17 = vld [vmem:[%s20017_s1 + $0xa8] sm:$0xff]  ;;  %3159 = vmatpush1.bf16.msra.mxu0 %v12124_v5  ;;  %3323 = vmatpush1.bf16.msra.mxu1 %v12126_v9  ;;  %v12134_v19 = vcombine.low %v53_v11, %v57_v12 }
   0x7   :  { %3160 = vmatprep.subr.bf16.mxu0 %v12133_v10  ;;  %v12141_v20 = vcombine.high %v60_v13, %v64_v15  ;;  %3324 = vmatprep.subr.bf16.mxu1 %v12135_v14  ;;  %v12143_v21 = vcombine.high %v61_v16, %v65_v17  ;;  %v68_v22 = vld [vmem:[%s20017_s1 + $0xc0] sm:$0xff]  ;;  %v69_v24 = vld [vmem:[%s20017_s1 + $0xc8] sm:$0xff]  ;;  %v12140_v26 = vcombine.low %v60_v13, %v64_v15 }
   0x8   :  { %v72_v23 = vld [vmem:[%s20017_s1 + $0xe0] sm:$0xff]  ;;  %v73_v25 = vld [vmem:[%s20017_s1 + $0xe8] sm:$0xff]  ;;  %v12142_v27 = vcombine.low %v61_v16, %v65_v17 }
   0x9   :  { %v12149_v28 = vcombine.high %v68_v22, %v72_v23  ;;  %v12151_v29 = vcombine.high %v69_v24, %v73_v25  ;;  %v76_v30 = vld [vmem:[%s20017_s1 + $0x100] sm:$0xff]  ;;  %v77_v32 = vld [vmem:[%s20017_s1 + $0x108] sm:$0xff]  ;;  %v12148_v34 = vcombine.low %v68_v22, %v72_v23  ;;  %v12150_v35 = vcombine.low %v69_v24, %v73_v25 }
   0xa   :  { %3161 = vmatpush1.bf16.msra.mxu0 %v12132_v18  ;;  %3325 = vmatpush1.bf16.msra.mxu1 %v12134_v19  ;;  %v80_v31 = vld [vmem:[%s20017_s1 + $0x120] sm:$0xff]  ;;  %v81_v33 = vld [vmem:[%s20017_s1 + $0x128] sm:$0xff] }
   0xb   :  { %3162 = vmatprep.subr.bf16.mxu0 %v12141_v20  ;;  %3326 = vmatprep.subr.bf16.mxu1 %v12143_v21  ;;  %v12157_v36 = vcombine.high %v76_v30, %v80_v31  ;;  %v12159_v37 = vcombine.high %v77_v32, %v81_v33  ;;  %v84_v38 = vld [vmem:[%s20017_s1 + $0x140] sm:$0xff]  ;;  %v85_v40 = vld [vmem:[%s20017_s1 + $0x148] sm:$0xff]  ;;  %v12156_v42 = vcombine.low %v76_v30, %v80_v31 }
   0xc   :  { %v88_v39 = vld [vmem:[%s20017_s1 + $0x160] sm:$0xff]  ;;  %v89_v41 = vld [vmem:[%s20017_s1 + $0x168] sm:$0xff]  ;;  %v12158_v43 = vcombine.low %v77_v32, %v81_v33 }
   0xd   :  { %v12165_v44 = vcombine.high %v84_v38, %v88_v39  ;;  %v12167_v45 = vcombine.high %v85_v40, %v89_v41  ;;  %v92_v46 = vld [vmem:[%s20017_s1 + $0x180] sm:$0xff]  ;;  %v93_v48 = vld [vmem:[%s20017_s1 + $0x188] sm:$0xff]  ;;  %v12164_v50 = vcombine.low %v84_v38, %v88_v39  ;;  %v12166_v51 = vcombine.low %v85_v40, %v89_v41 }
   0xe   :  { %3163 = vmatpush1.bf16.msra.mxu0 %v12140_v26  ;;  %3327 = vmatpush1.bf16.msra.mxu1 %v12142_v27  ;;  %v96_v47 = vld [vmem:[%s20017_s1 + $0x1a0] sm:$0xff]  ;;  %v97_v49 = vld [vmem:[%s20017_s1 + $0x1a8] sm:$0xff] }
   0xf   :  { %3164 = vmatprep.subr.bf16.mxu0 %v12149_v28  ;;  %3328 = vmatprep.subr.bf16.mxu1 %v12151_v29  ;;  %v12173_v52 = vcombine.high %v92_v46, %v96_v47  ;;  %v29_v53 = vld [vmem:[%s20016_s0 + $0x8] sm:$0xff]  ;;  %v12175_v54 = vcombine.high %v93_v48, %v97_v49  ;;  %v100_v55 = vld [vmem:[%s20017_s1 + $0x1c0] sm:$0xff]  ;;  %v12172_v60 = vcombine.low %v92_v46, %v96_v47 }
  0x10   :  { %v104_v56 = vld [vmem:[%s20017_s1 + $0x1e0] sm:$0xff]  ;;  %v14992_v57 = vpack.c.bf16 %v29_v53, %v29_v53  ;;  %v101_v58 = vld [vmem:[%s20017_s1 + $0x1c8] sm:$0xff]  ;;  %v12174_v61 = vcombine.low %v93_v48, %v97_v49 }
  0x11   :  { %v105_v59 = vld [vmem:[%s20017_s1 + $0x1e8] sm:$0xff]  ;;  %v12181_v62 = vcombine.high %v100_v55, %v104_v56  ;;  %v108_v0 = vld [vmem:[%s20017_s1 + $0x200] sm:$0xff]  ;;  %v12180_v4 = vcombine.low %v100_v55, %v104_v56 }
  0x12   :  { %3165 = vmatpush1.bf16.msra.mxu0 %v12148_v34  ;;  %3329 = vmatpush1.bf16.msra.mxu1 %v12150_v35  ;;  %v12183_v63 = vcombine.high %v101_v58, %v105_v59  ;;  %v112_v1 = vld [vmem:[%s20017_s1 + $0x220] sm:$0xff]  ;;  %v109_v2 = vld [vmem:[%s20017_s1 + $0x208] sm:$0xff]  ;;  %v12182_v5 = vcombine.low %v101_v58, %v105_v59 }
  0x13   :  { %3166 = vmatprep.subr.bf16.mxu0 %v12157_v36  ;;  %3330 = vmatprep.subr.bf16.mxu1 %v12159_v37  ;;  %v113_v3 = vld [vmem:[%s20017_s1 + $0x228] sm:$0xff]  ;;  %v12189_v6 = vcombine.high %v108_v0, %v112_v1  ;;  %v116_v8 = vld [vmem:[%s20017_s1 + $0x240] sm:$0xff]  ;;  %v12188_v12 = vcombine.low %v108_v0, %v112_v1 }
  0x14   :  { %3190 = vmatprep.mubr.bf16.mxu0 %v14992_v57  ;;  %3354 = vmatprep.mubr.bf16.mxu1 %v14992_v57  ;;  %v12191_v7 = vcombine.high %v109_v2, %v113_v3  ;;  %v120_v9 = vld [vmem:[%s20017_s1 + $0x260] sm:$0xff]  ;;  %v117_v10 = vld [vmem:[%s20017_s1 + $0x248] sm:$0xff]  ;;  %v12190_v13 = vcombine.low %v109_v2, %v113_v3 }
  0x15   :  { %v121_v11 = vld [vmem:[%s20017_s1 + $0x268] sm:$0xff]  ;;  %v12197_v14 = vcombine.high %v116_v8, %v120_v9  ;;  %v124_v16 = vld [vmem:[%s20017_s1 + $0x280] sm:$0xff]  ;;  %v12196_v20 = vcombine.low %v116_v8, %v120_v9 }
  0x16   :  { %3167 = vmatpush1.bf16.msra.mxu0 %v12156_v42  ;;  %3331 = vmatpush1.bf16.msra.mxu1 %v12158_v43  ;;  %v12199_v15 = vcombine.high %v117_v10, %v121_v11  ;;  %v128_v17 = vld [vmem:[%s20017_s1 + $0x2a0] sm:$0xff]  ;;  %v125_v18 = vld [vmem:[%s20017_s1 + $0x288] sm:$0xff]  ;;  %v12198_v21 = vcombine.low %v117_v10, %v121_v11 }
  0x17   :  { %3168 = vmatprep.subr.bf16.mxu0 %v12165_v44  ;;  %3332 = vmatprep.subr.bf16.mxu1 %v12167_v45  ;;  %v129_v19 = vld [vmem:[%s20017_s1 + $0x2a8] sm:$0xff]  ;;  %v12205_v22 = vcombine.high %v124_v16, %v128_v17  ;;  %v132_v24 = vld [vmem:[%s20017_s1 + $0x2c0] sm:$0xff]  ;;  %v12204_v28 = vcombine.low %v124_v16, %v128_v17 }
  0x18   :  { %v12207_v23 = vcombine.high %v125_v18, %v129_v19  ;;  %v136_v25 = vld [vmem:[%s20017_s1 + $0x2e0] sm:$0xff]  ;;  %v133_v26 = vld [vmem:[%s20017_s1 + $0x2c8] sm:$0xff]  ;;  %v12206_v29 = vcombine.low %v125_v18, %v129_v19 }
  0x19   :  { %v137_v27 = vld [vmem:[%s20017_s1 + $0x2e8] sm:$0xff]  ;;  %v12213_v30 = vcombine.high %v132_v24, %v136_v25  ;;  %v140_v32 = vld [vmem:[%s20017_s1 + $0x300] sm:$0xff]  ;;  %v12212_v36 = vcombine.low %v132_v24, %v136_v25 }
  0x1a   :  { %3169 = vmatpush1.bf16.msra.mxu0 %v12164_v50  ;;  %3333 = vmatpush1.bf16.msra.mxu1 %v12166_v51  ;;  %v12215_v31 = vcombine.high %v133_v26, %v137_v27  ;;  %v144_v33 = vld [vmem:[%s20017_s1 + $0x320] sm:$0xff]  ;;  %v141_v34 = vld [vmem:[%s20017_s1 + $0x308] sm:$0xff]  ;;  %v12214_v37 = vcombine.low %v133_v26, %v137_v27 }
  0x1b   :  { %3170 = vmatprep.subr.bf16.mxu0 %v12173_v52  ;;  %3334 = vmatprep.subr.bf16.mxu1 %v12175_v54  ;;  %v145_v35 = vld [vmem:[%s20017_s1 + $0x328] sm:$0xff]  ;;  %v12221_v38 = vcombine.high %v140_v32, %v144_v33  ;;  %v148_v40 = vld [vmem:[%s20017_s1 + $0x340] sm:$0xff]  ;;  %v12220_v44 = vcombine.low %v140_v32, %v144_v33 }
  0x1c   :  { %v12223_v39 = vcombine.high %v141_v34, %v145_v35  ;;  %v152_v41 = vld [vmem:[%s20017_s1 + $0x360] sm:$0xff]  ;;  %v149_v42 = vld [vmem:[%s20017_s1 + $0x348] sm:$0xff]  ;;  %v12222_v45 = vcombine.low %v141_v34, %v145_v35 }
  0x1d   :  { %v153_v43 = vld [vmem:[%s20017_s1 + $0x368] sm:$0xff]  ;;  %v12229_v46 = vcombine.high %v148_v40, %v152_v41  ;;  %v156_v48 = vld [vmem:[%s20017_s1 + $0x380] sm:$0xff]  ;;  %v12228_v52 = vcombine.low %v148_v40, %v152_v41 }
  0x1e   :  { %3171 = vmatpush1.bf16.msra.mxu0 %v12172_v60  ;;  %3335 = vmatpush1.bf16.msra.mxu1 %v12174_v61  ;;  %v12231_v47 = vcombine.high %v149_v42, %v153_v43  ;;  %v160_v49 = vld [vmem:[%s20017_s1 + $0x3a0] sm:$0xff]  ;;  %v157_v50 = vld [vmem:[%s20017_s1 + $0x388] sm:$0xff]  ;;  %v12230_v53 = vcombine.low %v149_v42, %v153_v43 }
  0x1f   :  { %3172 = vmatprep.subr.bf16.mxu0 %v12181_v62  ;;  %3336 = vmatprep.subr.bf16.mxu1 %v12183_v63  ;;  %v161_v51 = vld [vmem:[%s20017_s1 + $0x3a8] sm:$0xff]  ;;  %v12237_v54 = vcombine.high %v156_v48, %v160_v49  ;;  %v164_v56 = vld [vmem:[%s20017_s1 + $0x3c0] sm:$0xff]  ;;  %v12236_v61 = vcombine.low %v156_v48, %v160_v49 }
  0x20   :  { %v12239_v55 = vcombine.high %v157_v50, %v161_v51  ;;  %v168_v58 = vld [vmem:[%s20017_s1 + $0x3e0] sm:$0xff]  ;;  %v165_v59 = vld [vmem:[%s20017_s1 + $0x3c8] sm:$0xff]  ;;  %v12238_v62 = vcombine.low %v157_v50, %v161_v51 }
  0x21   :  { %v169_v60 = vld [vmem:[%s20017_s1 + $0x3e8] sm:$0xff]  ;;  %v12245_v63 = vcombine.high %v164_v56, %v168_v58  ;;  %v172_v1 = vld [vmem:[%s20017_s1 + $0x400] sm:$0xff] }
  0x22   :  { %3173 = vmatpush1.bf16.msra.mxu0 %v12180_v4  ;;  %3337 = vmatpush1.bf16.msra.mxu1 %v12182_v5  ;;  %v12247_v0 = vcombine.high %v165_v59, %v169_v60  ;;  %v176_v2 = vld [vmem:[%s20017_s1 + $0x420] sm:$0xff]  ;;  %v173_v3 = vld [vmem:[%s20017_s1 + $0x408] sm:$0xff]  ;;  %v12244_v5 = vcombine.low %v164_v56, %v168_v58 }
  0x23   :  { %3174 = vmatprep.subr.bf16.mxu0 %v12189_v6  ;;  %3338 = vmatprep.subr.bf16.mxu1 %v12191_v7  ;;  %v177_v4 = vld [vmem:[%s20017_s1 + $0x428] sm:$0xff]  ;;  %v28_v6 = vld [vmem:[%s20016_s0] sm:$0xff]  ;;  %v12246_v7 = vcombine.low %v165_v59, %v169_v60  ;;  %v12253_v8 = vcombine.high %v172_v1, %v176_v2  ;;  %v12252_v16 = vcombine.low %v172_v1, %v176_v2 }
  0x24   :  { %v12255_v9 = vcombine.high %v173_v3, %v177_v4  ;;  %v180_v10 = vld [vmem:[%s20017_s1 + $0x440] sm:$0xff]  ;;  %v12254_v17 = vcombine.low %v173_v3, %v177_v4  ;;  %v193_v24 = vld [vmem:[%s20017_s1 + $0x4a8] sm:$0xff] }
  0x25   :  { %v184_v11 = vld [vmem:[%s20017_s1 + $0x460] sm:$0xff]  ;;  %v201_v32 = vld [vmem:[%s20017_s1 + $0x4e8] sm:$0xff] }
  0x26   :  { %3175 = vmatpush1.bf16.msra.mxu0 %v12188_v12  ;;  %3339 = vmatpush1.bf16.msra.mxu1 %v12190_v13  ;;  %v15119_v12 = vpack.c.bf16 %v28_v6, %v28_v6  ;;  %v181_v13 = vld [vmem:[%s20017_s1 + $0x448] sm:$0xff]  ;;  %v12261_v18 = vcombine.high %v180_v10, %v184_v11  ;;  %v12260_v25 = vcombine.low %v180_v10, %v184_v11  ;;  %v240_v6 = vld [vmem:[%s20017_s1 + $0x620] sm:$0xff] }
  0x27   :  { %3176 = vmatprep.subr.bf16.mxu0 %v12197_v14  ;;  %3340 = vmatprep.subr.bf16.mxu1 %v12199_v15  ;;  %v185_v14 = vld [vmem:[%s20017_s1 + $0x468] sm:$0xff]  ;;  %v31_v15 = vld [vmem:[%s20016_s0 + $0x18] sm:$0xff] }
  0x28   :  { %v12263_v19 = vcombine.high %v181_v13, %v185_v14  ;;  %v12262_v26 = vcombine.low %v181_v13, %v185_v14  ;;  %v209_v40 = vld [vmem:[%s20017_s1 + $0x528] sm:$0xff]  ;;  %v244_v14 = vld [vmem:[%s20017_s1 + $0x640] sm:$0xff] }
  0x29   :  { %v217_v48 = vld [vmem:[%s20017_s1 + $0x568] sm:$0xff] }
  0x2a   :  { %3177 = vmatpush1.bf16.msra.mxu0 %v12196_v20  ;;  %3341 = vmatpush1.bf16.msra.mxu1 %v12198_v21  ;;  %v188_v20 = vld [vmem:[%s20017_s1 + $0x480] sm:$0xff]  ;;  %v225_v56 = vld [vmem:[%s20017_s1 + $0x5a8] sm:$0xff] }
  0x2b   :  { %3178 = vmatprep.subr.bf16.mxu0 %v12205_v22  ;;  %3342 = vmatprep.subr.bf16.mxu1 %v12207_v23  ;;  %v192_v21 = vld [vmem:[%s20017_s1 + $0x4a0] sm:$0xff]  ;;  %v189_v22 = vld [vmem:[%s20017_s1 + $0x488] sm:$0xff]  ;;  %v15139_v23 = vpack.c.bf16 %v31_v15, %v31_v15 }
  0x2c   :  { %v12269_v27 = vcombine.high %v188_v20, %v192_v21  ;;  %v12268_v33 = vcombine.low %v188_v20, %v192_v21  ;;  %v12270_v34 = vcombine.low %v189_v22, %v193_v24  ;;  %v233_v1 = vld [vmem:[%s20017_s1 + $0x5e8] sm:$0xff]  ;;  %v248_v15 = vld [vmem:[%s20017_s1 + $0x660] sm:$0xff] }
  0x2d   :  { %v12325_v21 = vcombine.high %v244_v14, %v248_v15 }
  0x2e   :  { %3179 = vmatpush1.bf16.msra.mxu0 %v12204_v28  ;;  %3343 = vmatpush1.bf16.msra.mxu1 %v12206_v29  ;;  %v196_v28 = vld [vmem:[%s20017_s1 + $0x4c0] sm:$0xff] }
  0x2f   :  { %3180 = vmatprep.subr.bf16.mxu0 %v12213_v30  ;;  %3344 = vmatprep.subr.bf16.mxu1 %v12215_v31  ;;  %v200_v29 = vld [vmem:[%s20017_s1 + $0x4e0] sm:$0xff]  ;;  %v197_v30 = vld [vmem:[%s20017_s1 + $0x4c8] sm:$0xff]  ;;  %v12271_v31 = vcombine.high %v189_v22, %v193_v24 }
  0x30   :  { %v12277_v35 = vcombine.high %v196_v28, %v200_v29  ;;  %v12276_v41 = vcombine.low %v196_v28, %v200_v29  ;;  %v12278_v42 = vcombine.low %v197_v30, %v201_v32  ;;  %v252_v22 = vld [vmem:[%s20017_s1 + $0x680] sm:$0xff]  ;;  %v12324_v28 = vcombine.low %v244_v14, %v248_v15  ;;  %v30_v14 = vld [vmem:[%s20016_s0 + $0x10] sm:$0xff] }
  0x31   :  { %v256_v24 = vld [vmem:[%s20017_s1 + $0x6a0] sm:$0xff] }
  0x32   :  { %3181 = vmatpush1.bf16.msra.mxu0 %v12212_v36  ;;  %3345 = vmatpush1.bf16.msra.mxu1 %v12214_v37  ;;  %v204_v36 = vld [vmem:[%s20017_s1 + $0x500] sm:$0xff] }
  0x33   :  { %3182 = vmatprep.subr.bf16.mxu0 %v12221_v38  ;;  %3346 = vmatprep.subr.bf16.mxu1 %v12223_v39  ;;  %v208_v37 = vld [vmem:[%s20017_s1 + $0x520] sm:$0xff]  ;;  %v205_v38 = vld [vmem:[%s20017_s1 + $0x508] sm:$0xff]  ;;  %v12279_v39 = vcombine.high %v197_v30, %v201_v32  ;;  %v12333_v30 = vcombine.high %v252_v22, %v256_v24 }
  0x34   :  { %v12285_v43 = vcombine.high %v204_v36, %v208_v37  ;;  %v12284_v49 = vcombine.low %v204_v36, %v208_v37  ;;  %v12286_v50 = vcombine.low %v205_v38, %v209_v40  ;;  %v264_v32 = vld [vmem:[%s20017_s1 + $0x6e0] sm:$0xff]  ;;  %v12332_v36 = vcombine.low %v252_v22, %v256_v24  ;;  %v33_v24 = vld [vmem:[%s20016_s0 + $0x28] sm:$0xff] }
  0x36   :  { %3183 = vmatpush1.bf16.msra.mxu0 %v12220_v44  ;;  %3347 = vmatpush1.bf16.msra.mxu1 %v12222_v45  ;;  %v212_v44 = vld [vmem:[%s20017_s1 + $0x540] sm:$0xff] }
  0x37   :  { %3184 = vmatprep.subr.bf16.mxu0 %v12229_v46  ;;  %3348 = vmatprep.subr.bf16.mxu1 %v12231_v47  ;;  %v216_v45 = vld [vmem:[%s20017_s1 + $0x560] sm:$0xff]  ;;  %v213_v46 = vld [vmem:[%s20017_s1 + $0x548] sm:$0xff]  ;;  %v12287_v47 = vcombine.high %v205_v38, %v209_v40 }
  0x38   :  { %v12293_v51 = vcombine.high %v212_v44, %v216_v45  ;;  %v12292_v58 = vcombine.low %v212_v44, %v216_v45  ;;  %v12294_v59 = vcombine.low %v213_v46, %v217_v48  ;;  %v272_v40 = vld [vmem:[%s20017_s1 + $0x720] sm:$0xff] }
  0x3a   :  { %3185 = vmatpush1.bf16.msra.mxu0 %v12228_v52  ;;  %3349 = vmatpush1.bf16.msra.mxu1 %v12230_v53  ;;  %v220_v52 = vld [vmem:[%s20017_s1 + $0x580] sm:$0xff] }
  0x3b   :  { %3186 = vmatprep.subr.bf16.mxu0 %v12237_v54  ;;  %3350 = vmatprep.subr.bf16.mxu1 %v12239_v55  ;;  %v224_v53 = vld [vmem:[%s20017_s1 + $0x5a0] sm:$0xff]  ;;  %v221_v54 = vld [vmem:[%s20017_s1 + $0x588] sm:$0xff]  ;;  %v12295_v55 = vcombine.high %v213_v46, %v217_v48 }
  0x3c   :  { %v12301_v60 = vcombine.high %v220_v52, %v224_v53  ;;  %v12300_v2 = vcombine.low %v220_v52, %v224_v53  ;;  %v12302_v3 = vcombine.low %v221_v54, %v225_v56  ;;  %v280_v48 = vld [vmem:[%s20017_s1 + $0x760] sm:$0xff] }
  0x3e   :  { %3187 = vmatpush1.bf16.msra.mxu0 %v12236_v61  ;;  %3351 = vmatpush1.bf16.msra.mxu1 %v12238_v62  ;;  %v228_v61 = vld [vmem:[%s20017_s1 + $0x5c0] sm:$0xff] }
  0x3f   :  { %3188 = vmatprep.subr.bf16.mxu0 %v12245_v63  ;;  %3352 = vmatprep.subr.bf16.mxu1 %v12247_v0  ;;  %v232_v62 = vld [vmem:[%s20017_s1 + $0x5e0] sm:$0xff]  ;;  %v229_v63 = vld [vmem:[%s20017_s1 + $0x5c8] sm:$0xff]  ;;  %v12303_v0 = vcombine.high %v221_v54, %v225_v56 }
  0x40   :  { %v12309_v4 = vcombine.high %v228_v61, %v232_v62  ;;  %v12308_v10 = vcombine.low %v228_v61, %v232_v62  ;;  %v12310_v11 = vcombine.low %v229_v63, %v233_v1  ;;  %v288_v56 = vld [vmem:[%s20017_s1 + $0x7a0] sm:$0xff] }
  0x42   :  { %3189 = vmatpush1.bf16.msra.mxu0 %v12244_v5  ;;  %3353 = vmatpush1.bf16.msra.mxu1 %v12246_v7  ;;  %v236_v5 = vld [vmem:[%s20017_s1 + $0x600] sm:$0xff]  ;;  %v237_v7 = vld [vmem:[%s20017_s1 + $0x608] sm:$0xff] }
  0x43   :  { %3199 = vmatprep.subr.bf16.mxu0 %v12253_v8  ;;  %3363 = vmatprep.subr.bf16.mxu1 %v12255_v9  ;;  %v12311_v8 = vcombine.high %v229_v63, %v233_v1  ;;  %v241_v9 = vld [vmem:[%s20017_s1 + $0x628] sm:$0xff]  ;;  %v12317_v13 = vcombine.high %v236_v5, %v240_v6  ;;  %v296_v1 = vld [vmem:[%s20017_s1 + $0x7e0] sm:$0xff] }
  0x44   :  { %v12318_v20 = vcombine.low %v237_v7, %v241_v9 }
  0x45   :  { %3191 = vmatmul.mubr.bf16.vlgmr.msra.gmra.mrb[0].mxu0 %v15119_v12  ;;  %3355 = vmatmul.mubr.bf16.vlgmr.msra.gmra.mrb[0].mxu1 %v15119_v12 }
  0x46   :  { %3200 = vmatpush1.bf16.msra.mxu0 %v12252_v16  ;;  %3364 = vmatpush1.bf16.msra.mxu1 %v12254_v17  ;;  %v245_v16 = vld [vmem:[%s20017_s1 + $0x648] sm:$0xff]  ;;  %v12319_v17 = vcombine.high %v237_v7, %v241_v9  ;;  %v304_v9 = vld [vmem:[%s20017_s1 + $0x820] sm:$0xff] }
  0x47   :  { %3201 = vmatprep.subr.bf16.mxu0 %v12261_v18  ;;  %3365 = vmatprep.subr.bf16.mxu1 %v12263_v19  ;;  %v249_v18 = vld [vmem:[%s20017_s1 + $0x668] sm:$0xff]  ;;  %v12316_v19 = vcombine.low %v236_v5, %v240_v6  ;;  %v300_v6 = vld [vmem:[%s20017_s1 + $0x800] sm:$0xff] }
  0x48   :  { %3231 = vmatprep.mubr.bf16.mxu0 %v15139_v23  ;;  %3395 = vmatprep.mubr.bf16.mxu1 %v15139_v23  ;;  %v12326_v29 = vcombine.low %v245_v16, %v249_v18 }
  0x4a   :  { %3202 = vmatpush1.bf16.msra.mxu0 %v12260_v25  ;;  %3366 = vmatpush1.bf16.msra.mxu1 %v12262_v26  ;;  %v253_v25 = vld [vmem:[%s20017_s1 + $0x688] sm:$0xff]  ;;  %v12327_v26 = vcombine.high %v245_v16, %v249_v18  ;;  %v308_v16 = vld [vmem:[%s20017_s1 + $0x840] sm:$0xff]  ;;  %v12381_v18 = vcombine.high %v300_v6, %v304_v9 }
  0x4b   :  { %3203 = vmatprep.subr.bf16.mxu0 %v12269_v27  ;;  %3367 = vmatprep.subr.bf16.mxu1 %v12271_v31  ;;  %v257_v27 = vld [vmem:[%s20017_s1 + $0x6a8] sm:$0xff]  ;;  %v260_v31 = vld [vmem:[%s20017_s1 + $0x6c0] sm:$0xff] }
  0x4c   :  { %v12334_v37 = vcombine.low %v253_v25, %v257_v27  ;;  %v12341_v38 = vcombine.high %v260_v31, %v264_v32  ;;  %v12340_v44 = vcombine.low %v260_v31, %v264_v32  ;;  %v317_v32 = vld [vmem:[%s20017_s1 + $0x888] sm:$0xff] }
  0x4e   :  { %3204 = vmatpush1.bf16.msra.mxu0 %v12268_v33  ;;  %3368 = vmatpush1.bf16.msra.mxu1 %v12270_v34  ;;  %v261_v33 = vld [vmem:[%s20017_s1 + $0x6c8] sm:$0xff]  ;;  %v12335_v34 = vcombine.high %v253_v25, %v257_v27  ;;  %v15334_v25 = vpack.c.bf16 %v30_v14, %v30_v14 }
  0x4f   :  { %3205 = vmatprep.subr.bf16.mxu0 %v12277_v35  ;;  %3369 = vmatprep.subr.bf16.mxu1 %v12279_v39  ;;  %v265_v35 = vld [vmem:[%s20017_s1 + $0x6e8] sm:$0xff]  ;;  %v268_v39 = vld [vmem:[%s20017_s1 + $0x700] sm:$0xff] }
  0x50   :  { %v12342_v45 = vcombine.low %v261_v33, %v265_v35  ;;  %v12349_v46 = vcombine.high %v268_v39, %v272_v40  ;;  %v12348_v52 = vcombine.low %v268_v39, %v272_v40  ;;  %v328_v39 = vld [vmem:[%s20017_s1 + $0x8e0] sm:$0xff]  ;;  %v325_v40 = vld [vmem:[%s20017_s1 + $0x8c8] sm:$0xff] }
  0x52   :  { %3206 = vmatpush1.bf16.msra.mxu0 %v12276_v41  ;;  %3370 = vmatpush1.bf16.msra.mxu1 %v12278_v42  ;;  %v269_v41 = vld [vmem:[%s20017_s1 + $0x708] sm:$0xff]  ;;  %v12343_v42 = vcombine.high %v261_v33, %v265_v35 }
  0x53   :  { %3207 = vmatprep.subr.bf16.mxu0 %v12285_v43  ;;  %3371 = vmatprep.subr.bf16.mxu1 %v12287_v47  ;;  %v273_v43 = vld [vmem:[%s20017_s1 + $0x728] sm:$0xff]  ;;  %v276_v47 = vld [vmem:[%s20017_s1 + $0x740] sm:$0xff] }
  0x54   :  { %v12350_v53 = vcombine.low %v269_v41, %v273_v43  ;;  %v12357_v54 = vcombine.high %v276_v47, %v280_v48  ;;  %v12356_v61 = vcombine.low %v276_v47, %v280_v48  ;;  %v321_v33 = vld [vmem:[%s20017_s1 + $0x8a8] sm:$0xff]  ;;  %v336_v47 = vld [vmem:[%s20017_s1 + $0x920] sm:$0xff] }
  0x55   :  { %v333_v48 = vld [vmem:[%s20017_s1 + $0x908] sm:$0xff] }
  0x56   :  { %3208 = vmatpush1.bf16.msra.mxu0 %v12284_v49  ;;  %3372 = vmatpush1.bf16.msra.mxu1 %v12286_v50  ;;  %v277_v49 = vld [vmem:[%s20017_s1 + $0x748] sm:$0xff]  ;;  %v12351_v50 = vcombine.high %v269_v41, %v273_v43  ;;  %v12399_v41 = vcombine.high %v317_v32, %v321_v33 }
  0x57   :  { %3209 = vmatprep.subr.bf16.mxu0 %v12293_v51  ;;  %3373 = vmatprep.subr.bf16.mxu1 %v12295_v55  ;;  %v281_v51 = vld [vmem:[%s20017_s1 + $0x768] sm:$0xff]  ;;  %v284_v55 = vld [vmem:[%s20017_s1 + $0x780] sm:$0xff] }
  0x58   :  { %v12358_v62 = vcombine.low %v277_v49, %v281_v51  ;;  %v12365_v63 = vcombine.high %v284_v55, %v288_v56  ;;  %v12364_v5 = vcombine.low %v284_v55, %v288_v56  ;;  %v344_v55 = vld [vmem:[%s20017_s1 + $0x960] sm:$0xff]  ;;  %v341_v56 = vld [vmem:[%s20017_s1 + $0x948] sm:$0xff] }
  0x5a   :  { %3210 = vmatpush1.bf16.msra.mxu0 %v12292_v58  ;;  %3374 = vmatpush1.bf16.msra.mxu1 %v12294_v59  ;;  %v285_v58 = vld [vmem:[%s20017_s1 + $0x788] sm:$0xff]  ;;  %v12359_v59 = vcombine.high %v277_v49, %v281_v51 }
  0x5b   :  { %3211 = vmatprep.subr.bf16.mxu0 %v12301_v60  ;;  %3375 = vmatprep.subr.bf16.mxu1 %v12303_v0  ;;  %v289_v60 = vld [vmem:[%s20017_s1 + $0x7a8] sm:$0xff]  ;;  %v292_v0 = vld [vmem:[%s20017_s1 + $0x7c0] sm:$0xff] }
  0x5c   :  { %v12366_v7 = vcombine.low %v285_v58, %v289_v60  ;;  %v12372_v15 = vcombine.low %v292_v0, %v296_v1 }
  0x5e   :  { %3212 = vmatpush1.bf16.msra.mxu0 %v12300_v2  ;;  %3376 = vmatpush1.bf16.msra.mxu1 %v12302_v3  ;;  %v293_v2 = vld [vmem:[%s20017_s1 + $0x7c8] sm:$0xff]  ;;  %v12367_v3 = vcombine.high %v285_v58, %v289_v60 }
  0x5f   :  { %3213 = vmatprep.subr.bf16.mxu0 %v12309_v4  ;;  %3377 = vmatprep.subr.bf16.mxu1 %v12311_v8  ;;  %v297_v4 = vld [vmem:[%s20017_s1 + $0x7e8] sm:$0xff]  ;;  %v12373_v8 = vcombine.high %v292_v0, %v296_v1  ;;  %v352_v0 = vld [vmem:[%s20017_s1 + $0x9a0] sm:$0xff] }
  0x60   :  { %v349_v1 = vld [vmem:[%s20017_s1 + $0x988] sm:$0xff] }
  0x62   :  { %3214 = vmatpush1.bf16.msra.mxu0 %v12308_v10  ;;  %3378 = vmatpush1.bf16.msra.mxu1 %v12310_v11  ;;  %v301_v10 = vld [vmem:[%s20017_s1 + $0x808] sm:$0xff] }
  0x63   :  { %3215 = vmatprep.subr.bf16.mxu0 %v12317_v13  ;;  %3379 = vmatprep.subr.bf16.mxu1 %v12319_v17  ;;  %v305_v11 = vld [vmem:[%s20017_s1 + $0x828] sm:$0xff]  ;;  %v12375_v13 = vcombine.high %v293_v2, %v297_v4  ;;  %v12374_v17 = vcombine.low %v293_v2, %v297_v4 }
  0x64   :  { %v12383_v22 = vcombine.high %v301_v10, %v305_v11  ;;  %v12382_v27 = vcombine.low %v301_v10, %v305_v11  ;;  %v361_v11 = vld [vmem:[%s20017_s1 + $0x9e8] sm:$0xff] }
  0x66   :  { %3216 = vmatpush1.bf16.msra.mxu0 %v12316_v19  ;;  %3380 = vmatpush1.bf16.msra.mxu1 %v12318_v20  ;;  %v312_v19 = vld [vmem:[%s20017_s1 + $0x860] sm:$0xff]  ;;  %v309_v20 = vld [vmem:[%s20017_s1 + $0x848] sm:$0xff] }
  0x67   :  { %3217 = vmatprep.subr.bf16.mxu0 %v12325_v21  ;;  %3381 = vmatprep.subr.bf16.mxu1 %v12327_v26  ;;  %v313_v21 = vld [vmem:[%s20017_s1 + $0x868] sm:$0xff]  ;;  %v12380_v26 = vcombine.low %v300_v6, %v304_v9  ;;  %v12388_v35 = vcombine.low %v308_v16, %v312_v19 }
  0x68   :  { %v12391_v31 = vcombine.high %v309_v20, %v313_v21  ;;  %v357_v9 = vld [vmem:[%s20017_s1 + $0x9c8] sm:$0xff] }
  0x6a   :  { %3218 = vmatpush1.bf16.msra.mxu0 %v12324_v28  ;;  %3382 = vmatpush1.bf16.msra.mxu1 %v12326_v29  ;;  %v12389_v28 = vcombine.high %v308_v16, %v312_v19  ;;  %v316_v29 = vld [vmem:[%s20017_s1 + $0x880] sm:$0xff]  ;;  %v12439_v19 = vcombine.high %v357_v9, %v361_v11 }
  0x6b   :  { %3219 = vmatprep.subr.bf16.mxu0 %v12333_v30  ;;  %3383 = vmatprep.subr.bf16.mxu1 %v12335_v34  ;;  %v320_v30 = vld [vmem:[%s20017_s1 + $0x8a0] sm:$0xff]  ;;  %v15348_v34 = vpack.c.bf16 %v33_v24, %v33_v24 }
  0x6c   :  { %v12396_v43 = vcombine.low %v316_v29, %v320_v30  ;;  %v364_v16 = vld [vmem:[%s20017_s1 + $0xa00] sm:$0xff] }
  0x6e   :  { %3220 = vmatpush1.bf16.msra.mxu0 %v12332_v36  ;;  %3384 = vmatpush1.bf16.msra.mxu1 %v12334_v37  ;;  %v12390_v36 = vcombine.low %v309_v20, %v313_v21  ;;  %v12397_v37 = vcombine.high %v316_v29, %v320_v30  ;;  %v369_v20 = vld [vmem:[%s20017_s1 + $0xa28] sm:$0xff] }
  0x6f   :  { %3221 = vmatprep.subr.bf16.mxu0 %v12341_v38  ;;  %3385 = vmatprep.subr.bf16.mxu1 %v12343_v42  ;;  %v324_v38 = vld [vmem:[%s20017_s1 + $0x8c0] sm:$0xff]  ;;  %v329_v42 = vld [vmem:[%s20017_s1 + $0x8e8] sm:$0xff] }
  0x70   :  { %v12407_v49 = vcombine.high %v325_v40, %v329_v42  ;;  %v12404_v51 = vcombine.low %v324_v38, %v328_v39  ;;  %v377_v30 = vld [vmem:[%s20017_s1 + $0xa68] sm:$0xff] }
  0x72   :  { %3222 = vmatpush1.bf16.msra.mxu0 %v12340_v44  ;;  %3386 = vmatpush1.bf16.msra.mxu1 %v12342_v45  ;;  %v12398_v44 = vcombine.low %v317_v32, %v321_v33  ;;  %v12405_v45 = vcombine.high %v324_v38, %v328_v39  ;;  %v385_v39 = vld [vmem:[%s20017_s1 + $0xaa8] sm:$0xff] }
  0x73   :  { %3223 = vmatprep.subr.bf16.mxu0 %v12349_v46  ;;  %3387 = vmatprep.subr.bf16.mxu1 %v12351_v50  ;;  %v332_v46 = vld [vmem:[%s20017_s1 + $0x900] sm:$0xff]  ;;  %v337_v50 = vld [vmem:[%s20017_s1 + $0x928] sm:$0xff] }
  0x74   :  { %v12415_v58 = vcombine.high %v333_v48, %v337_v50  ;;  %v12412_v60 = vcombine.low %v332_v46, %v336_v47 }
  0x76   :  { %3224 = vmatpush1.bf16.msra.mxu0 %v12348_v52  ;;  %3388 = vmatpush1.bf16.msra.mxu1 %v12350_v53  ;;  %v12406_v52 = vcombine.low %v325_v40, %v329_v42  ;;  %v12413_v53 = vcombine.high %v332_v46, %v336_v47  ;;  %v393_v47 = vld [vmem:[%s20017_s1 + $0xae8] sm:$0xff] }
  0x77   :  { %3225 = vmatprep.subr.bf16.mxu0 %v12357_v54  ;;  %3389 = vmatprep.subr.bf16.mxu1 %v12359_v59  ;;  %v340_v54 = vld [vmem:[%s20017_s1 + $0x940] sm:$0xff]  ;;  %v345_v59 = vld [vmem:[%s20017_s1 + $0x968] sm:$0xff] }
  0x78   :  { %v12423_v2 = vcombine.high %v341_v56, %v345_v59  ;;  %v12420_v4 = vcombine.low %v340_v54, %v344_v55 }
  0x7a   :  { %3226 = vmatpush1.bf16.msra.mxu0 %v12356_v61  ;;  %3390 = vmatpush1.bf16.msra.mxu1 %v12358_v62  ;;  %v12414_v61 = vcombine.low %v333_v48, %v337_v50  ;;  %v12421_v62 = vcombine.high %v340_v54, %v344_v55  ;;  %v401_v55 = vld [vmem:[%s20017_s1 + $0xb28] sm:$0xff] }
  0x7b   :  { %3227 = vmatprep.subr.bf16.mxu0 %v12365_v63  ;;  %3391 = vmatprep.subr.bf16.mxu1 %v12367_v3  ;;  %v348_v63 = vld [vmem:[%s20017_s1 + $0x980] sm:$0xff]  ;;  %v353_v3 = vld [vmem:[%s20017_s1 + $0x9a8] sm:$0xff] }
  0x7c   :  { %v12429_v6 = vcombine.high %v348_v63, %v352_v0  ;;  %v12431_v10 = vcombine.high %v349_v1, %v353_v3  ;;  %v12430_v14 = vcombine.low %v349_v1, %v353_v3 }
  0x7e   :  { %3228 = vmatpush1.bf16.msra.mxu0 %v12364_v5  ;;  %3392 = vmatpush1.bf16.msra.mxu1 %v12366_v7  ;;  %v12422_v5 = vcombine.low %v341_v56, %v345_v59  ;;  %v356_v7 = vld [vmem:[%s20017_s1 + $0x9c0] sm:$0xff] }
  0x7f   :  { %3229 = vmatprep.subr.bf16.mxu0 %v12373_v8  ;;  %3393 = vmatprep.subr.bf16.mxu1 %v12375_v13  ;;  %v360_v8 = vld [vmem:[%s20017_s1 + $0x9e0] sm:$0xff]  ;;  %v12428_v13 = vcombine.low %v348_v63, %v352_v0  ;;  %v409_v0 = vld [vmem:[%s20017_s1 + $0xb68] sm:$0xff] }
  0x80   :  { %v12436_v21 = vcombine.low %v356_v7, %v360_v8 }
  0x82   :  { %3230 = vmatpush1.bf16.msra.mxu0 %v12372_v15  ;;  %3394 = vmatpush1.bf16.msra.mxu1 %v12374_v17  ;;  %v12437_v15 = vcombine.high %v356_v7, %v360_v8  ;;  %v368_v17 = vld [vmem:[%s20017_s1 + $0xa20] sm:$0xff]  ;;  %v417_v8 = vld [vmem:[%s20017_s1 + $0xba8] sm:$0xff] }
  0x83   :  { %3240 = vmatprep.subr.bf16.mxu0 %v12381_v18  ;;  %3404 = vmatprep.subr.bf16.mxu1 %v12383_v22  ;;  %v365_v18 = vld [vmem:[%s20017_s1 + $0xa08] sm:$0xff]  ;;  %v12438_v22 = vcombine.low %v357_v9, %v361_v11  ;;  %v12445_v24 = vcombine.high %v364_v16, %v368_v17 }
  0x84   :  { %v12447_v29 = vcombine.high %v365_v18, %v369_v20  ;;  %v12446_v32 = vcombine.low %v365_v18, %v369_v20 }
  0x85   :  { %3232 = vmatmul.mubr.bf16.vlgmr.msra.gmra.mrb[0].mxu0 %v15334_v25  ;;  %3396 = vmatmul.mubr.bf16.vlgmr.msra.gmra.mrb[0].mxu1 %v15334_v25 }
  0x86   :  { %3241 = vmatpush1.bf16.msra.mxu0 %v12380_v26  ;;  %3405 = vmatpush1.bf16.msra.mxu1 %v12382_v27  ;;  %v372_v26 = vld [vmem:[%s20017_s1 + $0xa40] sm:$0xff] }
  0x87   :  { %3242 = vmatprep.subr.bf16.mxu0 %v12389_v28  ;;  %3406 = vmatprep.subr.bf16.mxu1 %v12391_v31  ;;  %v376_v27 = vld [vmem:[%s20017_s1 + $0xa60] sm:$0xff]  ;;  %v373_v28 = vld [vmem:[%s20017_s1 + $0xa48] sm:$0xff]  ;;  %v12444_v31 = vcombine.low %v364_v16, %v368_v17 }
  0x88   :  { %3272 = vmatprep.mubr.bf16.mxu0 %v15348_v34  ;;  %3436 = vmatprep.mubr.bf16.mxu1 %v15348_v34  ;;  %v12453_v33 = vcombine.high %v372_v26, %v376_v27  ;;  %v12455_v38 = vcombine.high %v373_v28, %v377_v30  ;;  %v12452_v40 = vcombine.low %v372_v26, %v376_v27  ;;  %v425_v17 = vld [vmem:[%s20017_s1 + $0xbe8] sm:$0xff] }
  0x89   :  { %v433_v26 = vld [vmem:[%s20017_s1 + $0xc28] sm:$0xff] }
  0x8a   :  { %3243 = vmatpush1.bf16.msra.mxu0 %v12388_v35  ;;  %3407 = vmatpush1.bf16.msra.mxu1 %v12390_v36  ;;  %v380_v35 = vld [vmem:[%s20017_s1 + $0xa80] sm:$0xff] }
  0x8b   :  { %3244 = vmatprep.subr.bf16.mxu0 %v12397_v37  ;;  %3408 = vmatprep.subr.bf16.mxu1 %v12399_v41  ;;  %v384_v36 = vld [vmem:[%s20017_s1 + $0xaa0] sm:$0xff]  ;;  %v381_v37 = vld [vmem:[%s20017_s1 + $0xa88] sm:$0xff]  ;;  %v12454_v41 = vcombine.low %v373_v28, %v377_v30 }
  0x8c   :  { %v12461_v42 = vcombine.high %v380_v35, %v384_v36  ;;  %v12463_v46 = vcombine.high %v381_v37, %v385_v39  ;;  %v12460_v48 = vcombine.low %v380_v35, %v384_v36  ;;  %v32_v28 = vld [vmem:[%s20016_s0 + $0x20] sm:$0xff]  ;;  %v437_v35 = vld [vmem:[%s20017_s1 + $0xc48] sm:$0xff] }
  0x8d   :  { %v436_v30 = vld [vmem:[%s20017_s1 + $0xc40] sm:$0xff]  ;;  %v441_v36 = vld [vmem:[%s20017_s1 + $0xc68] sm:$0xff] }
  0x8e   :  { %3245 = vmatpush1.bf16.msra.mxu0 %v12396_v43  ;;  %3409 = vmatpush1.bf16.msra.mxu1 %v12398_v44  ;;  %v388_v43 = vld [vmem:[%s20017_s1 + $0xac0] sm:$0xff] }
  0x8f   :  { %3246 = vmatprep.subr.bf16.mxu0 %v12405_v45  ;;  %3410 = vmatprep.subr.bf16.mxu1 %v12407_v49  ;;  %v392_v44 = vld [vmem:[%s20017_s1 + $0xae0] sm:$0xff]  ;;  %v389_v45 = vld [vmem:[%s20017_s1 + $0xac8] sm:$0xff]  ;;  %v12462_v49 = vcombine.low %v381_v37, %v385_v39  ;;  %v15540_v39 = vpack.c.bf16 %v32_v28, %v32_v28 }
  0x90   :  { %v12469_v50 = vcombine.high %v388_v43, %v392_v44  ;;  %v12471_v54 = vcombine.high %v389_v45, %v393_v47  ;;  %v12468_v56 = vcombine.low %v388_v43, %v392_v44  ;;  %v444_v43 = vld [vmem:[%s20017_s1 + $0xc80] sm:$0xff]  ;;  %v489_v28 = vld [vmem:[%s20017_s1 + $0xde8] sm:$0xff] }
  0x91   :  { %v448_v44 = vld [vmem:[%s20017_s1 + $0xca0] sm:$0xff] }
  0x92   :  { %3247 = vmatpush1.bf16.msra.mxu0 %v12404_v51  ;;  %3411 = vmatpush1.bf16.msra.mxu1 %v12406_v52  ;;  %v396_v51 = vld [vmem:[%s20017_s1 + $0xb00] sm:$0xff] }
  0x93   :  { %3248 = vmatprep.subr.bf16.mxu0 %v12413_v53  ;;  %3412 = vmatprep.subr.bf16.mxu1 %v12415_v58  ;;  %v400_v52 = vld [vmem:[%s20017_s1 + $0xb20] sm:$0xff]  ;;  %v397_v53 = vld [vmem:[%s20017_s1 + $0xb08] sm:$0xff]  ;;  %v12470_v58 = vcombine.low %v389_v45, %v393_v47 }
  0x94   :  { %v12477_v59 = vcombine.high %v396_v51, %v400_v52  ;;  %v12479_v63 = vcombine.high %v397_v53, %v401_v55  ;;  %v12476_v1 = vcombine.low %v396_v51, %v400_v52  ;;  %v445_v45 = vld [vmem:[%s20017_s1 + $0xc88] sm:$0xff]  ;;  %v12525_v51 = vcombine.high %v444_v43, %v448_v44  ;;  %v452_v52 = vld [vmem:[%s20017_s1 + $0xcc0] sm:$0xff] }
  0x95   :  { %v449_v47 = vld [vmem:[%s20017_s1 + $0xca8] sm:$0xff] }
  0x96   :  { %3249 = vmatpush1.bf16.msra.mxu0 %v12412_v60  ;;  %3413 = vmatpush1.bf16.msra.mxu1 %v12414_v61  ;;  %v404_v60 = vld [vmem:[%s20017_s1 + $0xb40] sm:$0xff] }
  0x97   :  { %3250 = vmatprep.subr.bf16.mxu0 %v12421_v62  ;;  %3414 = vmatprep.subr.bf16.mxu1 %v12423_v2  ;;  %v408_v61 = vld [vmem:[%s20017_s1 + $0xb60] sm:$0xff]  ;;  %v405_v62 = vld [vmem:[%s20017_s1 + $0xb48] sm:$0xff]  ;;  %v12478_v2 = vcombine.low %v397_v53, %v401_v55  ;;  %v12527_v55 = vcombine.high %v445_v45, %v449_v47 }
  0x98   :  { %v12485_v3 = vcombine.high %v404_v60, %v408_v61  ;;  %v12487_v7 = vcombine.high %v405_v62, %v409_v0  ;;  %v12484_v9 = vcombine.low %v404_v60, %v408_v61  ;;  %v456_v53 = vld [vmem:[%s20017_s1 + $0xce0] sm:$0xff] }
  0x99   :  { %v12533_v60 = vcombine.high %v452_v52, %v456_v53  ;;  %v460_v61 = vld [vmem:[%s20017_s1 + $0xd00] sm:$0xff] }
  0x9a   :  { %3251 = vmatpush1.bf16.msra.mxu0 %v12420_v4  ;;  %3415 = vmatpush1.bf16.msra.mxu1 %v12422_v5  ;;  %v412_v4 = vld [vmem:[%s20017_s1 + $0xb80] sm:$0xff] }
  0x9b   :  { %3252 = vmatprep.subr.bf16.mxu0 %v12429_v6  ;;  %3416 = vmatprep.subr.bf16.mxu1 %v12431_v10  ;;  %v416_v5 = vld [vmem:[%s20017_s1 + $0xba0] sm:$0xff]  ;;  %v413_v6 = vld [vmem:[%s20017_s1 + $0xb88] sm:$0xff]  ;;  %v12486_v10 = vcombine.low %v405_v62, %v409_v0 }
  0x9c   :  { %v12493_v11 = vcombine.high %v412_v4, %v416_v5  ;;  %v12495_v16 = vcombine.high %v413_v6, %v417_v8  ;;  %v12492_v18 = vcombine.low %v412_v4, %v416_v5  ;;  %v12494_v20 = vcombine.low %v413_v6, %v417_v8  ;;  %v464_v62 = vld [vmem:[%s20017_s1 + $0xd20] sm:$0xff] }
  0x9d   :  { %v12541_v4 = vcombine.high %v460_v61, %v464_v62  ;;  %v468_v5 = vld [vmem:[%s20017_s1 + $0xd40] sm:$0xff] }
  0x9e   :  { %3253 = vmatpush1.bf16.msra.mxu0 %v12428_v13  ;;  %3417 = vmatpush1.bf16.msra.mxu1 %v12430_v14  ;;  %v420_v13 = vld [vmem:[%s20017_s1 + $0xbc0] sm:$0xff] }
  0x9f   :  { %3254 = vmatprep.subr.bf16.mxu0 %v12437_v15  ;;  %3418 = vmatprep.subr.bf16.mxu1 %v12439_v19  ;;  %v424_v14 = vld [vmem:[%s20017_s1 + $0xbe0] sm:$0xff]  ;;  %v421_v15 = vld [vmem:[%s20017_s1 + $0xbc8] sm:$0xff] }
  0xa0   :  { %v428_v19 = vld [vmem:[%s20017_s1 + $0xc00] sm:$0xff]  ;;  %v12503_v27 = vcombine.high %v421_v15, %v425_v17 }
  0xa1   :  { %v472_v6 = vld [vmem:[%s20017_s1 + $0xd60] sm:$0xff] }
  0xa2   :  { %3255 = vmatpush1.bf16.msra.mxu0 %v12436_v21  ;;  %3419 = vmatpush1.bf16.msra.mxu1 %v12438_v22  ;;  %v12501_v21 = vcombine.high %v420_v13, %v424_v14  ;;  %v432_v22 = vld [vmem:[%s20017_s1 + $0xc20] sm:$0xff] }
  0xa3   :  { %3256 = vmatprep.subr.bf16.mxu0 %v12445_v24  ;;  %3420 = vmatprep.subr.bf16.mxu1 %v12447_v29  ;;  %v429_v24 = vld [vmem:[%s20017_s1 + $0xc08] sm:$0xff]  ;;  %v12500_v29 = vcombine.low %v420_v13, %v424_v14  ;;  %v12549_v13 = vcombine.high %v468_v5, %v472_v6  ;;  %v476_v14 = vld [vmem:[%s20017_s1 + $0xd80] sm:$0xff] }
  0xa4   :  { %v12511_v37 = vcombine.high %v429_v24, %v433_v26 }
  0xa6   :  { %3257 = vmatpush1.bf16.msra.mxu0 %v12444_v31  ;;  %3421 = vmatpush1.bf16.msra.mxu1 %v12446_v32  ;;  %v12502_v31 = vcombine.low %v421_v15, %v425_v17  ;;  %v12509_v32 = vcombine.high %v428_v19, %v432_v22  ;;  %v480_v15 = vld [vmem:[%s20017_s1 + $0xda0] sm:$0xff] }
  0xa7   :  { %3258 = vmatprep.subr.bf16.mxu0 %v12453_v33  ;;  %3422 = vmatprep.subr.bf16.mxu1 %v12455_v38  ;;  %v440_v33 = vld [vmem:[%s20017_s1 + $0xc60] sm:$0xff]  ;;  %v35_v38 = vld [vmem:[%s20016_s0 + $0x38] sm:$0xff] }
  0xaa   :  { %3259 = vmatpush1.bf16.msra.mxu0 %v12452_v40  ;;  %3423 = vmatpush1.bf16.msra.mxu1 %v12454_v41  ;;  %v12508_v40 = vcombine.low %v428_v19, %v432_v22  ;;  %v12510_v41 = vcombine.low %v429_v24, %v433_v26  ;;  %v12548_v19 = vcombine.low %v468_v5, %v472_v6  ;;  %v484_v22 = vld [vmem:[%s20017_s1 + $0xdc0] sm:$0xff]  ;;  %v485_v26 = vld [vmem:[%s20017_s1 + $0xdc8] sm:$0xff] }
  0xab   :  { %3260 = vmatprep.subr.bf16.mxu0 %v12461_v42  ;;  %3424 = vmatprep.subr.bf16.mxu1 %v12463_v46  ;;  %v12517_v42 = vcombine.high %v436_v30, %v440_v33  ;;  %v12519_v46 = vcombine.high %v437_v35, %v441_v36  ;;  %v488_v24 = vld [vmem:[%s20017_s1 + $0xde0] sm:$0xff]  ;;  %v525_v6 = vld [vmem:[%s20017_s1 + $0xf08] sm:$0xff] }
  0xac   :  { %v528_v5 = vld [vmem:[%s20017_s1 + $0xf20] sm:$0xff] }
  0xae   :  { %3261 = vmatpush1.bf16.msra.mxu0 %v12460_v48  ;;  %3425 = vmatpush1.bf16.msra.mxu1 %v12462_v49  ;;  %v15554_v48 = vpack.c.bf16 %v35_v38, %v35_v38  ;;  %v12516_v49 = vcombine.low %v436_v30, %v440_v33  ;;  %v496_v33 = vld [vmem:[%s20017_s1 + $0xe20] sm:$0xff]  ;;  %v12564_v38 = vcombine.low %v484_v22, %v488_v24 }
  0xaf   :  { %3262 = vmatprep.subr.bf16.mxu0 %v12469_v50  ;;  %3426 = vmatprep.subr.bf16.mxu1 %v12471_v54  ;;  %v12518_v50 = vcombine.low %v437_v35, %v441_v36  ;;  %v453_v54 = vld [vmem:[%s20017_s1 + $0xcc8] sm:$0xff]  ;;  %v12567_v36 = vcombine.high %v485_v26, %v489_v28 }
  0xb0   :  { %v493_v35 = vld [vmem:[%s20017_s1 + $0xe08] sm:$0xff] }
  0xb2   :  { %3263 = vmatpush1.bf16.msra.mxu0 %v12468_v56  ;;  %3427 = vmatpush1.bf16.msra.mxu1 %v12470_v58  ;;  %v457_v56 = vld [vmem:[%s20017_s1 + $0xce8] sm:$0xff]  ;;  %v12524_v58 = vcombine.low %v444_v43, %v448_v44  ;;  %v504_v43 = vld [vmem:[%s20017_s1 + $0xe60] sm:$0xff] }
  0xb3   :  { %3264 = vmatprep.subr.bf16.mxu0 %v12477_v59  ;;  %3428 = vmatprep.subr.bf16.mxu1 %v12479_v63  ;;  %v12526_v59 = vcombine.low %v445_v45, %v449_v47  ;;  %v461_v63 = vld [vmem:[%s20017_s1 + $0xd08] sm:$0xff]  ;;  %v12535_v0 = vcombine.high %v453_v54, %v457_v56 }
  0xb4   :  { %v501_v44 = vld [vmem:[%s20017_s1 + $0xe48] sm:$0xff] }
  0xb6   :  { %3265 = vmatpush1.bf16.msra.mxu0 %v12476_v1  ;;  %3429 = vmatpush1.bf16.msra.mxu1 %v12478_v2  ;;  %v465_v1 = vld [vmem:[%s20017_s1 + $0xd28] sm:$0xff]  ;;  %v12532_v2 = vcombine.low %v452_v52, %v456_v53  ;;  %v512_v52 = vld [vmem:[%s20017_s1 + $0xea0] sm:$0xff] }
  0xb7   :  { %3266 = vmatprep.subr.bf16.mxu0 %v12485_v3  ;;  %3430 = vmatprep.subr.bf16.mxu1 %v12487_v7  ;;  %v12534_v3 = vcombine.low %v453_v54, %v457_v56  ;;  %v469_v7 = vld [vmem:[%s20017_s1 + $0xd48] sm:$0xff]  ;;  %v12543_v8 = vcombine.high %v461_v63, %v465_v1 }
  0xb8   :  { %v509_v53 = vld [vmem:[%s20017_s1 + $0xe88] sm:$0xff] }
  0xba   :  { %3267 = vmatpush1.bf16.msra.mxu0 %v12484_v9  ;;  %3431 = vmatpush1.bf16.msra.mxu1 %v12486_v10  ;;  %v473_v9 = vld [vmem:[%s20017_s1 + $0xd68] sm:$0xff]  ;;  %v12540_v10 = vcombine.low %v460_v61, %v464_v62  ;;  %v520_v61 = vld [vmem:[%s20017_s1 + $0xee0] sm:$0xff] }
  0xbb   :  { %3268 = vmatprep.subr.bf16.mxu0 %v12493_v11  ;;  %3432 = vmatprep.subr.bf16.mxu1 %v12495_v16  ;;  %v12542_v11 = vcombine.low %v461_v63, %v465_v1  ;;  %v477_v16 = vld [vmem:[%s20017_s1 + $0xd88] sm:$0xff]  ;;  %v12551_v17 = vcombine.high %v469_v7, %v473_v9 }
  0xbc   :  { %v517_v62 = vld [vmem:[%s20017_s1 + $0xec8] sm:$0xff] }
  0xbe   :  { %3269 = vmatpush1.bf16.msra.mxu0 %v12492_v18  ;;  %3433 = vmatpush1.bf16.msra.mxu1 %v12494_v20  ;;  %v481_v18 = vld [vmem:[%s20017_s1 + $0xda8] sm:$0xff]  ;;  %v12550_v20 = vcombine.low %v469_v7, %v473_v9 }
  0xbf   :  { %3270 = vmatprep.subr.bf16.mxu0 %v12501_v21  ;;  %3434 = vmatprep.subr.bf16.mxu1 %v12503_v27  ;;  %v12557_v21 = vcombine.high %v476_v14, %v480_v15  ;;  %v12559_v27 = vcombine.high %v477_v16, %v481_v18  ;;  %v12558_v30 = vcombine.low %v477_v16, %v481_v18 }
  0xc2   :  { %3271 = vmatpush1.bf16.msra.mxu0 %v12500_v29  ;;  %3435 = vmatpush1.bf16.msra.mxu1 %v12502_v31  ;;  %v12556_v29 = vcombine.low %v476_v14, %v480_v15  ;;  %v12565_v31 = vcombine.high %v484_v22, %v488_v24  ;;  %v536_v14 = vld [vmem:[%s20017_s1 + $0xf60] sm:$0xff]  ;;  %v533_v15 = vld [vmem:[%s20017_s1 + $0xf48] sm:$0xff] }
  0xc3   :  { %3281 = vmatprep.subr.bf16.mxu0 %v12509_v32  ;;  %3445 = vmatprep.subr.bf16.mxu1 %v12511_v37  ;;  %v492_v32 = vld [vmem:[%s20017_s1 + $0xe00] sm:$0xff]  ;;  %v497_v37 = vld [vmem:[%s20017_s1 + $0xe28] sm:$0xff] }
  0xc4   :  { %v12575_v45 = vcombine.high %v493_v35, %v497_v37  ;;  %v12572_v47 = vcombine.low %v492_v32, %v496_v33  ;;  %v544_v22 = vld [vmem:[%s20017_s1 + $0xfa0] sm:$0xff]  ;;  %v541_v24 = vld [vmem:[%s20017_s1 + $0xf88] sm:$0xff] }
  0xc5   :  { %3273 = vmatmul.mubr.bf16.vlgmr.msra.gmra.mrb[0].mxu0 %v15540_v39  ;;  %3437 = vmatmul.mubr.bf16.vlgmr.msra.gmra.mrb[0].mxu1 %v15540_v39 }
  0xc6   :  { %3282 = vmatpush1.bf16.msra.mxu0 %v12508_v40  ;;  %3446 = vmatpush1.bf16.msra.mxu1 %v12510_v41  ;;  %v12566_v40 = vcombine.low %v485_v26, %v489_v28  ;;  %v12573_v41 = vcombine.high %v492_v32, %v496_v33  ;;  %v552_v32 = vld [vmem:[%s20017_s1 + $0xfe0] sm:$0xff]  ;;  %v549_v33 = vld [vmem:[%s20017_s1 + $0xfc8] sm:$0xff] }
  0xc7   :  { %3283 = vmatprep.subr.bf16.mxu0 %v12517_v42  ;;  %3447 = vmatprep.subr.bf16.mxu1 %v12519_v46  ;;  %v500_v42 = vld [vmem:[%s20017_s1 + $0xe40] sm:$0xff]  ;;  %v505_v46 = vld [vmem:[%s20017_s1 + $0xe68] sm:$0xff] }
  0xc8   :  { %3313 = vmatprep.mubr.bf16.mxu0 %v15554_v48  ;;  %3477 = vmatprep.mubr.bf16.mxu1 %v15554_v48  ;;  %v12583_v54 = vcombine.high %v501_v44, %v505_v46  ;;  %v12580_v56 = vcombine.low %v500_v42, %v504_v43 }
  0xca   :  { %3284 = vmatpush1.bf16.msra.mxu0 %v12516_v49  ;;  %3448 = vmatpush1.bf16.msra.mxu1 %v12518_v50  ;;  %v12574_v49 = vcombine.low %v493_v35, %v497_v37  ;;  %v12581_v50 = vcombine.high %v500_v42, %v504_v43  ;;  %v50_v42 = vld [vmem:[%s20017_s1 + $0x30] sm:$0xff]  ;;  %v47_v43 = vld [vmem:[%s20017_s1 + $0x18] sm:$0xff] }
  0xcb   :  { %3285 = vmatprep.subr.bf16.mxu0 %v12525_v51  ;;  %3449 = vmatprep.subr.bf16.mxu1 %v12527_v55  ;;  %v508_v51 = vld [vmem:[%s20017_s1 + $0xe80] sm:$0xff]  ;;  %v513_v55 = vld [vmem:[%s20017_s1 + $0xea8] sm:$0xff] }
  0xcc   :  { %v12591_v63 = vcombine.high %v509_v53, %v513_v55  ;;  %v12588_v1 = vcombine.low %v508_v51, %v512_v52 }
  0xce   :  { %3286 = vmatpush1.bf16.msra.mxu0 %v12524_v58  ;;  %3450 = vmatpush1.bf16.msra.mxu1 %v12526_v59  ;;  %v12582_v58 = vcombine.low %v501_v44, %v505_v46  ;;  %v12589_v59 = vcombine.high %v508_v51, %v512_v52  ;;  %v51_v46 = vld [vmem:[%s20017_s1 + $0x38] sm:$0xff]  ;;  %v54_v51 = vld [vmem:[%s20017_s1 + $0x50] sm:$0xff] }
  0xcf   :  { %3287 = vmatprep.subr.bf16.mxu0 %v12533_v60  ;;  %3451 = vmatprep.subr.bf16.mxu1 %v12535_v0  ;;  %v516_v60 = vld [vmem:[%s20017_s1 + $0xec0] sm:$0xff]  ;;  %v521_v0 = vld [vmem:[%s20017_s1 + $0xee8] sm:$0xff]  ;;  %v58_v52 = vld [vmem:[%s20017_s1 + $0x70] sm:$0xff] }
  0xd0   :  { %v12599_v7 = vcombine.high %v517_v62, %v521_v0  ;;  %v12596_v9 = vcombine.low %v516_v60, %v520_v61 }
  0xd2   :  { %3288 = vmatpush1.bf16.msra.mxu0 %v12532_v2  ;;  %3452 = vmatpush1.bf16.msra.mxu1 %v12534_v3  ;;  %v12590_v2 = vcombine.low %v509_v53, %v513_v55  ;;  %v12597_v3 = vcombine.high %v516_v60, %v520_v61  ;;  %v55_v53 = vld [vmem:[%s20017_s1 + $0x58] sm:$0xff]  ;;  %v12137_v60 = vcombine.high %v54_v51, %v58_v52  ;;  %v62_v61 = vld [vmem:[%s20017_s1 + $0x90] sm:$0xff] }
  0xd3   :  { %3289 = vmatprep.subr.bf16.mxu0 %v12541_v4  ;;  %3453 = vmatprep.subr.bf16.mxu1 %v12543_v8  ;;  %v524_v4 = vld [vmem:[%s20017_s1 + $0xf00] sm:$0xff]  ;;  %v529_v8 = vld [vmem:[%s20017_s1 + $0xf28] sm:$0xff]  ;;  %v59_v55 = vld [vmem:[%s20017_s1 + $0x78] sm:$0xff] }
  0xd4   :  { %v12607_v16 = vcombine.high %v525_v6, %v529_v8  ;;  %v12604_v18 = vcombine.low %v524_v4, %v528_v5 }
  0xd6   :  { %3290 = vmatpush1.bf16.msra.mxu0 %v12540_v10  ;;  %3454 = vmatpush1.bf16.msra.mxu1 %v12542_v11  ;;  %v12598_v10 = vcombine.low %v517_v62, %v521_v0  ;;  %v12605_v11 = vcombine.high %v524_v4, %v528_v5  ;;  %v66_v62 = vld [vmem:[%s20017_s1 + $0xb0] sm:$0xff]  ;;  %v12139_v0 = vcombine.high %v55_v53, %v59_v55 }
  0xd7   :  { %3291 = vmatprep.subr.bf16.mxu0 %v12549_v13  ;;  %3455 = vmatprep.subr.bf16.mxu1 %v12551_v17  ;;  %v532_v13 = vld [vmem:[%s20017_s1 + $0xf40] sm:$0xff]  ;;  %v537_v17 = vld [vmem:[%s20017_s1 + $0xf68] sm:$0xff]  ;;  %v12145_v4 = vcombine.high %v62_v61, %v66_v62  ;;  %v70_v5 = vld [vmem:[%s20017_s1 + $0xd0] sm:$0xff] }
  0xd8   :  { %v12615_v26 = vcombine.high %v533_v15, %v537_v17  ;;  %v12612_v28 = vcombine.low %v532_v13, %v536_v14 }
  0xda   :  { %3292 = vmatpush1.bf16.msra.mxu0 %v12548_v19  ;;  %3456 = vmatpush1.bf16.msra.mxu1 %v12550_v20  ;;  %v12606_v19 = vcombine.low %v525_v6, %v529_v8  ;;  %v12613_v20 = vcombine.high %v532_v13, %v536_v14  ;;  %v74_v6 = vld [vmem:[%s20017_s1 + $0xf0] sm:$0xff] }
  0xdb   :  { %3293 = vmatprep.subr.bf16.mxu0 %v12557_v21  ;;  %3457 = vmatprep.subr.bf16.mxu1 %v12559_v27  ;;  %v540_v21 = vld [vmem:[%s20017_s1 + $0xf80] sm:$0xff]  ;;  %v545_v27 = vld [vmem:[%s20017_s1 + $0xfa8] sm:$0xff]  ;;  %v12153_v13 = vcombine.high %v70_v5, %v74_v6  ;;  %v78_v14 = vld [vmem:[%s20017_s1 + $0x110] sm:$0xff] }
  0xdc   :  { %v12623_v35 = vcombine.high %v541_v24, %v545_v27  ;;  %v12620_v37 = vcombine.low %v540_v21, %v544_v22 }
  0xde   :  { %3294 = vmatpush1.bf16.msra.mxu0 %v12556_v29  ;;  %3458 = vmatpush1.bf16.msra.mxu1 %v12558_v30  ;;  %v12614_v29 = vcombine.low %v533_v15, %v537_v17  ;;  %v12621_v30 = vcombine.high %v540_v21, %v544_v22  ;;  %v82_v15 = vld [vmem:[%s20017_s1 + $0x130] sm:$0xff]  ;;  %v83_v17 = vld [vmem:[%s20017_s1 + $0x138] sm:$0xff] }
  0xdf   :  { %3295 = vmatprep.subr.bf16.mxu0 %v12565_v31  ;;  %3459 = vmatprep.subr.bf16.mxu1 %v12567_v36  ;;  %v548_v31 = vld [vmem:[%s20017_s1 + $0xfc0] sm:$0xff]  ;;  %v553_v36 = vld [vmem:[%s20017_s1 + $0xfe8] sm:$0xff]  ;;  %v86_v21 = vld [vmem:[%s20017_s1 + $0x150] sm:$0xff] }
  0xe0   :  { %v12631_v44 = vcombine.high %v549_v33, %v553_v36  ;;  %v90_v22 = vld [vmem:[%s20017_s1 + $0x170] sm:$0xff] }
  0xe2   :  { %3296 = vmatpush1.bf16.msra.mxu0 %v12564_v38  ;;  %3460 = vmatpush1.bf16.msra.mxu1 %v12566_v40  ;;  %v12622_v38 = vcombine.low %v541_v24, %v545_v27  ;;  %v12629_v40 = vcombine.high %v548_v31, %v552_v32  ;;  %v87_v24 = vld [vmem:[%s20017_s1 + $0x158] sm:$0xff] }
  0xe3   :  { %3297 = vmatprep.subr.bf16.mxu0 %v12573_v41  ;;  %3461 = vmatprep.subr.bf16.mxu1 %v12575_v45  ;;  %v46_v41 = vld [vmem:[%s20017_s1 + $0x10] sm:$0xff]  ;;  %v91_v27 = vld [vmem:[%s20017_s1 + $0x178] sm:$0xff] }
  0xe4   :  { %v34_v45 = vld [vmem:[%s20016_s0 + $0x30] sm:$0xff] }
  0xe6   :  { %3298 = vmatpush1.bf16.msra.mxu0 %v12572_v47  ;;  %3462 = vmatpush1.bf16.msra.mxu1 %v12574_v49  ;;  %v12628_v47 = vcombine.low %v548_v31, %v552_v32  ;;  %v12630_v49 = vcombine.low %v549_v33, %v553_v36  ;;  %v94_v31 = vld [vmem:[%s20017_s1 + $0x190] sm:$0xff]  ;;  %v95_v33 = vld [vmem:[%s20017_s1 + $0x198] sm:$0xff] }
  0xe7   :  { %3299 = vmatprep.subr.bf16.mxu0 %v12581_v50  ;;  %3463 = vmatprep.subr.bf16.mxu1 %v12583_v54  ;;  %v12129_v50 = vcombine.high %v46_v41, %v50_v42  ;;  %v12131_v54 = vcombine.high %v47_v43, %v51_v46  ;;  %v98_v32 = vld [vmem:[%s20017_s1 + $0x1b0] sm:$0xff]  ;;  %v99_v36 = vld [vmem:[%s20017_s1 + $0x1b8] sm:$0xff] }
  0xea   :  { %3300 = vmatpush1.bf16.msra.mxu0 %v12580_v56  ;;  %3464 = vmatpush1.bf16.msra.mxu1 %v12582_v58  ;;  %v15743_v56 = vpack.c.bf16 %v34_v45, %v34_v45  ;;  %v12128_v58 = vcombine.low %v46_v41, %v50_v42  ;;  %v102_v41 = vld [vmem:[%s20017_s1 + $0x1d0] sm:$0xff]  ;;  %v107_v45 = vld [vmem:[%s20017_s1 + $0x1f8] sm:$0xff] }
  0xeb   :  { %3301 = vmatprep.subr.bf16.mxu0 %v12589_v59  ;;  %3465 = vmatprep.subr.bf16.mxu1 %v12591_v63  ;;  %v12130_v59 = vcombine.low %v47_v43, %v51_v46  ;;  %v63_v63 = vld [vmem:[%s20017_s1 + $0x98] sm:$0xff]  ;;  %v106_v42 = vld [vmem:[%s20017_s1 + $0x1f0] sm:$0xff]  ;;  %v12176_v46 = vcombine.low %v94_v31, %v98_v32 }
  0xec   :  { %v103_v43 = vld [vmem:[%s20017_s1 + $0x1d8] sm:$0xff] }
  0xee   :  { %3302 = vmatpush1.bf16.msra.mxu0 %v12588_v1  ;;  %3466 = vmatpush1.bf16.msra.mxu1 %v12590_v2  ;;  %v67_v1 = vld [vmem:[%s20017_s1 + $0xb8] sm:$0xff]  ;;  %v12136_v2 = vcombine.low %v54_v51, %v58_v52  ;;  %v114_v51 = vld [vmem:[%s20017_s1 + $0x230] sm:$0xff] }
  0xef   :  { %3303 = vmatprep.subr.bf16.mxu0 %v12597_v3  ;;  %3467 = vmatprep.subr.bf16.mxu1 %v12599_v7  ;;  %v12138_v3 = vcombine.low %v55_v53, %v59_v55  ;;  %v71_v7 = vld [vmem:[%s20017_s1 + $0xd8] sm:$0xff]  ;;  %v12147_v8 = vcombine.high %v63_v63, %v67_v1  ;;  %v12187_v53 = vcombine.high %v103_v43, %v107_v45 }
  0xf0   :  { %v111_v52 = vld [vmem:[%s20017_s1 + $0x218] sm:$0xff]  ;;  %v12184_v55 = vcombine.low %v102_v41, %v106_v42 }
  0xf2   :  { %3304 = vmatpush1.bf16.msra.mxu0 %v12596_v9  ;;  %3468 = vmatpush1.bf16.msra.mxu1 %v12598_v10  ;;  %v75_v9 = vld [vmem:[%s20017_s1 + $0xf8] sm:$0xff]  ;;  %v12144_v10 = vcombine.low %v62_v61, %v66_v62  ;;  %v122_v61 = vld [vmem:[%s20017_s1 + $0x270] sm:$0xff] }
  0xf3   :  { %3305 = vmatprep.subr.bf16.mxu0 %v12605_v11  ;;  %3469 = vmatprep.subr.bf16.mxu1 %v12607_v16  ;;  %v12146_v11 = vcombine.low %v63_v63, %v67_v1  ;;  %v79_v16 = vld [vmem:[%s20017_s1 + $0x118] sm:$0xff] }
  0xf4   :  { %v119_v62 = vld [vmem:[%s20017_s1 + $0x258] sm:$0xff] }
  0xf6   :  { %3306 = vmatpush1.bf16.msra.mxu0 %v12604_v18  ;;  %3470 = vmatpush1.bf16.msra.mxu1 %v12606_v19  ;;  %v12152_v18 = vcombine.low %v70_v5, %v74_v6  ;;  %v12154_v19 = vcombine.low %v71_v7, %v75_v9  ;;  %v130_v5 = vld [vmem:[%s20017_s1 + $0x2b0] sm:$0xff]  ;;  %v127_v6 = vld [vmem:[%s20017_s1 + $0x298] sm:$0xff] }
  0xf7   :  { %3307 = vmatprep.subr.bf16.mxu0 %v12613_v20  ;;  %3471 = vmatprep.subr.bf16.mxu1 %v12615_v26  ;;  %v12161_v20 = vcombine.high %v78_v14, %v82_v15  ;;  %v12163_v26 = vcombine.high %v79_v16, %v83_v17 }
  0xfa   :  { %3308 = vmatpush1.bf16.msra.mxu0 %v12612_v28  ;;  %3472 = vmatpush1.bf16.msra.mxu1 %v12614_v29  ;;  %v12160_v28 = vcombine.low %v78_v14, %v82_v15  ;;  %v12162_v29 = vcombine.low %v79_v16, %v83_v17  ;;  %v138_v14 = vld [vmem:[%s20017_s1 + $0x2f0] sm:$0xff]  ;;  %v135_v15 = vld [vmem:[%s20017_s1 + $0x2d8] sm:$0xff] }
  0xfb   :  { %3309 = vmatprep.subr.bf16.mxu0 %v12621_v30  ;;  %3473 = vmatprep.subr.bf16.mxu1 %v12623_v35  ;;  %v12169_v30 = vcombine.high %v86_v21, %v90_v22  ;;  %v12171_v35 = vcombine.high %v87_v24, %v91_v27 }
  0xfe   :  { %3310 = vmatpush1.bf16.msra.mxu0 %v12620_v37  ;;  %3474 = vmatpush1.bf16.msra.mxu1 %v12622_v38  ;;  %v12168_v37 = vcombine.low %v86_v21, %v90_v22  ;;  %v12170_v38 = vcombine.low %v87_v24, %v91_v27  ;;  %v146_v21 = vld [vmem:[%s20017_s1 + $0x330] sm:$0xff]  ;;  %v143_v22 = vld [vmem:[%s20017_s1 + $0x318] sm:$0xff] }
  0xff   :  { %3311 = vmatprep.subr.bf16.mxu0 %v12629_v40  ;;  %3475 = vmatprep.subr.bf16.mxu1 %v12631_v44  ;;  %v12177_v40 = vcombine.high %v94_v31, %v98_v32  ;;  %v12179_v44 = vcombine.high %v95_v33, %v99_v36  ;;  %v154_v31 = vld [vmem:[%s20017_s1 + $0x370] sm:$0xff]  ;;  %v151_v32 = vld [vmem:[%s20017_s1 + $0x358] sm:$0xff] }
 0x102   :  { %3312 = vmatpush1.bf16.msra.mxu0 %v12628_v47  ;;  %3476 = vmatpush1.bf16.msra.mxu1 %v12630_v49  ;;  %v12178_v47 = vcombine.low %v95_v33, %v99_v36  ;;  %v12185_v49 = vcombine.high %v102_v41, %v106_v42  ;;  %v162_v41 = vld [vmem:[%s20017_s1 + $0x3b0] sm:$0xff]  ;;  %v159_v42 = vld [vmem:[%s20017_s1 + $0x398] sm:$0xff] }
 0x103   :  { %3486 = vmatprep.subr.bf16.mxu0 %v12129_v50  ;;  %3650 = vmatprep.subr.bf16.mxu1 %v12131_v54  ;;  %v110_v50 = vld [vmem:[%s20017_s1 + $0x210] sm:$0xff]  ;;  %v115_v54 = vld [vmem:[%s20017_s1 + $0x238] sm:$0xff] }
 0x104   :  { %v12195_v63 = vcombine.high %v111_v52, %v115_v54  ;;  %v12192_v1 = vcombine.low %v110_v50, %v114_v51 }
 0x105   :  { %3314 = vmatmul.mubr.bf16.vlgmr.msra.gmra.mrb[0].mxu0 %v15743_v56  ;;  %3478 = vmatmul.mubr.bf16.vlgmr.msra.gmra.mrb[0].mxu1 %v15743_v56 }
 0x106   :  { %3487 = vmatpush1.bf16.msra.mxu0 %v12128_v58  ;;  %3651 = vmatpush1.bf16.msra.mxu1 %v12130_v59  ;;  %v12186_v58 = vcombine.low %v103_v43, %v107_v45  ;;  %v12193_v59 = vcombine.high %v110_v50, %v114_v51  ;;  %v170_v50 = vld [vmem:[%s20017_s1 + $0x3f0] sm:$0xff]  ;;  %v167_v51 = vld [vmem:[%s20017_s1 + $0x3d8] sm:$0xff] }
 0x107   :  { %3488 = vmatprep.subr.bf16.mxu0 %v12137_v60  ;;  %3652 = vmatprep.subr.bf16.mxu1 %v12139_v0  ;;  %v118_v60 = vld [vmem:[%s20017_s1 + $0x250] sm:$0xff]  ;;  %v123_v0 = vld [vmem:[%s20017_s1 + $0x278] sm:$0xff] }
 0x108   :  { %3518 = vmatprep.mubr.bf16.mxu0 %v14992_v57  ;;  %3682 = vmatprep.mubr.bf16.mxu1 %v14992_v57  ;;  %v12155_v57 = vcombine.high %v71_v7, %v75_v9  ;;  %v12203_v7 = vcombine.high %v119_v62, %v123_v0  ;;  %v12200_v9 = vcombine.low %v118_v60, %v122_v61 }
 0x10a   :  { %3489 = vmatpush1.bf16.msra.mxu0 %v12136_v2  ;;  %3653 = vmatpush1.bf16.msra.mxu1 %v12138_v3  ;;  %v12194_v2 = vcombine.low %v111_v52, %v115_v54  ;;  %v12201_v3 = vcombine.high %v118_v60, %v122_v61  ;;  %v178_v60 = vld [vmem:[%s20017_s1 + $0x430] sm:$0xff]  ;;  %v175_v61 = vld [vmem:[%s20017_s1 + $0x418] sm:$0xff] }
 0x10b   :  { %3490 = vmatprep.subr.bf16.mxu0 %v12145_v4  ;;  %3654 = vmatprep.subr.bf16.mxu1 %v12147_v8  ;;  %v126_v4 = vld [vmem:[%s20017_s1 + $0x290] sm:$0xff]  ;;  %v131_v8 = vld [vmem:[%s20017_s1 + $0x2b8] sm:$0xff] }
 0x10c   :  { %v12211_v16 = vcombine.high %v127_v6, %v131_v8  ;;  %v12208_v17 = vcombine.low %v126_v4, %v130_v5 }
 0x10e   :  { %3491 = vmatpush1.bf16.msra.mxu0 %v12144_v10  ;;  %3655 = vmatpush1.bf16.msra.mxu1 %v12146_v11  ;;  %v12202_v10 = vcombine.low %v119_v62, %v123_v0  ;;  %v12209_v11 = vcombine.high %v126_v4, %v130_v5  ;;  %v186_v4 = vld [vmem:[%s20017_s1 + $0x470] sm:$0xff]  ;;  %v183_v5 = vld [vmem:[%s20017_s1 + $0x458] sm:$0xff] }
 0x10f   :  { %3492 = vmatprep.subr.bf16.mxu0 %v12153_v13  ;;  %3656 = vmatprep.subr.bf16.mxu1 %v12155_v57  ;;  %v134_v13 = vld [vmem:[%s20017_s1 + $0x2d0] sm:$0xff]  ;;  %v139_v57 = vld [vmem:[%s20017_s1 + $0x2f8] sm:$0xff] }
 0x110   :  { %v12219_v24 = vcombine.high %v135_v15, %v139_v57  ;;  %v12216_v27 = vcombine.low %v134_v13, %v138_v14 }
 0x112   :  { %3493 = vmatpush1.bf16.msra.mxu0 %v12152_v18  ;;  %3657 = vmatpush1.bf16.msra.mxu1 %v12154_v19  ;;  %v12210_v18 = vcombine.low %v127_v6, %v131_v8  ;;  %v12217_v19 = vcombine.high %v134_v13, %v138_v14  ;;  %v194_v13 = vld [vmem:[%s20017_s1 + $0x4b0] sm:$0xff]  ;;  %v191_v14 = vld [vmem:[%s20017_s1 + $0x498] sm:$0xff] }
 0x113   :  { %3494 = vmatprep.subr.bf16.mxu0 %v12161_v20  ;;  %3658 = vmatprep.subr.bf16.mxu1 %v12163_v26  ;;  %v142_v20 = vld [vmem:[%s20017_s1 + $0x310] sm:$0xff]  ;;  %v147_v26 = vld [vmem:[%s20017_s1 + $0x338] sm:$0xff] }
 0x114   :  { %v12227_v33 = vcombine.high %v143_v22, %v147_v26  ;;  %v12224_v36 = vcombine.low %v142_v20, %v146_v21 }
 0x116   :  { %3495 = vmatpush1.bf16.msra.mxu0 %v12160_v28  ;;  %3659 = vmatpush1.bf16.msra.mxu1 %v12162_v29  ;;  %v12218_v28 = vcombine.low %v135_v15, %v139_v57  ;;  %v12225_v29 = vcombine.high %v142_v20, %v146_v21  ;;  %v202_v20 = vld [vmem:[%s20017_s1 + $0x4f0] sm:$0xff]  ;;  %v199_v21 = vld [vmem:[%s20017_s1 + $0x4d8] sm:$0xff] }
 0x117   :  { %3496 = vmatprep.subr.bf16.mxu0 %v12169_v30  ;;  %3660 = vmatprep.subr.bf16.mxu1 %v12171_v35  ;;  %v150_v30 = vld [vmem:[%s20017_s1 + $0x350] sm:$0xff]  ;;  %v155_v35 = vld [vmem:[%s20017_s1 + $0x378] sm:$0xff] }
 0x118   :  { %v12235_v43 = vcombine.high %v151_v32, %v155_v35  ;;  %v12232_v45 = vcombine.low %v150_v30, %v154_v31 }
 0x11a   :  { %3497 = vmatpush1.bf16.msra.mxu0 %v12168_v37  ;;  %3661 = vmatpush1.bf16.msra.mxu1 %v12170_v38  ;;  %v12226_v37 = vcombine.low %v143_v22, %v147_v26  ;;  %v12233_v38 = vcombine.high %v150_v30, %v154_v31  ;;  %v207_v30 = vld [vmem:[%s20017_s1 + $0x518] sm:$0xff] }
 0x11b   :  { %3498 = vmatprep.subr.bf16.mxu0 %v12177_v40  ;;  %3662 = vmatprep.subr.bf16.mxu1 %v12179_v44  ;;  %v158_v40 = vld [vmem:[%s20017_s1 + $0x390] sm:$0xff]  ;;  %v163_v44 = vld [vmem:[%s20017_s1 + $0x3b8] sm:$0xff] }
 0x11c   :  { %v12243_v52 = vcombine.high %v159_v42, %v163_v44  ;;  %v12240_v54 = vcombine.low %v158_v40, %v162_v41  ;;  %v211_v31 = vld [vmem:[%s20017_s1 + $0x538] sm:$0xff] }
 0x11e   :  { %3499 = vmatpush1.bf16.msra.mxu0 %v12176_v46  ;;  %3663 = vmatpush1.bf16.msra.mxu1 %v12178_v47  ;;  %v12234_v46 = vcombine.low %v151_v32, %v155_v35  ;;  %v12241_v47 = vcombine.high %v158_v40, %v162_v41  ;;  %v12291_v40 = vcombine.high %v207_v30, %v211_v31  ;;  %v219_v41 = vld [vmem:[%s20017_s1 + $0x578] sm:$0xff] }
 0x11f   :  { %3500 = vmatprep.subr.bf16.mxu0 %v12185_v49  ;;  %3664 = vmatprep.subr.bf16.mxu1 %v12187_v53  ;;  %v166_v49 = vld [vmem:[%s20017_s1 + $0x3d0] sm:$0xff]  ;;  %v171_v53 = vld [vmem:[%s20017_s1 + $0x3f8] sm:$0xff] }
 0x120   :  { %v12251_v62 = vcombine.high %v167_v51, %v171_v53  ;;  %v12248_v0 = vcombine.low %v166_v49, %v170_v50 }
 0x122   :  { %3501 = vmatpush1.bf16.msra.mxu0 %v12184_v55  ;;  %3665 = vmatpush1.bf16.msra.mxu1 %v12186_v58  ;;  %v12242_v55 = vcombine.low %v159_v42, %v163_v44  ;;  %v12249_v58 = vcombine.high %v166_v49, %v170_v50  ;;  %v227_v50 = vld [vmem:[%s20017_s1 + $0x5b8] sm:$0xff] }
 0x123   :  { %3502 = vmatprep.subr.bf16.mxu0 %v12193_v59  ;;  %3666 = vmatprep.subr.bf16.mxu1 %v12195_v63  ;;  %v174_v59 = vld [vmem:[%s20017_s1 + $0x410] sm:$0xff]  ;;  %v179_v63 = vld [vmem:[%s20017_s1 + $0x438] sm:$0xff] }
 0x124   :  { %v12259_v6 = vcombine.high %v175_v61, %v179_v63  ;;  %v12256_v8 = vcombine.low %v174_v59, %v178_v60 }
 0x126   :  { %3503 = vmatpush1.bf16.msra.mxu0 %v12192_v1  ;;  %3667 = vmatpush1.bf16.msra.mxu1 %v12194_v2  ;;  %v12250_v1 = vcombine.low %v167_v51, %v171_v53  ;;  %v12257_v2 = vcombine.high %v174_v59, %v178_v60  ;;  %v231_v59 = vld [vmem:[%s20017_s1 + $0x5d8] sm:$0xff] }
 0x127   :  { %3504 = vmatprep.subr.bf16.mxu0 %v12201_v3  ;;  %3668 = vmatprep.subr.bf16.mxu1 %v12203_v7  ;;  %v182_v3 = vld [vmem:[%s20017_s1 + $0x450] sm:$0xff]  ;;  %v187_v7 = vld [vmem:[%s20017_s1 + $0x478] sm:$0xff] }
 0x128   :  { %v12267_v15 = vcombine.high %v183_v5, %v187_v7  ;;  %v12264_v57 = vcombine.low %v182_v3, %v186_v4  ;;  %v235_v60 = vld [vmem:[%s20017_s1 + $0x5f8] sm:$0xff] }
 0x12a   :  { %3505 = vmatpush1.bf16.msra.mxu0 %v12200_v9  ;;  %3669 = vmatpush1.bf16.msra.mxu1 %v12202_v10  ;;  %v12258_v9 = vcombine.low %v175_v61, %v179_v63  ;;  %v12265_v10 = vcombine.high %v182_v3, %v186_v4  ;;  %v12315_v3 = vcombine.high %v231_v59, %v235_v60  ;;  %v243_v4 = vld [vmem:[%s20017_s1 + $0x638] sm:$0xff] }
 0x12b   :  { %3506 = vmatprep.subr.bf16.mxu0 %v12209_v11  ;;  %3670 = vmatprep.subr.bf16.mxu1 %v12211_v16  ;;  %v190_v11 = vld [vmem:[%s20017_s1 + $0x490] sm:$0xff]  ;;  %v195_v16 = vld [vmem:[%s20017_s1 + $0x4b8] sm:$0xff] }
 0x12c   :  { %v12275_v22 = vcombine.high %v191_v14, %v195_v16  ;;  %v12274_v26 = vcombine.low %v191_v14, %v195_v16 }
 0x12e   :  { %3507 = vmatpush1.bf16.msra.mxu0 %v12208_v17  ;;  %3671 = vmatpush1.bf16.msra.mxu1 %v12210_v18  ;;  %v12266_v17 = vcombine.low %v183_v5, %v187_v7  ;;  %v12273_v18 = vcombine.high %v190_v11, %v194_v13 }
 0x12f   :  { %3508 = vmatprep.subr.bf16.mxu0 %v12217_v19  ;;  %3672 = vmatprep.subr.bf16.mxu1 %v12219_v24  ;;  %v198_v19 = vld [vmem:[%s20017_s1 + $0x4d0] sm:$0xff]  ;;  %v12272_v24 = vcombine.low %v190_v11, %v194_v13  ;;  %v251_v13 = vld [vmem:[%s20017_s1 + $0x678] sm:$0xff] }
 0x130   :  { %v12280_v32 = vcombine.low %v198_v19, %v202_v20 }
 0x132   :  { %3509 = vmatpush1.bf16.msra.mxu0 %v12216_v27  ;;  %3673 = vmatpush1.bf16.msra.mxu1 %v12218_v28  ;;  %v12281_v27 = vcombine.high %v198_v19, %v202_v20  ;;  %v206_v28 = vld [vmem:[%s20017_s1 + $0x510] sm:$0xff]  ;;  %v259_v20 = vld [vmem:[%s20017_s1 + $0x6b8] sm:$0xff] }
 0x133   :  { %3510 = vmatprep.subr.bf16.mxu0 %v12225_v29  ;;  %3674 = vmatprep.subr.bf16.mxu1 %v12227_v33  ;;  %v210_v29 = vld [vmem:[%s20017_s1 + $0x530] sm:$0xff] }
 0x134   :  { %v12289_v35 = vcombine.high %v206_v28, %v210_v29  ;;  %v12288_v42 = vcombine.low %v206_v28, %v210_v29  ;;  %v267_v29 = vld [vmem:[%s20017_s1 + $0x6f8] sm:$0xff] }
 0x136   :  { %3511 = vmatpush1.bf16.msra.mxu0 %v12224_v36  ;;  %3675 = vmatpush1.bf16.msra.mxu1 %v12226_v37  ;;  %v214_v36 = vld [vmem:[%s20017_s1 + $0x550] sm:$0xff] }
 0x137   :  { %3512 = vmatprep.subr.bf16.mxu0 %v12233_v38  ;;  %3676 = vmatprep.subr.bf16.mxu1 %v12235_v43  ;;  %v218_v37 = vld [vmem:[%s20017_s1 + $0x570] sm:$0xff]  ;;  %v215_v38 = vld [vmem:[%s20017_s1 + $0x558] sm:$0xff]  ;;  %v12290_v43 = vcombine.low %v207_v30, %v211_v31 }
 0x138   :  { %v12297_v44 = vcombine.high %v214_v36, %v218_v37  ;;  %v12299_v49 = vcombine.high %v215_v38, %v219_v41  ;;  %v12296_v51 = vcombine.low %v214_v36, %v218_v37  ;;  %v275_v37 = vld [vmem:[%s20017_s1 + $0x738] sm:$0xff] }
 0x13a   :  { %3513 = vmatpush1.bf16.msra.mxu0 %v12232_v45  ;;  %3677 = vmatpush1.bf16.msra.mxu1 %v12234_v46  ;;  %v222_v45 = vld [vmem:[%s20017_s1 + $0x590] sm:$0xff] }
 0x13b   :  { %3514 = vmatprep.subr.bf16.mxu0 %v12241_v47  ;;  %3678 = vmatprep.subr.bf16.mxu1 %v12243_v52  ;;  %v226_v46 = vld [vmem:[%s20017_s1 + $0x5b0] sm:$0xff]  ;;  %v223_v47 = vld [vmem:[%s20017_s1 + $0x598] sm:$0xff]  ;;  %v12298_v52 = vcombine.low %v215_v38, %v219_v41 }
 0x13c   :  { %v12305_v53 = vcombine.high %v222_v45, %v226_v46  ;;  %v12304_v61 = vcombine.low %v222_v45, %v226_v46  ;;  %v283_v46 = vld [vmem:[%s20017_s1 + $0x778] sm:$0xff] }
 0x13e   :  { %3515 = vmatpush1.bf16.msra.mxu0 %v12240_v54  ;;  %3679 = vmatpush1.bf16.msra.mxu1 %v12242_v55  ;;  %v230_v54 = vld [vmem:[%s20017_s1 + $0x5d0] sm:$0xff] }
 0x13f   :  { %3516 = vmatprep.subr.bf16.mxu0 %v12249_v58  ;;  %3680 = vmatprep.subr.bf16.mxu1 %v12251_v62  ;;  %v234_v55 = vld [vmem:[%s20017_s1 + $0x5f0] sm:$0xff]  ;;  %v12307_v58 = vcombine.high %v223_v47, %v227_v50  ;;  %v12306_v62 = vcombine.low %v223_v47, %v227_v50 }
 0x140   :  { %v12313_v63 = vcombine.high %v230_v54, %v234_v55  ;;  %v12312_v5 = vcombine.low %v230_v54, %v234_v55  ;;  %v291_v55 = vld [vmem:[%s20017_s1 + $0x7b8] sm:$0xff] }
 0x142   :  { %3517 = vmatpush1.bf16.msra.mxu0 %v12248_v0  ;;  %3681 = vmatpush1.bf16.msra.mxu1 %v12250_v1  ;;  %v238_v0 = vld [vmem:[%s20017_s1 + $0x610] sm:$0xff] }
 0x143   :  { %3527 = vmatprep.subr.bf16.mxu0 %v12257_v2  ;;  %3691 = vmatprep.subr.bf16.mxu1 %v12259_v6  ;;  %v242_v1 = vld [vmem:[%s20017_s1 + $0x630] sm:$0xff]  ;;  %v239_v2 = vld [vmem:[%s20017_s1 + $0x618] sm:$0xff]  ;;  %v12314_v6 = vcombine.low %v231_v59, %v235_v60 }
 0x144   :  { %v12321_v7 = vcombine.high %v238_v0, %v242_v1  ;;  %v12323_v11 = vcombine.high %v239_v2, %v243_v4  ;;  %v12320_v14 = vcombine.low %v238_v0, %v242_v1  ;;  %v299_v1 = vld [vmem:[%s20017_s1 + $0x7f8] sm:$0xff] }
 0x145   :  { %3519 = vmatmul.mubr.bf16.vlgmr.msra.gmra.mrb[4].mxu0 %v15119_v12  ;;  %3683 = vmatmul.mubr.bf16.vlgmr.msra.gmra.mrb[4].mxu1 %v15119_v12  ;;  %v203_v12 = vld [vmem:[%s20017_s1 + $0x4f8] sm:$0xff] }
 0x146   :  { %3528 = vmatpush1.bf16.msra.mxu0 %v12256_v8  ;;  %3692 = vmatpush1.bf16.msra.mxu1 %v12258_v9  ;;  %v12282_v33 = vcombine.low %v199_v21, %v203_v12  ;;  %v246_v8 = vld [vmem:[%s20017_s1 + $0x650] sm:$0xff] }
 0x147   :  { %3529 = vmatprep.subr.bf16.mxu0 %v12265_v10  ;;  %3693 = vmatprep.subr.bf16.mxu1 %v12267_v15  ;;  %v250_v9 = vld [vmem:[%s20017_s1 + $0x670] sm:$0xff]  ;;  %v247_v10 = vld [vmem:[%s20017_s1 + $0x658] sm:$0xff]  ;;  %v12322_v15 = vcombine.low %v239_v2, %v243_v4 }
 0x148   :  { %3559 = vmatprep.mubr.bf16.mxu0 %v15139_v23  ;;  %3723 = vmatprep.mubr.bf16.mxu1 %v15139_v23  ;;  %v12283_v23 = vcombine.high %v199_v21, %v203_v12  ;;  %v12329_v16 = vcombine.high %v246_v8, %v250_v9  ;;  %v12331_v19 = vcombine.high %v247_v10, %v251_v13 }
 0x149   :  { %v12328_v21 = vcombine.low %v246_v8, %v250_v9  ;;  %v307_v9 = vld [vmem:[%s20017_s1 + $0x838] sm:$0xff] }
 0x14a   :  { %3530 = vmatpush1.bf16.msra.mxu0 %v12264_v57  ;;  %3694 = vmatpush1.bf16.msra.mxu1 %v12266_v17  ;;  %v254_v57 = vld [vmem:[%s20017_s1 + $0x690] sm:$0xff] }
 0x14b   :  { %3531 = vmatprep.subr.bf16.mxu0 %v12273_v18  ;;  %3695 = vmatprep.subr.bf16.mxu1 %v12275_v22  ;;  %v258_v17 = vld [vmem:[%s20017_s1 + $0x6b0] sm:$0xff]  ;;  %v255_v18 = vld [vmem:[%s20017_s1 + $0x698] sm:$0xff]  ;;  %v12330_v22 = vcombine.low %v247_v10, %v251_v13 }
 0x14c   :  { %v12337_v12 = vcombine.high %v254_v57, %v258_v17  ;;  %v12339_v28 = vcombine.high %v255_v18, %v259_v20  ;;  %v12336_v30 = vcombine.low %v254_v57, %v258_v17  ;;  %v315_v17 = vld [vmem:[%s20017_s1 + $0x878] sm:$0xff] }
 0x14e   :  { %3532 = vmatpush1.bf16.msra.mxu0 %v12272_v24  ;;  %3696 = vmatpush1.bf16.msra.mxu1 %v12274_v26  ;;  %v262_v24 = vld [vmem:[%s20017_s1 + $0x6d0] sm:$0xff] }
 0x14f   :  { %3533 = vmatprep.subr.bf16.mxu0 %v12281_v27  ;;  %3697 = vmatprep.subr.bf16.mxu1 %v12283_v23  ;;  %v266_v26 = vld [vmem:[%s20017_s1 + $0x6f0] sm:$0xff]  ;;  %v263_v27 = vld [vmem:[%s20017_s1 + $0x6d8] sm:$0xff]  ;;  %v12338_v23 = vcombine.low %v255_v18, %v259_v20 }
 0x150   :  { %v12345_v31 = vcombine.high %v262_v24, %v266_v26  ;;  %v12347_v36 = vcombine.high %v263_v27, %v267_v29  ;;  %v12344_v38 = vcombine.low %v262_v24, %v266_v26  ;;  %v323_v26 = vld [vmem:[%s20017_s1 + $0x8b8] sm:$0xff] }
 0x152   :  { %3534 = vmatpush1.bf16.msra.mxu0 %v12280_v32  ;;  %3698 = vmatpush1.bf16.msra.mxu1 %v12282_v33  ;;  %v270_v32 = vld [vmem:[%s20017_s1 + $0x710] sm:$0xff] }
 0x153   :  { %3535 = vmatprep.subr.bf16.mxu0 %v12289_v35  ;;  %3699 = vmatprep.subr.bf16.mxu1 %v12291_v40  ;;  %v274_v33 = vld [vmem:[%s20017_s1 + $0x730] sm:$0xff]  ;;  %v271_v35 = vld [vmem:[%s20017_s1 + $0x718] sm:$0xff]  ;;  %v12346_v40 = vcombine.low %v263_v27, %v267_v29 }
 0x154   :  { %v12353_v41 = vcombine.high %v270_v32, %v274_v33  ;;  %v12355_v45 = vcombine.high %v271_v35, %v275_v37  ;;  %v12352_v47 = vcombine.low %v270_v32, %v274_v33 }
 0x156   :  { %3536 = vmatpush1.bf16.msra.mxu0 %v12288_v42  ;;  %3700 = vmatpush1.bf16.msra.mxu1 %v12290_v43  ;;  %v278_v42 = vld [vmem:[%s20017_s1 + $0x750] sm:$0xff] }
 0x157   :  { %3537 = vmatprep.subr.bf16.mxu0 %v12297_v44  ;;  %3701 = vmatprep.subr.bf16.mxu1 %v12299_v49  ;;  %v282_v43 = vld [vmem:[%s20017_s1 + $0x770] sm:$0xff]  ;;  %v279_v44 = vld [vmem:[%s20017_s1 + $0x758] sm:$0xff]  ;;  %v12354_v49 = vcombine.low %v271_v35, %v275_v37 }
 0x158   :  { %v12361_v50 = vcombine.high %v278_v42, %v282_v43  ;;  %v12363_v54 = vcombine.high %v279_v44, %v283_v46  ;;  %v12362_v59 = vcombine.low %v279_v44, %v283_v46 }
 0x15a   :  { %3538 = vmatpush1.bf16.msra.mxu0 %v12296_v51  ;;  %3702 = vmatpush1.bf16.msra.mxu1 %v12298_v52  ;;  %v286_v51 = vld [vmem:[%s20017_s1 + $0x790] sm:$0xff] }
 0x15b   :  { %3539 = vmatprep.subr.bf16.mxu0 %v12305_v53  ;;  %3703 = vmatprep.subr.bf16.mxu1 %v12307_v58  ;;  %v290_v52 = vld [vmem:[%s20017_s1 + $0x7b0] sm:$0xff]  ;;  %v287_v53 = vld [vmem:[%s20017_s1 + $0x798] sm:$0xff]  ;;  %v12360_v58 = vcombine.low %v278_v42, %v282_v43 }
 0x15c   :  { %v12369_v60 = vcombine.high %v286_v51, %v290_v52  ;;  %v12371_v0 = vcombine.high %v287_v53, %v291_v55  ;;  %v12368_v2 = vcombine.low %v286_v51, %v290_v52 }
 0x15e   :  { %3540 = vmatpush1.bf16.msra.mxu0 %v12304_v61  ;;  %3704 = vmatpush1.bf16.msra.mxu1 %v12306_v62  ;;  %v294_v61 = vld [vmem:[%s20017_s1 + $0x7d0] sm:$0xff] }
 0x15f   :  { %3541 = vmatprep.subr.bf16.mxu0 %v12313_v63  ;;  %3705 = vmatprep.subr.bf16.mxu1 %v12315_v3  ;;  %v298_v62 = vld [vmem:[%s20017_s1 + $0x7f0] sm:$0xff]  ;;  %v295_v63 = vld [vmem:[%s20017_s1 + $0x7d8] sm:$0xff]  ;;  %v12370_v3 = vcombine.low %v287_v53, %v291_v55 }
 0x160   :  { %v12377_v4 = vcombine.high %v294_v61, %v298_v62  ;;  %v12379_v8 = vcombine.high %v295_v63, %v299_v1  ;;  %v12376_v10 = vcombine.low %v294_v61, %v298_v62 }
 0x162   :  { %3542 = vmatpush1.bf16.msra.mxu0 %v12312_v5  ;;  %3706 = vmatpush1.bf16.msra.mxu1 %v12314_v6  ;;  %v302_v5 = vld [vmem:[%s20017_s1 + $0x810] sm:$0xff] }
 0x163   :  { %3543 = vmatprep.subr.bf16.mxu0 %v12321_v7  ;;  %3707 = vmatprep.subr.bf16.mxu1 %v12323_v11  ;;  %v306_v6 = vld [vmem:[%s20017_s1 + $0x830] sm:$0xff]  ;;  %v303_v7 = vld [vmem:[%s20017_s1 + $0x818] sm:$0xff]  ;;  %v12378_v11 = vcombine.low %v295_v63, %v299_v1 }
 0x164   :  { %v12385_v13 = vcombine.high %v302_v5, %v306_v6  ;;  %v12387_v57 = vcombine.high %v303_v7, %v307_v9  ;;  %v12384_v18 = vcombine.low %v302_v5, %v306_v6 }
 0x166   :  { %3544 = vmatpush1.bf16.msra.mxu0 %v12320_v14  ;;  %3708 = vmatpush1.bf16.msra.mxu1 %v12322_v15  ;;  %v310_v14 = vld [vmem:[%s20017_s1 + $0x850] sm:$0xff] }
 0x167   :  { %3545 = vmatprep.subr.bf16.mxu0 %v12329_v16  ;;  %3709 = vmatprep.subr.bf16.mxu1 %v12331_v19  ;;  %v314_v15 = vld [vmem:[%s20017_s1 + $0x870] sm:$0xff]  ;;  %v311_v16 = vld [vmem:[%s20017_s1 + $0x858] sm:$0xff]  ;;  %v12386_v19 = vcombine.low %v303_v7, %v307_v9 }
 0x168   :  { %v12393_v20 = vcombine.high %v310_v14, %v314_v15  ;;  %v12395_v24 = vcombine.high %v311_v16, %v315_v17  ;;  %v12392_v27 = vcombine.low %v310_v14, %v314_v15 }
 0x16a   :  { %3546 = vmatpush1.bf16.msra.mxu0 %v12328_v21  ;;  %3710 = vmatpush1.bf16.msra.mxu1 %v12330_v22  ;;  %v318_v21 = vld [vmem:[%s20017_s1 + $0x890] sm:$0xff] }
 0x16b   :  { %3547 = vmatprep.subr.bf16.mxu0 %v12337_v12  ;;  %3711 = vmatprep.subr.bf16.mxu1 %v12339_v28  ;;  %v322_v22 = vld [vmem:[%s20017_s1 + $0x8b0] sm:$0xff]  ;;  %v319_v12 = vld [vmem:[%s20017_s1 + $0x898] sm:$0xff] }
 0x16e   :  { %3548 = vmatpush1.bf16.msra.mxu0 %v12336_v30  ;;  %3712 = vmatpush1.bf16.msra.mxu1 %v12338_v23 }
 0x16f   :  { %3549 = vmatprep.subr.bf16.mxu0 %v12345_v31  ;;  %3713 = vmatprep.subr.bf16.mxu1 %v12347_v36 }
 0x172   :  { %3550 = vmatpush1.bf16.msra.mxu0 %v12344_v38  ;;  %3714 = vmatpush1.bf16.msra.mxu1 %v12346_v40 }
 0x173   :  { %3551 = vmatprep.subr.bf16.mxu0 %v12353_v41  ;;  %3715 = vmatprep.subr.bf16.mxu1 %v12355_v45 }
 0x176   :  { %3552 = vmatpush1.bf16.msra.mxu0 %v12352_v47  ;;  %3716 = vmatpush1.bf16.msra.mxu1 %v12354_v49 }
 0x177   :  { %3553 = vmatprep.subr.bf16.mxu0 %v12361_v50  ;;  %3717 = vmatprep.subr.bf16.mxu1 %v12363_v54 }
 0x17a   :  { %3554 = vmatpush1.bf16.msra.mxu0 %v12360_v58  ;;  %3718 = vmatpush1.bf16.msra.mxu1 %v12362_v59 }
 0x17b   :  { %3555 = vmatprep.subr.bf16.mxu0 %v12369_v60  ;;  %3719 = vmatprep.subr.bf16.mxu1 %v12371_v0 }
 0x17e   :  { %3556 = vmatpush1.bf16.msra.mxu0 %v12368_v2  ;;  %3720 = vmatpush1.bf16.msra.mxu1 %v12370_v3 }
 0x17f   :  { %3557 = vmatprep.subr.bf16.mxu0 %v12377_v4  ;;  %3721 = vmatprep.subr.bf16.mxu1 %v12379_v8 }
 0x182   :  { %3558 = vmatpush1.bf16.msra.mxu0 %v12376_v10  ;;  %3722 = vmatpush1.bf16.msra.mxu1 %v12378_v11 }
 0x183   :  { %3568 = vmatprep.subr.bf16.mxu0 %v12385_v13  ;;  %3732 = vmatprep.subr.bf16.mxu1 %v12387_v57 }
 0x185   :  { %3560 = vmatmul.mubr.bf16.vlgmr.msra.gmra.mrb[4].mxu0 %v15334_v25  ;;  %3724 = vmatmul.mubr.bf16.vlgmr.msra.gmra.mrb[4].mxu1 %v15334_v25 }
 0x186   :  { %3569 = vmatpush1.bf16.msra.mxu0 %v12384_v18 }
 0x187   :  { %12 = vsyncpa [#allocation3], 0  ;;  %3733 = vmatpush1.bf16.msra.mxu1 %v12386_v19  ;;  %3570 = vmatprep.subr.bf16.mxu0 %v12393_v20  ;;  %v12394_v28 = vcombine.low %v311_v16, %v315_v17  ;;  %v12401_v29 = vcombine.high %v318_v21, %v322_v22  ;;  %v12403_v30 = vcombine.high %v319_v12, %v323_v26  ;;  %v326_v23 = vld [vmem:[%s20017_s1 + $0x8d0] sm:$0xff]  ;;  %v327_v25 = vld [vmem:[%s20017_s1 + $0x8d8] sm:$0xff] }
 0x188   :  { %3734 = vmatprep.subr.bf16.mxu1 %v12395_v24  ;;  %v330_v31 = vld [vmem:[%s20017_s1 + $0x8f0] sm:$0xff]  ;;  %3600 = vmatprep.mubr.bf16.mxu0 %v15348_v34  ;;  %v331_v32 = vld [vmem:[%s20017_s1 + $0x8f8] sm:$0xff]  ;;  %v12400_v33 = vcombine.low %v318_v21, %v322_v22  ;;  %v12402_v35 = vcombine.low %v319_v12, %v323_v26 }
 0x189   :  { %3764 = vmatprep.mubr.bf16.mxu1 %v15348_v34  ;;  %v12409_v36 = vcombine.high %v326_v23, %v330_v31  ;;  %v12411_v37 = vcombine.high %v327_v25, %v331_v32  ;;  %v334_v38 = vld [vmem:[%s20017_s1 + $0x910] sm:$0xff]  ;;  %v335_v34 = vld [vmem:[%s20017_s1 + $0x918] sm:$0xff]  ;;  %v12408_v42 = vcombine.low %v326_v23, %v330_v31  ;;  %v12410_v43 = vcombine.low %v327_v25, %v331_v32 }
 0x18a   :  { %3571 = vmatpush1.bf16.msra.mxu0 %v12392_v27  ;;  %v338_v40 = vld [vmem:[%s20017_s1 + $0x930] sm:$0xff]  ;;  %v339_v41 = vld [vmem:[%s20017_s1 + $0x938] sm:$0xff] }
 0x18b   :  { %3735 = vmatpush1.bf16.msra.mxu1 %v12394_v28  ;;  %3572 = vmatprep.subr.bf16.mxu0 %v12401_v29  ;;  %v12417_v44 = vcombine.high %v334_v38, %v338_v40  ;;  %v12419_v45 = vcombine.high %v335_v34, %v339_v41  ;;  %v342_v46 = vld [vmem:[%s20017_s1 + $0x950] sm:$0xff]  ;;  %v343_v49 = vld [vmem:[%s20017_s1 + $0x958] sm:$0xff]  ;;  %v12416_v51 = vcombine.low %v334_v38, %v338_v40 }
 0x18c   :  { %3736 = vmatprep.subr.bf16.mxu1 %v12403_v30  ;;  %v346_v47 = vld [vmem:[%s20017_s1 + $0x970] sm:$0xff]  ;;  %v347_v50 = vld [vmem:[%s20017_s1 + $0x978] sm:$0xff]  ;;  %v12418_v52 = vcombine.low %v335_v34, %v339_v41 }
 0x18d   :  { %v12425_v53 = vcombine.high %v342_v46, %v346_v47  ;;  %v12427_v54 = vcombine.high %v343_v49, %v347_v50  ;;  %v350_v55 = vld [vmem:[%s20017_s1 + $0x990] sm:$0xff]  ;;  %v351_v59 = vld [vmem:[%s20017_s1 + $0x998] sm:$0xff]  ;;  %v12424_v61 = vcombine.low %v342_v46, %v346_v47  ;;  %v12426_v62 = vcombine.low %v343_v49, %v347_v50 }
 0x18e   :  { %3573 = vmatpush1.bf16.msra.mxu0 %v12400_v33  ;;  %v354_v58 = vld [vmem:[%s20017_s1 + $0x9b0] sm:$0xff]  ;;  %v355_v60 = vld [vmem:[%s20017_s1 + $0x9b8] sm:$0xff] }
 0x18f   :  { %3737 = vmatpush1.bf16.msra.mxu1 %v12402_v35  ;;  %3574 = vmatprep.subr.bf16.mxu0 %v12409_v36  ;;  %v12433_v63 = vcombine.high %v350_v55, %v354_v58  ;;  %v12435_v0 = vcombine.high %v351_v59, %v355_v60  ;;  %v358_v1 = vld [vmem:[%s20017_s1 + $0x9d0] sm:$0xff]  ;;  %v359_v3 = vld [vmem:[%s20017_s1 + $0x9d8] sm:$0xff]  ;;  %v12432_v5 = vcombine.low %v350_v55, %v354_v58 }
 0x190   :  { %3738 = vmatprep.subr.bf16.mxu1 %v12411_v37  ;;  %v362_v2 = vld [vmem:[%s20017_s1 + $0x9f0] sm:$0xff]  ;;  %v363_v4 = vld [vmem:[%s20017_s1 + $0x9f8] sm:$0xff]  ;;  %v12434_v6 = vcombine.low %v351_v59, %v355_v60 }
 0x191   :  { %v12441_v7 = vcombine.high %v358_v1, %v362_v2  ;;  %v12443_v8 = vcombine.high %v359_v3, %v363_v4  ;;  %v366_v9 = vld [vmem:[%s20017_s1 + $0xa10] sm:$0xff]  ;;  %v367_v11 = vld [vmem:[%s20017_s1 + $0xa18] sm:$0xff]  ;;  %v12440_v14 = vcombine.low %v358_v1, %v362_v2  ;;  %v12442_v15 = vcombine.low %v359_v3, %v363_v4 }
 0x192   :  { %3575 = vmatpush1.bf16.msra.mxu0 %v12408_v42  ;;  %v370_v10 = vld [vmem:[%s20017_s1 + $0xa30] sm:$0xff]  ;;  %v371_v13 = vld [vmem:[%s20017_s1 + $0xa38] sm:$0xff] }
 0x193   :  { %3739 = vmatpush1.bf16.msra.mxu1 %v12410_v43  ;;  %3576 = vmatprep.subr.bf16.mxu0 %v12417_v44  ;;  %v12449_v16 = vcombine.high %v366_v9, %v370_v10  ;;  %v12451_v57 = vcombine.high %v367_v11, %v371_v13  ;;  %v374_v17 = vld [vmem:[%s20017_s1 + $0xa50] sm:$0xff]  ;;  %v375_v19 = vld [vmem:[%s20017_s1 + $0xa58] sm:$0xff]  ;;  %v12448_v21 = vcombine.low %v366_v9, %v370_v10 }
 0x194   :  { %3740 = vmatprep.subr.bf16.mxu1 %v12419_v45  ;;  %v378_v18 = vld [vmem:[%s20017_s1 + $0xa70] sm:$0xff]  ;;  %v379_v20 = vld [vmem:[%s20017_s1 + $0xa78] sm:$0xff]  ;;  %v12450_v22 = vcombine.low %v367_v11, %v371_v13 }
 0x195   :  { %v12457_v12 = vcombine.high %v374_v17, %v378_v18  ;;  %v12459_v24 = vcombine.high %v375_v19, %v379_v20  ;;  %v382_v26 = vld [vmem:[%s20017_s1 + $0xa90] sm:$0xff]  ;;  %v383_v28 = vld [vmem:[%s20017_s1 + $0xa98] sm:$0xff]  ;;  %v12456_v30 = vcombine.low %v374_v17, %v378_v18  ;;  %v12458_v23 = vcombine.low %v375_v19, %v379_v20 }
 0x196   :  { %3577 = vmatpush1.bf16.msra.mxu0 %v12416_v51  ;;  %v386_v27 = vld [vmem:[%s20017_s1 + $0xab0] sm:$0xff]  ;;  %v387_v29 = vld [vmem:[%s20017_s1 + $0xab8] sm:$0xff] }
 0x197   :  { %3741 = vmatpush1.bf16.msra.mxu1 %v12418_v52  ;;  %3578 = vmatprep.subr.bf16.mxu0 %v12425_v53  ;;  %v12465_v31 = vcombine.high %v382_v26, %v386_v27  ;;  %v12467_v25 = vcombine.high %v383_v28, %v387_v29  ;;  %v390_v32 = vld [vmem:[%s20017_s1 + $0xad0] sm:$0xff]  ;;  %v391_v35 = vld [vmem:[%s20017_s1 + $0xad8] sm:$0xff]  ;;  %v12464_v37 = vcombine.low %v382_v26, %v386_v27 }
 0x198   :  { %3742 = vmatprep.subr.bf16.mxu1 %v12427_v54  ;;  %v394_v33 = vld [vmem:[%s20017_s1 + $0xaf0] sm:$0xff]  ;;  %v395_v36 = vld [vmem:[%s20017_s1 + $0xaf8] sm:$0xff]  ;;  %v12466_v38 = vcombine.low %v383_v28, %v387_v29 }
 0x199   :  { %v12473_v40 = vcombine.high %v390_v32, %v394_v33  ;;  %v12475_v34 = vcombine.high %v391_v35, %v395_v36  ;;  %v398_v41 = vld [vmem:[%s20017_s1 + $0xb10] sm:$0xff]  ;;  %v399_v43 = vld [vmem:[%s20017_s1 + $0xb18] sm:$0xff]  ;;  %v12472_v45 = vcombine.low %v390_v32, %v394_v33  ;;  %v12474_v46 = vcombine.low %v391_v35, %v395_v36 }
 0x19a   :  { %3579 = vmatpush1.bf16.msra.mxu0 %v12424_v61  ;;  %v402_v42 = vld [vmem:[%s20017_s1 + $0xb30] sm:$0xff]  ;;  %v403_v44 = vld [vmem:[%s20017_s1 + $0xb38] sm:$0xff] }
 0x19b   :  { %3743 = vmatpush1.bf16.msra.mxu1 %v12426_v62  ;;  %3580 = vmatprep.subr.bf16.mxu0 %v12433_v63  ;;  %v12481_v47 = vcombine.high %v398_v41, %v402_v42  ;;  %v12483_v49 = vcombine.high %v399_v43, %v403_v44  ;;  %v406_v50 = vld [vmem:[%s20017_s1 + $0xb50] sm:$0xff]  ;;  %v407_v52 = vld [vmem:[%s20017_s1 + $0xb58] sm:$0xff]  ;;  %v12480_v54 = vcombine.low %v398_v41, %v402_v42 }
 0x19c   :  { %3744 = vmatprep.subr.bf16.mxu1 %v12435_v0  ;;  %v410_v51 = vld [vmem:[%s20017_s1 + $0xb70] sm:$0xff]  ;;  %v411_v53 = vld [vmem:[%s20017_s1 + $0xb78] sm:$0xff]  ;;  %v12482_v55 = vcombine.low %v399_v43, %v403_v44 }
 0x19d   :  { %v12489_v58 = vcombine.high %v406_v50, %v410_v51  ;;  %v12491_v59 = vcombine.high %v407_v52, %v411_v53  ;;  %v414_v60 = vld [vmem:[%s20017_s1 + $0xb90] sm:$0xff]  ;;  %v415_v62 = vld [vmem:[%s20017_s1 + $0xb98] sm:$0xff]  ;;  %v12488_v0 = vcombine.low %v406_v50, %v410_v51  ;;  %v12490_v1 = vcombine.low %v407_v52, %v411_v53 }
 0x19e   :  { %3581 = vmatpush1.bf16.msra.mxu0 %v12432_v5  ;;  %v418_v61 = vld [vmem:[%s20017_s1 + $0xbb0] sm:$0xff]  ;;  %v419_v63 = vld [vmem:[%s20017_s1 + $0xbb8] sm:$0xff] }
 0x19f   :  { %3745 = vmatpush1.bf16.msra.mxu1 %v12434_v6  ;;  %3582 = vmatprep.subr.bf16.mxu0 %v12441_v7  ;;  %v12497_v2 = vcombine.high %v414_v60, %v418_v61  ;;  %v12499_v3 = vcombine.high %v415_v62, %v419_v63  ;;  %v422_v4 = vld [vmem:[%s20017_s1 + $0xbd0] sm:$0xff]  ;;  %v423_v6 = vld [vmem:[%s20017_s1 + $0xbd8] sm:$0xff]  ;;  %v12498_v9 = vcombine.low %v415_v62, %v419_v63 }
 0x1a0   :  { %3746 = vmatprep.subr.bf16.mxu1 %v12443_v8  ;;  %v426_v5 = vld [vmem:[%s20017_s1 + $0xbf0] sm:$0xff]  ;;  %v427_v7 = vld [vmem:[%s20017_s1 + $0xbf8] sm:$0xff]  ;;  %v12496_v8 = vcombine.low %v414_v60, %v418_v61 }
 0x1a1   :  { %v12505_v10 = vcombine.high %v422_v4, %v426_v5  ;;  %v12507_v11 = vcombine.high %v423_v6, %v427_v7  ;;  %v430_v13 = vld [vmem:[%s20017_s1 + $0xc10] sm:$0xff]  ;;  %v12506_v17 = vcombine.low %v423_v6, %v427_v7  ;;  %v471_v53 = vld [vmem:[%s20017_s1 + $0xd58] sm:$0xff] }
 0x1a2   :  { %3583 = vmatpush1.bf16.msra.mxu0 %v12440_v14  ;;  %v434_v14 = vld [vmem:[%s20017_s1 + $0xc30] sm:$0xff]  ;;  %v479_v63 = vld [vmem:[%s20017_s1 + $0xd98] sm:$0xff] }
 0x1a3   :  { %3747 = vmatpush1.bf16.msra.mxu1 %v12442_v15  ;;  %3584 = vmatprep.subr.bf16.mxu0 %v12449_v16  ;;  %v431_v15 = vld [vmem:[%s20017_s1 + $0xc18] sm:$0xff]  ;;  %v12513_v18 = vcombine.high %v430_v13, %v434_v14  ;;  %v438_v20 = vld [vmem:[%s20017_s1 + $0xc50] sm:$0xff] }
 0x1a4   :  { %3748 = vmatprep.subr.bf16.mxu1 %v12451_v57  ;;  %v435_v16 = vld [vmem:[%s20017_s1 + $0xc38] sm:$0xff]  ;;  %v12504_v57 = vcombine.low %v422_v4, %v426_v5  ;;  %v446_v29 = vld [vmem:[%s20017_s1 + $0xc90] sm:$0xff] }
 0x1a5   :  { %v12515_v19 = vcombine.high %v431_v15, %v435_v16  ;;  %v12514_v26 = vcombine.low %v431_v15, %v435_v16  ;;  %v454_v36 = vld [vmem:[%s20017_s1 + $0xcd0] sm:$0xff] }
 0x1a6   :  { %3585 = vmatpush1.bf16.msra.mxu0 %v12448_v21  ;;  %v442_v21 = vld [vmem:[%s20017_s1 + $0xc70] sm:$0xff] }
 0x1a7   :  { %3749 = vmatpush1.bf16.msra.mxu1 %v12450_v22  ;;  %3586 = vmatprep.subr.bf16.mxu0 %v12457_v12  ;;  %v439_v22 = vld [vmem:[%s20017_s1 + $0xc58] sm:$0xff]  ;;  %v12521_v27 = vcombine.high %v438_v20, %v442_v21  ;;  %v462_v43 = vld [vmem:[%s20017_s1 + $0xd10] sm:$0xff] }
 0x1a8   :  { %3750 = vmatprep.subr.bf16.mxu1 %v12459_v24  ;;  %v443_v12 = vld [vmem:[%s20017_s1 + $0xc78] sm:$0xff]  ;;  %v12512_v24 = vcombine.low %v430_v13, %v434_v14  ;;  %v466_v44 = vld [vmem:[%s20017_s1 + $0xd30] sm:$0xff] }
 0x1a9   :  { %v12523_v28 = vcombine.high %v439_v22, %v443_v12  ;;  %v12522_v32 = vcombine.low %v439_v22, %v443_v12  ;;  %v470_v51 = vld [vmem:[%s20017_s1 + $0xd50] sm:$0xff]  ;;  %v495_v12 = vld [vmem:[%s20017_s1 + $0xe18] sm:$0xff] }
 0x1aa   :  { %3587 = vmatpush1.bf16.msra.mxu0 %v12456_v30  ;;  %v450_v30 = vld [vmem:[%s20017_s1 + $0xcb0] sm:$0xff] }
 0x1ab   :  { %3751 = vmatpush1.bf16.msra.mxu1 %v12458_v23  ;;  %3588 = vmatprep.subr.bf16.mxu0 %v12465_v31  ;;  %v447_v23 = vld [vmem:[%s20017_s1 + $0xc98] sm:$0xff]  ;;  %v12529_v33 = vcombine.high %v446_v29, %v450_v30  ;;  %v474_v52 = vld [vmem:[%s20017_s1 + $0xd70] sm:$0xff] }
 0x1ac   :  { %3752 = vmatprep.subr.bf16.mxu1 %v12467_v25  ;;  %v451_v31 = vld [vmem:[%s20017_s1 + $0xcb8] sm:$0xff]  ;;  %v12520_v25 = vcombine.low %v438_v20, %v442_v21  ;;  %v478_v61 = vld [vmem:[%s20017_s1 + $0xd90] sm:$0xff] }
 0x1ad   :  { %v12531_v35 = vcombine.high %v447_v23, %v451_v31  ;;  %v482_v62 = vld [vmem:[%s20017_s1 + $0xdb0] sm:$0xff] }
 0x1ae   :  { %3589 = vmatpush1.bf16.msra.mxu0 %v12464_v37  ;;  %v458_v37 = vld [vmem:[%s20017_s1 + $0xcf0] sm:$0xff]  ;;  %v12560_v15 = vcombine.low %v478_v61, %v482_v62 }
 0x1af   :  { %3753 = vmatpush1.bf16.msra.mxu1 %v12466_v38  ;;  %3590 = vmatprep.subr.bf16.mxu0 %v12473_v40  ;;  %v459_v38 = vld [vmem:[%s20017_s1 + $0xcf8] sm:$0xff]  ;;  %v12528_v40 = vcombine.low %v446_v29, %v450_v30  ;;  %v12537_v41 = vcombine.high %v454_v36, %v458_v37  ;;  %v486_v6 = vld [vmem:[%s20017_s1 + $0xdd0] sm:$0xff] }
 0x1b0   :  { %3754 = vmatprep.subr.bf16.mxu1 %v12475_v34  ;;  %v12530_v34 = vcombine.low %v447_v23, %v451_v31  ;;  %v490_v7 = vld [vmem:[%s20017_s1 + $0xdf0] sm:$0xff]  ;;  %v503_v31 = vld [vmem:[%s20017_s1 + $0xe58] sm:$0xff] }
 0x1b1   :  { %v494_v21 = vld [vmem:[%s20017_s1 + $0xe10] sm:$0xff] }
 0x1b2   :  { %3591 = vmatpush1.bf16.msra.mxu0 %v12472_v45  ;;  %v467_v45 = vld [vmem:[%s20017_s1 + $0xd38] sm:$0xff]  ;;  %v498_v22 = vld [vmem:[%s20017_s1 + $0xe30] sm:$0xff] }
 0x1b3   :  { %3755 = vmatpush1.bf16.msra.mxu1 %v12474_v46  ;;  %3592 = vmatprep.subr.bf16.mxu0 %v12481_v47  ;;  %v12536_v46 = vcombine.low %v454_v36, %v458_v37  ;;  %v502_v30 = vld [vmem:[%s20017_s1 + $0xe50] sm:$0xff] }
 0x1b4   :  { %3756 = vmatprep.subr.bf16.mxu1 %v12483_v49  ;;  %v12545_v49 = vcombine.high %v462_v43, %v466_v44  ;;  %v506_v23 = vld [vmem:[%s20017_s1 + $0xe70] sm:$0xff] }
 0x1b5   :  { %v510_v37 = vld [vmem:[%s20017_s1 + $0xe90] sm:$0xff] }
 0x1b6   :  { %3593 = vmatpush1.bf16.msra.mxu0 %v12480_v54  ;;  %v475_v54 = vld [vmem:[%s20017_s1 + $0xd78] sm:$0xff] }
 0x1b7   :  { %3757 = vmatpush1.bf16.msra.mxu1 %v12482_v55  ;;  %3594 = vmatprep.subr.bf16.mxu0 %v12489_v58  ;;  %v12544_v55 = vcombine.low %v462_v43, %v466_v44  ;;  %v12555_v60 = vcombine.high %v471_v53, %v475_v54  ;;  %v518_v44 = vld [vmem:[%s20017_s1 + $0xed0] sm:$0xff] }
 0x1b8   :  { %3758 = vmatprep.subr.bf16.mxu1 %v12491_v59  ;;  %v12553_v59 = vcombine.high %v470_v51, %v474_v52 }
 0x1ba   :  { %3595 = vmatpush1.bf16.msra.mxu0 %v12488_v0  ;;  %v483_v0 = vld [vmem:[%s20017_s1 + $0xdb8] sm:$0xff] }
 0x1bb   :  { %3759 = vmatpush1.bf16.msra.mxu1 %v12490_v1  ;;  %3596 = vmatprep.subr.bf16.mxu0 %v12497_v2  ;;  %v12552_v1 = vcombine.low %v470_v51, %v474_v52  ;;  %v12554_v2 = vcombine.low %v471_v53, %v475_v54  ;;  %v12563_v5 = vcombine.high %v479_v63, %v483_v0  ;;  %v526_v52 = vld [vmem:[%s20017_s1 + $0xf10] sm:$0xff]  ;;  %v558_v54 = vlaneseq }
 0x1bc   :  { %3760 = vmatprep.subr.bf16.mxu1 %v12499_v3  ;;  %v12561_v3 = vcombine.high %v478_v61, %v482_v62  ;;  %v530_v53 = vld [vmem:[%s20017_s1 + $0xf30] sm:$0xff] }
 0x1bd   :  { %v12609_v61 = vcombine.high %v526_v52, %v530_v53 }
 0x1be   :  { %3597 = vmatpush1.bf16.msra.mxu0 %v12496_v8 }
 0x1bf   :  { %3761 = vmatpush1.bf16.msra.mxu1 %v12498_v9  ;;  %3598 = vmatprep.subr.bf16.mxu0 %v12505_v10  ;;  %v487_v10 = vld [vmem:[%s20017_s1 + $0xdd8] sm:$0xff] }
 0x1c0   :  { %3762 = vmatprep.subr.bf16.mxu1 %v12507_v11  ;;  %v491_v11 = vld [vmem:[%s20017_s1 + $0xdf8] sm:$0xff] }
 0x1c1   :  { %v12571_v20 = vcombine.high %v487_v10, %v491_v11 }
 0x1c2   :  { %3599 = vmatpush1.bf16.msra.mxu0 %v12504_v57 }
 0x1c3   :  { %3763 = vmatpush1.bf16.msra.mxu1 %v12506_v17  ;;  %3609 = vmatprep.subr.bf16.mxu0 %v12513_v18  ;;  %v12562_v17 = vcombine.low %v479_v63, %v483_v0  ;;  %v12569_v18 = vcombine.high %v486_v6, %v490_v7  ;;  %v534_v63 = vld [vmem:[%s20017_s1 + $0xf50] sm:$0xff] }
 0x1c4   :  { %3773 = vmatprep.subr.bf16.mxu1 %v12515_v19  ;;  %v538_v0 = vld [vmem:[%s20017_s1 + $0xf70] sm:$0xff] }
 0x1c5   :  { %3601 = vmatmul.mubr.bf16.vlgmr.msra.gmra.mrb[4].mxu0 %v15540_v39 }
 0x1c6   :  { %3610 = vmatpush1.bf16.msra.mxu0 %v12512_v24  ;;  %3765 = vmatmul.mubr.bf16.vlgmr.msra.gmra.mrb[4].mxu1 %v15540_v39  ;;  %v455_v39 = vld [vmem:[%s20017_s1 + $0xcd8] sm:$0xff] }
 0x1c7   :  { %3774 = vmatpush1.bf16.msra.mxu1 %v12514_v26  ;;  %3611 = vmatprep.subr.bf16.mxu0 %v12521_v27  ;;  %v12539_v42 = vcombine.high %v455_v39, %v459_v38  ;;  %v12538_v47 = vcombine.low %v455_v39, %v459_v38  ;;  %v499_v24 = vld [vmem:[%s20017_s1 + $0xe38] sm:$0xff]  ;;  %v12568_v26 = vcombine.low %v486_v6, %v490_v7  ;;  %v514_v39 = vld [vmem:[%s20017_s1 + $0xeb0] sm:$0xff] }
 0x1c8   :  { %3775 = vmatprep.subr.bf16.mxu1 %v12523_v28  ;;  %3641 = vmatprep.mubr.bf16.mxu0 %v15554_v48  ;;  %v12570_v27 = vcombine.low %v487_v10, %v491_v11  ;;  %v12577_v28 = vcombine.high %v494_v21, %v498_v22  ;;  %v12579_v29 = vcombine.high %v495_v12, %v499_v24  ;;  %v511_v38 = vld [vmem:[%s20017_s1 + $0xe98] sm:$0xff]  ;;  %v542_v11 = vld [vmem:[%s20017_s1 + $0xf90] sm:$0xff] }
 0x1c9   :  { %3805 = vmatprep.mubr.bf16.mxu1 %v15554_v48  ;;  %v463_v48 = vld [vmem:[%s20017_s1 + $0xd18] sm:$0xff]  ;;  %v12617_v7 = vcombine.high %v534_v63, %v538_v0 }
 0x1ca   :  { %3612 = vmatpush1.bf16.msra.mxu0 %v12520_v25  ;;  %v12547_v50 = vcombine.high %v463_v48, %v467_v45  ;;  %v12546_v58 = vcombine.low %v463_v48, %v467_v45  ;;  %v507_v25 = vld [vmem:[%s20017_s1 + $0xe78] sm:$0xff]  ;;  %v522_v48 = vld [vmem:[%s20017_s1 + $0xef0] sm:$0xff] }
 0x1cb   :  { %3776 = vmatpush1.bf16.msra.mxu1 %v12522_v32  ;;  %3613 = vmatprep.subr.bf16.mxu0 %v12529_v33  ;;  %v12576_v32 = vcombine.low %v494_v21, %v498_v22  ;;  %v12578_v33 = vcombine.low %v495_v12, %v499_v24  ;;  %v12587_v36 = vcombine.high %v503_v31, %v507_v25  ;;  %v519_v45 = vld [vmem:[%s20017_s1 + $0xed8] sm:$0xff]  ;;  %v550_v22 = vld [vmem:[%s20017_s1 + $0xfd0] sm:$0xff] }
 0x1cc   :  { %3777 = vmatprep.subr.bf16.mxu1 %v12531_v35  ;;  %v12585_v35 = vcombine.high %v502_v30, %v506_v23  ;;  %v554_v12 = vld [vmem:[%s20017_s1 + $0xff0] sm:$0xff] }
 0x1ce   :  { %3614 = vmatpush1.bf16.msra.mxu0 %v12528_v40  ;;  %v515_v40 = vld [vmem:[%s20017_s1 + $0xeb8] sm:$0xff] }
 0x1cf   :  { %3778 = vmatpush1.bf16.msra.mxu1 %v12530_v34  ;;  %3615 = vmatprep.subr.bf16.mxu0 %v12537_v41  ;;  %v12584_v34 = vcombine.low %v502_v30, %v506_v23  ;;  %v12586_v41 = vcombine.low %v503_v31, %v507_v25  ;;  %v12595_v43 = vcombine.high %v511_v38, %v515_v40  ;;  %v3830_v31 = vld [vmem:[%s20019_s3] sm:$0xff] }
 0x1d0   :  { %3779 = vmatprep.subr.bf16.mxu1 %v12539_v42  ;;  %v12593_v42 = vcombine.high %v510_v37, %v514_v39  ;;  %v12633_v30 = vcombine.high %v550_v22, %v554_v12  ;;  %v3834_v25 = vld [vmem:[%s20019_s3 + $0x20] sm:$0xff] }
 0x1d2   :  { %3616 = vmatpush1.bf16.msra.mxu0 %v12536_v46  ;;  %v523_v46 = vld [vmem:[%s20017_s1 + $0xef8] sm:$0xff] }
 0x1d3   :  { %3780 = vmatpush1.bf16.msra.mxu1 %v12538_v47  ;;  %3617 = vmatprep.subr.bf16.mxu0 %v12545_v49  ;;  %v12592_v47 = vcombine.low %v510_v37, %v514_v39  ;;  %v12594_v49 = vcombine.low %v511_v38, %v515_v40  ;;  %v12603_v51 = vcombine.high %v519_v45, %v523_v46 }
 0x1d4   :  { %3781 = vmatprep.subr.bf16.mxu1 %v12547_v50  ;;  %v12601_v50 = vcombine.high %v518_v44, %v522_v48  ;;  %v12637_v39 = vcombine.high %v3830_v31, %v3834_v25 }
 0x1d6   :  { %3618 = vmatpush1.bf16.msra.mxu0 %v12544_v55  ;;  %v527_v55 = vld [vmem:[%s20017_s1 + $0xf18] sm:$0xff] }
 0x1d7   :  { %3782 = vmatpush1.bf16.msra.mxu1 %v12546_v58  ;;  %3619 = vmatprep.subr.bf16.mxu0 %v12553_v59  ;;  %v531_v58 = vld [vmem:[%s20017_s1 + $0xf38] sm:$0xff]  ;;  %v12600_v59 = vcombine.low %v518_v44, %v522_v48 }
 0x1d8   :  { %v16397_v4 = vpop.f32.mrb[0].mxu0  ;;  %3783 = vmatprep.subr.bf16.mxu1 %v12555_v60  ;;  %v16405_v8 = vpop.f32.mrb[0].mxu1  ;;  %v12602_v60 = vcombine.low %v519_v45, %v523_v46  ;;  %v12611_v62 = vcombine.high %v527_v55, %v531_v58  ;;  %v12610_v6 = vcombine.low %v527_v55, %v531_v58  ;;  %v3846_v45 = vld [vmem:[%s20019_s3 + $0x80] sm:$0xff] }
 0x1d9   :  { %v16407_v9 = vpop.f32.mrb[1].mxu0  ;;  %v16415_v13 = vpop.f32.mrb[1].mxu1  ;;  %v3850_v46 = vld [vmem:[%s20019_s3 + $0xa0] sm:$0xff] }
 0x1da   :  { %v3319_v14 = vpop.f32.mrb[2].mxu0  ;;  %3620 = vmatpush1.bf16.msra.mxu0 %v12552_v1  ;;  %v3483_v16 = vpop.f32.mrb[2].mxu1  ;;  %v16483_v1 = vshrl.u32 %v558_v54, 7  ;;  %v12653_v54 = vcombine.high %v3846_v45, %v3850_v46  ;;  %v3854_v58 = vld [vmem:[%s20019_s3 + $0xc0] sm:$0xff] }
 0x1db   :  { %3784 = vmatpush1.bf16.msra.mxu1 %v12554_v2  ;;  %v3320_v57 = vpop.f32.mrb[3].mxu0  ;;  %3621 = vmatprep.subr.bf16.mxu0 %v12561_v3  ;;  %v3484_v19 = vpop.f32.mrb[3].mxu1  ;;  %v535_v2 = vld [vmem:[%s20017_s1 + $0xf58] sm:$0xff]  ;;  %v546_v14 = vld [vmem:[%s20017_s1 + $0xfb0] sm:$0xff] }
 0x1dc   :  { %3785 = vmatprep.subr.bf16.mxu1 %v12563_v5  ;;  %v539_v3 = vld [vmem:[%s20017_s1 + $0xf78] sm:$0xff]  ;;  %v12608_v5 = vcombine.low %v526_v52, %v530_v53 }
 0x1dd   :  { %v12619_v10 = vcombine.high %v535_v2, %v539_v3  ;;  %v543_v16 = vld [vmem:[%s20017_s1 + $0xf98] sm:$0xff]  ;;  %v12618_v19 = vcombine.low %v535_v2, %v539_v3  ;;  %v3862_v2 = vld [vmem:[%s20019_s3 + $0x100] sm:$0xff] }
 0x1de   :  { %3622 = vmatpush1.bf16.msra.mxu0 %v12560_v15  ;;  %v16498_v15 = vsub.s32 1, %v16483_v1  ;;  %v547_v57 = vld [vmem:[%s20017_s1 + $0xfb8] sm:$0xff]  ;;  %v3866_v3 = vld [vmem:[%s20019_s3 + $0x120] sm:$0xff] }
 0x1df   :  { %3786 = vmatpush1.bf16.msra.mxu1 %v12562_v17  ;;  %3623 = vmatprep.subr.bf16.mxu0 %v12569_v18  ;;  %v16509_v17 = vld [vmem:[%s20018_s2] sm:$0xff]  ;;  %v12616_v18 = vcombine.low %v534_v63, %v538_v0  ;;  %v12627_v21 = vcombine.high %v543_v16, %v547_v57 }
 0x1e0   :  { %3787 = vmatprep.subr.bf16.mxu1 %v12571_v20  ;;  %v12625_v20 = vcombine.high %v542_v11, %v546_v14  ;;  %v565_v24 = vrot.slane %v16509_v17, %v16498_v15 }
 0x1e2   :  { %3624 = vmatpush1.bf16.msra.mxu0 %v12568_v26  ;;  %v551_v26 = vld [vmem:[%s20017_s1 + $0xfd8] sm:$0xff] }
 0x1e3   :  { %3788 = vmatpush1.bf16.msra.mxu1 %v12570_v27  ;;  %3625 = vmatprep.subr.bf16.mxu0 %v12577_v28  ;;  %v555_v27 = vld [vmem:[%s20017_s1 + $0xff8] sm:$0xff]  ;;  %v12624_v28 = vcombine.low %v542_v11, %v546_v14  ;;  %v12669_v11 = vcombine.high %v3862_v2, %v3866_v3 }
 0x1e4   :  { %3789 = vmatprep.subr.bf16.mxu1 %v12579_v29  ;;  %v12626_v29 = vcombine.low %v543_v16, %v547_v57  ;;  %v12635_v23 = vcombine.high %v551_v26, %v555_v27  ;;  %v12634_v37 = vcombine.low %v551_v26, %v555_v27  ;;  %v3870_v16 = vld [vmem:[%s20019_s3 + $0x140] sm:$0xff]  ;;  %v3879_v27 = vld [vmem:[%s20019_s3 + $0x188] sm:$0xff] }
 0x1e5   :  { %v3874_v57 = vld [vmem:[%s20019_s3 + $0x160] sm:$0xff] }
 0x1e6   :  { %3626 = vmatpush1.bf16.msra.mxu0 %v12576_v32  ;;  %v13814_v32 = vadd.f32 %v16407_v9, %v565_v24  ;;  %v3838_v9 = vld [vmem:[%s20019_s3 + $0x40] sm:$0xff] }
 0x1e7   :  { %3790 = vmatpush1.bf16.msra.mxu1 %v12578_v33  ;;  %3627 = vmatprep.subr.bf16.mxu0 %v12585_v35  ;;  %v3831_v33 = vld [vmem:[%s20019_s3 + $0x8] sm:$0xff]  ;;  %v3878_v24 = vld [vmem:[%s20019_s3 + $0x180] sm:$0xff] }
 0x1e8   :  { %3791 = vmatprep.subr.bf16.mxu1 %v12587_v36  ;;  %v3835_v35 = vld [vmem:[%s20019_s3 + $0x28] sm:$0xff]  ;;  %v12632_v36 = vcombine.low %v550_v22, %v554_v12  ;;  %v3815_v40 = vmax.f32 %v13814_v32, 0.0  ;;  %v12677_v22 = vcombine.high %v3870_v16, %v3874_v57  ;;  %v3882_v26 = vld [vmem:[%s20019_s3 + $0x1a0] sm:$0xff] }
 0x1e9   :  { %v12639_v38 = vcombine.high %v3831_v33, %v3835_v35  ;;  %v12638_v44 = vcombine.low %v3831_v33, %v3835_v35  ;;  %v3890_v32 = vld [vmem:[%s20019_s3 + $0x1e0] sm:$0xff]  ;;  %v3887_v33 = vld [vmem:[%s20019_s3 + $0x1c8] sm:$0xff] }
 0x1ea   :  { %3628 = vmatpush1.bf16.msra.mxu0 %v12584_v34  ;;  %v3842_v34 = vld [vmem:[%s20019_s3 + $0x60] sm:$0xff]  ;;  %v3891_v35 = vld [vmem:[%s20019_s3 + $0x1e8] sm:$0xff] }
 0x1eb   :  { %3792 = vmatpush1.bf16.msra.mxu1 %v12586_v41  ;;  %3629 = vmatprep.subr.bf16.mxu0 %v12593_v42  ;;  %v12636_v41 = vcombine.low %v3830_v31, %v3834_v25  ;;  %v3839_v42 = vld [vmem:[%s20019_s3 + $0x48] sm:$0xff]  ;;  %v12645_v48 = vcombine.high %v3838_v9, %v3842_v34  ;;  %v12644_v52 = vcombine.low %v3838_v9, %v3842_v34  ;;  %v3886_v25 = vld [vmem:[%s20019_s3 + $0x1c0] sm:$0xff] }
 0x1ec   :  { %3793 = vmatprep.subr.bf16.mxu1 %v12595_v43  ;;  %v3843_v43 = vld [vmem:[%s20019_s3 + $0x68] sm:$0xff]  ;;  %v3898_v9 = vld [vmem:[%s20019_s3 + $0x220] sm:$0xff] }
 0x1ed   :  { %v12646_v53 = vcombine.low %v3839_v42, %v3843_v43  ;;  %v3895_v34 = vld [vmem:[%s20019_s3 + $0x208] sm:$0xff] }
 0x1ee   :  { %3630 = vmatpush1.bf16.msra.mxu0 %v12592_v47  ;;  %v16556_v47 = vpack.c.bf16 %v3815_v40, %v3815_v40  ;;  %v3894_v40 = vld [vmem:[%s20019_s3 + $0x200] sm:$0xff] }
 0x1ef   :  { %3794 = vmatpush1.bf16.msra.mxu1 %v12594_v49  ;;  %3631 = vmatprep.subr.bf16.mxu0 %v12601_v50  ;;  %v12647_v49 = vcombine.high %v3839_v42, %v3843_v43  ;;  %v3847_v50 = vld [vmem:[%s20019_s3 + $0x88] sm:$0xff]  ;;  %v12692_v42 = vcombine.low %v3886_v25, %v3890_v32  ;;  %v12694_v43 = vcombine.low %v3887_v33, %v3891_v35 }
 0x1f0   :  { %3795 = vmatprep.subr.bf16.mxu1 %v12603_v51  ;;  %v3851_v51 = vld [vmem:[%s20019_s3 + $0xa8] sm:$0xff] }
 0x1f1   :  { %v12655_v55 = vcombine.high %v3847_v50, %v3851_v51 }
 0x1f2   :  { %3632 = vmatpush1.bf16.msra.mxu0 %v12600_v59  ;;  %v3858_v59 = vld [vmem:[%s20019_s3 + $0xe0] sm:$0xff] }
 0x1f3   :  { %3796 = vmatpush1.bf16.msra.mxu1 %v12602_v60  ;;  %3633 = vmatprep.subr.bf16.mxu0 %v12609_v61  ;;  %v3859_v60 = vld [vmem:[%s20019_s3 + $0xe8] sm:$0xff]  ;;  %v12652_v61 = vcombine.low %v3846_v45, %v3850_v46  ;;  %v12661_v63 = vcombine.high %v3854_v58, %v3858_v59  ;;  %v3902_v45 = vld [vmem:[%s20019_s3 + $0x240] sm:$0xff] }
 0x1f4   :  { %3797 = vmatprep.subr.bf16.mxu1 %v12611_v62  ;;  %v12654_v62 = vcombine.low %v3847_v50, %v3851_v51  ;;  %v3906_v46 = vld [vmem:[%s20019_s3 + $0x260] sm:$0xff]  ;;  %v3907_v50 = vld [vmem:[%s20019_s3 + $0x268] sm:$0xff]  ;;  %v12700_v51 = vcombine.low %v3894_v40, %v3898_v9 }
 0x1f6   :  { %3634 = vmatpush1.bf16.msra.mxu0 %v12608_v5  ;;  %v3863_v5 = vld [vmem:[%s20019_s3 + $0x108] sm:$0xff] }
 0x1f7   :  { %3798 = vmatpush1.bf16.msra.mxu1 %v12610_v6  ;;  %3635 = vmatprep.subr.bf16.mxu0 %v12617_v7  ;;  %v3867_v6 = vld [vmem:[%s20019_s3 + $0x128] sm:$0xff]  ;;  %v12660_v7 = vcombine.low %v3854_v58, %v3858_v59  ;;  %v3914_v58 = vld [vmem:[%s20019_s3 + $0x2a0] sm:$0xff] }
 0x1f8   :  { %3799 = vmatprep.subr.bf16.mxu1 %v12619_v10  ;;  %v12671_v14 = vcombine.high %v3863_v5, %v3867_v6  ;;  %v3911_v59 = vld [vmem:[%s20019_s3 + $0x288] sm:$0xff] }
 0x1fa   :  { %3636 = vmatpush1.bf16.msra.mxu0 %v12616_v18  ;;  %v3871_v18 = vld [vmem:[%s20019_s3 + $0x148] sm:$0xff] }
 0x1fb   :  { %3800 = vmatpush1.bf16.msra.mxu1 %v12618_v19  ;;  %3637 = vmatprep.subr.bf16.mxu0 %v12625_v20  ;;  %v3875_v19 = vld [vmem:[%s20019_s3 + $0x168] sm:$0xff]  ;;  %v12668_v20 = vcombine.low %v3862_v2, %v3866_v3  ;;  %v3922_v2 = vld [vmem:[%s20019_s3 + $0x2e0] sm:$0xff] }
 0x1fc   :  { %3801 = vmatprep.subr.bf16.mxu1 %v12627_v21  ;;  %v12670_v21 = vcombine.low %v3863_v5, %v3867_v6  ;;  %v12679_v12 = vcombine.high %v3871_v18, %v3875_v19  ;;  %v3919_v3 = vld [vmem:[%s20019_s3 + $0x2c8] sm:$0xff] }
 0x1fd   :  { %v3923_v5 = vld [vmem:[%s20019_s3 + $0x2e8] sm:$0xff] }
 0x1fe   :  { %3638 = vmatpush1.bf16.msra.mxu0 %v12624_v28  ;;  %v3883_v28 = vld [vmem:[%s20019_s3 + $0x1a8] sm:$0xff] }
 0x1ff   :  { %3802 = vmatpush1.bf16.msra.mxu1 %v12626_v29  ;;  %3639 = vmatprep.subr.bf16.mxu0 %v12633_v30  ;;  %v12676_v29 = vcombine.low %v3870_v16, %v3874_v57  ;;  %v12678_v30 = vcombine.low %v3871_v18, %v3875_v19  ;;  %v12687_v31 = vcombine.high %v3879_v27, %v3883_v28  ;;  %v3930_v16 = vld [vmem:[%s20019_s3 + $0x320] sm:$0xff]  ;;  %v3927_v57 = vld [vmem:[%s20019_s3 + $0x308] sm:$0xff] }
 0x200   :  { %3803 = vmatprep.subr.bf16.mxu1 %v12635_v23  ;;  %v12685_v23 = vcombine.high %v3878_v24, %v3882_v26  ;;  %v3931_v18 = vld [vmem:[%s20019_s3 + $0x328] sm:$0xff] }
 0x202   :  { %3640 = vmatpush1.bf16.msra.mxu0 %v12632_v36  ;;  %v12684_v36 = vcombine.low %v3878_v24, %v3882_v26  ;;  %v3938_v24 = vld [vmem:[%s20019_s3 + $0x360] sm:$0xff]  ;;  %v3935_v26 = vld [vmem:[%s20019_s3 + $0x348] sm:$0xff] }
 0x203   :  { %3804 = vmatpush1.bf16.msra.mxu1 %v12634_v37  ;;  %6944 = vmatprep.subr.bf16.mxu0 %v12637_v39  ;;  %v12686_v37 = vcombine.low %v3879_v27, %v3883_v28  ;;  %v12693_v39 = vcombine.high %v3886_v25, %v3890_v32  ;;  %v3939_v27 = vld [vmem:[%s20019_s3 + $0x368] sm:$0xff]  ;;  %v3942_v25 = vld [vmem:[%s20019_s3 + $0x380] sm:$0xff] }
 0x204   :  { %7108 = vmatprep.subr.bf16.mxu1 %v12639_v38  ;;  %v12695_v38 = vcombine.high %v3887_v33, %v3891_v35  ;;  %v3946_v32 = vld [vmem:[%s20019_s3 + $0x3a0] sm:$0xff]  ;;  %v16710_v33 = vsub.s32 3, %v16483_v1  ;;  %v3943_v35 = vld [vmem:[%s20019_s3 + $0x388] sm:$0xff] }
 0x205   :  { %3642 = vmatmul.mubr.bf16.vlgmr.msra.gmra.mrb[4].mxu0 %v15743_v56 }
 0x206   :  { %3806 = vmatmul.mubr.bf16.vlgmr.msra.gmra.mrb[4].mxu1 %v15743_v56  ;;  %6945 = vmatpush1.bf16.msra.mxu0 %v12636_v41  ;;  %v3855_v56 = vld [vmem:[%s20019_s3 + $0xc8] sm:$0xff] }
 0x207   :  { %6976 = vmatprep.mubr.bf16.mxu0 %v16556_v47  ;;  %7109 = vmatpush1.bf16.msra.mxu1 %v12638_v44  ;;  %v12663_v0 = vcombine.high %v3855_v56, %v3859_v60  ;;  %v12662_v10 = vcombine.low %v3855_v56, %v3859_v60  ;;  %v3899_v41 = vld [vmem:[%s20019_s3 + $0x228] sm:$0xff]  ;;  %v12701_v44 = vcombine.high %v3894_v40, %v3898_v9 }
 0x208   :  { %7140 = vmatprep.mubr.bf16.mxu1 %v16556_v47  ;;  %6946 = vmatprep.subr.bf16.mxu0 %v12645_v48  ;;  %v12703_v48 = vcombine.high %v3895_v34, %v3899_v41  ;;  %v3915_v56 = vld [vmem:[%s20019_s3 + $0x2a8] sm:$0xff]  ;;  %v12708_v60 = vcombine.low %v3902_v45, %v3906_v46  ;;  %v12749_v40 = vcombine.high %v3942_v25, %v3946_v32 }
 0x209   :  { %7110 = vmatprep.subr.bf16.mxu1 %v12647_v49  ;;  %v3903_v49 = vld [vmem:[%s20019_s3 + $0x248] sm:$0xff] }
 0x20a   :  { %6947 = vmatpush1.bf16.msra.mxu0 %v12644_v52  ;;  %v12702_v52 = vcombine.low %v3895_v34, %v3899_v41  ;;  %v3950_v34 = vld [vmem:[%s20019_s3 + $0x3c0] sm:$0xff] }
 0x20b   :  { %7111 = vmatpush1.bf16.msra.mxu1 %v12646_v53  ;;  %6948 = vmatprep.subr.bf16.mxu0 %v12653_v54  ;;  %v12709_v53 = vcombine.high %v3902_v45, %v3906_v46  ;;  %v12711_v54 = vcombine.high %v3903_v49, %v3907_v50  ;;  %v3954_v41 = vld [vmem:[%s20019_s3 + $0x3e0] sm:$0xff] }
 0x20c   :  { %7112 = vmatprep.subr.bf16.mxu1 %v12655_v55  ;;  %v3910_v55 = vld [vmem:[%s20019_s3 + $0x280] sm:$0xff] }
 0x20d   :  { %v12716_v6 = vcombine.low %v3910_v55, %v3914_v58 }
 0x20e   :  { %6949 = vmatpush1.bf16.msra.mxu0 %v12652_v61  ;;  %v12710_v61 = vcombine.low %v3903_v49, %v3907_v50  ;;  %v12757_v49 = vcombine.high %v3950_v34, %v3954_v41 }
 0x20f   :  { %7113 = vmatpush1.bf16.msra.mxu1 %v12654_v62  ;;  %6950 = vmatprep.subr.bf16.mxu0 %v12661_v63  ;;  %v12717_v62 = vcombine.high %v3910_v55, %v3914_v58  ;;  %v12719_v63 = vcombine.high %v3911_v59, %v3915_v56  ;;  %v12756_v55 = vcombine.low %v3950_v34, %v3954_v41  ;;  %v3999_v34 = vld [vmem:[%s20019_s3 + $0x548] sm:$0xff] }
 0x210   :  { %7114 = vmatprep.subr.bf16.mxu1 %v12663_v0  ;;  %v3918_v0 = vld [vmem:[%s20019_s3 + $0x2c0] sm:$0xff]  ;;  %v4003_v41 = vld [vmem:[%s20019_s3 + $0x568] sm:$0xff] }
 0x211   :  { %v12724_v19 = vcombine.low %v3918_v0, %v3922_v2 }
 0x212   :  { %6951 = vmatpush1.bf16.msra.mxu0 %v12660_v7  ;;  %v12718_v7 = vcombine.low %v3911_v59, %v3915_v56 }
 0x213   :  { %7115 = vmatpush1.bf16.msra.mxu1 %v12662_v10  ;;  %6952 = vmatprep.subr.bf16.mxu0 %v12669_v11  ;;  %v12725_v10 = vcombine.high %v3918_v0, %v3922_v2  ;;  %v12727_v11 = vcombine.high %v3919_v3, %v3923_v5  ;;  %v3967_v0 = vld [vmem:[%s20019_s3 + $0x448] sm:$0xff] }
 0x214   :  { %7116 = vmatprep.subr.bf16.mxu1 %v12671_v14  ;;  %v3926_v14 = vld [vmem:[%s20019_s3 + $0x300] sm:$0xff]  ;;  %v3971_v2 = vld [vmem:[%s20019_s3 + $0x468] sm:$0xff] }
 0x215   :  { %v12732_v28 = vcombine.low %v3926_v14, %v3930_v16 }
 0x216   :  { %6953 = vmatpush1.bf16.msra.mxu0 %v12668_v20  ;;  %v12726_v20 = vcombine.low %v3919_v3, %v3923_v5 }
 0x217   :  { %7117 = vmatpush1.bf16.msra.mxu1 %v12670_v21  ;;  %6954 = vmatprep.subr.bf16.mxu0 %v12677_v22  ;;  %v12733_v21 = vcombine.high %v3926_v14, %v3930_v16  ;;  %v12735_v22 = vcombine.high %v3927_v57, %v3931_v18  ;;  %v12775_v14 = vcombine.high %v3967_v0, %v3971_v2  ;;  %v3975_v16 = vld [vmem:[%s20019_s3 + $0x488] sm:$0xff] }
 0x218   :  { %7118 = vmatprep.subr.bf16.mxu1 %v12679_v12  ;;  %v3934_v12 = vld [vmem:[%s20019_s3 + $0x340] sm:$0xff] }
 0x21a   :  { %6955 = vmatpush1.bf16.msra.mxu0 %v12676_v29  ;;  %v16701_v29 = vsub.s32 0, %v16483_v1 }
 0x21b   :  { %7119 = vmatpush1.bf16.msra.mxu1 %v12678_v30  ;;  %6956 = vmatprep.subr.bf16.mxu0 %v12685_v23  ;;  %v12734_v30 = vcombine.low %v3927_v57, %v3931_v18  ;;  %v12741_v23 = vcombine.high %v3934_v12, %v3938_v24  ;;  %v3979_v57 = vld [vmem:[%s20019_s3 + $0x4a8] sm:$0xff] }
 0x21c   :  { %7120 = vmatprep.subr.bf16.mxu1 %v12687_v31  ;;  %v12743_v31 = vcombine.high %v3935_v26, %v3939_v27 }
 0x21e   :  { %6957 = vmatpush1.bf16.msra.mxu0 %v12684_v36  ;;  %v3947_v36 = vld [vmem:[%s20019_s3 + $0x3a8] sm:$0xff] }
 0x21f   :  { %7121 = vmatpush1.bf16.msra.mxu1 %v12686_v37  ;;  %6958 = vmatprep.subr.bf16.mxu0 %v12693_v39  ;;  %v12740_v37 = vcombine.low %v3934_v12, %v3938_v24  ;;  %v561_v39 = vrot.slane %v16509_v17, %v16701_v29  ;;  %v12751_v9 = vcombine.high %v3943_v35, %v3947_v36  ;;  %v3986_v12 = vld [vmem:[%s20019_s3 + $0x4e0] sm:$0xff]  ;;  %v3983_v24 = vld [vmem:[%s20019_s3 + $0x4c8] sm:$0xff] }
 0x220   :  { %7122 = vmatprep.subr.bf16.mxu1 %v12695_v38  ;;  %v12742_v38 = vcombine.low %v3935_v26, %v3939_v27  ;;  %v12750_v46 = vcombine.low %v3943_v35, %v3947_v36  ;;  %v3987_v26 = vld [vmem:[%s20019_s3 + $0x4e8] sm:$0xff] }
 0x221   :  { %v13813_v45 = vadd.f32 %v16397_v4, %v561_v39  ;;  %v3959_v4 = vld [vmem:[%s20019_s3 + $0x408] sm:$0xff] }
 0x222   :  { %6959 = vmatpush1.bf16.msra.mxu0 %v12692_v42  ;;  %v573_v42 = vrot.slane %v16509_v17, %v16710_v33  ;;  %v3995_v35 = vld [vmem:[%s20019_s3 + $0x528] sm:$0xff] }
 0x223   :  { %7123 = vmatpush1.bf16.msra.mxu1 %v12694_v43  ;;  %6960 = vmatprep.subr.bf16.mxu0 %v12701_v44  ;;  %v3951_v43 = vld [vmem:[%s20019_s3 + $0x3c8] sm:$0xff]  ;;  %v3814_v58 = vmax.f32 %v13813_v45, 0.0  ;;  %v4006_v45 = vld [vmem:[%s20019_s3 + $0x580] sm:$0xff] }
 0x224   :  { %7124 = vmatprep.subr.bf16.mxu1 %v12703_v48  ;;  %v3955_v44 = vld [vmem:[%s20019_s3 + $0x3e8] sm:$0xff]  ;;  %v12748_v48 = vcombine.low %v3942_v25, %v3946_v32  ;;  %v3994_v25 = vld [vmem:[%s20019_s3 + $0x520] sm:$0xff] }
 0x225   :  { %v12759_v50 = vcombine.high %v3951_v43, %v3955_v44  ;;  %v12758_v59 = vcombine.low %v3951_v43, %v3955_v44  ;;  %v16760_v3 = vpack.c.bf16 %v3814_v58, %v3814_v58  ;;  %v3991_v32 = vld [vmem:[%s20019_s3 + $0x508] sm:$0xff] }
 0x226   :  { %6961 = vmatpush1.bf16.msra.mxu0 %v12700_v51  ;;  %v3958_v51 = vld [vmem:[%s20019_s3 + $0x400] sm:$0xff]  ;;  %v12798_v43 = vcombine.low %v3991_v32, %v3995_v35  ;;  %v4015_v58 = vld [vmem:[%s20019_s3 + $0x5c8] sm:$0xff] }
 0x227   :  { %7125 = vmatpush1.bf16.msra.mxu1 %v12702_v52  ;;  %6962 = vmatprep.subr.bf16.mxu0 %v12709_v53  ;;  %v3962_v52 = vld [vmem:[%s20019_s3 + $0x420] sm:$0xff]  ;;  %v13816_v53 = vadd.f32 %v16415_v13, %v573_v42 }
 0x228   :  { %7126 = vmatprep.subr.bf16.mxu1 %v12711_v54  ;;  %v3963_v54 = vld [vmem:[%s20019_s3 + $0x428] sm:$0xff]  ;;  %v12765_v56 = vcombine.high %v3958_v51, %v3962_v52  ;;  %v3966_v13 = vld [vmem:[%s20019_s3 + $0x440] sm:$0xff] }
 0x229   :  { %v12766_v5 = vcombine.low %v3959_v4, %v3963_v54 }
 0x22a   :  { %6963 = vmatpush1.bf16.msra.mxu0 %v12708_v60  ;;  %v12767_v60 = vcombine.high %v3959_v4, %v3963_v54  ;;  %v4014_v54 = vld [vmem:[%s20019_s3 + $0x5c0] sm:$0xff] }
 0x22b   :  { %7127 = vmatpush1.bf16.msra.mxu1 %v12710_v61  ;;  %6964 = vmatprep.subr.bf16.mxu0 %v12717_v62  ;;  %v3817_v61 = vmax.f32 %v13816_v53, 0.0  ;;  %v3970_v62 = vld [vmem:[%s20019_s3 + $0x460] sm:$0xff] }
 0x22c   :  { %7128 = vmatprep.subr.bf16.mxu1 %v12719_v63  ;;  %v12764_v63 = vcombine.low %v3958_v51, %v3962_v52  ;;  %v12772_v18 = vcombine.low %v3966_v13, %v3970_v62  ;;  %v12806_v52 = vcombine.low %v3999_v34, %v4003_v41 }
 0x22e   :  { %6965 = vmatpush1.bf16.msra.mxu0 %v12716_v6  ;;  %v12773_v6 = vcombine.high %v3966_v13, %v3970_v62  ;;  %v4022_v62 = vld [vmem:[%s20019_s3 + $0x600] sm:$0xff] }
 0x22f   :  { %7129 = vmatpush1.bf16.msra.mxu1 %v12718_v7  ;;  %6966 = vmatprep.subr.bf16.mxu0 %v12725_v10  ;;  %v3974_v7 = vld [vmem:[%s20019_s3 + $0x480] sm:$0xff] }
 0x230   :  { %7130 = vmatprep.subr.bf16.mxu1 %v12727_v11  ;;  %v3978_v10 = vld [vmem:[%s20019_s3 + $0x4a0] sm:$0xff]  ;;  %v16768_v11 = vpack.c.bf16 %v3817_v61, %v3817_v61 }
 0x231   :  { %v12780_v27 = vcombine.low %v3974_v7, %v3978_v10 }
 0x232   :  { %6967 = vmatpush1.bf16.msra.mxu0 %v12724_v19  ;;  %v12774_v19 = vcombine.low %v3967_v0, %v3971_v2  ;;  %v4023_v0 = vld [vmem:[%s20019_s3 + $0x608] sm:$0xff] }
 0x233   :  { %7131 = vmatpush1.bf16.msra.mxu1 %v12726_v20  ;;  %6968 = vmatprep.subr.bf16.mxu0 %v12733_v21  ;;  %v12781_v20 = vcombine.high %v3974_v7, %v3978_v10  ;;  %v12783_v21 = vcombine.high %v3975_v16, %v3979_v57  ;;  %v4027_v2 = vld [vmem:[%s20019_s3 + $0x628] sm:$0xff] }
 0x234   :  { %7132 = vmatprep.subr.bf16.mxu1 %v12735_v22  ;;  %v3982_v22 = vld [vmem:[%s20019_s3 + $0x4c0] sm:$0xff]  ;;  %v12831_v10 = vcombine.high %v4023_v0, %v4027_v2 }
 0x235   :  { %v12788_v36 = vcombine.low %v3982_v22, %v3986_v12 }
 0x236   :  { %6969 = vmatpush1.bf16.msra.mxu0 %v12732_v28  ;;  %v12782_v28 = vcombine.low %v3975_v16, %v3979_v57  ;;  %v4034_v16 = vld [vmem:[%s20019_s3 + $0x660] sm:$0xff]  ;;  %v4031_v57 = vld [vmem:[%s20019_s3 + $0x648] sm:$0xff] }
 0x237   :  { %7133 = vmatpush1.bf16.msra.mxu1 %v12734_v30  ;;  %6970 = vmatprep.subr.bf16.mxu0 %v12741_v23  ;;  %v12789_v30 = vcombine.high %v3982_v22, %v3986_v12  ;;  %v12791_v23 = vcombine.high %v3983_v24, %v3987_v26  ;;  %v4038_v12 = vld [vmem:[%s20019_s3 + $0x680] sm:$0xff] }
 0x238   :  { %7134 = vmatprep.subr.bf16.mxu1 %v12743_v31  ;;  %v3990_v31 = vld [vmem:[%s20019_s3 + $0x500] sm:$0xff] }
 0x239   :  { %v12797_v39 = vcombine.high %v3990_v31, %v3994_v25  ;;  %v12796_v42 = vcombine.low %v3990_v31, %v3994_v25  ;;  %v4046_v25 = vld [vmem:[%s20019_s3 + $0x6c0] sm:$0xff] }
 0x23a   :  { %6971 = vmatpush1.bf16.msra.mxu0 %v12740_v37  ;;  %v12790_v37 = vcombine.low %v3983_v24, %v3987_v26  ;;  %v4042_v24 = vld [vmem:[%s20019_s3 + $0x6a0] sm:$0xff]  ;;  %v4039_v26 = vld [vmem:[%s20019_s3 + $0x688] sm:$0xff] }
 0x23b   :  { %7135 = vmatpush1.bf16.msra.mxu1 %v12742_v38  ;;  %6972 = vmatprep.subr.bf16.mxu0 %v12749_v40  ;;  %v12799_v38 = vcombine.high %v3991_v32, %v3995_v35  ;;  %v3998_v40 = vld [vmem:[%s20019_s3 + $0x540] sm:$0xff]  ;;  %v4047_v35 = vld [vmem:[%s20019_s3 + $0x6c8] sm:$0xff] }
 0x23c   :  { %7136 = vmatprep.subr.bf16.mxu1 %v12751_v9  ;;  %v4002_v9 = vld [vmem:[%s20019_s3 + $0x560] sm:$0xff] }
 0x23d   :  { %v12805_v44 = vcombine.high %v3998_v40, %v4002_v9  ;;  %v12804_v51 = vcombine.low %v3998_v40, %v4002_v9  ;;  %v4050_v32 = vld [vmem:[%s20019_s3 + $0x6e0] sm:$0xff] }
 0x23e   :  { %6973 = vmatpush1.bf16.msra.mxu0 %v12748_v48  ;;  %v12807_v48 = vcombine.high %v3999_v34, %v4003_v41  ;;  %v4054_v9 = vld [vmem:[%s20019_s3 + $0x700] sm:$0xff]  ;;  %v4055_v41 = vld [vmem:[%s20019_s3 + $0x708] sm:$0xff] }
 0x23f   :  { %7137 = vmatpush1.bf16.msra.mxu1 %v12750_v46  ;;  %6974 = vmatprep.subr.bf16.mxu0 %v12757_v49  ;;  %v4010_v46 = vld [vmem:[%s20019_s3 + $0x5a0] sm:$0xff]  ;;  %v4007_v49 = vld [vmem:[%s20019_s3 + $0x588] sm:$0xff] }
 0x240   :  { %7138 = vmatprep.subr.bf16.mxu1 %v12759_v50  ;;  %v4011_v50 = vld [vmem:[%s20019_s3 + $0x5a8] sm:$0xff]  ;;  %v12813_v53 = vcombine.high %v4006_v45, %v4010_v46  ;;  %v4058_v34 = vld [vmem:[%s20019_s3 + $0x720] sm:$0xff] }
 0x241   :  { %v12815_v4 = vcombine.high %v4007_v49, %v4011_v50 }
 0x242   :  { %6975 = vmatpush1.bf16.msra.mxu0 %v12756_v55  ;;  %v4018_v55 = vld [vmem:[%s20019_s3 + $0x5e0] sm:$0xff] }
 0x243   :  { %7139 = vmatpush1.bf16.msra.mxu1 %v12758_v59  ;;  %6985 = vmatprep.subr.bf16.mxu0 %v12765_v56  ;;  %v4019_v59 = vld [vmem:[%s20019_s3 + $0x5e8] sm:$0xff]  ;;  %v12812_v56 = vcombine.low %v4006_v45, %v4010_v46  ;;  %v12821_v61 = vcombine.high %v4014_v54, %v4018_v55  ;;  %v4062_v46 = vld [vmem:[%s20019_s3 + $0x740] sm:$0xff] }
 0x244   :  { %7149 = vmatprep.subr.bf16.mxu1 %v12767_v60  ;;  %v12814_v60 = vcombine.low %v4007_v49, %v4011_v50  ;;  %v12823_v13 = vcombine.high %v4015_v58, %v4019_v59  ;;  %v4066_v49 = vld [vmem:[%s20019_s3 + $0x760] sm:$0xff]  ;;  %v4063_v50 = vld [vmem:[%s20019_s3 + $0x748] sm:$0xff] }
 0x245   :  { %6977 = vmatmul.mubr.bf16.vlgmr.msra.gmra.mrb[8].mxu0 %v16760_v3 }
 0x246   :  { %7141 = vmatmul.mubr.bf16.vlgmr.msra.gmra.mrb[8].mxu1 %v16760_v3  ;;  %6986 = vmatpush1.bf16.msra.mxu0 %v12764_v63  ;;  %v4026_v63 = vld [vmem:[%s20019_s3 + $0x620] sm:$0xff] }
 0x247   :  { %7017 = vmatprep.mubr.bf16.mxu0 %v16768_v11  ;;  %7150 = vmatpush1.bf16.msra.mxu1 %v12766_v5  ;;  %v12820_v5 = vcombine.low %v4014_v54, %v4018_v55  ;;  %v12829_v7 = vcombine.high %v4022_v62, %v4026_v63  ;;  %v12869_v54 = vcombine.high %v4062_v46, %v4066_v49 }
 0x248   :  { %7181 = vmatprep.mubr.bf16.mxu1 %v16768_v11  ;;  %6987 = vmatprep.subr.bf16.mxu0 %v12773_v6  ;;  %v12822_v6 = vcombine.low %v4015_v58, %v4019_v59  ;;  %v4070_v58 = vld [vmem:[%s20019_s3 + $0x780] sm:$0xff] }
 0x249   :  { %7151 = vmatprep.subr.bf16.mxu1 %v12775_v14  ;;  %v4030_v14 = vld [vmem:[%s20019_s3 + $0x640] sm:$0xff] }
 0x24a   :  { %6988 = vmatpush1.bf16.msra.mxu0 %v12772_v18  ;;  %v4035_v18 = vld [vmem:[%s20019_s3 + $0x668] sm:$0xff]  ;;  %v4074_v59 = vld [vmem:[%s20019_s3 + $0x7a0] sm:$0xff] }
 0x24b   :  { %7152 = vmatpush1.bf16.msra.mxu1 %v12774_v19  ;;  %6989 = vmatprep.subr.bf16.mxu0 %v12781_v20  ;;  %v12828_v19 = vcombine.low %v4022_v62, %v4026_v63  ;;  %v12830_v20 = vcombine.low %v4023_v0, %v4027_v2  ;;  %v12839_v22 = vcombine.high %v4031_v57, %v4035_v18  ;;  %v4078_v2 = vld [vmem:[%s20019_s3 + $0x7c0] sm:$0xff] }
 0x24c   :  { %7153 = vmatprep.subr.bf16.mxu1 %v12783_v21  ;;  %v12837_v21 = vcombine.high %v4030_v14, %v4034_v16  ;;  %v12877_v63 = vcombine.high %v4070_v58, %v4074_v59 }
 0x24e   :  { %6990 = vmatpush1.bf16.msra.mxu0 %v12780_v27  ;;  %v4043_v27 = vld [vmem:[%s20019_s3 + $0x6a8] sm:$0xff] }
 0x24f   :  { %7154 = vmatpush1.bf16.msra.mxu1 %v12782_v28  ;;  %6991 = vmatprep.subr.bf16.mxu0 %v12789_v30  ;;  %v12836_v28 = vcombine.low %v4030_v14, %v4034_v16  ;;  %v12838_v30 = vcombine.low %v4031_v57, %v4035_v18  ;;  %v12847_v31 = vcombine.high %v4039_v26, %v4043_v27  ;;  %v4086_v18 = vld [vmem:[%s20019_s3 + $0x800] sm:$0xff] }
 0x250   :  { %7155 = vmatprep.subr.bf16.mxu1 %v12791_v23  ;;  %v12845_v23 = vcombine.high %v4038_v12, %v4042_v24 }
 0x252   :  { %6992 = vmatpush1.bf16.msra.mxu0 %v12788_v36  ;;  %v4051_v36 = vld [vmem:[%s20019_s3 + $0x6e8] sm:$0xff] }
 0x253   :  { %7156 = vmatpush1.bf16.msra.mxu1 %v12790_v37  ;;  %6993 = vmatprep.subr.bf16.mxu0 %v12797_v39  ;;  %v12844_v37 = vcombine.low %v4038_v12, %v4042_v24  ;;  %v12846_v39 = vcombine.low %v4039_v26, %v4043_v27  ;;  %v12855_v40 = vcombine.high %v4047_v35, %v4051_v36  ;;  %v4094_v27 = vld [vmem:[%s20019_s3 + $0x840] sm:$0xff] }
 0x254   :  { %7157 = vmatprep.subr.bf16.mxu1 %v12799_v38  ;;  %v12853_v38 = vcombine.high %v4046_v25, %v4050_v32 }
 0x256   :  { %6994 = vmatpush1.bf16.msra.mxu0 %v12796_v42  ;;  %v4059_v42 = vld [vmem:[%s20019_s3 + $0x728] sm:$0xff] }
 0x257   :  { %7158 = vmatpush1.bf16.msra.mxu1 %v12798_v43  ;;  %6995 = vmatprep.subr.bf16.mxu0 %v12805_v44  ;;  %v12852_v43 = vcombine.low %v4046_v25, %v4050_v32  ;;  %v12854_v44 = vcombine.low %v4047_v35, %v4051_v36  ;;  %v12863_v45 = vcombine.high %v4055_v41, %v4059_v42 }
 0x258   :  { %7159 = vmatprep.subr.bf16.mxu1 %v12807_v48  ;;  %v12861_v48 = vcombine.high %v4054_v9, %v4058_v34 }
 0x25a   :  { %6996 = vmatpush1.bf16.msra.mxu0 %v12804_v51  ;;  %v4067_v51 = vld [vmem:[%s20019_s3 + $0x768] sm:$0xff] }
 0x25b   :  { %7160 = vmatpush1.bf16.msra.mxu1 %v12806_v52  ;;  %6997 = vmatprep.subr.bf16.mxu0 %v12813_v53  ;;  %v12860_v52 = vcombine.low %v4054_v9, %v4058_v34  ;;  %v16913_v53 = vsub.s32 2, %v16483_v1  ;;  %v12871_v55 = vcombine.high %v4063_v50, %v4067_v51  ;;  %v12870_v62 = vcombine.low %v4063_v50, %v4067_v51 }
 0x25c   :  { %7161 = vmatprep.subr.bf16.mxu1 %v12815_v4  ;;  %v12862_v4 = vcombine.low %v4055_v41, %v4059_v42 }
 0x25e   :  { %6998 = vmatpush1.bf16.msra.mxu0 %v12812_v56  ;;  %v4071_v56 = vld [vmem:[%s20019_s3 + $0x788] sm:$0xff] }
 0x25f   :  { %7162 = vmatpush1.bf16.msra.mxu1 %v12814_v60  ;;  %6999 = vmatprep.subr.bf16.mxu0 %v12821_v61  ;;  %v4075_v60 = vld [vmem:[%s20019_s3 + $0x7a8] sm:$0xff]  ;;  %v12868_v61 = vcombine.low %v4062_v46, %v4066_v49 }
 0x260   :  { %7163 = vmatprep.subr.bf16.mxu1 %v12823_v13  ;;  %v569_v13 = vrot.slane %v16509_v17, %v16913_v53  ;;  %v12879_v0 = vcombine.high %v4071_v56, %v4075_v60  ;;  %v4083_v17 = vld [vmem:[%s20019_s3 + $0x7e8] sm:$0xff]  ;;  %v12878_v14 = vcombine.low %v4071_v56, %v4075_v60 }
 0x262   :  { %7000 = vmatpush1.bf16.msra.mxu0 %v12820_v5  ;;  %v4082_v5 = vld [vmem:[%s20019_s3 + $0x7e0] sm:$0xff] }
 0x263   :  { %7164 = vmatpush1.bf16.msra.mxu1 %v12822_v6  ;;  %7001 = vmatprep.subr.bf16.mxu0 %v12829_v7  ;;  %v4079_v6 = vld [vmem:[%s20019_s3 + $0x7c8] sm:$0xff]  ;;  %v12876_v7 = vcombine.low %v4070_v58, %v4074_v59  ;;  %v12885_v16 = vcombine.high %v4078_v2, %v4082_v5 }
 0x264   :  { %7165 = vmatprep.subr.bf16.mxu1 %v12831_v10  ;;  %v13815_v10 = vadd.f32 %v16405_v8, %v569_v13  ;;  %v12887_v57 = vcombine.high %v4079_v6, %v4083_v17  ;;  %v4091_v8 = vld [vmem:[%s20019_s3 + $0x828] sm:$0xff]  ;;  %v12886_v12 = vcombine.low %v4079_v6, %v4083_v17  ;;  %v4130_v13 = vld [vmem:[%s20019_s3 + $0x960] sm:$0xff] }
 0x265   :  { %v4134_v17 = vld [vmem:[%s20019_s3 + $0x980] sm:$0xff] }
 0x266   :  { %7002 = vmatpush1.bf16.msra.mxu0 %v12828_v19  ;;  %v4090_v19 = vld [vmem:[%s20019_s3 + $0x820] sm:$0xff] }
 0x267   :  { %7166 = vmatpush1.bf16.msra.mxu1 %v12830_v20  ;;  %7003 = vmatprep.subr.bf16.mxu0 %v12837_v21  ;;  %v4087_v20 = vld [vmem:[%s20019_s3 + $0x808] sm:$0xff]  ;;  %v12884_v21 = vcombine.low %v4078_v2, %v4082_v5  ;;  %v12893_v24 = vcombine.high %v4086_v18, %v4090_v19 }
 0x268   :  { %7167 = vmatprep.subr.bf16.mxu1 %v12839_v22  ;;  %v3816_v22 = vmax.f32 %v13815_v10, 0.0  ;;  %v12895_v26 = vcombine.high %v4087_v20, %v4091_v8  ;;  %v12894_v32 = vcombine.low %v4087_v20, %v4091_v8  ;;  %v4135_v10 = vld [vmem:[%s20019_s3 + $0x988] sm:$0xff]  ;;  %v4142_v20 = vld [vmem:[%s20019_s3 + $0x9c0] sm:$0xff] }
 0x269   :  { %v4146_v8 = vld [vmem:[%s20019_s3 + $0x9e0] sm:$0xff] }
 0x26a   :  { %7004 = vmatpush1.bf16.msra.mxu0 %v12836_v28  ;;  %v4098_v28 = vld [vmem:[%s20019_s3 + $0x860] sm:$0xff]  ;;  %v16966_v25 = vpack.c.bf16 %v3816_v22, %v3816_v22  ;;  %v4147_v22 = vld [vmem:[%s20019_s3 + $0x9e8] sm:$0xff] }
 0x26b   :  { %7168 = vmatpush1.bf16.msra.mxu1 %v12838_v30  ;;  %7005 = vmatprep.subr.bf16.mxu0 %v12845_v23  ;;  %v4095_v30 = vld [vmem:[%s20019_s3 + $0x848] sm:$0xff]  ;;  %v12901_v35 = vcombine.high %v4094_v27, %v4098_v28  ;;  %v12900_v9 = vcombine.low %v4094_v27, %v4098_v28  ;;  %v4150_v28 = vld [vmem:[%s20019_s3 + $0xa00] sm:$0xff] }
 0x26c   :  { %7169 = vmatprep.subr.bf16.mxu1 %v12847_v31  ;;  %v4099_v23 = vld [vmem:[%s20019_s3 + $0x868] sm:$0xff]  ;;  %v12892_v31 = vcombine.low %v4086_v18, %v4090_v19 }
 0x26d   :  { %v12903_v36 = vcombine.high %v4095_v30, %v4099_v23  ;;  %v12902_v34 = vcombine.low %v4095_v30, %v4099_v23  ;;  %v4154_v30 = vld [vmem:[%s20019_s3 + $0xa20] sm:$0xff]  ;;  %v4151_v23 = vld [vmem:[%s20019_s3 + $0xa08] sm:$0xff] }
 0x26e   :  { %7006 = vmatpush1.bf16.msra.mxu0 %v12844_v37  ;;  %v4102_v37 = vld [vmem:[%s20019_s3 + $0x880] sm:$0xff] }
 0x26f   :  { %7170 = vmatpush1.bf16.msra.mxu1 %v12846_v39  ;;  %7007 = vmatprep.subr.bf16.mxu0 %v12853_v38  ;;  %v4106_v39 = vld [vmem:[%s20019_s3 + $0x8a0] sm:$0xff]  ;;  %v4103_v38 = vld [vmem:[%s20019_s3 + $0x888] sm:$0xff] }
 0x270   :  { %7171 = vmatprep.subr.bf16.mxu1 %v12855_v40  ;;  %v4107_v40 = vld [vmem:[%s20019_s3 + $0x8a8] sm:$0xff]  ;;  %v12909_v41 = vcombine.high %v4102_v37, %v4106_v39  ;;  %v12908_v46 = vcombine.low %v4102_v37, %v4106_v39  ;;  %v4158_v39 = vld [vmem:[%s20019_s3 + $0xa40] sm:$0xff] }
 0x271   :  { %v12911_v42 = vcombine.high %v4103_v38, %v4107_v40  ;;  %v12910_v49 = vcombine.low %v4103_v38, %v4107_v40  ;;  %v4162_v38 = vld [vmem:[%s20019_s3 + $0xa60] sm:$0xff]  ;;  %v4159_v40 = vld [vmem:[%s20019_s3 + $0xa48] sm:$0xff] }
 0x272   :  { %7008 = vmatpush1.bf16.msra.mxu0 %v12852_v43  ;;  %v4110_v43 = vld [vmem:[%s20019_s3 + $0x8c0] sm:$0xff] }
 0x273   :  { %7172 = vmatpush1.bf16.msra.mxu1 %v12854_v44  ;;  %7009 = vmatprep.subr.bf16.mxu0 %v12861_v48  ;;  %v4114_v44 = vld [vmem:[%s20019_s3 + $0x8e0] sm:$0xff]  ;;  %v4111_v48 = vld [vmem:[%s20019_s3 + $0x8c8] sm:$0xff] }
 0x274   :  { %7173 = vmatprep.subr.bf16.mxu1 %v12863_v45  ;;  %v4115_v45 = vld [vmem:[%s20019_s3 + $0x8e8] sm:$0xff]  ;;  %v12917_v50 = vcombine.high %v4110_v43, %v4114_v44  ;;  %v12916_v58 = vcombine.low %v4110_v43, %v4114_v44  ;;  %v4166_v44 = vld [vmem:[%s20019_s3 + $0xa80] sm:$0xff] }
 0x275   :  { %v12919_v51 = vcombine.high %v4111_v48, %v4115_v45  ;;  %v12918_v59 = vcombine.low %v4111_v48, %v4115_v45  ;;  %v4170_v48 = vld [vmem:[%s20019_s3 + $0xaa0] sm:$0xff]  ;;  %v4167_v45 = vld [vmem:[%s20019_s3 + $0xa88] sm:$0xff] }
 0x276   :  { %7010 = vmatpush1.bf16.msra.mxu0 %v12860_v52  ;;  %v4118_v52 = vld [vmem:[%s20019_s3 + $0x900] sm:$0xff] }
 0x277   :  { %7174 = vmatpush1.bf16.msra.mxu1 %v12862_v4  ;;  %7011 = vmatprep.subr.bf16.mxu0 %v12869_v54  ;;  %v4122_v4 = vld [vmem:[%s20019_s3 + $0x920] sm:$0xff]  ;;  %v4119_v54 = vld [vmem:[%s20019_s3 + $0x908] sm:$0xff] }
 0x278   :  { %7175 = vmatprep.subr.bf16.mxu1 %v12871_v55  ;;  %v4123_v55 = vld [vmem:[%s20019_s3 + $0x928] sm:$0xff]  ;;  %v12925_v56 = vcombine.high %v4118_v52, %v4122_v4 }
 0x279   :  { %v12927_v60 = vcombine.high %v4119_v54, %v4123_v55  ;;  %v12926_v2 = vcombine.low %v4119_v54, %v4123_v55  ;;  %v4178_v54 = vld [vmem:[%s20019_s3 + $0xae0] sm:$0xff]  ;;  %v4175_v55 = vld [vmem:[%s20019_s3 + $0xac8] sm:$0xff] }
 0x27a   :  { %7012 = vmatpush1.bf16.msra.mxu0 %v12868_v61  ;;  %v4126_v61 = vld [vmem:[%s20019_s3 + $0x940] sm:$0xff] }
 0x27b   :  { %7176 = vmatpush1.bf16.msra.mxu1 %v12870_v62  ;;  %7013 = vmatprep.subr.bf16.mxu0 %v12877_v63  ;;  %v4127_v62 = vld [vmem:[%s20019_s3 + $0x948] sm:$0xff]  ;;  %v12933_v5 = vcombine.high %v4126_v61, %v4130_v13 }
 0x27c   :  { %7177 = vmatprep.subr.bf16.mxu1 %v12879_v0  ;;  %v4131_v63 = vld [vmem:[%s20019_s3 + $0x968] sm:$0xff]  ;;  %v12924_v0 = vcombine.low %v4118_v52, %v4122_v4  ;;  %v4174_v4 = vld [vmem:[%s20019_s3 + $0xac0] sm:$0xff] }
 0x27d   :  { %v12935_v6 = vcombine.high %v4127_v62, %v4131_v63 }
 0x27e   :  { %7014 = vmatpush1.bf16.msra.mxu0 %v12876_v7  ;;  %v4138_v7 = vld [vmem:[%s20019_s3 + $0x9a0] sm:$0xff] }
 0x27f   :  { %7178 = vmatpush1.bf16.msra.mxu1 %v12878_v14  ;;  %7015 = vmatprep.subr.bf16.mxu0 %v12885_v16  ;;  %v4139_v14 = vld [vmem:[%s20019_s3 + $0x9a8] sm:$0xff]  ;;  %v12932_v16 = vcombine.low %v4126_v61, %v4130_v13  ;;  %v12941_v18 = vcombine.high %v4134_v17, %v4138_v7  ;;  %v4182_v13 = vld [vmem:[%s20019_s3 + $0xb00] sm:$0xff] }
 0x280   :  { %7179 = vmatprep.subr.bf16.mxu1 %v12887_v57  ;;  %v12934_v57 = vcombine.low %v4127_v62, %v4131_v63  ;;  %v12943_v19 = vcombine.high %v4135_v10, %v4139_v14  ;;  %v4186_v62 = vld [vmem:[%s20019_s3 + $0xb20] sm:$0xff]  ;;  %v4183_v63 = vld [vmem:[%s20019_s3 + $0xb08] sm:$0xff] }
 0x282   :  { %7016 = vmatpush1.bf16.msra.mxu0 %v12884_v21  ;;  %v4143_v21 = vld [vmem:[%s20019_s3 + $0x9c8] sm:$0xff] }
 0x283   :  { %7180 = vmatpush1.bf16.msra.mxu1 %v12886_v12  ;;  %7026 = vmatprep.subr.bf16.mxu0 %v12893_v24  ;;  %v12940_v12 = vcombine.low %v4134_v17, %v4138_v7  ;;  %v12942_v24 = vcombine.low %v4135_v10, %v4139_v14  ;;  %v12951_v27 = vcombine.high %v4143_v21, %v4147_v22  ;;  %v4190_v7 = vld [vmem:[%s20019_s3 + $0xb40] sm:$0xff]  ;;  %v4191_v14 = vld [vmem:[%s20019_s3 + $0xb48] sm:$0xff] }
 0x284   :  { %7190 = vmatprep.subr.bf16.mxu1 %v12895_v26  ;;  %v12949_v26 = vcombine.high %v4142_v20, %v4146_v8  ;;  %v4194_v10 = vld [vmem:[%s20019_s3 + $0xb60] sm:$0xff] }
 0x285   :  { %7018 = vmatmul.mubr.bf16.vlgmr.msra.gmra.mrb[8].mxu0 %v16966_v25 }
 0x286   :  { %7182 = vmatmul.mubr.bf16.vlgmr.msra.gmra.mrb[8].mxu1 %v16966_v25  ;;  %7027 = vmatpush1.bf16.msra.mxu0 %v12892_v31  ;;  %v4155_v31 = vld [vmem:[%s20019_s3 + $0xa28] sm:$0xff] }
 0x287   :  { %7191 = vmatpush1.bf16.msra.mxu1 %v12894_v32  ;;  %7028 = vmatprep.subr.bf16.mxu0 %v12901_v35  ;;  %v12948_v32 = vcombine.low %v4142_v20, %v4146_v8  ;;  %v12950_v35 = vcombine.low %v4143_v21, %v4147_v22  ;;  %v12959_v37 = vcombine.high %v4151_v23, %v4155_v31  ;;  %v4198_v8 = vld [vmem:[%s20019_s3 + $0xb80] sm:$0xff]  ;;  %v4199_v22 = vld [vmem:[%s20019_s3 + $0xb88] sm:$0xff] }
 0x288   :  { %7192 = vmatprep.subr.bf16.mxu1 %v12903_v36  ;;  %v12957_v36 = vcombine.high %v4150_v28, %v4154_v30  ;;  %v4202_v21 = vld [vmem:[%s20019_s3 + $0xba0] sm:$0xff] }
 0x28a   :  { %7029 = vmatpush1.bf16.msra.mxu0 %v12900_v9  ;;  %v4163_v9 = vld [vmem:[%s20019_s3 + $0xa68] sm:$0xff] }
 0x28b   :  { %7193 = vmatpush1.bf16.msra.mxu1 %v12902_v34  ;;  %7030 = vmatprep.subr.bf16.mxu0 %v12909_v41  ;;  %v12956_v34 = vcombine.low %v4150_v28, %v4154_v30  ;;  %v12958_v41 = vcombine.low %v4151_v23, %v4155_v31  ;;  %v12967_v43 = vcombine.high %v4159_v40, %v4163_v9  ;;  %v4206_v30 = vld [vmem:[%s20019_s3 + $0xbc0] sm:$0xff]  ;;  %v4207_v31 = vld [vmem:[%s20019_s3 + $0xbc8] sm:$0xff] }
 0x28c   :  { %7194 = vmatprep.subr.bf16.mxu1 %v12911_v42  ;;  %v12965_v42 = vcombine.high %v4158_v39, %v4162_v38  ;;  %v4210_v23 = vld [vmem:[%s20019_s3 + $0xbe0] sm:$0xff] }
 0x28e   :  { %7031 = vmatpush1.bf16.msra.mxu0 %v12908_v46  ;;  %v4171_v46 = vld [vmem:[%s20019_s3 + $0xaa8] sm:$0xff] }
 0x28f   :  { %7195 = vmatpush1.bf16.msra.mxu1 %v12910_v49  ;;  %7032 = vmatprep.subr.bf16.mxu0 %v12917_v50  ;;  %v12964_v49 = vcombine.low %v4158_v39, %v4162_v38  ;;  %v12966_v50 = vcombine.low %v4159_v40, %v4163_v9  ;;  %v12975_v52 = vcombine.high %v4167_v45, %v4171_v46  ;;  %v4214_v38 = vld [vmem:[%s20019_s3 + $0xc00] sm:$0xff]  ;;  %v4215_v9 = vld [vmem:[%s20019_s3 + $0xc08] sm:$0xff] }
 0x290   :  { %7196 = vmatprep.subr.bf16.mxu1 %v12919_v51  ;;  %v12973_v51 = vcombine.high %v4166_v44, %v4170_v48  ;;  %v4218_v40 = vld [vmem:[%s20019_s3 + $0xc20] sm:$0xff] }
 0x292   :  { %7033 = vmatpush1.bf16.msra.mxu0 %v12916_v58  ;;  %v4179_v58 = vld [vmem:[%s20019_s3 + $0xae8] sm:$0xff] }
 0x293   :  { %7197 = vmatpush1.bf16.msra.mxu1 %v12918_v59  ;;  %7034 = vmatprep.subr.bf16.mxu0 %v12925_v56  ;;  %v12972_v59 = vcombine.low %v4166_v44, %v4170_v48  ;;  %v12974_v56 = vcombine.low %v4167_v45, %v4171_v46  ;;  %v12983_v61 = vcombine.high %v4175_v55, %v4179_v58  ;;  %v17151_v48 = vsub.s32 4, %v16483_v1 }
 0x294   :  { %7198 = vmatprep.subr.bf16.mxu1 %v12927_v60  ;;  %v12981_v60 = vcombine.high %v4174_v4, %v4178_v54  ;;  %v17154_v45 = vsub.s32 5, %v16483_v1  ;;  %v17157_v46 = vsub.s32 7, %v16483_v1 }
 0x296   :  { %7035 = vmatpush1.bf16.msra.mxu0 %v12924_v0  ;;  %v4187_v0 = vld [vmem:[%s20019_s3 + $0xb28] sm:$0xff] }
 0x297   :  { %7199 = vmatpush1.bf16.msra.mxu1 %v12926_v2  ;;  %7036 = vmatprep.subr.bf16.mxu0 %v12933_v5  ;;  %v12980_v2 = vcombine.low %v4174_v4, %v4178_v54  ;;  %v12982_v5 = vcombine.low %v4175_v55, %v4179_v58  ;;  %v12991_v17 = vcombine.high %v4183_v63, %v4187_v0 }
 0x298   :  { %7200 = vmatprep.subr.bf16.mxu1 %v12935_v6  ;;  %v12989_v6 = vcombine.high %v4182_v13, %v4186_v62 }
 0x29a   :  { %7037 = vmatpush1.bf16.msra.mxu0 %v12932_v16  ;;  %v4195_v16 = vld [vmem:[%s20019_s3 + $0xb68] sm:$0xff] }
 0x29b   :  { %7201 = vmatpush1.bf16.msra.mxu1 %v12934_v57  ;;  %7038 = vmatprep.subr.bf16.mxu0 %v12941_v18  ;;  %v12988_v57 = vcombine.low %v4182_v13, %v4186_v62  ;;  %v12990_v18 = vcombine.low %v4183_v63, %v4187_v0  ;;  %v12999_v20 = vcombine.high %v4191_v14, %v4195_v16 }
 0x29c   :  { %7202 = vmatprep.subr.bf16.mxu1 %v12943_v19  ;;  %v12997_v19 = vcombine.high %v4190_v7, %v4194_v10 }
 0x29e   :  { %7039 = vmatpush1.bf16.msra.mxu0 %v12940_v12  ;;  %v4203_v12 = vld [vmem:[%s20019_s3 + $0xba8] sm:$0xff] }
 0x29f   :  { %7203 = vmatpush1.bf16.msra.mxu1 %v12942_v24  ;;  %7040 = vmatprep.subr.bf16.mxu0 %v12949_v26  ;;  %v12996_v24 = vcombine.low %v4190_v7, %v4194_v10  ;;  %v12998_v26 = vcombine.low %v4191_v14, %v4195_v16  ;;  %v13007_v28 = vcombine.high %v4199_v22, %v4203_v12  ;;  %v4223_v7 = vld [vmem:[%s20019_s3 + $0xc48] sm:$0xff] }
 0x2a0   :  { %7204 = vmatprep.subr.bf16.mxu1 %v12951_v27  ;;  %v13005_v27 = vcombine.high %v4198_v8, %v4202_v21  ;;  %v4227_v10 = vld [vmem:[%s20019_s3 + $0xc68] sm:$0xff]  ;;  %v13020_v16 = vcombine.low %v4214_v38, %v4218_v40 }
 0x2a2   :  { %7041 = vmatpush1.bf16.msra.mxu0 %v12948_v32  ;;  %v4211_v32 = vld [vmem:[%s20019_s3 + $0xbe8] sm:$0xff] }
 0x2a3   :  { %7205 = vmatpush1.bf16.msra.mxu1 %v12950_v35  ;;  %7042 = vmatprep.subr.bf16.mxu0 %v12957_v36  ;;  %v13004_v35 = vcombine.low %v4198_v8, %v4202_v21  ;;  %v13006_v36 = vcombine.low %v4199_v22, %v4203_v12  ;;  %v13015_v39 = vcombine.high %v4207_v31, %v4211_v32  ;;  %v4234_v21 = vld [vmem:[%s20019_s3 + $0xca0] sm:$0xff]  ;;  %v4231_v22 = vld [vmem:[%s20019_s3 + $0xc88] sm:$0xff] }
 0x2a4   :  { %7206 = vmatprep.subr.bf16.mxu1 %v12959_v37  ;;  %v13013_v37 = vcombine.high %v4206_v30, %v4210_v23  ;;  %v13031_v8 = vcombine.high %v4223_v7, %v4227_v10  ;;  %v4235_v12 = vld [vmem:[%s20019_s3 + $0xca8] sm:$0xff] }
 0x2a6   :  { %7043 = vmatpush1.bf16.msra.mxu0 %v12956_v34  ;;  %v4219_v34 = vld [vmem:[%s20019_s3 + $0xc28] sm:$0xff] }
 0x2a7   :  { %7207 = vmatpush1.bf16.msra.mxu1 %v12958_v41  ;;  %7044 = vmatprep.subr.bf16.mxu0 %v12965_v42  ;;  %v13012_v41 = vcombine.low %v4206_v30, %v4210_v23  ;;  %v13014_v42 = vcombine.low %v4207_v31, %v4211_v32  ;;  %v13023_v44 = vcombine.high %v4215_v9, %v4219_v34  ;;  %v4238_v23 = vld [vmem:[%s20019_s3 + $0xcc0] sm:$0xff]  ;;  %v4239_v32 = vld [vmem:[%s20019_s3 + $0xcc8] sm:$0xff] }
 0x2a8   :  { %7208 = vmatprep.subr.bf16.mxu1 %v12967_v43  ;;  %v13021_v43 = vcombine.high %v4214_v38, %v4218_v40  ;;  %v13039_v30 = vcombine.high %v4231_v22, %v4235_v12  ;;  %v4242_v31 = vld [vmem:[%s20019_s3 + $0xce0] sm:$0xff] }
 0x2a9   :  { %v4246_v40 = vld [vmem:[%s20019_s3 + $0xd00] sm:$0xff] }
 0x2aa   :  { %7045 = vmatpush1.bf16.msra.mxu0 %v12964_v49  ;;  %v17162_v49 = vld [vmem:[%s20018_s2] sm:$0xff] }
 0x2ab   :  { %7209 = vmatpush1.bf16.msra.mxu1 %v12966_v50  ;;  %7046 = vmatprep.subr.bf16.mxu0 %v12973_v51  ;;  %v577_v50 = vrot.slane %v17162_v49, %v17151_v48  ;;  %v581_v51 = vrot.slane %v17162_v49, %v17154_v45 }
 0x2ac   :  { %7210 = vmatprep.subr.bf16.mxu1 %v12975_v52  ;;  %v589_v52 = vrot.slane %v17162_v49, %v17157_v46 }
 0x2ae   :  { %7047 = vmatpush1.bf16.msra.mxu0 %v12972_v59 }
 0x2af   :  { %7211 = vmatpush1.bf16.msra.mxu1 %v12974_v56  ;;  %7048 = vmatprep.subr.bf16.mxu0 %v12981_v60 }
 0x2b0   :  { %7212 = vmatprep.subr.bf16.mxu1 %v12983_v61 }
 0x2b2   :  { %7049 = vmatpush1.bf16.msra.mxu0 %v12980_v2 }
 0x2b3   :  { %7213 = vmatpush1.bf16.msra.mxu1 %v12982_v5  ;;  %7050 = vmatprep.subr.bf16.mxu0 %v12989_v6  ;;  %v4222_v5 = vld [vmem:[%s20019_s3 + $0xc40] sm:$0xff] }
 0x2b4   :  { %7214 = vmatprep.subr.bf16.mxu1 %v12991_v17  ;;  %v4226_v17 = vld [vmem:[%s20019_s3 + $0xc60] sm:$0xff] }
 0x2b6   :  { %7051 = vmatpush1.bf16.msra.mxu0 %v12988_v57  ;;  %v13022_v57 = vcombine.low %v4215_v9, %v4219_v34  ;;  %v4250_v9 = vld [vmem:[%s20019_s3 + $0xd20] sm:$0xff]  ;;  %v4247_v34 = vld [vmem:[%s20019_s3 + $0xd08] sm:$0xff] }
 0x2b7   :  { %7215 = vmatpush1.bf16.msra.mxu1 %v12990_v18  ;;  %7052 = vmatprep.subr.bf16.mxu0 %v12997_v19  ;;  %v4230_v19 = vld [vmem:[%s20019_s3 + $0xc80] sm:$0xff] }
 0x2b8   :  { %7216 = vmatprep.subr.bf16.mxu1 %v12999_v20  ;;  %v13029_v20 = vcombine.high %v4222_v5, %v4226_v17 }
 0x2ba   :  { %7053 = vmatpush1.bf16.msra.mxu0 %v12996_v24 }
 0x2bb   :  { %7217 = vmatpush1.bf16.msra.mxu1 %v12998_v26  ;;  %7054 = vmatprep.subr.bf16.mxu0 %v13005_v27  ;;  %v13028_v26 = vcombine.low %v4222_v5, %v4226_v17  ;;  %v13030_v27 = vcombine.low %v4223_v7, %v4227_v10  ;;  %v4270_v17 = vld [vmem:[%s20019_s3 + $0xdc0] sm:$0xff]  ;;  %v4271_v10 = vld [vmem:[%s20019_s3 + $0xdc8] sm:$0xff] }
 0x2bc   :  { %7218 = vmatprep.subr.bf16.mxu1 %v13007_v28  ;;  %v13037_v28 = vcombine.high %v4230_v19, %v4234_v21  ;;  %v4274_v7 = vld [vmem:[%s20019_s3 + $0xde0] sm:$0xff] }
 0x2be   :  { %7055 = vmatpush1.bf16.msra.mxu0 %v13004_v35  ;;  %v4243_v35 = vld [vmem:[%s20019_s3 + $0xce8] sm:$0xff] }
 0x2bf   :  { %7219 = vmatpush1.bf16.msra.mxu1 %v13006_v36  ;;  %7056 = vmatprep.subr.bf16.mxu0 %v13013_v37  ;;  %v13036_v36 = vcombine.low %v4230_v19, %v4234_v21  ;;  %v13038_v37 = vcombine.low %v4231_v22, %v4235_v12  ;;  %v13047_v38 = vcombine.high %v4239_v32, %v4243_v35  ;;  %v4278_v21 = vld [vmem:[%s20019_s3 + $0xe00] sm:$0xff]  ;;  %v4279_v12 = vld [vmem:[%s20019_s3 + $0xe08] sm:$0xff] }
 0x2c0   :  { %7220 = vmatprep.subr.bf16.mxu1 %v13015_v39  ;;  %v13045_v39 = vcombine.high %v4238_v23, %v4242_v31  ;;  %v4282_v22 = vld [vmem:[%s20019_s3 + $0xe20] sm:$0xff] }
 0x2c2   :  { %7057 = vmatpush1.bf16.msra.mxu0 %v13012_v41  ;;  %v4251_v41 = vld [vmem:[%s20019_s3 + $0xd28] sm:$0xff] }
 0x2c3   :  { %7221 = vmatpush1.bf16.msra.mxu1 %v13014_v42  ;;  %7067 = vmatprep.subr.bf16.mxu0 %v13021_v43  ;;  %v13044_v42 = vcombine.low %v4238_v23, %v4242_v31  ;;  %v13046_v43 = vcombine.low %v4239_v32, %v4243_v35  ;;  %v4286_v31 = vld [vmem:[%s20019_s3 + $0xe40] sm:$0xff]  ;;  %v4287_v35 = vld [vmem:[%s20019_s3 + $0xe48] sm:$0xff] }
 0x2c4   :  { %7231 = vmatprep.subr.bf16.mxu1 %v13023_v44  ;;  %v13053_v44 = vcombine.high %v4246_v40, %v4250_v9  ;;  %v4290_v32 = vld [vmem:[%s20019_s3 + $0xe60] sm:$0xff] }
 0x2d8   :  { %v3643_v4 = vpop.f32.mrb[4].mxu0 }
 0x2d9   :  { %v13817_v54 = vadd.f32 %v3643_v4, %v577_v50  ;;  %v17170_v55 = vpop.f32.mrb[4].mxu1  ;;  %v3645_v58 = vpop.f32.mrb[5].mxu0  ;;  %v13055_v50 = vcombine.high %v4247_v34, %v4251_v41  ;;  %v4255_v4 = vld [vmem:[%s20019_s3 + $0xd48] sm:$0xff] }
 0x2da   :  { %v13818_v59 = vadd.f32 %v3645_v58, %v581_v51  ;;  %v3809_v56 = vpop.f32.mrb[5].mxu1  ;;  %v3647_v60 = vpop.f32.mrb[6].mxu0  ;;  %v4254_v51 = vld [vmem:[%s20019_s3 + $0xd40] sm:$0xff]  ;;  %v13052_v58 = vcombine.low %v4246_v40, %v4250_v9 }
 0x2db   :  { %v3818_v61 = vmax.f32 %v13817_v54, 0.0  ;;  %v13820_v13 = vadd.f32 %v3809_v56, %v589_v52  ;;  %v3811_v62 = vpop.f32.mrb[6].mxu1  ;;  %v3648_v63 = vpop.f32.mrb[7].mxu0  ;;  %v4258_v52 = vld [vmem:[%s20019_s3 + $0xd60] sm:$0xff]  ;;  %v4259_v54 = vld [vmem:[%s20019_s3 + $0xd68] sm:$0xff] }
 0x2dc   :  { %v3819_v0 = vmax.f32 %v13818_v59, 0.0  ;;  %v3812_v2 = vpop.f32.mrb[7].mxu1  ;;  %v13054_v59 = vcombine.low %v4247_v34, %v4251_v41  ;;  %v13061_v56 = vcombine.high %v4254_v51, %v4258_v52  ;;  %v13063_v60 = vcombine.high %v4255_v4, %v4259_v54  ;;  %v4263_v62 = vld [vmem:[%s20019_s3 + $0xd88] sm:$0xff]  ;;  %v4294_v9 = vld [vmem:[%s20019_s3 + $0xe80] sm:$0xff] }
 0x2dd   :  { %v3821_v6 = vmax.f32 %v13820_v13, 0.0  ;;  %v17186_v18 = vpack.c.bf16 %v3818_v61, %v3818_v61  ;;  %v4262_v61 = vld [vmem:[%s20019_s3 + $0xd80] sm:$0xff]  ;;  %v4267_v63 = vld [vmem:[%s20019_s3 + $0xda8] sm:$0xff]  ;;  %v13062_v2 = vcombine.low %v4255_v4, %v4259_v54 }
 0x2de   :  { %v17184_v14 = vpack.c.bf16 %v3819_v0, %v3819_v0  ;;  %v4266_v13 = vld [vmem:[%s20019_s3 + $0xda0] sm:$0xff]  ;;  %v13060_v0 = vcombine.low %v4254_v51, %v4258_v52  ;;  %v13070_v19 = vcombine.low %v4263_v62, %v4267_v63  ;;  %v4295_v41 = vld [vmem:[%s20019_s3 + $0xe88] sm:$0xff] }
 0x2df   :  { %v17202_v24 = vpack.c.bf16 %v3821_v6, %v3821_v6  ;;  %v13069_v5 = vcombine.high %v4262_v61, %v4266_v13  ;;  %v13071_v6 = vcombine.high %v4263_v62, %v4267_v63  ;;  %v4298_v34 = vld [vmem:[%s20019_s3 + $0xea0] sm:$0xff]  ;;  %v4303_v54 = vld [vmem:[%s20019_s3 + $0xec8] sm:$0xff] }
 0x2e0   :  { %7058 = vmatprep.mubr.bf16.mxu0 %v17184_v14  ;;  %7222 = vmatprep.mubr.bf16.mxu1 %v17184_v14  ;;  %v4302_v52 = vld [vmem:[%s20019_s3 + $0xec0] sm:$0xff]  ;;  %v4311_v63 = vld [vmem:[%s20019_s3 + $0xf08] sm:$0xff] }
 0x2e1   :  { %7059 = vmatmul.mubr.bf16.vlgmr.msra.gmra.mrb[8].mxu0 %v17186_v18  ;;  %7223 = vmatmul.mubr.bf16.vlgmr.msra.gmra.mrb[8].mxu1 %v17186_v18  ;;  %v4306_v4 = vld [vmem:[%s20019_s3 + $0xee0] sm:$0xff] }
 0x2e2   :  { %7068 = vmatpush1.bf16.msra.mxu0 %v13020_v16  ;;  %7232 = vmatpush1.bf16.msra.mxu1 %v13022_v57  ;;  %v4275_v16 = vld [vmem:[%s20019_s3 + $0xde8] sm:$0xff]  ;;  %v13068_v57 = vcombine.low %v4262_v61, %v4266_v13  ;;  %v4310_v13 = vld [vmem:[%s20019_s3 + $0xf00] sm:$0xff] }
 0x2e3   :  { %7099 = vmatprep.mubr.bf16.mxu0 %v17202_v24  ;;  %7263 = vmatprep.mubr.bf16.mxu1 %v17202_v24  ;;  %v4314_v62 = vld [vmem:[%s20019_s3 + $0xf20] sm:$0xff] }
 0x2e4   :  { %7069 = vmatprep.subr.bf16.mxu0 %v13029_v20  ;;  %7233 = vmatprep.subr.bf16.mxu1 %v13031_v8  ;;  %v13077_v20 = vcombine.high %v4270_v17, %v4274_v7  ;;  %v13079_v8 = vcombine.high %v4271_v10, %v4275_v16 }
 0x2e6   :  { %7070 = vmatpush1.bf16.msra.mxu0 %v13028_v26  ;;  %7234 = vmatpush1.bf16.msra.mxu1 %v13030_v27  ;;  %v4283_v26 = vld [vmem:[%s20019_s3 + $0xe28] sm:$0xff]  ;;  %v13076_v27 = vcombine.low %v4270_v17, %v4274_v7  ;;  %v4318_v7 = vld [vmem:[%s20019_s3 + $0xf40] sm:$0xff] }
 0x2e7   :  { %7071 = vmatprep.subr.bf16.mxu0 %v13037_v28  ;;  %7235 = vmatprep.subr.bf16.mxu1 %v13039_v30  ;;  %v13078_v28 = vcombine.low %v4271_v10, %v4275_v16  ;;  %v13085_v30 = vcombine.high %v4278_v21, %v4282_v22  ;;  %v13087_v23 = vcombine.high %v4279_v12, %v4283_v26  ;;  %v4322_v10 = vld [vmem:[%s20019_s3 + $0xf60] sm:$0xff]  ;;  %v4319_v16 = vld [vmem:[%s20019_s3 + $0xf48] sm:$0xff] }
 0x2ea   :  { %7072 = vmatpush1.bf16.msra.mxu0 %v13036_v36  ;;  %7236 = vmatpush1.bf16.msra.mxu1 %v13038_v37  ;;  %v4291_v36 = vld [vmem:[%s20019_s3 + $0xe68] sm:$0xff]  ;;  %v13084_v37 = vcombine.low %v4278_v21, %v4282_v22  ;;  %v13125_v21 = vcombine.high %v4318_v7, %v4322_v10 }
 0x2eb   :  { %7073 = vmatprep.subr.bf16.mxu0 %v13045_v39  ;;  %7237 = vmatprep.subr.bf16.mxu1 %v13047_v38  ;;  %v13086_v39 = vcombine.low %v4279_v12, %v4283_v26  ;;  %v13093_v38 = vcombine.high %v4286_v31, %v4290_v32  ;;  %v13095_v40 = vcombine.high %v4287_v35, %v4291_v36  ;;  %v4326_v12 = vld [vmem:[%s20019_s3 + $0xf80] sm:$0xff] }
 0x2ec   :  { %v4330_v26 = vld [vmem:[%s20019_s3 + $0xfa0] sm:$0xff] }
 0x2ee   :  { %7074 = vmatpush1.bf16.msra.mxu0 %v13044_v42  ;;  %7238 = vmatpush1.bf16.msra.mxu1 %v13046_v43  ;;  %v4299_v42 = vld [vmem:[%s20019_s3 + $0xea8] sm:$0xff]  ;;  %v13092_v43 = vcombine.low %v4286_v31, %v4290_v32  ;;  %v13133_v31 = vcombine.high %v4326_v12, %v4330_v26 }
 0x2ef   :  { %7075 = vmatprep.subr.bf16.mxu0 %v13053_v44  ;;  %7239 = vmatprep.subr.bf16.mxu1 %v13055_v50  ;;  %v13094_v44 = vcombine.low %v4287_v35, %v4291_v36  ;;  %v13101_v50 = vcombine.high %v4294_v9, %v4298_v34  ;;  %v13103_v51 = vcombine.high %v4295_v41, %v4299_v42  ;;  %v4334_v35 = vld [vmem:[%s20019_s3 + $0xfc0] sm:$0xff] }
 0x2f0   :  { %v4338_v36 = vld [vmem:[%s20019_s3 + $0xfe0] sm:$0xff] }
 0x2f2   :  { %7076 = vmatpush1.bf16.msra.mxu0 %v13052_v58  ;;  %7240 = vmatpush1.bf16.msra.mxu1 %v13054_v59  ;;  %v4307_v58 = vld [vmem:[%s20019_s3 + $0xee8] sm:$0xff]  ;;  %v13100_v59 = vcombine.low %v4294_v9, %v4298_v34  ;;  %v13141_v9 = vcombine.high %v4334_v35, %v4338_v36 }
 0x2f3   :  { %7077 = vmatprep.subr.bf16.mxu0 %v13061_v56  ;;  %7241 = vmatprep.subr.bf16.mxu1 %v13063_v60  ;;  %v13102_v56 = vcombine.low %v4295_v41, %v4299_v42  ;;  %v13109_v60 = vcombine.high %v4302_v52, %v4306_v4  ;;  %v13111_v61 = vcombine.high %v4303_v54, %v4307_v58  ;;  %v3832_v41 = vld [vmem:[%s20019_s3 + $0x10] sm:$0xff] }
 0x2f4   :  { %v3836_v42 = vld [vmem:[%s20019_s3 + $0x30] sm:$0xff] }
 0x2f6   :  { %7078 = vmatpush1.bf16.msra.mxu0 %v13060_v0  ;;  %7242 = vmatpush1.bf16.msra.mxu1 %v13062_v2  ;;  %v4315_v0 = vld [vmem:[%s20019_s3 + $0xf28] sm:$0xff]  ;;  %v13108_v2 = vcombine.low %v4302_v52, %v4306_v4  ;;  %v12641_v52 = vcombine.high %v3832_v41, %v3836_v42 }
 0x2f7   :  { %7079 = vmatprep.subr.bf16.mxu0 %v13069_v5  ;;  %7243 = vmatprep.subr.bf16.mxu1 %v13071_v6  ;;  %v13110_v5 = vcombine.low %v4303_v54, %v4307_v58  ;;  %v13117_v6 = vcombine.high %v4310_v13, %v4314_v62  ;;  %v13119_v17 = vcombine.high %v4311_v63, %v4315_v0  ;;  %v3840_v54 = vld [vmem:[%s20019_s3 + $0x50] sm:$0xff] }
 0x2f8   :  { %v3844_v58 = vld [vmem:[%s20019_s3 + $0x70] sm:$0xff] }
 0x2fa   :  { %7080 = vmatpush1.bf16.msra.mxu0 %v13068_v57  ;;  %7244 = vmatpush1.bf16.msra.mxu1 %v13070_v19  ;;  %v4323_v57 = vld [vmem:[%s20019_s3 + $0xf68] sm:$0xff]  ;;  %v13116_v19 = vcombine.low %v4310_v13, %v4314_v62  ;;  %v12649_v62 = vcombine.high %v3840_v54, %v3844_v58 }
 0x2fb   :  { %7081 = vmatprep.subr.bf16.mxu0 %v13077_v20  ;;  %7245 = vmatprep.subr.bf16.mxu1 %v13079_v8  ;;  %v13118_v20 = vcombine.low %v4311_v63, %v4315_v0  ;;  %v17341_v8 = vsub.s32 6, %v16483_v1  ;;  %v13127_v22 = vcombine.high %v4319_v16, %v4323_v57  ;;  %v4331_v1 = vld [vmem:[%s20019_s3 + $0xfa8] sm:$0xff]  ;;  %v3848_v0 = vld [vmem:[%s20019_s3 + $0x90] sm:$0xff] }
 0x2fe   :  { %7082 = vmatpush1.bf16.msra.mxu0 %v13076_v27  ;;  %7246 = vmatpush1.bf16.msra.mxu1 %v13078_v28  ;;  %v4327_v27 = vld [vmem:[%s20019_s3 + $0xf88] sm:$0xff]  ;;  %v13124_v28 = vcombine.low %v4318_v7, %v4322_v10 }
 0x2ff   :  { %7083 = vmatprep.subr.bf16.mxu0 %v13085_v30  ;;  %7247 = vmatprep.subr.bf16.mxu1 %v13087_v23  ;;  %v13126_v30 = vcombine.low %v4319_v16, %v4323_v57  ;;  %v585_v23 = vrot.slane %v17162_v49, %v17341_v8  ;;  %v13135_v32 = vcombine.high %v4327_v27, %v4331_v1  ;;  %v4339_v49 = vld [vmem:[%s20019_s3 + $0xfe8] sm:$0xff]  ;;  %v3856_v57 = vld [vmem:[%s20019_s3 + $0xd0] sm:$0xff] }
 0x302   :  { %7084 = vmatpush1.bf16.msra.mxu0 %v13084_v37  ;;  %7248 = vmatpush1.bf16.msra.mxu1 %v13086_v39  ;;  %v4335_v37 = vld [vmem:[%s20019_s3 + $0xfc8] sm:$0xff]  ;;  %v13132_v39 = vcombine.low %v4326_v12, %v4330_v26 }
 0x303   :  { %7085 = vmatprep.subr.bf16.mxu0 %v13093_v38  ;;  %7249 = vmatprep.subr.bf16.mxu1 %v13095_v40  ;;  %v13134_v38 = vcombine.low %v4327_v27, %v4331_v1  ;;  %v13819_v40 = vadd.f32 %v17170_v55, %v585_v23  ;;  %v13143_v34 = vcombine.high %v4335_v37, %v4339_v49  ;;  %v3837_v55 = vld [vmem:[%s20019_s3 + $0x38] sm:$0xff]  ;;  %v3864_v27 = vld [vmem:[%s20019_s3 + $0x110] sm:$0xff] }
 0x304   :  { %v3868_v1 = vld [vmem:[%s20019_s3 + $0x130] sm:$0xff] }
 0x306   :  { %7086 = vmatpush1.bf16.msra.mxu0 %v13092_v43  ;;  %7250 = vmatpush1.bf16.msra.mxu1 %v13094_v44  ;;  %v3833_v43 = vld [vmem:[%s20019_s3 + $0x18] sm:$0xff]  ;;  %v13140_v44 = vcombine.low %v4334_v35, %v4338_v36  ;;  %v3872_v36 = vld [vmem:[%s20019_s3 + $0x150] sm:$0xff] }
 0x307   :  { %7087 = vmatprep.subr.bf16.mxu0 %v13101_v50  ;;  %7251 = vmatprep.subr.bf16.mxu1 %v13103_v51  ;;  %v13142_v50 = vcombine.low %v4335_v37, %v4339_v49  ;;  %v3820_v51 = vmax.f32 %v13819_v40, 0.0  ;;  %v12643_v4 = vcombine.high %v3833_v43, %v3837_v55  ;;  %v12642_v13 = vcombine.low %v3833_v43, %v3837_v55  ;;  %v3876_v37 = vld [vmem:[%s20019_s3 + $0x170] sm:$0xff]  ;;  %v3873_v49 = vld [vmem:[%s20019_s3 + $0x158] sm:$0xff] }
 0x308   :  { %v3881_v43 = vld [vmem:[%s20019_s3 + $0x198] sm:$0xff] }
 0x309   :  { %v3885_v55 = vld [vmem:[%s20019_s3 + $0x1b8] sm:$0xff] }
 0x30a   :  { %7088 = vmatpush1.bf16.msra.mxu0 %v13100_v59  ;;  %7252 = vmatpush1.bf16.msra.mxu1 %v13102_v56  ;;  %v3841_v59 = vld [vmem:[%s20019_s3 + $0x58] sm:$0xff] }
 0x30b   :  { %7089 = vmatprep.subr.bf16.mxu0 %v13109_v60  ;;  %7253 = vmatprep.subr.bf16.mxu1 %v13111_v61  ;;  %v3845_v56 = vld [vmem:[%s20019_s3 + $0x78] sm:$0xff]  ;;  %v12640_v60 = vcombine.low %v3832_v41, %v3836_v42  ;;  %v17394_v61 = vpack.c.bf16 %v3820_v51, %v3820_v51  ;;  %v3880_v41 = vld [vmem:[%s20019_s3 + $0x190] sm:$0xff] }
 0x30c   :  { %v12651_v63 = vcombine.high %v3841_v59, %v3845_v56  ;;  %v12650_v7 = vcombine.low %v3841_v59, %v3845_v56  ;;  %v3884_v42 = vld [vmem:[%s20019_s3 + $0x1b0] sm:$0xff]  ;;  %v3893_v59 = vld [vmem:[%s20019_s3 + $0x1f8] sm:$0xff] }
 0x30d   :  { %v12689_v51 = vcombine.high %v3880_v41, %v3884_v42  ;;  %v12688_v56 = vcombine.low %v3880_v41, %v3884_v42  ;;  %v3932_v41 = vld [vmem:[%s20019_s3 + $0x330] sm:$0xff]  ;;  %v3929_v42 = vld [vmem:[%s20019_s3 + $0x318] sm:$0xff] }
 0x30e   :  { %7090 = vmatpush1.bf16.msra.mxu0 %v13108_v2  ;;  %7254 = vmatpush1.bf16.msra.mxu1 %v13110_v5  ;;  %v3852_v2 = vld [vmem:[%s20019_s3 + $0xb0] sm:$0xff]  ;;  %v3849_v5 = vld [vmem:[%s20019_s3 + $0x98] sm:$0xff] }
 0x30f   :  { %7091 = vmatprep.subr.bf16.mxu0 %v13117_v6  ;;  %7255 = vmatprep.subr.bf16.mxu1 %v13119_v17  ;;  %v3853_v6 = vld [vmem:[%s20019_s3 + $0xb8] sm:$0xff]  ;;  %v12648_v17 = vcombine.low %v3840_v54, %v3844_v58  ;;  %v12657_v10 = vcombine.high %v3848_v0, %v3852_v2  ;;  %v3892_v54 = vld [vmem:[%s20019_s3 + $0x1f0] sm:$0xff] }
 0x310   :  { %v12659_v16 = vcombine.high %v3849_v5, %v3853_v6  ;;  %v3889_v58 = vld [vmem:[%s20019_s3 + $0x1d8] sm:$0xff] }
 0x312   :  { %7092 = vmatpush1.bf16.msra.mxu0 %v13116_v19  ;;  %7256 = vmatpush1.bf16.msra.mxu1 %v13118_v20  ;;  %v3860_v19 = vld [vmem:[%s20019_s3 + $0xf0] sm:$0xff]  ;;  %v3857_v20 = vld [vmem:[%s20019_s3 + $0xd8] sm:$0xff] }
 0x313   :  { %7093 = vmatprep.subr.bf16.mxu0 %v13125_v21  ;;  %7257 = vmatprep.subr.bf16.mxu1 %v13127_v22  ;;  %v12656_v21 = vcombine.low %v3848_v0, %v3852_v2  ;;  %v12658_v22 = vcombine.low %v3849_v5, %v3853_v6  ;;  %v12665_v12 = vcombine.high %v3856_v57, %v3860_v19  ;;  %v3900_v0 = vld [vmem:[%s20019_s3 + $0x230] sm:$0xff]  ;;  %v3897_v2 = vld [vmem:[%s20019_s3 + $0x218] sm:$0xff] }
 0x314   :  { %v12664_v23 = vcombine.low %v3856_v57, %v3860_v19  ;;  %v3901_v5 = vld [vmem:[%s20019_s3 + $0x238] sm:$0xff]  ;;  %v3908_v57 = vld [vmem:[%s20019_s3 + $0x270] sm:$0xff] }
 0x315   :  { %v3905_v19 = vld [vmem:[%s20019_s3 + $0x258] sm:$0xff] }
 0x316   :  { %7094 = vmatpush1.bf16.msra.mxu0 %v13124_v28  ;;  %7258 = vmatpush1.bf16.msra.mxu1 %v13126_v30  ;;  %v3865_v28 = vld [vmem:[%s20019_s3 + $0x118] sm:$0xff] }
 0x317   :  { %7095 = vmatprep.subr.bf16.mxu0 %v13133_v31  ;;  %7259 = vmatprep.subr.bf16.mxu1 %v13135_v32  ;;  %v3869_v30 = vld [vmem:[%s20019_s3 + $0x138] sm:$0xff]  ;;  %v12673_v32 = vcombine.high %v3864_v27, %v3868_v1 }
 0x318   :  { %v12675_v35 = vcombine.high %v3865_v28, %v3869_v30  ;;  %v12674_v40 = vcombine.low %v3865_v28, %v3869_v30  ;;  %v3917_v28 = vld [vmem:[%s20019_s3 + $0x2b8] sm:$0xff] }
 0x31a   :  { %7096 = vmatpush1.bf16.msra.mxu0 %v13132_v39  ;;  %7260 = vmatpush1.bf16.msra.mxu1 %v13134_v38  ;;  %v3877_v39 = vld [vmem:[%s20019_s3 + $0x178] sm:$0xff]  ;;  %v12672_v38 = vcombine.low %v3864_v27, %v3868_v1  ;;  %v3916_v27 = vld [vmem:[%s20019_s3 + $0x2b0] sm:$0xff] }
 0x31b   :  { %7097 = vmatprep.subr.bf16.mxu0 %v13141_v9  ;;  %7261 = vmatprep.subr.bf16.mxu1 %v13143_v34  ;;  %v12681_v9 = vcombine.high %v3872_v36, %v3876_v37  ;;  %v12683_v34 = vcombine.high %v3873_v49, %v3877_v39  ;;  %v3913_v1 = vld [vmem:[%s20019_s3 + $0x298] sm:$0xff] }
 0x31e   :  { %7098 = vmatpush1.bf16.msra.mxu0 %v13140_v44  ;;  %7262 = vmatpush1.bf16.msra.mxu1 %v13142_v50  ;;  %v12680_v44 = vcombine.low %v3872_v36, %v3876_v37  ;;  %v12682_v50 = vcombine.low %v3873_v49, %v3877_v39  ;;  %v3924_v36 = vld [vmem:[%s20019_s3 + $0x2f0] sm:$0xff]  ;;  %v3921_v37 = vld [vmem:[%s20019_s3 + $0x2d8] sm:$0xff] }
 0x31f   :  { %7272 = vmatprep.subr.bf16.mxu0 %v12641_v52  ;;  %7436 = vmatprep.subr.bf16.mxu1 %v12643_v4  ;;  %v12691_v52 = vcombine.high %v3881_v43, %v3885_v55  ;;  %v3888_v4 = vld [vmem:[%s20019_s3 + $0x1d0] sm:$0xff]  ;;  %v3925_v49 = vld [vmem:[%s20019_s3 + $0x2f8] sm:$0xff] }
 0x320   :  { %v12696_v6 = vcombine.low %v3888_v4, %v3892_v54 }
 0x321   :  { %7100 = vmatmul.mubr.bf16.vlgmr.msra.gmra.mrb[8].mxu0 %v17394_v61  ;;  %7264 = vmatmul.mubr.bf16.vlgmr.msra.gmra.mrb[8].mxu1 %v17394_v61 }
 0x322   :  { %7273 = vmatpush1.bf16.msra.mxu0 %v12640_v60  ;;  %7304 = vmatprep.mubr.bf16.mxu0 %v16556_v47  ;;  %v12690_v60 = vcombine.low %v3881_v43, %v3885_v55  ;;  %v3933_v43 = vld [vmem:[%s20019_s3 + $0x338] sm:$0xff] }
 0x323   :  { %7437 = vmatpush1.bf16.msra.mxu1 %v12642_v13  ;;  %7468 = vmatprep.mubr.bf16.mxu1 %v16556_v47  ;;  %v3861_v47 = vld [vmem:[%s20019_s3 + $0xf8] sm:$0xff]  ;;  %v12697_v13 = vcombine.high %v3888_v4, %v3892_v54  ;;  %v3940_v4 = vld [vmem:[%s20019_s3 + $0x370] sm:$0xff] }
 0x324   :  { %7274 = vmatprep.subr.bf16.mxu0 %v12649_v62  ;;  %7438 = vmatprep.subr.bf16.mxu1 %v12651_v63  ;;  %v12667_v26 = vcombine.high %v3857_v20, %v3861_v47  ;;  %v12666_v31 = vcombine.low %v3857_v20, %v3861_v47  ;;  %v12699_v62 = vcombine.high %v3889_v58, %v3893_v59  ;;  %v3896_v63 = vld [vmem:[%s20019_s3 + $0x210] sm:$0xff]  ;;  %v3909_v20 = vld [vmem:[%s20019_s3 + $0x278] sm:$0xff] }
 0x325   :  { %v12704_v47 = vcombine.low %v3896_v63, %v3900_v0  ;;  %v3937_v54 = vld [vmem:[%s20019_s3 + $0x358] sm:$0xff] }
 0x326   :  { %7275 = vmatpush1.bf16.msra.mxu0 %v12648_v17  ;;  %v12698_v17 = vcombine.low %v3889_v58, %v3893_v59  ;;  %v3941_v58 = vld [vmem:[%s20019_s3 + $0x378] sm:$0xff] }
 0x327   :  { %7439 = vmatpush1.bf16.msra.mxu1 %v12650_v7  ;;  %7276 = vmatprep.subr.bf16.mxu0 %v12657_v10  ;;  %v12705_v7 = vcombine.high %v3896_v63, %v3900_v0  ;;  %v12707_v10 = vcombine.high %v3897_v2, %v3901_v5  ;;  %v3948_v63 = vld [vmem:[%s20019_s3 + $0x3b0] sm:$0xff]  ;;  %v3945_v0 = vld [vmem:[%s20019_s3 + $0x398] sm:$0xff] }
 0x328   :  { %7440 = vmatprep.subr.bf16.mxu1 %v12659_v16  ;;  %v3904_v16 = vld [vmem:[%s20019_s3 + $0x250] sm:$0xff] }
 0x329   :  { %v12712_v30 = vcombine.low %v3904_v16, %v3908_v57 }
 0x32a   :  { %7277 = vmatpush1.bf16.msra.mxu0 %v12656_v21  ;;  %v12706_v21 = vcombine.low %v3897_v2, %v3901_v5  ;;  %v3949_v2 = vld [vmem:[%s20019_s3 + $0x3b8] sm:$0xff] }
 0x32b   :  { %7441 = vmatpush1.bf16.msra.mxu1 %v12658_v22  ;;  %7278 = vmatprep.subr.bf16.mxu0 %v12665_v12  ;;  %v12713_v22 = vcombine.high %v3904_v16, %v3908_v57  ;;  %v12715_v12 = vcombine.high %v3905_v19, %v3909_v20  ;;  %v3956_v16 = vld [vmem:[%s20019_s3 + $0x3f0] sm:$0xff]  ;;  %v3953_v57 = vld [vmem:[%s20019_s3 + $0x3d8] sm:$0xff] }
 0x32c   :  { %7442 = vmatprep.subr.bf16.mxu1 %v12667_v26  ;;  %v3912_v26 = vld [vmem:[%s20019_s3 + $0x290] sm:$0xff] }
 0x32d   :  { %v12720_v39 = vcombine.low %v3912_v26, %v3916_v27 }
 0x32e   :  { %7279 = vmatpush1.bf16.msra.mxu0 %v12664_v23  ;;  %v12714_v23 = vcombine.low %v3905_v19, %v3909_v20  ;;  %v3957_v19 = vld [vmem:[%s20019_s3 + $0x3f8] sm:$0xff] }
 0x32f   :  { %7443 = vmatpush1.bf16.msra.mxu1 %v12666_v31  ;;  %7280 = vmatprep.subr.bf16.mxu0 %v12673_v32  ;;  %v12721_v31 = vcombine.high %v3912_v26, %v3916_v27  ;;  %v12723_v32 = vcombine.high %v3913_v1, %v3917_v28  ;;  %v3964_v26 = vld [vmem:[%s20019_s3 + $0x430] sm:$0xff]  ;;  %v3961_v27 = vld [vmem:[%s20019_s3 + $0x418] sm:$0xff] }
 0x330   :  { %7444 = vmatprep.subr.bf16.mxu1 %v12675_v35  ;;  %v3920_v35 = vld [vmem:[%s20019_s3 + $0x2d0] sm:$0xff] }
 0x331   :  { %v12728_v55 = vcombine.low %v3920_v35, %v3924_v36 }
 0x332   :  { %7281 = vmatpush1.bf16.msra.mxu0 %v12672_v38  ;;  %v12722_v38 = vcombine.low %v3913_v1, %v3917_v28  ;;  %v3965_v1 = vld [vmem:[%s20019_s3 + $0x438] sm:$0xff] }
 0x333   :  { %7445 = vmatpush1.bf16.msra.mxu1 %v12674_v40  ;;  %7282 = vmatprep.subr.bf16.mxu0 %v12681_v9  ;;  %v12729_v40 = vcombine.high %v3920_v35, %v3924_v36  ;;  %v12731_v9 = vcombine.high %v3921_v37, %v3925_v49  ;;  %v3972_v35 = vld [vmem:[%s20019_s3 + $0x470] sm:$0xff] }
 0x334   :  { %7446 = vmatprep.subr.bf16.mxu1 %v12683_v34  ;;  %v3928_v34 = vld [vmem:[%s20019_s3 + $0x310] sm:$0xff] }
 0x335   :  { %v12736_v59 = vcombine.low %v3928_v34, %v3932_v41 }
 0x336   :  { %7283 = vmatpush1.bf16.msra.mxu0 %v12680_v44  ;;  %v12730_v44 = vcombine.low %v3921_v37, %v3925_v49  ;;  %v3969_v37 = vld [vmem:[%s20019_s3 + $0x458] sm:$0xff] }
 0x337   :  { %7447 = vmatpush1.bf16.msra.mxu1 %v12682_v50  ;;  %7284 = vmatprep.subr.bf16.mxu0 %v12689_v51  ;;  %v12737_v50 = vcombine.high %v3928_v34, %v3932_v41  ;;  %v12739_v51 = vcombine.high %v3929_v42, %v3933_v43  ;;  %v3973_v49 = vld [vmem:[%s20019_s3 + $0x478] sm:$0xff] }
 0x338   :  { %7448 = vmatprep.subr.bf16.mxu1 %v12691_v52  ;;  %v3936_v52 = vld [vmem:[%s20019_s3 + $0x350] sm:$0xff]  ;;  %v12779_v34 = vcombine.high %v3969_v37, %v3973_v49  ;;  %v3977_v41 = vld [vmem:[%s20019_s3 + $0x498] sm:$0xff] }
 0x339   :  { %v12744_v5 = vcombine.low %v3936_v52, %v3940_v4 }
 0x33a   :  { %7285 = vmatpush1.bf16.msra.mxu0 %v12688_v56  ;;  %v12738_v56 = vcombine.low %v3929_v42, %v3933_v43  ;;  %v3981_v42 = vld [vmem:[%s20019_s3 + $0x4b8] sm:$0xff] }
 0x33b   :  { %7449 = vmatpush1.bf16.msra.mxu1 %v12690_v60  ;;  %7286 = vmatprep.subr.bf16.mxu0 %v12697_v13  ;;  %v12745_v60 = vcombine.high %v3936_v52, %v3940_v4  ;;  %v12747_v13 = vcombine.high %v3937_v54, %v3941_v58  ;;  %v3988_v52 = vld [vmem:[%s20019_s3 + $0x4f0] sm:$0xff]  ;;  %v3989_v4 = vld [vmem:[%s20019_s3 + $0x4f8] sm:$0xff] }
 0x33c   :  { %7450 = vmatprep.subr.bf16.mxu1 %v12699_v62  ;;  %v3944_v62 = vld [vmem:[%s20019_s3 + $0x390] sm:$0xff] }
 0x33d   :  { %v12752_v20 = vcombine.low %v3944_v62, %v3948_v63 }
 0x33e   :  { %7287 = vmatpush1.bf16.msra.mxu0 %v12696_v6  ;;  %v12746_v6 = vcombine.low %v3937_v54, %v3941_v58  ;;  %v12786_v54 = vcombine.low %v3977_v41, %v3981_v42 }
 0x33f   :  { %7451 = vmatpush1.bf16.msra.mxu1 %v12698_v17  ;;  %7288 = vmatprep.subr.bf16.mxu0 %v12705_v7  ;;  %v12753_v17 = vcombine.high %v3944_v62, %v3948_v63  ;;  %v12755_v7 = vcombine.high %v3945_v0, %v3949_v2  ;;  %v3997_v62 = vld [vmem:[%s20019_s3 + $0x538] sm:$0xff] }
 0x340   :  { %7452 = vmatprep.subr.bf16.mxu1 %v12707_v10  ;;  %v3952_v10 = vld [vmem:[%s20019_s3 + $0x3d0] sm:$0xff] }
 0x341   :  { %v12760_v28 = vcombine.low %v3952_v10, %v3956_v16 }
 0x342   :  { %7289 = vmatpush1.bf16.msra.mxu0 %v12704_v47  ;;  %v12754_v47 = vcombine.low %v3945_v0, %v3949_v2 }
 0x343   :  { %7453 = vmatpush1.bf16.msra.mxu1 %v12706_v21  ;;  %7290 = vmatprep.subr.bf16.mxu0 %v12713_v22  ;;  %v12761_v21 = vcombine.high %v3952_v10, %v3956_v16  ;;  %v12763_v22 = vcombine.high %v3953_v57, %v3957_v19  ;;  %v4005_v10 = vld [vmem:[%s20019_s3 + $0x578] sm:$0xff] }
 0x344   :  { %7454 = vmatprep.subr.bf16.mxu1 %v12715_v12  ;;  %v3960_v12 = vld [vmem:[%s20019_s3 + $0x410] sm:$0xff] }
 0x345   :  { %v12768_v36 = vcombine.low %v3960_v12, %v3964_v26 }
 0x346   :  { %7291 = vmatpush1.bf16.msra.mxu0 %v12712_v30  ;;  %v12762_v30 = vcombine.low %v3953_v57, %v3957_v19 }
 0x347   :  { %7455 = vmatpush1.bf16.msra.mxu1 %v12714_v23  ;;  %7292 = vmatprep.subr.bf16.mxu0 %v12721_v31  ;;  %v12769_v23 = vcombine.high %v3960_v12, %v3964_v26  ;;  %v12771_v31 = vcombine.high %v3961_v27, %v3965_v1  ;;  %v4013_v12 = vld [vmem:[%s20019_s3 + $0x5b8] sm:$0xff] }
 0x348   :  { %7456 = vmatprep.subr.bf16.mxu1 %v12723_v32  ;;  %v3968_v32 = vld [vmem:[%s20019_s3 + $0x450] sm:$0xff] }
 0x349   :  { %v12776_v43 = vcombine.low %v3968_v32, %v3972_v35 }
 0x34a   :  { %7293 = vmatpush1.bf16.msra.mxu0 %v12720_v39  ;;  %v12770_v39 = vcombine.low %v3961_v27, %v3965_v1 }
 0x34b   :  { %7457 = vmatpush1.bf16.msra.mxu1 %v12722_v38  ;;  %7294 = vmatprep.subr.bf16.mxu0 %v12729_v40  ;;  %v12777_v38 = vcombine.high %v3968_v32, %v3972_v35  ;;  %v3976_v40 = vld [vmem:[%s20019_s3 + $0x490] sm:$0xff]  ;;  %v4021_v32 = vld [vmem:[%s20019_s3 + $0x5f8] sm:$0xff] }
 0x34c   :  { %7458 = vmatprep.subr.bf16.mxu1 %v12731_v9  ;;  %v3980_v9 = vld [vmem:[%s20019_s3 + $0x4b0] sm:$0xff] }
 0x34e   :  { %7295 = vmatpush1.bf16.msra.mxu0 %v12728_v55  ;;  %v12778_v55 = vcombine.low %v3969_v37, %v3973_v49 }
 0x34f   :  { %7459 = vmatpush1.bf16.msra.mxu1 %v12730_v44  ;;  %7296 = vmatprep.subr.bf16.mxu0 %v12737_v50  ;;  %v12785_v44 = vcombine.high %v3976_v40, %v3980_v9  ;;  %v12787_v50 = vcombine.high %v3977_v41, %v3981_v42 }
 0x350   :  { %7460 = vmatprep.subr.bf16.mxu1 %v12739_v51  ;;  %v3984_v51 = vld [vmem:[%s20019_s3 + $0x4d0] sm:$0xff] }
 0x351   :  { %v12793_v58 = vcombine.high %v3984_v51, %v3988_v52  ;;  %v12792_v63 = vcombine.low %v3984_v51, %v3988_v52  ;;  %v4037_v51 = vld [vmem:[%s20019_s3 + $0x678] sm:$0xff] }
 0x352   :  { %7297 = vmatpush1.bf16.msra.mxu0 %v12736_v59 }
 0x353   :  { %7461 = vmatpush1.bf16.msra.mxu1 %v12738_v56  ;;  %7298 = vmatprep.subr.bf16.mxu0 %v12745_v60  ;;  %v3992_v56 = vld [vmem:[%s20019_s3 + $0x510] sm:$0xff] }
 0x354   :  { %7462 = vmatprep.subr.bf16.mxu1 %v12747_v13  ;;  %v3996_v60 = vld [vmem:[%s20019_s3 + $0x530] sm:$0xff]  ;;  %v3993_v13 = vld [vmem:[%s20019_s3 + $0x518] sm:$0xff] }
 0x355   :  { %v12801_v2 = vcombine.high %v3992_v56, %v3996_v60  ;;  %v12800_v16 = vcombine.low %v3992_v56, %v3996_v60  ;;  %v12802_v57 = vcombine.low %v3993_v13, %v3997_v62  ;;  %v4045_v56 = vld [vmem:[%s20019_s3 + $0x6b8] sm:$0xff] }
 0x356   :  { %7299 = vmatpush1.bf16.msra.mxu0 %v12744_v5  ;;  %v12803_v5 = vcombine.high %v3993_v13, %v3997_v62 }
 0x357   :  { %7463 = vmatpush1.bf16.msra.mxu1 %v12746_v6  ;;  %7300 = vmatprep.subr.bf16.mxu0 %v12753_v17  ;;  %v4000_v6 = vld [vmem:[%s20019_s3 + $0x550] sm:$0xff] }
 0x358   :  { %7464 = vmatprep.subr.bf16.mxu1 %v12755_v7  ;;  %v4004_v17 = vld [vmem:[%s20019_s3 + $0x570] sm:$0xff]  ;;  %v4001_v7 = vld [vmem:[%s20019_s3 + $0x558] sm:$0xff] }
 0x359   :  { %v12809_v19 = vcombine.high %v4000_v6, %v4004_v17  ;;  %v12808_v26 = vcombine.low %v4000_v6, %v4004_v17  ;;  %v12810_v27 = vcombine.low %v4001_v7, %v4005_v10  ;;  %v4053_v6 = vld [vmem:[%s20019_s3 + $0x6f8] sm:$0xff] }
 0x35a   :  { %7301 = vmatpush1.bf16.msra.mxu0 %v12752_v20  ;;  %v12811_v20 = vcombine.high %v4001_v7, %v4005_v10 }
 0x35b   :  { %7465 = vmatpush1.bf16.msra.mxu1 %v12754_v47  ;;  %7302 = vmatprep.subr.bf16.mxu0 %v12761_v21  ;;  %v4008_v47 = vld [vmem:[%s20019_s3 + $0x590] sm:$0xff] }
 0x35c   :  { %7466 = vmatprep.subr.bf16.mxu1 %v12763_v22  ;;  %v4012_v21 = vld [vmem:[%s20019_s3 + $0x5b0] sm:$0xff]  ;;  %v4009_v22 = vld [vmem:[%s20019_s3 + $0x598] sm:$0xff] }
 0x35d   :  { %v12817_v1 = vcombine.high %v4008_v47, %v4012_v21  ;;  %v12816_v35 = vcombine.low %v4008_v47, %v4012_v21  ;;  %v4061_v47 = vld [vmem:[%s20019_s3 + $0x738] sm:$0xff] }
 0x35e   :  { %7303 = vmatpush1.bf16.msra.mxu0 %v12760_v28  ;;  %v12819_v28 = vcombine.high %v4009_v22, %v4013_v12 }
 0x35f   :  { %7467 = vmatpush1.bf16.msra.mxu1 %v12762_v30  ;;  %7313 = vmatprep.subr.bf16.mxu0 %v12769_v23  ;;  %v4016_v30 = vld [vmem:[%s20019_s3 + $0x5d0] sm:$0xff] }
 0x360   :  { %7477 = vmatprep.subr.bf16.mxu1 %v12771_v31  ;;  %v4020_v23 = vld [vmem:[%s20019_s3 + $0x5f0] sm:$0xff]  ;;  %v4017_v31 = vld [vmem:[%s20019_s3 + $0x5d8] sm:$0xff] }
 0x361   :  { %7305 = vmatmul.mubr.bf16.vlgmr.msra.gmra.mrb[12].mxu0 %v16760_v3  ;;  %v12825_v37 = vcombine.high %v4016_v30, %v4020_v23  ;;  %v12827_v49 = vcombine.high %v4017_v31, %v4021_v32  ;;  %v12826_v41 = vcombine.low %v4017_v31, %v4021_v32 }
 0x362   :  { %7469 = vmatmul.mubr.bf16.vlgmr.msra.gmra.mrb[12].mxu1 %v16760_v3  ;;  %7314 = vmatpush1.bf16.msra.mxu0 %v12768_v36  ;;  %v3985_v3 = vld [vmem:[%s20019_s3 + $0x4d8] sm:$0xff]  ;;  %v12818_v36 = vcombine.low %v4009_v22, %v4013_v12 }
 0x363   :  { %7345 = vmatprep.mubr.bf16.mxu0 %v16768_v11  ;;  %7478 = vmatpush1.bf16.msra.mxu1 %v12770_v39  ;;  %v12795_v59 = vcombine.high %v3985_v3, %v3989_v4  ;;  %v12794_v0 = vcombine.low %v3985_v3, %v3989_v4  ;;  %v4024_v39 = vld [vmem:[%s20019_s3 + $0x610] sm:$0xff] }
 0x364   :  { %7509 = vmatprep.mubr.bf16.mxu1 %v16768_v11  ;;  %7315 = vmatprep.subr.bf16.mxu0 %v12777_v38  ;;  %v12784_v11 = vcombine.low %v3976_v40, %v3980_v9  ;;  %v4028_v38 = vld [vmem:[%s20019_s3 + $0x630] sm:$0xff]  ;;  %v4025_v40 = vld [vmem:[%s20019_s3 + $0x618] sm:$0xff] }
 0x365   :  { %7479 = vmatprep.subr.bf16.mxu1 %v12779_v34  ;;  %v4029_v9 = vld [vmem:[%s20019_s3 + $0x638] sm:$0xff]  ;;  %v12824_v34 = vcombine.low %v4016_v30, %v4020_v23  ;;  %v12833_v42 = vcombine.high %v4024_v39, %v4028_v38  ;;  %v12832_v52 = vcombine.low %v4024_v39, %v4028_v38 }
 0x366   :  { %7316 = vmatpush1.bf16.msra.mxu0 %v12776_v43  ;;  %v12835_v43 = vcombine.high %v4025_v40, %v4029_v9  ;;  %v12834_v3 = vcombine.low %v4025_v40, %v4029_v9  ;;  %v4069_v30 = vld [vmem:[%s20019_s3 + $0x778] sm:$0xff] }
 0x367   :  { %7480 = vmatpush1.bf16.msra.mxu1 %v12778_v55  ;;  %7317 = vmatprep.subr.bf16.mxu0 %v12785_v44  ;;  %v4032_v55 = vld [vmem:[%s20019_s3 + $0x650] sm:$0xff]  ;;  %v4077_v39 = vld [vmem:[%s20019_s3 + $0x7b8] sm:$0xff] }
 0x368   :  { %7481 = vmatprep.subr.bf16.mxu1 %v12787_v50  ;;  %v4036_v44 = vld [vmem:[%s20019_s3 + $0x670] sm:$0xff]  ;;  %v4033_v50 = vld [vmem:[%s20019_s3 + $0x658] sm:$0xff] }
 0x369   :  { %v12841_v4 = vcombine.high %v4032_v55, %v4036_v44  ;;  %v12840_v60 = vcombine.low %v4032_v55, %v4036_v44  ;;  %v12842_v13 = vcombine.low %v4033_v50, %v4037_v51  ;;  %v4085_v55 = vld [vmem:[%s20019_s3 + $0x7f8] sm:$0xff] }
 0x36a   :  { %7318 = vmatpush1.bf16.msra.mxu0 %v12784_v11  ;;  %v12843_v11 = vcombine.high %v4033_v50, %v4037_v51 }
 0x36b   :  { %7482 = vmatpush1.bf16.msra.mxu1 %v12786_v54  ;;  %7319 = vmatprep.subr.bf16.mxu0 %v12793_v58  ;;  %v4040_v54 = vld [vmem:[%s20019_s3 + $0x690] sm:$0xff] }
 0x36c   :  { %7483 = vmatprep.subr.bf16.mxu1 %v12795_v59  ;;  %v4044_v58 = vld [vmem:[%s20019_s3 + $0x6b0] sm:$0xff]  ;;  %v4041_v59 = vld [vmem:[%s20019_s3 + $0x698] sm:$0xff] }
 0x36d   :  { %v12849_v62 = vcombine.high %v4040_v54, %v4044_v58  ;;  %v12848_v17 = vcombine.low %v4040_v54, %v4044_v58  ;;  %v12850_v7 = vcombine.low %v4041_v59, %v4045_v56  ;;  %v4093_v54 = vld [vmem:[%s20019_s3 + $0x838] sm:$0xff] }
 0x36e   :  { %7320 = vmatpush1.bf16.msra.mxu0 %v12792_v63  ;;  %v12851_v63 = vcombine.high %v4041_v59, %v4045_v56 }
 0x36f   :  { %7484 = vmatpush1.bf16.msra.mxu1 %v12794_v0  ;;  %7321 = vmatprep.subr.bf16.mxu0 %v12801_v2  ;;  %v4048_v0 = vld [vmem:[%s20019_s3 + $0x6d0] sm:$0xff] }
 0x370   :  { %7485 = vmatprep.subr.bf16.mxu1 %v12803_v5  ;;  %v4052_v2 = vld [vmem:[%s20019_s3 + $0x6f0] sm:$0xff]  ;;  %v4049_v5 = vld [vmem:[%s20019_s3 + $0x6d8] sm:$0xff] }
 0x371   :  { %v12857_v10 = vcombine.high %v4048_v0, %v4052_v2  ;;  %v12856_v21 = vcombine.low %v4048_v0, %v4052_v2  ;;  %v12858_v22 = vcombine.low %v4049_v5, %v4053_v6  ;;  %v4097_v0 = vld [vmem:[%s20019_s3 + $0x858] sm:$0xff] }
 0x372   :  { %7322 = vmatpush1.bf16.msra.mxu0 %v12800_v16  ;;  %v12859_v16 = vcombine.high %v4049_v5, %v4053_v6  ;;  %v4101_v2 = vld [vmem:[%s20019_s3 + $0x878] sm:$0xff] }
 0x373   :  { %7486 = vmatpush1.bf16.msra.mxu1 %v12802_v57  ;;  %7323 = vmatprep.subr.bf16.mxu0 %v12809_v19  ;;  %v4056_v57 = vld [vmem:[%s20019_s3 + $0x710] sm:$0xff] }
 0x374   :  { %7487 = vmatprep.subr.bf16.mxu1 %v12811_v20  ;;  %v4060_v19 = vld [vmem:[%s20019_s3 + $0x730] sm:$0xff]  ;;  %v4057_v20 = vld [vmem:[%s20019_s3 + $0x718] sm:$0xff] }
 0x375   :  { %v12865_v12 = vcombine.high %v4056_v57, %v4060_v19  ;;  %v12864_v23 = vcombine.low %v4056_v57, %v4060_v19  ;;  %v12866_v31 = vcombine.low %v4057_v20, %v4061_v47  ;;  %v4109_v57 = vld [vmem:[%s20019_s3 + $0x8b8] sm:$0xff] }
 0x376   :  { %7324 = vmatpush1.bf16.msra.mxu0 %v12808_v26  ;;  %v12867_v26 = vcombine.high %v4057_v20, %v4061_v47  ;;  %v12906_v20 = vcombine.low %v4097_v0, %v4101_v2 }
 0x377   :  { %7488 = vmatpush1.bf16.msra.mxu1 %v12810_v27  ;;  %7325 = vmatprep.subr.bf16.mxu0 %v12817_v1  ;;  %v4064_v27 = vld [vmem:[%s20019_s3 + $0x750] sm:$0xff] }
 0x378   :  { %7489 = vmatprep.subr.bf16.mxu1 %v12819_v28  ;;  %v4068_v1 = vld [vmem:[%s20019_s3 + $0x770] sm:$0xff]  ;;  %v4065_v28 = vld [vmem:[%s20019_s3 + $0x758] sm:$0xff] }
 0x379   :  { %v12873_v32 = vcombine.high %v4064_v27, %v4068_v1  ;;  %v12872_v38 = vcombine.low %v4064_v27, %v4068_v1  ;;  %v12874_v40 = vcombine.low %v4065_v28, %v4069_v30 }
 0x37a   :  { %7326 = vmatpush1.bf16.msra.mxu0 %v12816_v35  ;;  %v12875_v35 = vcombine.high %v4065_v28, %v4069_v30  ;;  %v4120_v30 = vld [vmem:[%s20019_s3 + $0x910] sm:$0xff] }
 0x37b   :  { %7490 = vmatpush1.bf16.msra.mxu1 %v12818_v36  ;;  %7327 = vmatprep.subr.bf16.mxu0 %v12825_v37  ;;  %v4072_v36 = vld [vmem:[%s20019_s3 + $0x790] sm:$0xff] }
 0x37c   :  { %7491 = vmatprep.subr.bf16.mxu1 %v12827_v49  ;;  %v4076_v37 = vld [vmem:[%s20019_s3 + $0x7b0] sm:$0xff]  ;;  %v4073_v49 = vld [vmem:[%s20019_s3 + $0x798] sm:$0xff] }
 0x37d   :  { %v12881_v9 = vcombine.high %v4072_v36, %v4076_v37  ;;  %v12880_v44 = vcombine.low %v4072_v36, %v4076_v37  ;;  %v12882_v50 = vcombine.low %v4073_v49, %v4077_v39 }
 0x37e   :  { %7328 = vmatpush1.bf16.msra.mxu0 %v12824_v34  ;;  %v12883_v34 = vcombine.high %v4073_v49, %v4077_v39  ;;  %v4128_v39 = vld [vmem:[%s20019_s3 + $0x950] sm:$0xff] }
 0x37f   :  { %7492 = vmatpush1.bf16.msra.mxu1 %v12826_v41  ;;  %7329 = vmatprep.subr.bf16.mxu0 %v12833_v42  ;;  %v4080_v41 = vld [vmem:[%s20019_s3 + $0x7d0] sm:$0xff] }
 0x380   :  { %7493 = vmatprep.subr.bf16.mxu1 %v12835_v43  ;;  %v4084_v42 = vld [vmem:[%s20019_s3 + $0x7f0] sm:$0xff]  ;;  %v4081_v43 = vld [vmem:[%s20019_s3 + $0x7d8] sm:$0xff] }
 0x381   :  { %v12889_v51 = vcombine.high %v4080_v41, %v4084_v42  ;;  %v12888_v58 = vcombine.low %v4080_v41, %v4084_v42  ;;  %v12890_v59 = vcombine.low %v4081_v43, %v4085_v55 }
 0x382   :  { %7330 = vmatpush1.bf16.msra.mxu0 %v12832_v52  ;;  %v12891_v52 = vcombine.high %v4081_v43, %v4085_v55  ;;  %v4136_v55 = vld [vmem:[%s20019_s3 + $0x990] sm:$0xff] }
 0x383   :  { %7494 = vmatpush1.bf16.msra.mxu1 %v12834_v3  ;;  %7331 = vmatprep.subr.bf16.mxu0 %v12841_v4  ;;  %v4088_v3 = vld [vmem:[%s20019_s3 + $0x810] sm:$0xff] }
 0x384   :  { %7495 = vmatprep.subr.bf16.mxu1 %v12843_v11  ;;  %v4092_v4 = vld [vmem:[%s20019_s3 + $0x830] sm:$0xff]  ;;  %v4089_v11 = vld [vmem:[%s20019_s3 + $0x818] sm:$0xff] }
 0x385   :  { %v12897_v56 = vcombine.high %v4088_v3, %v4092_v4  ;;  %v12898_v5 = vcombine.low %v4089_v11, %v4093_v54 }
 0x386   :  { %7332 = vmatpush1.bf16.msra.mxu0 %v12840_v60  ;;  %v12899_v60 = vcombine.high %v4089_v11, %v4093_v54  ;;  %v4144_v54 = vld [vmem:[%s20019_s3 + $0x9d0] sm:$0xff] }
 0x387   :  { %7496 = vmatpush1.bf16.msra.mxu1 %v12842_v13  ;;  %7333 = vmatprep.subr.bf16.mxu0 %v12849_v62  ;;  %v4096_v13 = vld [vmem:[%s20019_s3 + $0x850] sm:$0xff] }
 0x388   :  { %7497 = vmatprep.subr.bf16.mxu1 %v12851_v63  ;;  %v4100_v62 = vld [vmem:[%s20019_s3 + $0x870] sm:$0xff]  ;;  %v12896_v63 = vcombine.low %v4088_v3, %v4092_v4 }
 0x389   :  { %v12905_v6 = vcombine.high %v4096_v13, %v4100_v62  ;;  %v12904_v19 = vcombine.low %v4096_v13, %v4100_v62 }
 0x38a   :  { %7334 = vmatpush1.bf16.msra.mxu0 %v12848_v17  ;;  %v4104_v17 = vld [vmem:[%s20019_s3 + $0x890] sm:$0xff] }
 0x38b   :  { %7498 = vmatpush1.bf16.msra.mxu1 %v12850_v7  ;;  %7335 = vmatprep.subr.bf16.mxu0 %v12857_v10  ;;  %v4108_v7 = vld [vmem:[%s20019_s3 + $0x8b0] sm:$0xff]  ;;  %v12907_v10 = vcombine.high %v4097_v0, %v4101_v2 }
 0x38c   :  { %7499 = vmatprep.subr.bf16.mxu1 %v12859_v16  ;;  %v4105_v16 = vld [vmem:[%s20019_s3 + $0x898] sm:$0xff]  ;;  %v12913_v47 = vcombine.high %v4104_v17, %v4108_v7  ;;  %v4152_v0 = vld [vmem:[%s20019_s3 + $0xa10] sm:$0xff] }
 0x38d   :  { %v12914_v27 = vcombine.low %v4105_v16, %v4109_v57  ;;  %v4156_v2 = vld [vmem:[%s20019_s3 + $0xa30] sm:$0xff] }
 0x38e   :  { %7336 = vmatpush1.bf16.msra.mxu0 %v12856_v21  ;;  %v12915_v21 = vcombine.high %v4105_v16, %v4109_v57  ;;  %v4160_v57 = vld [vmem:[%s20019_s3 + $0xa50] sm:$0xff] }
 0x38f   :  { %7500 = vmatpush1.bf16.msra.mxu1 %v12858_v22  ;;  %7337 = vmatprep.subr.bf16.mxu0 %v12865_v12  ;;  %v4112_v22 = vld [vmem:[%s20019_s3 + $0x8d0] sm:$0xff] }
 0x390   :  { %7501 = vmatprep.subr.bf16.mxu1 %v12867_v26  ;;  %v4116_v12 = vld [vmem:[%s20019_s3 + $0x8f0] sm:$0xff]  ;;  %v4117_v26 = vld [vmem:[%s20019_s3 + $0x8f8] sm:$0xff] }
 0x391   :  { %v12921_v1 = vcombine.high %v4112_v22, %v4116_v12 }
 0x392   :  { %7338 = vmatpush1.bf16.msra.mxu0 %v12864_v23  ;;  %v4124_v23 = vld [vmem:[%s20019_s3 + $0x930] sm:$0xff] }
 0x393   :  { %7502 = vmatpush1.bf16.msra.mxu1 %v12866_v31  ;;  %7339 = vmatprep.subr.bf16.mxu0 %v12873_v32  ;;  %v4121_v31 = vld [vmem:[%s20019_s3 + $0x918] sm:$0xff]  ;;  %v12929_v37 = vcombine.high %v4120_v30, %v4124_v23 }
 0x394   :  { %7503 = vmatprep.subr.bf16.mxu1 %v12875_v35  ;;  %v4125_v32 = vld [vmem:[%s20019_s3 + $0x938] sm:$0xff]  ;;  %v12920_v35 = vcombine.low %v4112_v22, %v4116_v12 }
 0x395   :  { %v12931_v49 = vcombine.high %v4121_v31, %v4125_v32  ;;  %v12930_v41 = vcombine.low %v4121_v31, %v4125_v32  ;;  %v4176_v32 = vld [vmem:[%s20019_s3 + $0xad0] sm:$0xff] }
 0x396   :  { %7340 = vmatpush1.bf16.msra.mxu0 %v12872_v38  ;;  %v4132_v38 = vld [vmem:[%s20019_s3 + $0x970] sm:$0xff] }
 0x397   :  { %7504 = vmatpush1.bf16.msra.mxu1 %v12874_v40  ;;  %7341 = vmatprep.subr.bf16.mxu0 %v12881_v9  ;;  %v4129_v40 = vld [vmem:[%s20019_s3 + $0x958] sm:$0xff]  ;;  %v12937_v42 = vcombine.high %v4128_v39, %v4132_v38 }
 0x398   :  { %7505 = vmatprep.subr.bf16.mxu1 %v12883_v34  ;;  %v4133_v9 = vld [vmem:[%s20019_s3 + $0x978] sm:$0xff]  ;;  %v12928_v34 = vcombine.low %v4120_v30, %v4124_v23 }
 0x399   :  { %v12939_v43 = vcombine.high %v4129_v40, %v4133_v9  ;;  %v12938_v3 = vcombine.low %v4129_v40, %v4133_v9  ;;  %v4184_v9 = vld [vmem:[%s20019_s3 + $0xb10] sm:$0xff] }
 0x39a   :  { %7342 = vmatpush1.bf16.msra.mxu0 %v12880_v44  ;;  %v4140_v44 = vld [vmem:[%s20019_s3 + $0x9b0] sm:$0xff] }
 0x39b   :  { %7506 = vmatpush1.bf16.msra.mxu1 %v12882_v50  ;;  %7343 = vmatprep.subr.bf16.mxu0 %v12889_v51  ;;  %v4137_v50 = vld [vmem:[%s20019_s3 + $0x998] sm:$0xff]  ;;  %v12945_v4 = vcombine.high %v4136_v55, %v4140_v44 }
 0x39c   :  { %7507 = vmatprep.subr.bf16.mxu1 %v12891_v52  ;;  %v4141_v51 = vld [vmem:[%s20019_s3 + $0x9b8] sm:$0xff]  ;;  %v12936_v52 = vcombine.low %v4128_v39, %v4132_v38 }
 0x39d   :  { %v12947_v11 = vcombine.high %v4137_v50, %v4141_v51  ;;  %v12946_v13 = vcombine.low %v4137_v50, %v4141_v51  ;;  %v4192_v51 = vld [vmem:[%s20019_s3 + $0xb50] sm:$0xff] }
 0x39e   :  { %7344 = vmatpush1.bf16.msra.mxu0 %v12888_v58  ;;  %v4148_v58 = vld [vmem:[%s20019_s3 + $0x9f0] sm:$0xff] }
 0x39f   :  { %7508 = vmatpush1.bf16.msra.mxu1 %v12890_v59  ;;  %7354 = vmatprep.subr.bf16.mxu0 %v12897_v56  ;;  %v4145_v59 = vld [vmem:[%s20019_s3 + $0x9d8] sm:$0xff]  ;;  %v12953_v62 = vcombine.high %v4144_v54, %v4148_v58 }
 0x3a0   :  { %7518 = vmatprep.subr.bf16.mxu1 %v12899_v60  ;;  %v4149_v56 = vld [vmem:[%s20019_s3 + $0x9f8] sm:$0xff]  ;;  %v12944_v60 = vcombine.low %v4136_v55, %v4140_v44 }
 0x3a1   :  { %7346 = vmatmul.mubr.bf16.vlgmr.msra.gmra.mrb[12].mxu0 %v16966_v25 }
 0x3a2   :  { %7510 = vmatmul.mubr.bf16.vlgmr.msra.gmra.mrb[12].mxu1 %v16966_v25  ;;  %7355 = vmatpush1.bf16.msra.mxu0 %v12896_v63  ;;  %v4113_v25 = vld [vmem:[%s20019_s3 + $0x8d8] sm:$0xff]  ;;  %v12955_v63 = vcombine.high %v4145_v59, %v4149_v56 }
 0x3a3   :  { %7386 = vmatprep.mubr.bf16.mxu0 %v17184_v14  ;;  %7519 = vmatpush1.bf16.msra.mxu1 %v12898_v5  ;;  %v12923_v28 = vcombine.high %v4113_v25, %v4117_v26  ;;  %v12922_v36 = vcombine.low %v4113_v25, %v4117_v26  ;;  %v4153_v5 = vld [vmem:[%s20019_s3 + $0xa18] sm:$0xff]  ;;  %v4168_v26 = vld [vmem:[%s20019_s3 + $0xa90] sm:$0xff] }
 0x3a4   :  { %7550 = vmatprep.mubr.bf16.mxu1 %v17184_v14  ;;  %7356 = vmatprep.subr.bf16.mxu0 %v12905_v6  ;;  %v12912_v14 = vcombine.low %v4104_v17, %v4108_v7  ;;  %v4157_v6 = vld [vmem:[%s20019_s3 + $0xa38] sm:$0xff]  ;;  %v12952_v17 = vcombine.low %v4144_v54, %v4148_v58  ;;  %v12954_v7 = vcombine.low %v4145_v59, %v4149_v56  ;;  %v4200_v56 = vld [vmem:[%s20019_s3 + $0xb90] sm:$0xff] }
 0x3a5   :  { %7520 = vmatprep.subr.bf16.mxu1 %v12907_v10  ;;  %v12961_v10 = vcombine.high %v4152_v0, %v4156_v2  ;;  %v12963_v16 = vcombine.high %v4153_v5, %v4157_v6  ;;  %v12962_v22 = vcombine.low %v4153_v5, %v4157_v6  ;;  %v4208_v6 = vld [vmem:[%s20019_s3 + $0xbd0] sm:$0xff] }
 0x3a6   :  { %7357 = vmatpush1.bf16.msra.mxu0 %v12904_v19  ;;  %v4164_v19 = vld [vmem:[%s20019_s3 + $0xa70] sm:$0xff] }
 0x3a7   :  { %7521 = vmatpush1.bf16.msra.mxu1 %v12906_v20  ;;  %7358 = vmatprep.subr.bf16.mxu0 %v12913_v47  ;;  %v4161_v20 = vld [vmem:[%s20019_s3 + $0xa58] sm:$0xff]  ;;  %v12969_v12 = vcombine.high %v4160_v57, %v4164_v19 }
 0x3a8   :  { %7522 = vmatprep.subr.bf16.mxu1 %v12915_v21  ;;  %v4165_v47 = vld [vmem:[%s20019_s3 + $0xa78] sm:$0xff]  ;;  %v12960_v21 = vcombine.low %v4152_v0, %v4156_v2 }
 0x3a9   :  { %v12971_v25 = vcombine.high %v4161_v20, %v4165_v47  ;;  %v12970_v30 = vcombine.low %v4161_v20, %v4165_v47  ;;  %v4216_v47 = vld [vmem:[%s20019_s3 + $0xc10] sm:$0xff] }
 0x3aa   :  { %7359 = vmatpush1.bf16.msra.mxu0 %v12912_v14  ;;  %v4172_v14 = vld [vmem:[%s20019_s3 + $0xab0] sm:$0xff] }
 0x3ab   :  { %7523 = vmatpush1.bf16.msra.mxu1 %v12914_v27  ;;  %7360 = vmatprep.subr.bf16.mxu0 %v12921_v1  ;;  %v4169_v27 = vld [vmem:[%s20019_s3 + $0xa98] sm:$0xff]  ;;  %v12977_v23 = vcombine.high %v4168_v26, %v4172_v14 }
 0x3ac   :  { %7524 = vmatprep.subr.bf16.mxu1 %v12923_v28  ;;  %v4173_v1 = vld [vmem:[%s20019_s3 + $0xab8] sm:$0xff]  ;;  %v12968_v28 = vcombine.low %v4160_v57, %v4164_v19 }
 0x3ad   :  { %v12979_v31 = vcombine.high %v4169_v27, %v4173_v1  ;;  %v12978_v39 = vcombine.low %v4169_v27, %v4173_v1  ;;  %v4224_v1 = vld [vmem:[%s20019_s3 + $0xc50] sm:$0xff] }
 0x3ae   :  { %7361 = vmatpush1.bf16.msra.mxu0 %v12920_v35  ;;  %v4180_v35 = vld [vmem:[%s20019_s3 + $0xaf0] sm:$0xff] }
 0x3af   :  { %7525 = vmatpush1.bf16.msra.mxu1 %v12922_v36  ;;  %7362 = vmatprep.subr.bf16.mxu0 %v12929_v37  ;;  %v4177_v36 = vld [vmem:[%s20019_s3 + $0xad8] sm:$0xff]  ;;  %v12985_v38 = vcombine.high %v4176_v32, %v4180_v35 }
 0x3b0   :  { %7526 = vmatprep.subr.bf16.mxu1 %v12931_v49  ;;  %v4181_v37 = vld [vmem:[%s20019_s3 + $0xaf8] sm:$0xff]  ;;  %v12976_v49 = vcombine.low %v4168_v26, %v4172_v14 }
 0x3b1   :  { %v12987_v40 = vcombine.high %v4177_v36, %v4181_v37  ;;  %v12986_v55 = vcombine.low %v4177_v36, %v4181_v37  ;;  %v4232_v36 = vld [vmem:[%s20019_s3 + $0xc90] sm:$0xff] }
 0x3b2   :  { %7363 = vmatpush1.bf16.msra.mxu0 %v12928_v34  ;;  %v4188_v34 = vld [vmem:[%s20019_s3 + $0xb30] sm:$0xff] }
 0x3b3   :  { %7527 = vmatpush1.bf16.msra.mxu1 %v12930_v41  ;;  %7364 = vmatprep.subr.bf16.mxu0 %v12937_v42  ;;  %v4185_v41 = vld [vmem:[%s20019_s3 + $0xb18] sm:$0xff]  ;;  %v12993_v44 = vcombine.high %v4184_v9, %v4188_v34  ;;  %v4236_v37 = vld [vmem:[%s20019_s3 + $0xcb0] sm:$0xff] }
 0x3b4   :  { %7528 = vmatprep.subr.bf16.mxu1 %v12939_v43  ;;  %v4189_v42 = vld [vmem:[%s20019_s3 + $0xb38] sm:$0xff]  ;;  %v12984_v43 = vcombine.low %v4176_v32, %v4180_v35 }
 0x3b5   :  { %v12995_v50 = vcombine.high %v4185_v41, %v4189_v42  ;;  %v12994_v54 = vcombine.low %v4185_v41, %v4189_v42  ;;  %v4240_v42 = vld [vmem:[%s20019_s3 + $0xcd0] sm:$0xff] }
 0x3b6   :  { %7365 = vmatpush1.bf16.msra.mxu0 %v12936_v52  ;;  %v4196_v52 = vld [vmem:[%s20019_s3 + $0xb70] sm:$0xff] }
 0x3b7   :  { %7529 = vmatpush1.bf16.msra.mxu1 %v12938_v3  ;;  %7366 = vmatprep.subr.bf16.mxu0 %v12945_v4  ;;  %v4193_v3 = vld [vmem:[%s20019_s3 + $0xb58] sm:$0xff]  ;;  %v13001_v58 = vcombine.high %v4192_v51, %v4196_v52 }
 0x3b8   :  { %7530 = vmatprep.subr.bf16.mxu1 %v12947_v11  ;;  %v4197_v4 = vld [vmem:[%s20019_s3 + $0xb78] sm:$0xff]  ;;  %v12992_v11 = vcombine.low %v4184_v9, %v4188_v34  ;;  %v13041_v34 = vcombine.high %v4232_v36, %v4236_v37 }
 0x3b9   :  { %v13003_v59 = vcombine.high %v4193_v3, %v4197_v4  ;;  %v13002_v0 = vcombine.low %v4193_v3, %v4197_v4  ;;  %v4252_v3 = vld [vmem:[%s20019_s3 + $0xd30] sm:$0xff]  ;;  %v4249_v4 = vld [vmem:[%s20019_s3 + $0xd18] sm:$0xff] }
 0x3ba   :  { %7367 = vmatpush1.bf16.msra.mxu0 %v12944_v60  ;;  %v4204_v60 = vld [vmem:[%s20019_s3 + $0xbb0] sm:$0xff] }
 0x3bb   :  { %7531 = vmatpush1.bf16.msra.mxu1 %v12946_v13  ;;  %7368 = vmatprep.subr.bf16.mxu0 %v12953_v62  ;;  %v4201_v13 = vld [vmem:[%s20019_s3 + $0xb98] sm:$0xff]  ;;  %v13009_v2 = vcombine.high %v4200_v56, %v4204_v60 }
 0x3bc   :  { %7532 = vmatprep.subr.bf16.mxu1 %v12955_v63  ;;  %v4205_v62 = vld [vmem:[%s20019_s3 + $0xbb8] sm:$0xff]  ;;  %v13000_v63 = vcombine.low %v4192_v51, %v4196_v52  ;;  %v4248_v52 = vld [vmem:[%s20019_s3 + $0xd10] sm:$0xff] }
 0x3bd   :  { %v13011_v5 = vcombine.high %v4201_v13, %v4205_v62  ;;  %v13010_v57 = vcombine.low %v4201_v13, %v4205_v62  ;;  %v4260_v13 = vld [vmem:[%s20019_s3 + $0xd70] sm:$0xff]  ;;  %v4257_v62 = vld [vmem:[%s20019_s3 + $0xd58] sm:$0xff] }
 0x3be   :  { %7369 = vmatpush1.bf16.msra.mxu0 %v12952_v17  ;;  %v4212_v17 = vld [vmem:[%s20019_s3 + $0xbf0] sm:$0xff] }
 0x3bf   :  { %7533 = vmatpush1.bf16.msra.mxu1 %v12954_v7  ;;  %7370 = vmatprep.subr.bf16.mxu0 %v12961_v10  ;;  %v4209_v7 = vld [vmem:[%s20019_s3 + $0xbd8] sm:$0xff]  ;;  %v13017_v19 = vcombine.high %v4208_v6, %v4212_v17 }
 0x3c0   :  { %7534 = vmatprep.subr.bf16.mxu1 %v12963_v16  ;;  %v4213_v10 = vld [vmem:[%s20019_s3 + $0xbf8] sm:$0xff]  ;;  %v13008_v16 = vcombine.low %v4200_v56, %v4204_v60  ;;  %v4256_v60 = vld [vmem:[%s20019_s3 + $0xd50] sm:$0xff] }
 0x3c1   :  { %v13019_v20 = vcombine.high %v4209_v7, %v4213_v10  ;;  %v13018_v26 = vcombine.low %v4209_v7, %v4213_v10  ;;  %v4268_v7 = vld [vmem:[%s20019_s3 + $0xdb0] sm:$0xff]  ;;  %v4265_v10 = vld [vmem:[%s20019_s3 + $0xd98] sm:$0xff] }
 0x3c2   :  { %7371 = vmatpush1.bf16.msra.mxu0 %v12960_v21  ;;  %v4220_v21 = vld [vmem:[%s20019_s3 + $0xc30] sm:$0xff] }
 0x3c3   :  { %7535 = vmatpush1.bf16.msra.mxu1 %v12962_v22  ;;  %7372 = vmatprep.subr.bf16.mxu0 %v12969_v12  ;;  %v4217_v22 = vld [vmem:[%s20019_s3 + $0xc18] sm:$0xff]  ;;  %v13025_v14 = vcombine.high %v4216_v47, %v4220_v21 }
 0x3c4   :  { %7536 = vmatprep.subr.bf16.mxu1 %v12971_v25  ;;  %v4221_v12 = vld [vmem:[%s20019_s3 + $0xc38] sm:$0xff]  ;;  %v13016_v25 = vcombine.low %v4208_v6, %v4212_v17  ;;  %v4264_v17 = vld [vmem:[%s20019_s3 + $0xd90] sm:$0xff] }
 0x3c5   :  { %v13027_v27 = vcombine.high %v4217_v22, %v4221_v12  ;;  %v13026_v32 = vcombine.low %v4217_v22, %v4221_v12  ;;  %v4272_v12 = vld [vmem:[%s20019_s3 + $0xdd0] sm:$0xff] }
 0x3c6   :  { %7373 = vmatpush1.bf16.msra.mxu0 %v12968_v28  ;;  %v4228_v28 = vld [vmem:[%s20019_s3 + $0xc70] sm:$0xff] }
 0x3c7   :  { %7537 = vmatpush1.bf16.msra.mxu1 %v12970_v30  ;;  %7374 = vmatprep.subr.bf16.mxu0 %v12977_v23  ;;  %v13024_v30 = vcombine.low %v4216_v47, %v4220_v21  ;;  %v4225_v23 = vld [vmem:[%s20019_s3 + $0xc58] sm:$0xff]  ;;  %v13033_v35 = vcombine.high %v4224_v1, %v4228_v28 }
 0x3c8   :  { %7538 = vmatprep.subr.bf16.mxu1 %v12979_v31  ;;  %v4229_v31 = vld [vmem:[%s20019_s3 + $0xc78] sm:$0xff] }
 0x3c9   :  { %v13034_v9 = vcombine.low %v4225_v23, %v4229_v31 }
 0x3ca   :  { %7375 = vmatpush1.bf16.msra.mxu0 %v12976_v49  ;;  %v13035_v49 = vcombine.high %v4225_v23, %v4229_v31  ;;  %v13072_v23 = vcombine.low %v4264_v17, %v4268_v7 }
 0x3cb   :  { %7539 = vmatpush1.bf16.msra.mxu1 %v12978_v39  ;;  %7376 = vmatprep.subr.bf16.mxu0 %v12985_v38  ;;  %v4233_v39 = vld [vmem:[%s20019_s3 + $0xc98] sm:$0xff] }
 0x3cc   :  { %7540 = vmatprep.subr.bf16.mxu1 %v12987_v40  ;;  %v4237_v38 = vld [vmem:[%s20019_s3 + $0xcb8] sm:$0xff]  ;;  %v13032_v40 = vcombine.low %v4224_v1, %v4228_v28 }
 0x3cd   :  { %v13043_v41 = vcombine.high %v4233_v39, %v4237_v38  ;;  %v4277_v1 = vld [vmem:[%s20019_s3 + $0xdf8] sm:$0xff] }
 0x3ce   :  { %7377 = vmatpush1.bf16.msra.mxu0 %v12984_v43  ;;  %v4244_v43 = vld [vmem:[%s20019_s3 + $0xcf0] sm:$0xff] }
 0x3cf   :  { %7541 = vmatpush1.bf16.msra.mxu1 %v12986_v55  ;;  %7378 = vmatprep.subr.bf16.mxu0 %v12993_v44  ;;  %v4245_v55 = vld [vmem:[%s20019_s3 + $0xcf8] sm:$0xff]  ;;  %v13042_v44 = vcombine.low %v4233_v39, %v4237_v38  ;;  %v4284_v39 = vld [vmem:[%s20019_s3 + $0xe30] sm:$0xff] }
 0x3d0   :  { %7542 = vmatprep.subr.bf16.mxu1 %v12995_v50  ;;  %v13049_v50 = vcombine.high %v4240_v42, %v4244_v43  ;;  %v4281_v38 = vld [vmem:[%s20019_s3 + $0xe18] sm:$0xff] }
 0x3d2   :  { %7379 = vmatpush1.bf16.msra.mxu0 %v12992_v11  ;;  %v4253_v11 = vld [vmem:[%s20019_s3 + $0xd38] sm:$0xff] }
 0x3d3   :  { %7543 = vmatpush1.bf16.msra.mxu1 %v12994_v54  ;;  %7380 = vmatprep.subr.bf16.mxu0 %v13001_v58  ;;  %v13048_v54 = vcombine.low %v4240_v42, %v4244_v43  ;;  %v13059_v56 = vcombine.high %v4249_v4, %v4253_v11  ;;  %v4288_v43 = vld [vmem:[%s20019_s3 + $0xe50] sm:$0xff] }
 0x3d4   :  { %7544 = vmatprep.subr.bf16.mxu1 %v13003_v59  ;;  %v13057_v59 = vcombine.high %v4248_v52, %v4252_v3 }
 0x3d6   :  { %7381 = vmatpush1.bf16.msra.mxu0 %v13000_v63  ;;  %v4261_v63 = vld [vmem:[%s20019_s3 + $0xd78] sm:$0xff] }
 0x3d7   :  { %7545 = vmatpush1.bf16.msra.mxu1 %v13002_v0  ;;  %7382 = vmatprep.subr.bf16.mxu0 %v13009_v2  ;;  %v13056_v0 = vcombine.low %v4248_v52, %v4252_v3  ;;  %v13058_v2 = vcombine.low %v4249_v4, %v4253_v11  ;;  %v13067_v6 = vcombine.high %v4257_v62, %v4261_v63  ;;  %v4296_v3 = vld [vmem:[%s20019_s3 + $0xe90] sm:$0xff]  ;;  %v4297_v11 = vld [vmem:[%s20019_s3 + $0xe98] sm:$0xff] }
 0x3d8   :  { %7546 = vmatprep.subr.bf16.mxu1 %v13011_v5  ;;  %v13065_v5 = vcombine.high %v4256_v60, %v4260_v13  ;;  %v4300_v4 = vld [vmem:[%s20019_s3 + $0xeb0] sm:$0xff] }
 0x3da   :  { %7383 = vmatpush1.bf16.msra.mxu0 %v13008_v16  ;;  %v4269_v16 = vld [vmem:[%s20019_s3 + $0xdb8] sm:$0xff] }
 0x3db   :  { %7547 = vmatpush1.bf16.msra.mxu1 %v13010_v57  ;;  %7384 = vmatprep.subr.bf16.mxu0 %v13017_v19  ;;  %v13064_v57 = vcombine.low %v4256_v60, %v4260_v13  ;;  %v13066_v19 = vcombine.low %v4257_v62, %v4261_v63  ;;  %v13075_v22 = vcombine.high %v4265_v10, %v4269_v16  ;;  %v4304_v13 = vld [vmem:[%s20019_s3 + $0xed0] sm:$0xff]  ;;  %v4305_v63 = vld [vmem:[%s20019_s3 + $0xed8] sm:$0xff] }
 0x3dc   :  { %7548 = vmatprep.subr.bf16.mxu1 %v13019_v20  ;;  %v13073_v20 = vcombine.high %v4264_v17, %v4268_v7  ;;  %v4308_v62 = vld [vmem:[%s20019_s3 + $0xef0] sm:$0xff] }
 0x3dd   :  { %v4312_v7 = vld [vmem:[%s20019_s3 + $0xf10] sm:$0xff] }
 0x3de   :  { %7385 = vmatpush1.bf16.msra.mxu0 %v13016_v25  ;;  %v4276_v25 = vld [vmem:[%s20019_s3 + $0xdf0] sm:$0xff] }
 0x3df   :  { %7549 = vmatpush1.bf16.msra.mxu1 %v13018_v26  ;;  %7395 = vmatprep.subr.bf16.mxu0 %v13025_v14 }
 0x3e0   :  { %7559 = vmatprep.subr.bf16.mxu1 %v13027_v27  ;;  %v4273_v27 = vld [vmem:[%s20019_s3 + $0xdd8] sm:$0xff] }
 0x3e1   :  { %7387 = vmatmul.mubr.bf16.vlgmr.msra.gmra.mrb[12].mxu0 %v17186_v18 }
 0x3e2   :  { %7551 = vmatmul.mubr.bf16.vlgmr.msra.gmra.mrb[12].mxu1 %v17186_v18  ;;  %7396 = vmatpush1.bf16.msra.mxu0 %v13024_v30  ;;  %v4241_v18 = vld [vmem:[%s20019_s3 + $0xcd8] sm:$0xff] }
 0x3e3   :  { %7427 = vmatprep.mubr.bf16.mxu0 %v17202_v24  ;;  %7560 = vmatpush1.bf16.msra.mxu1 %v13026_v32  ;;  %v13051_v51 = vcombine.high %v4241_v18, %v4245_v55  ;;  %v13050_v58 = vcombine.low %v4241_v18, %v4245_v55  ;;  %v4292_v18 = vld [vmem:[%s20019_s3 + $0xe70] sm:$0xff]  ;;  %v4289_v55 = vld [vmem:[%s20019_s3 + $0xe58] sm:$0xff] }
 0x3e4   :  { %7591 = vmatprep.mubr.bf16.mxu1 %v17202_v24  ;;  %7397 = vmatprep.subr.bf16.mxu0 %v13033_v35  ;;  %v13040_v24 = vcombine.low %v4232_v36, %v4236_v37  ;;  %v13074_v35 = vcombine.low %v4265_v10, %v4269_v16  ;;  %v13081_v36 = vcombine.high %v4272_v12, %v4276_v25  ;;  %v4316_v10 = vld [vmem:[%s20019_s3 + $0xf30] sm:$0xff]  ;;  %v4313_v16 = vld [vmem:[%s20019_s3 + $0xf18] sm:$0xff] }
 0x3e5   :  { %7561 = vmatprep.subr.bf16.mxu1 %v13035_v49  ;;  %v13083_v37 = vcombine.high %v4273_v27, %v4277_v1  ;;  %v4280_v49 = vld [vmem:[%s20019_s3 + $0xe10] sm:$0xff] }
 0x3e6   :  { %7398 = vmatpush1.bf16.msra.mxu0 %v13032_v40  ;;  %v4285_v40 = vld [vmem:[%s20019_s3 + $0xe38] sm:$0xff] }
 0x3e7   :  { %7562 = vmatpush1.bf16.msra.mxu1 %v13034_v9  ;;  %7399 = vmatprep.subr.bf16.mxu0 %v13041_v34  ;;  %v13080_v9 = vcombine.low %v4272_v12, %v4276_v25  ;;  %v13082_v34 = vcombine.low %v4273_v27, %v4277_v1  ;;  %v13091_v42 = vcombine.high %v4281_v38, %v4285_v40  ;;  %v4320_v25 = vld [vmem:[%s20019_s3 + $0xf50] sm:$0xff]  ;;  %v4321_v1 = vld [vmem:[%s20019_s3 + $0xf58] sm:$0xff] }
 0x3e8   :  { %7563 = vmatprep.subr.bf16.mxu1 %v13043_v41  ;;  %v13089_v41 = vcombine.high %v4280_v49, %v4284_v39  ;;  %v4324_v27 = vld [vmem:[%s20019_s3 + $0xf70] sm:$0xff] }
 0x3ea   :  { %7400 = vmatpush1.bf16.msra.mxu0 %v13040_v24  ;;  %v4293_v24 = vld [vmem:[%s20019_s3 + $0xe78] sm:$0xff] }
 0x3eb   :  { %7564 = vmatpush1.bf16.msra.mxu1 %v13042_v44  ;;  %7401 = vmatprep.subr.bf16.mxu0 %v13049_v50  ;;  %v13088_v44 = vcombine.low %v4280_v49, %v4284_v39  ;;  %v13090_v50 = vcombine.low %v4281_v38, %v4285_v40  ;;  %v13099_v52 = vcombine.high %v4289_v55, %v4293_v24  ;;  %v4333_v49 = vld [vmem:[%s20019_s3 + $0xfb8] sm:$0xff]  ;;  %v18155_v39 = vld [vmem:[%s20020_s4] sm:$0xff] }
 0x3ec   :  { %7565 = vmatprep.subr.bf16.mxu1 %v13051_v51  ;;  %v13097_v51 = vcombine.high %v4288_v43, %v4292_v18  ;;  %v13128_v38 = vcombine.low %v4320_v25, %v4324_v27 }
 0x3ee   :  { %7402 = vmatpush1.bf16.msra.mxu0 %v13048_v54  ;;  %v4301_v54 = vld [vmem:[%s20019_s3 + $0xeb8] sm:$0xff] }
 0x3ef   :  { %7566 = vmatpush1.bf16.msra.mxu1 %v13050_v58  ;;  %7403 = vmatprep.subr.bf16.mxu0 %v13057_v59  ;;  %v13096_v58 = vcombine.low %v4288_v43, %v4292_v18  ;;  %v13098_v59 = vcombine.low %v4289_v55, %v4293_v24  ;;  %v13107_v60 = vcombine.high %v4297_v11, %v4301_v54  ;;  %v4337_v18 = vld [vmem:[%s20019_s3 + $0xfd8] sm:$0xff] }
 0x3f0   :  { %7567 = vmatprep.subr.bf16.mxu1 %v13059_v56  ;;  %v13105_v56 = vcombine.high %v4296_v3, %v4300_v4  ;;  %v4351_v43 = vrot.slane %v18155_v39, %v16498_v15  ;;  %v4341_v55 = vld [vmem:[%s20019_s3 + $0xff8] sm:$0xff] }
 0x3f2   :  { %7404 = vmatpush1.bf16.msra.mxu0 %v13056_v0  ;;  %v4309_v0 = vld [vmem:[%s20019_s3 + $0xef8] sm:$0xff] }
 0x3f3   :  { %7568 = vmatpush1.bf16.msra.mxu1 %v13058_v2  ;;  %7405 = vmatprep.subr.bf16.mxu0 %v13065_v5  ;;  %v13104_v2 = vcombine.low %v4296_v3, %v4300_v4  ;;  %v13106_v5 = vcombine.low %v4297_v11, %v4301_v54  ;;  %v13115_v17 = vcombine.high %v4305_v63, %v4309_v0  ;;  %v13984_v11 = vld [vmem:[%s20021_s5 + $0x4] ss:$36 sps:$4 sm:$0xff]   ;;  %v13987_v54 = vld [vmem:[%s20021_s5 + $0xc] ss:$36 sps:$4 sm:$0xff]  }
 0x3f4   :  { %v18048_v47 = vpop.f32.mrb[8].mxu0  ;;  %v18050_v21 = vpop.f32.mrb[8].mxu1  ;;  %7569 = vmatprep.subr.bf16.mxu1 %v13067_v6  ;;  %v13113_v6 = vcombine.high %v4304_v13, %v4308_v62  ;;  %v13146_v4 = vcombine.low %v4337_v18, %v4341_v55 }
 0x3f5   :  { %v18058_v26 = vpop.f32.mrb[9].mxu0  ;;  %v18060_v14 = vpop.f32.mrb[9].mxu1 }
 0x3f6   :  { %v7105_v28 = vpop.f32.mrb[10].mxu0  ;;  %v7269_v30 = vpop.f32.mrb[10].mxu1  ;;  %7406 = vmatpush1.bf16.msra.mxu0 %v13064_v57  ;;  %v4317_v57 = vld [vmem:[%s20019_s3 + $0xf38] sm:$0xff] }
 0x3f7   :  { %7570 = vmatpush1.bf16.msra.mxu1 %v13066_v19  ;;  %v7106_v31 = vpop.f32.mrb[11].mxu0  ;;  %v7270_v32 = vpop.f32.mrb[11].mxu1  ;;  %7407 = vmatprep.subr.bf16.mxu0 %v13073_v20  ;;  %v13112_v19 = vcombine.low %v4304_v13, %v4308_v62  ;;  %v13114_v20 = vcombine.low %v4305_v63, %v4309_v0  ;;  %v13123_v12 = vcombine.high %v4313_v16, %v4317_v57  ;;  %v4325_v28 = vld [vmem:[%s20019_s3 + $0xf78] sm:$0xff]  ;;  %v13988_v62 = vld [vmem:[%s20021_s5 + $0x48] ss:$36 sps:$4 sm:$0xff]  }
 0x3f8   :  { %7571 = vmatprep.subr.bf16.mxu1 %v13075_v22  ;;  %v13121_v22 = vcombine.high %v4312_v7, %v4316_v10  ;;  %v13120_v30 = vcombine.low %v4312_v7, %v4316_v10  ;;  %v13129_v31 = vcombine.high %v4320_v25, %v4324_v27  ;;  %v13131_v32 = vcombine.high %v4321_v1, %v4325_v28  ;;  %v13993_v13 = vld [vmem:[%s20021_s5 + $0x54] ss:$36 sps:$4 sm:$0xff]   ;;  %v14003_v10 = vld [vmem:[%s20021_s5 + $0xe0] ss:$36 sps:$4 sm:$0xff]   ;;  %v14012_v25 = vld [vmem:[%s20021_s5 + $0x168] ss:$36 sps:$4 sm:$0xff]  }
 0x3f9   :  { %v13130_v40 = vcombine.low %v4321_v1, %v4325_v28  ;;  %v13991_v63 = vld [vmem:[%s20021_s5 + $0x50] ss:$36 sps:$4 sm:$0xff]   ;;  %v14000_v7 = vld [vmem:[%s20021_s5 + $0xd8] ss:$36 sps:$4 sm:$0xff]  }
 0x3fa   :  { %7408 = vmatpush1.bf16.msra.mxu0 %v13072_v23  ;;  %v13122_v23 = vcombine.low %v4313_v16, %v4317_v57  ;;  %v13996_v0 = vld [vmem:[%s20021_s5 + $0x94] ss:$36 sps:$4 sm:$0xff]   ;;  %v14008_v16 = vld [vmem:[%s20021_s5 + $0x124] ss:$36 sps:$4 sm:$0xff]   ;;  %v14011_v57 = vld [vmem:[%s20021_s5 + $0x12c] ss:$36 sps:$4 sm:$0xff]  }
 0x3fb   :  { %7572 = vmatpush1.bf16.msra.mxu1 %v13074_v35  ;;  %7409 = vmatprep.subr.bf16.mxu0 %v13081_v36  ;;  %v4328_v35 = vld [vmem:[%s20019_s3 + $0xf90] sm:$0xff]  ;;  %v14023_v28 = vld [vmem:[%s20021_s5 + $0x1bc] ss:$36 sps:$4 sm:$0xff]  }
 0x3fc   :  { %7573 = vmatprep.subr.bf16.mxu1 %v13083_v37  ;;  %v4332_v36 = vld [vmem:[%s20019_s3 + $0xfb0] sm:$0xff]  ;;  %v4329_v37 = vld [vmem:[%s20019_s3 + $0xf98] sm:$0xff] }
 0x3fd   :  { %v13136_v24 = vcombine.low %v4328_v35, %v4332_v36  ;;  %v14015_v27 = vld [vmem:[%s20021_s5 + $0x170] ss:$36 sps:$4 sm:$0xff]  }
 0x3fe   :  { %7410 = vmatpush1.bf16.msra.mxu0 %v13080_v9  ;;  %v13137_v9 = vcombine.high %v4328_v35, %v4332_v36  ;;  %v14020_v1 = vld [vmem:[%s20021_s5 + $0x1b4] ss:$36 sps:$4 sm:$0xff]   ;;  %v14027_v36 = vld [vmem:[%s20021_s5 + $0x200] ss:$36 sps:$4 sm:$0xff]  }
 0x3ff   :  { %7574 = vmatpush1.bf16.msra.mxu1 %v13082_v34  ;;  %7411 = vmatprep.subr.bf16.mxu0 %v13089_v41  ;;  %v13139_v34 = vcombine.high %v4329_v37, %v4333_v49  ;;  %v4336_v41 = vld [vmem:[%s20019_s3 + $0xfd0] sm:$0xff]  ;;  %v14024_v35 = vld [vmem:[%s20021_s5 + $0x1f8] ss:$36 sps:$4 sm:$0xff]  }
 0x400   :  { %7575 = vmatprep.subr.bf16.mxu1 %v13091_v42  ;;  %v4340_v42 = vld [vmem:[%s20019_s3 + $0xff0] sm:$0xff] }
 0x401   :  { %v13144_v3 = vcombine.low %v4336_v41, %v4340_v42 }
 0x402   :  { %7412 = vmatpush1.bf16.msra.mxu0 %v13088_v44  ;;  %v13138_v44 = vcombine.low %v4329_v37, %v4333_v49  ;;  %v14032_v37 = vld [vmem:[%s20021_s5 + $0x244] ss:$36 sps:$4 sm:$0xff]   ;;  %v14035_v49 = vld [vmem:[%s20021_s5 + $0x24c] ss:$36 sps:$4 sm:$0xff]  }
 0x403   :  { %7576 = vmatpush1.bf16.msra.mxu1 %v13090_v50  ;;  %7413 = vmatprep.subr.bf16.mxu0 %v13097_v51  ;;  %v13145_v50 = vcombine.high %v4336_v41, %v4340_v42  ;;  %v13147_v51 = vcombine.high %v4337_v18, %v4341_v55  ;;  %v14036_v41 = vld [vmem:[%s20021_s5 + $0x288] ss:$36 sps:$4 sm:$0xff]   ;;  %v14039_v42 = vld [vmem:[%s20021_s5 + $0x290] ss:$36 sps:$4 sm:$0xff]   ;;  %v14047_v18 = vld [vmem:[%s20021_s5 + $0x2dc] ss:$36 sps:$4 sm:$0xff]  }
 0x404   :  { %7577 = vmatprep.subr.bf16.mxu1 %v13099_v52  ;;  %v13822_v52 = vadd.f32 %v18058_v26, %v4351_v43  ;;  %v13982_v26 = vld [vmem:[%s20021_s5] ss:$36 sps:$4 sm:$0xff]   ;;  %v14044_v43 = vld [vmem:[%s20021_s5 + $0x2d4] ss:$36 sps:$4 sm:$0xff]  }
 0x405   :  { %v14042_v55 = vld [vmem:[%s20021_s5 + $0x2d0] ss:$36 sps:$4 sm:$0xff]  }
 0x406   :  { %7414 = vmatpush1.bf16.msra.mxu0 %v13096_v58  ;;  %v7601_v58 = vmax.f32 %v13822_v52, 0.0  ;;  %v14051_v52 = vld [vmem:[%s20021_s5 + $0x320] ss:$36 sps:$4 sm:$0xff]  }
 0x407   :  { %7578 = vmatpush1.bf16.msra.mxu1 %v13098_v59  ;;  %7415 = vmatprep.subr.bf16.mxu0 %v13105_v56  ;;  %v13985_v59 = vld [vmem:[%s20021_s5 + $0x8] ss:$36 sps:$4 sm:$0xff]  }
 0x408   :  { %7579 = vmatprep.subr.bf16.mxu1 %v13107_v60  ;;  %v13990_v56 = vld [vmem:[%s20021_s5 + $0x4c] ss:$36 sps:$4 sm:$0xff]   ;;  %v18187_v60 = vpack.c.bf16 %v7601_v58, %v7601_v58 }
 0x409   :  { %v14062_v58 = vld [vmem:[%s20021_s5 + $0x3ac] ss:$36 sps:$4 sm:$0xff]  }
 0x40a   :  { %7416 = vmatpush1.bf16.msra.mxu0 %v13104_v2  ;;  %v13994_v2 = vld [vmem:[%s20021_s5 + $0x90] ss:$36 sps:$4 sm:$0xff]  }
 0x40b   :  { %7580 = vmatpush1.bf16.msra.mxu1 %v13106_v5  ;;  %7417 = vmatprep.subr.bf16.mxu0 %v13113_v6  ;;  %v13997_v5 = vld [vmem:[%s20021_s5 + $0x98] ss:$36 sps:$4 sm:$0xff]  }
 0x40c   :  { %7581 = vmatprep.subr.bf16.mxu1 %v13115_v17  ;;  %v14002_v6 = vld [vmem:[%s20021_s5 + $0xdc] ss:$36 sps:$4 sm:$0xff]   ;;  %v14005_v17 = vld [vmem:[%s20021_s5 + $0xe4] ss:$36 sps:$4 sm:$0xff]  }
 0x40e   :  { %7418 = vmatpush1.bf16.msra.mxu0 %v13112_v19  ;;  %v14006_v19 = vld [vmem:[%s20021_s5 + $0x120] ss:$36 sps:$4 sm:$0xff]  }
 0x40f   :  { %7582 = vmatpush1.bf16.msra.mxu1 %v13114_v20  ;;  %7419 = vmatprep.subr.bf16.mxu0 %v13121_v22  ;;  %v14009_v20 = vld [vmem:[%s20021_s5 + $0x128] ss:$36 sps:$4 sm:$0xff]  }
 0x410   :  { %7583 = vmatprep.subr.bf16.mxu1 %v13123_v12  ;;  %v14014_v22 = vld [vmem:[%s20021_s5 + $0x16c] ss:$36 sps:$4 sm:$0xff]   ;;  %v14017_v12 = vld [vmem:[%s20021_s5 + $0x174] ss:$36 sps:$4 sm:$0xff]  }
 0x412   :  { %7420 = vmatpush1.bf16.msra.mxu0 %v13120_v30  ;;  %v14018_v30 = vld [vmem:[%s20021_s5 + $0x1b0] ss:$36 sps:$4 sm:$0xff]  }
 0x413   :  { %7584 = vmatpush1.bf16.msra.mxu1 %v13122_v23  ;;  %7421 = vmatprep.subr.bf16.mxu0 %v13129_v31  ;;  %v14021_v23 = vld [vmem:[%s20021_s5 + $0x1b8] ss:$36 sps:$4 sm:$0xff]  }
 0x414   :  { %7585 = vmatprep.subr.bf16.mxu1 %v13131_v32  ;;  %v14026_v31 = vld [vmem:[%s20021_s5 + $0x1fc] ss:$36 sps:$4 sm:$0xff]   ;;  %v14029_v32 = vld [vmem:[%s20021_s5 + $0x204] ss:$36 sps:$4 sm:$0xff]  }
 0x416   :  { %7422 = vmatpush1.bf16.msra.mxu0 %v13128_v38  ;;  %v14030_v38 = vld [vmem:[%s20021_s5 + $0x240] ss:$36 sps:$4 sm:$0xff]  }
 0x417   :  { %7586 = vmatpush1.bf16.msra.mxu1 %v13130_v40  ;;  %7423 = vmatprep.subr.bf16.mxu0 %v13137_v9  ;;  %v14033_v40 = vld [vmem:[%s20021_s5 + $0x248] ss:$36 sps:$4 sm:$0xff]  }
 0x418   :  { %7587 = vmatprep.subr.bf16.mxu1 %v13139_v34  ;;  %v14038_v9 = vld [vmem:[%s20021_s5 + $0x28c] ss:$36 sps:$4 sm:$0xff]   ;;  %v14041_v34 = vld [vmem:[%s20021_s5 + $0x294] ss:$36 sps:$4 sm:$0xff]  }
 0x41a   :  { %7424 = vmatpush1.bf16.msra.mxu0 %v13136_v24  ;;  %v14045_v24 = vld [vmem:[%s20021_s5 + $0x2d8] ss:$36 sps:$4 sm:$0xff]  }
 0x41b   :  { %7588 = vmatpush1.bf16.msra.mxu1 %v13138_v44  ;;  %7425 = vmatprep.subr.bf16.mxu0 %v13145_v50  ;;  %v14050_v44 = vld [vmem:[%s20021_s5 + $0x31c] ss:$36 sps:$4 sm:$0xff]   ;;  %v14053_v50 = vld [vmem:[%s20021_s5 + $0x324] ss:$36 sps:$4 sm:$0xff]  }
 0x41c   :  { %7589 = vmatprep.subr.bf16.mxu1 %v13147_v51  ;;  %v14048_v51 = vld [vmem:[%s20021_s5 + $0x318] ss:$36 sps:$4 sm:$0xff]  }
 0x41e   :  { %7426 = vmatpush1.bf16.msra.mxu0 %v13144_v3  ;;  %v14056_v3 = vld [vmem:[%s20021_s5 + $0x364] ss:$36 sps:$4 sm:$0xff]  }
 0x41f   :  { %7590 = vmatpush1.bf16.msra.mxu1 %v13146_v4  ;;  %11249 = vmatprep.subr.bf16.mxu0 %v13984_v11  ;;  %v14059_v4 = vld [vmem:[%s20021_s5 + $0x36c] ss:$36 sps:$4 sm:$0xff]   ;;  %v14054_v11 = vld [vmem:[%s20021_s5 + $0x360] ss:$36 sps:$4 sm:$0xff]  }
 0x420   :  { %11413 = vmatprep.subr.bf16.mxu1 %v13987_v54  ;;  %v14057_v54 = vld [vmem:[%s20021_s5 + $0x368] ss:$36 sps:$4 sm:$0xff]  }
 0x421   :  { %7428 = vmatmul.mubr.bf16.vlgmr.msra.gmra.mrb[12].mxu0 %v17394_v61 }
 0x422   :  { %7592 = vmatmul.mubr.bf16.vlgmr.msra.gmra.mrb[12].mxu1 %v17394_v61  ;;  %11250 = vmatpush1.bf16.msra.mxu0 %v13982_v26  ;;  %v13999_v61 = vld [vmem:[%s20021_s5 + $0x9c] ss:$36 sps:$4 sm:$0xff]   ;;  %v14065_v26 = vld [vmem:[%s20021_s5 + $0x3b4] ss:$36 sps:$4 sm:$0xff]  }
 0x423   :  { %11281 = vmatprep.mubr.bf16.mxu0 %v18187_v60  ;;  %11414 = vmatpush1.bf16.msra.mxu1 %v13985_v59  ;;  %v14060_v59 = vld [vmem:[%s20021_s5 + $0x3a8] ss:$36 sps:$4 sm:$0xff]  }
 0x424   :  { %11445 = vmatprep.mubr.bf16.mxu1 %v18187_v60  ;;  %11251 = vmatprep.subr.bf16.mxu0 %v13990_v56  ;;  %v4347_v56 = vrot.slane %v18155_v39, %v16701_v29 }
 0x425   :  { %11415 = vmatprep.subr.bf16.mxu1 %v13993_v13  ;;  %v14063_v13 = vld [vmem:[%s20021_s5 + $0x3b0] ss:$36 sps:$4 sm:$0xff]  }
 0x426   :  { %11252 = vmatpush1.bf16.msra.mxu0 %v13988_v62  ;;  %v14068_v62 = vld [vmem:[%s20021_s5 + $0x3f4] ss:$36 sps:$4 sm:$0xff]  }
 0x427   :  { %11416 = vmatpush1.bf16.msra.mxu1 %v13991_v63  ;;  %11253 = vmatprep.subr.bf16.mxu0 %v13996_v0  ;;  %v14071_v63 = vld [vmem:[%s20021_s5 + $0x3fc] ss:$36 sps:$4 sm:$0xff]   ;;  %v4359_v0 = vrot.slane %v18155_v39, %v16710_v33 }
 0x428   :  { %11417 = vmatprep.subr.bf16.mxu1 %v13999_v61  ;;  %v14066_v61 = vld [vmem:[%s20021_s5 + $0x3f0] ss:$36 sps:$4 sm:$0xff]  }
 0x42a   :  { %11254 = vmatpush1.bf16.msra.mxu0 %v13994_v2  ;;  %v13821_v2 = vadd.f32 %v18048_v47, %v4347_v56  ;;  %v14072_v47 = vld [vmem:[%s20021_s5 + $0x438] ss:$36 sps:$4 sm:$0xff]   ;;  %v14134_v56 = vld [vmem:[%s20021_s5 + $0x70c] ss:$36 sps:$4 sm:$0xff]  }
 0x42b   :  { %11418 = vmatpush1.bf16.msra.mxu1 %v13997_v5  ;;  %11255 = vmatprep.subr.bf16.mxu0 %v14002_v6  ;;  %v14069_v5 = vld [vmem:[%s20021_s5 + $0x3f8] ss:$36 sps:$4 sm:$0xff]  }
 0x42c   :  { %11419 = vmatprep.subr.bf16.mxu1 %v14005_v17  ;;  %v14074_v6 = vld [vmem:[%s20021_s5 + $0x43c] ss:$36 sps:$4 sm:$0xff]   ;;  %v14077_v17 = vld [vmem:[%s20021_s5 + $0x444] ss:$36 sps:$4 sm:$0xff]  }
 0x42e   :  { %11256 = vmatpush1.bf16.msra.mxu0 %v14000_v7  ;;  %v13824_v7 = vadd.f32 %v18060_v14, %v4359_v0  ;;  %v14083_v14 = vld [vmem:[%s20021_s5 + $0x48c] ss:$36 sps:$4 sm:$0xff]   ;;  %v14140_v0 = vld [vmem:[%s20021_s5 + $0x754] ss:$36 sps:$4 sm:$0xff]  }
 0x42f   :  { %11420 = vmatpush1.bf16.msra.mxu1 %v14003_v10  ;;  %11257 = vmatprep.subr.bf16.mxu0 %v14008_v16  ;;  %v7600_v10 = vmax.f32 %v13821_v2, 0.0  ;;  %v14075_v16 = vld [vmem:[%s20021_s5 + $0x440] ss:$36 sps:$4 sm:$0xff]   ;;  %v14138_v2 = vld [vmem:[%s20021_s5 + $0x750] ss:$36 sps:$4 sm:$0xff]  }
 0x430   :  { %11421 = vmatprep.subr.bf16.mxu1 %v14011_v57  ;;  %v14080_v57 = vld [vmem:[%s20021_s5 + $0x484] ss:$36 sps:$4 sm:$0xff]  }
 0x432   :  { %11258 = vmatpush1.bf16.msra.mxu0 %v14006_v19  ;;  %v7603_v19 = vmax.f32 %v13824_v7, 0.0  ;;  %v14144_v7 = vld [vmem:[%s20021_s5 + $0x798] ss:$36 sps:$4 sm:$0xff]  }
 0x433   :  { %11422 = vmatpush1.bf16.msra.mxu1 %v14009_v20  ;;  %11259 = vmatprep.subr.bf16.mxu0 %v14014_v22  ;;  %v14078_v20 = vld [vmem:[%s20021_s5 + $0x480] ss:$36 sps:$4 sm:$0xff]   ;;  %v18385_v22 = vpack.c.bf16 %v7600_v10, %v7600_v10 }
 0x434   :  { %11423 = vmatprep.subr.bf16.mxu1 %v14017_v12  ;;  %v14081_v12 = vld [vmem:[%s20021_s5 + $0x488] ss:$36 sps:$4 sm:$0xff]  }
 0x435   :  { %v14152_v10 = vld [vmem:[%s20021_s5 + $0x7e4] ss:$36 sps:$4 sm:$0xff]  }
 0x436   :  { %11260 = vmatpush1.bf16.msra.mxu0 %v14012_v25  ;;  %v14086_v25 = vld [vmem:[%s20021_s5 + $0x4cc] ss:$36 sps:$4 sm:$0xff]  }
 0x437   :  { %11424 = vmatpush1.bf16.msra.mxu1 %v14015_v27  ;;  %11261 = vmatprep.subr.bf16.mxu0 %v14020_v1  ;;  %v18393_v27 = vpack.c.bf16 %v7603_v19, %v7603_v19  ;;  %v14089_v1 = vld [vmem:[%s20021_s5 + $0x4d4] ss:$36 sps:$4 sm:$0xff]   ;;  %v14158_v19 = vld [vmem:[%s20021_s5 + $0x82c] ss:$36 sps:$4 sm:$0xff]  }
 0x438   :  { %11425 = vmatprep.subr.bf16.mxu1 %v14023_v28  ;;  %v14084_v28 = vld [vmem:[%s20021_s5 + $0x4c8] ss:$36 sps:$4 sm:$0xff]  }
 0x43a   :  { %11262 = vmatpush1.bf16.msra.mxu0 %v14018_v30  ;;  %v14087_v30 = vld [vmem:[%s20021_s5 + $0x4d0] ss:$36 sps:$4 sm:$0xff]  }
 0x43b   :  { %11426 = vmatpush1.bf16.msra.mxu1 %v14021_v23  ;;  %11263 = vmatprep.subr.bf16.mxu0 %v14026_v31  ;;  %v14092_v23 = vld [vmem:[%s20021_s5 + $0x514] ss:$36 sps:$4 sm:$0xff]   ;;  %v14095_v31 = vld [vmem:[%s20021_s5 + $0x51c] ss:$36 sps:$4 sm:$0xff]  }
 0x43c   :  { %11427 = vmatprep.subr.bf16.mxu1 %v14029_v32  ;;  %v14090_v32 = vld [vmem:[%s20021_s5 + $0x510] ss:$36 sps:$4 sm:$0xff]  }
 0x43e   :  { %11264 = vmatpush1.bf16.msra.mxu0 %v14024_v35  ;;  %v14093_v35 = vld [vmem:[%s20021_s5 + $0x518] ss:$36 sps:$4 sm:$0xff]  }
 0x43f   :  { %11428 = vmatpush1.bf16.msra.mxu1 %v14027_v36  ;;  %11265 = vmatprep.subr.bf16.mxu0 %v14032_v37  ;;  %v14098_v36 = vld [vmem:[%s20021_s5 + $0x55c] ss:$36 sps:$4 sm:$0xff]   ;;  %v14101_v37 = vld [vmem:[%s20021_s5 + $0x564] ss:$36 sps:$4 sm:$0xff]  }
 0x440   :  { %11429 = vmatprep.subr.bf16.mxu1 %v14035_v49  ;;  %v14096_v49 = vld [vmem:[%s20021_s5 + $0x558] ss:$36 sps:$4 sm:$0xff]  }
 0x442   :  { %11266 = vmatpush1.bf16.msra.mxu0 %v14030_v38  ;;  %v14099_v38 = vld [vmem:[%s20021_s5 + $0x560] ss:$36 sps:$4 sm:$0xff]  }
 0x443   :  { %11430 = vmatpush1.bf16.msra.mxu1 %v14033_v40  ;;  %11267 = vmatprep.subr.bf16.mxu0 %v14038_v9  ;;  %v14104_v40 = vld [vmem:[%s20021_s5 + $0x5a4] ss:$36 sps:$4 sm:$0xff]   ;;  %v14107_v9 = vld [vmem:[%s20021_s5 + $0x5ac] ss:$36 sps:$4 sm:$0xff]  }
 0x444   :  { %11431 = vmatprep.subr.bf16.mxu1 %v14041_v34  ;;  %v14102_v34 = vld [vmem:[%s20021_s5 + $0x5a0] ss:$36 sps:$4 sm:$0xff]  }
 0x446   :  { %11268 = vmatpush1.bf16.msra.mxu0 %v14036_v41  ;;  %v14105_v41 = vld [vmem:[%s20021_s5 + $0x5a8] ss:$36 sps:$4 sm:$0xff]  }
 0x447   :  { %11432 = vmatpush1.bf16.msra.mxu1 %v14039_v42  ;;  %11269 = vmatprep.subr.bf16.mxu0 %v14044_v43  ;;  %v14110_v42 = vld [vmem:[%s20021_s5 + $0x5ec] ss:$36 sps:$4 sm:$0xff]   ;;  %v14113_v43 = vld [vmem:[%s20021_s5 + $0x5f4] ss:$36 sps:$4 sm:$0xff]  }
 0x448   :  { %11433 = vmatprep.subr.bf16.mxu1 %v14047_v18  ;;  %v14108_v18 = vld [vmem:[%s20021_s5 + $0x5e8] ss:$36 sps:$4 sm:$0xff]  }
 0x44a   :  { %11270 = vmatpush1.bf16.msra.mxu0 %v14042_v55  ;;  %v14111_v55 = vld [vmem:[%s20021_s5 + $0x5f0] ss:$36 sps:$4 sm:$0xff]  }
 0x44b   :  { %11434 = vmatpush1.bf16.msra.mxu1 %v14045_v24  ;;  %11271 = vmatprep.subr.bf16.mxu0 %v14050_v44  ;;  %v14116_v24 = vld [vmem:[%s20021_s5 + $0x634] ss:$36 sps:$4 sm:$0xff]   ;;  %v14119_v44 = vld [vmem:[%s20021_s5 + $0x63c] ss:$36 sps:$4 sm:$0xff]  }
 0x44c   :  { %11435 = vmatprep.subr.bf16.mxu1 %v14053_v50  ;;  %v14114_v50 = vld [vmem:[%s20021_s5 + $0x630] ss:$36 sps:$4 sm:$0xff]  }
 0x44e   :  { %11272 = vmatpush1.bf16.msra.mxu0 %v14048_v51  ;;  %v14117_v51 = vld [vmem:[%s20021_s5 + $0x638] ss:$36 sps:$4 sm:$0xff]  }
 0x44f   :  { %11436 = vmatpush1.bf16.msra.mxu1 %v14051_v52  ;;  %11273 = vmatprep.subr.bf16.mxu0 %v14056_v3  ;;  %v14122_v52 = vld [vmem:[%s20021_s5 + $0x67c] ss:$36 sps:$4 sm:$0xff]   ;;  %v14125_v3 = vld [vmem:[%s20021_s5 + $0x684] ss:$36 sps:$4 sm:$0xff]  }
 0x450   :  { %11437 = vmatprep.subr.bf16.mxu1 %v14059_v4  ;;  %v14120_v4 = vld [vmem:[%s20021_s5 + $0x678] ss:$36 sps:$4 sm:$0xff]  }
 0x452   :  { %11274 = vmatpush1.bf16.msra.mxu0 %v14054_v11  ;;  %v14123_v11 = vld [vmem:[%s20021_s5 + $0x680] ss:$36 sps:$4 sm:$0xff]  }
 0x453   :  { %11438 = vmatpush1.bf16.msra.mxu1 %v14057_v54  ;;  %11275 = vmatprep.subr.bf16.mxu0 %v14062_v58  ;;  %v14128_v54 = vld [vmem:[%s20021_s5 + $0x6c4] ss:$36 sps:$4 sm:$0xff]   ;;  %v14131_v58 = vld [vmem:[%s20021_s5 + $0x6cc] ss:$36 sps:$4 sm:$0xff]  }
 0x454   :  { %11439 = vmatprep.subr.bf16.mxu1 %v14065_v26  ;;  %v14126_v26 = vld [vmem:[%s20021_s5 + $0x6c0] ss:$36 sps:$4 sm:$0xff]  }
 0x456   :  { %11276 = vmatpush1.bf16.msra.mxu0 %v14060_v59  ;;  %v14129_v59 = vld [vmem:[%s20021_s5 + $0x6c8] ss:$36 sps:$4 sm:$0xff]  }
 0x457   :  { %11440 = vmatpush1.bf16.msra.mxu1 %v14063_v13  ;;  %11277 = vmatprep.subr.bf16.mxu0 %v14068_v62  ;;  %v14137_v13 = vld [vmem:[%s20021_s5 + $0x714] ss:$36 sps:$4 sm:$0xff]   ;;  %v14132_v62 = vld [vmem:[%s20021_s5 + $0x708] ss:$36 sps:$4 sm:$0xff]  }
 0x458   :  { %11441 = vmatprep.subr.bf16.mxu1 %v14071_v63  ;;  %v14135_v63 = vld [vmem:[%s20021_s5 + $0x710] ss:$36 sps:$4 sm:$0xff]  }
 0x45a   :  { %11278 = vmatpush1.bf16.msra.mxu0 %v14066_v61  ;;  %v14143_v61 = vld [vmem:[%s20021_s5 + $0x75c] ss:$36 sps:$4 sm:$0xff]  }
 0x45b   :  { %11442 = vmatpush1.bf16.msra.mxu1 %v14069_v5  ;;  %11279 = vmatprep.subr.bf16.mxu0 %v14074_v6  ;;  %v14141_v5 = vld [vmem:[%s20021_s5 + $0x758] ss:$36 sps:$4 sm:$0xff]  }
 0x45c   :  { %11443 = vmatprep.subr.bf16.mxu1 %v14077_v17  ;;  %v14146_v6 = vld [vmem:[%s20021_s5 + $0x79c] ss:$36 sps:$4 sm:$0xff]   ;;  %v14149_v17 = vld [vmem:[%s20021_s5 + $0x7a4] ss:$36 sps:$4 sm:$0xff]  }
 0x45e   :  { %11280 = vmatpush1.bf16.msra.mxu0 %v14072_v47  ;;  %v14147_v47 = vld [vmem:[%s20021_s5 + $0x7a0] ss:$36 sps:$4 sm:$0xff]  }
 0x45f   :  { %11444 = vmatpush1.bf16.msra.mxu1 %v14075_v16  ;;  %11290 = vmatprep.subr.bf16.mxu0 %v14080_v57  ;;  %v14155_v16 = vld [vmem:[%s20021_s5 + $0x7ec] ss:$36 sps:$4 sm:$0xff]   ;;  %v14150_v57 = vld [vmem:[%s20021_s5 + $0x7e0] ss:$36 sps:$4 sm:$0xff]  }
 0x460   :  { %11454 = vmatprep.subr.bf16.mxu1 %v14083_v14  ;;  %v14153_v14 = vld [vmem:[%s20021_s5 + $0x7e8] ss:$36 sps:$4 sm:$0xff]  }
 0x461   :  { %11282 = vmatmul.mubr.bf16.vlgmr.msra.gmra.mrb[16].mxu0 %v18385_v22 }
 0x462   :  { %11446 = vmatmul.mubr.bf16.vlgmr.msra.gmra.mrb[16].mxu1 %v18385_v22  ;;  %11291 = vmatpush1.bf16.msra.mxu0 %v14078_v20  ;;  %v14161_v20 = vld [vmem:[%s20021_s5 + $0x834] ss:$36 sps:$4 sm:$0xff]  }
 0x463   :  { %11322 = vmatprep.mubr.bf16.mxu0 %v18393_v27  ;;  %11455 = vmatpush1.bf16.msra.mxu1 %v14081_v12  ;;  %v14156_v12 = vld [vmem:[%s20021_s5 + $0x828] ss:$36 sps:$4 sm:$0xff]  }
 0x464   :  { %11486 = vmatprep.mubr.bf16.mxu1 %v18393_v27  ;;  %11292 = vmatprep.subr.bf16.mxu0 %v14086_v25  ;;  %v4355_v25 = vrot.slane %v18155_v39, %v16913_v53 }
 0x465   :  { %11456 = vmatprep.subr.bf16.mxu1 %v14089_v1  ;;  %v14159_v1 = vld [vmem:[%s20021_s5 + $0x830] ss:$36 sps:$4 sm:$0xff]  }
 0x466   :  { %11293 = vmatpush1.bf16.msra.mxu0 %v14084_v28  ;;  %v14164_v28 = vld [vmem:[%s20021_s5 + $0x874] ss:$36 sps:$4 sm:$0xff]  }
 0x467   :  { %11457 = vmatpush1.bf16.msra.mxu1 %v14087_v30  ;;  %11294 = vmatprep.subr.bf16.mxu0 %v14092_v23  ;;  %v14167_v30 = vld [vmem:[%s20021_s5 + $0x87c] ss:$36 sps:$4 sm:$0xff]   ;;  %v14162_v23 = vld [vmem:[%s20021_s5 + $0x870] ss:$36 sps:$4 sm:$0xff]  }
 0x468   :  { %11458 = vmatprep.subr.bf16.mxu1 %v14095_v31  ;;  %v13823_v31 = vadd.f32 %v18050_v21, %v4355_v25  ;;  %v14168_v21 = vld [vmem:[%s20021_s5 + $0x8b8] ss:$36 sps:$4 sm:$0xff]   ;;  %v14231_v25 = vld [vmem:[%s20021_s5 + $0xb90] ss:$36 sps:$4 sm:$0xff]  }
 0x46a   :  { %11295 = vmatpush1.bf16.msra.mxu0 %v14090_v32  ;;  %v14165_v32 = vld [vmem:[%s20021_s5 + $0x878] ss:$36 sps:$4 sm:$0xff]  }
 0x46b   :  { %11459 = vmatpush1.bf16.msra.mxu1 %v14093_v35  ;;  %11296 = vmatprep.subr.bf16.mxu0 %v14098_v36  ;;  %v14170_v35 = vld [vmem:[%s20021_s5 + $0x8bc] ss:$36 sps:$4 sm:$0xff]   ;;  %v14173_v36 = vld [vmem:[%s20021_s5 + $0x8c4] ss:$36 sps:$4 sm:$0xff]  }
 0x46c   :  { %11460 = vmatprep.subr.bf16.mxu1 %v14101_v37  ;;  %v7602_v37 = vmax.f32 %v13823_v31, 0.0  ;;  %v14242_v31 = vld [vmem:[%s20021_s5 + $0xc1c] ss:$36 sps:$4 sm:$0xff]  }
 0x46e   :  { %11297 = vmatpush1.bf16.msra.mxu0 %v14096_v49  ;;  %v14171_v49 = vld [vmem:[%s20021_s5 + $0x8c0] ss:$36 sps:$4 sm:$0xff]  }
 0x46f   :  { %11461 = vmatpush1.bf16.msra.mxu1 %v14099_v38  ;;  %11298 = vmatprep.subr.bf16.mxu0 %v14104_v40  ;;  %v14176_v38 = vld [vmem:[%s20021_s5 + $0x904] ss:$36 sps:$4 sm:$0xff]   ;;  %v14179_v40 = vld [vmem:[%s20021_s5 + $0x90c] ss:$36 sps:$4 sm:$0xff]  }
 0x470   :  { %11462 = vmatprep.subr.bf16.mxu1 %v14107_v9  ;;  %v14174_v9 = vld [vmem:[%s20021_s5 + $0x900] ss:$36 sps:$4 sm:$0xff]  }
 0x472   :  { %11299 = vmatpush1.bf16.msra.mxu0 %v14102_v34  ;;  %v18588_v34 = vpack.c.bf16 %v7602_v37, %v7602_v37  ;;  %v14251_v37 = vld [vmem:[%s20021_s5 + $0xc6c] ss:$36 sps:$4 sm:$0xff]  }
 0x473   :  { %11463 = vmatpush1.bf16.msra.mxu1 %v14105_v41  ;;  %11300 = vmatprep.subr.bf16.mxu0 %v14110_v42  ;;  %v14177_v41 = vld [vmem:[%s20021_s5 + $0x908] ss:$36 sps:$4 sm:$0xff]  }
 0x474   :  { %11464 = vmatprep.subr.bf16.mxu1 %v14113_v43  ;;  %v14182_v42 = vld [vmem:[%s20021_s5 + $0x94c] ss:$36 sps:$4 sm:$0xff]   ;;  %v14185_v43 = vld [vmem:[%s20021_s5 + $0x954] ss:$36 sps:$4 sm:$0xff]  }
 0x476   :  { %11301 = vmatpush1.bf16.msra.mxu0 %v14108_v18  ;;  %v14180_v18 = vld [vmem:[%s20021_s5 + $0x948] ss:$36 sps:$4 sm:$0xff]  }
 0x477   :  { %11465 = vmatpush1.bf16.msra.mxu1 %v14111_v55  ;;  %11302 = vmatprep.subr.bf16.mxu0 %v14116_v24  ;;  %v14183_v55 = vld [vmem:[%s20021_s5 + $0x950] ss:$36 sps:$4 sm:$0xff]  }
 0x478   :  { %11466 = vmatprep.subr.bf16.mxu1 %v14119_v44  ;;  %v14188_v24 = vld [vmem:[%s20021_s5 + $0x994] ss:$36 sps:$4 sm:$0xff]   ;;  %v14191_v44 = vld [vmem:[%s20021_s5 + $0x99c] ss:$36 sps:$4 sm:$0xff]  }
 0x47a   :  { %11303 = vmatpush1.bf16.msra.mxu0 %v14114_v50  ;;  %v14186_v50 = vld [vmem:[%s20021_s5 + $0x990] ss:$36 sps:$4 sm:$0xff]  }
 0x47b   :  { %11467 = vmatpush1.bf16.msra.mxu1 %v14117_v51  ;;  %11304 = vmatprep.subr.bf16.mxu0 %v14122_v52  ;;  %v14189_v51 = vld [vmem:[%s20021_s5 + $0x998] ss:$36 sps:$4 sm:$0xff]  }
 0x47c   :  { %11468 = vmatprep.subr.bf16.mxu1 %v14125_v3  ;;  %v14194_v52 = vld [vmem:[%s20021_s5 + $0x9dc] ss:$36 sps:$4 sm:$0xff]   ;;  %v14197_v3 = vld [vmem:[%s20021_s5 + $0x9e4] ss:$36 sps:$4 sm:$0xff]  }
 0x47e   :  { %11305 = vmatpush1.bf16.msra.mxu0 %v14120_v4  ;;  %v14192_v4 = vld [vmem:[%s20021_s5 + $0x9d8] ss:$36 sps:$4 sm:$0xff]  }
 0x47f   :  { %11469 = vmatpush1.bf16.msra.mxu1 %v14123_v11  ;;  %11306 = vmatprep.subr.bf16.mxu0 %v14128_v54  ;;  %v14195_v11 = vld [vmem:[%s20021_s5 + $0x9e0] ss:$36 sps:$4 sm:$0xff]  }
 0x480   :  { %11470 = vmatprep.subr.bf16.mxu1 %v14131_v58  ;;  %v14200_v54 = vld [vmem:[%s20021_s5 + $0xa24] ss:$36 sps:$4 sm:$0xff]   ;;  %v14203_v58 = vld [vmem:[%s20021_s5 + $0xa2c] ss:$36 sps:$4 sm:$0xff]  }
 0x482   :  { %11307 = vmatpush1.bf16.msra.mxu0 %v14126_v26  ;;  %v14198_v26 = vld [vmem:[%s20021_s5 + $0xa20] ss:$36 sps:$4 sm:$0xff]  }
 0x483   :  { %11471 = vmatpush1.bf16.msra.mxu1 %v14129_v59  ;;  %11308 = vmatprep.subr.bf16.mxu0 %v14134_v56  ;;  %v14201_v59 = vld [vmem:[%s20021_s5 + $0xa28] ss:$36 sps:$4 sm:$0xff]  }
 0x484   :  { %11472 = vmatprep.subr.bf16.mxu1 %v14137_v13  ;;  %v14206_v56 = vld [vmem:[%s20021_s5 + $0xa6c] ss:$36 sps:$4 sm:$0xff]   ;;  %v14209_v13 = vld [vmem:[%s20021_s5 + $0xa74] ss:$36 sps:$4 sm:$0xff]  }
 0x486   :  { %11309 = vmatpush1.bf16.msra.mxu0 %v14132_v62  ;;  %v14204_v62 = vld [vmem:[%s20021_s5 + $0xa68] ss:$36 sps:$4 sm:$0xff]  }
 0x487   :  { %11473 = vmatpush1.bf16.msra.mxu1 %v14135_v63  ;;  %11310 = vmatprep.subr.bf16.mxu0 %v14140_v0  ;;  %v14207_v63 = vld [vmem:[%s20021_s5 + $0xa70] ss:$36 sps:$4 sm:$0xff]  }
 0x488   :  { %11474 = vmatprep.subr.bf16.mxu1 %v14143_v61  ;;  %v14212_v0 = vld [vmem:[%s20021_s5 + $0xab4] ss:$36 sps:$4 sm:$0xff]   ;;  %v14215_v61 = vld [vmem:[%s20021_s5 + $0xabc] ss:$36 sps:$4 sm:$0xff]  }
 0x48a   :  { %11311 = vmatpush1.bf16.msra.mxu0 %v14138_v2  ;;  %v14210_v2 = vld [vmem:[%s20021_s5 + $0xab0] ss:$36 sps:$4 sm:$0xff]  }
 0x48b   :  { %11475 = vmatpush1.bf16.msra.mxu1 %v14141_v5  ;;  %11312 = vmatprep.subr.bf16.mxu0 %v14146_v6  ;;  %v14213_v5 = vld [vmem:[%s20021_s5 + $0xab8] ss:$36 sps:$4 sm:$0xff]  }
 0x48c   :  { %11476 = vmatprep.subr.bf16.mxu1 %v14149_v17  ;;  %v14218_v6 = vld [vmem:[%s20021_s5 + $0xafc] ss:$36 sps:$4 sm:$0xff]   ;;  %v14221_v17 = vld [vmem:[%s20021_s5 + $0xb04] ss:$36 sps:$4 sm:$0xff]  }
 0x48e   :  { %11313 = vmatpush1.bf16.msra.mxu0 %v14144_v7  ;;  %v14216_v7 = vld [vmem:[%s20021_s5 + $0xaf8] ss:$36 sps:$4 sm:$0xff]  }
 0x48f   :  { %11477 = vmatpush1.bf16.msra.mxu1 %v14147_v47  ;;  %11314 = vmatprep.subr.bf16.mxu0 %v14152_v10  ;;  %v14219_v47 = vld [vmem:[%s20021_s5 + $0xb00] ss:$36 sps:$4 sm:$0xff]  }
 0x490   :  { %11478 = vmatprep.subr.bf16.mxu1 %v14155_v16  ;;  %v14224_v10 = vld [vmem:[%s20021_s5 + $0xb44] ss:$36 sps:$4 sm:$0xff]   ;;  %v14227_v16 = vld [vmem:[%s20021_s5 + $0xb4c] ss:$36 sps:$4 sm:$0xff]  }
 0x492   :  { %11315 = vmatpush1.bf16.msra.mxu0 %v14150_v57  ;;  %v14222_v57 = vld [vmem:[%s20021_s5 + $0xb40] ss:$36 sps:$4 sm:$0xff]  }
 0x493   :  { %11479 = vmatpush1.bf16.msra.mxu1 %v14153_v14  ;;  %11316 = vmatprep.subr.bf16.mxu0 %v14158_v19  ;;  %v14225_v14 = vld [vmem:[%s20021_s5 + $0xb48] ss:$36 sps:$4 sm:$0xff]  }
 0x494   :  { %11480 = vmatprep.subr.bf16.mxu1 %v14161_v20  ;;  %v14230_v19 = vld [vmem:[%s20021_s5 + $0xb8c] ss:$36 sps:$4 sm:$0xff]   ;;  %v14233_v20 = vld [vmem:[%s20021_s5 + $0xb94] ss:$36 sps:$4 sm:$0xff]  }
 0x496   :  { %11317 = vmatpush1.bf16.msra.mxu0 %v14156_v12  ;;  %v14228_v12 = vld [vmem:[%s20021_s5 + $0xb88] ss:$36 sps:$4 sm:$0xff]  }
 0x497   :  { %11481 = vmatpush1.bf16.msra.mxu1 %v14159_v1  ;;  %11318 = vmatprep.subr.bf16.mxu0 %v14164_v28  ;;  %v14236_v1 = vld [vmem:[%s20021_s5 + $0xbd4] ss:$36 sps:$4 sm:$0xff]   ;;  %v14239_v28 = vld [vmem:[%s20021_s5 + $0xbdc] ss:$36 sps:$4 sm:$0xff]  }
 0x498   :  { %11482 = vmatprep.subr.bf16.mxu1 %v14167_v30  ;;  %v14234_v30 = vld [vmem:[%s20021_s5 + $0xbd0] ss:$36 sps:$4 sm:$0xff]  }
 0x49a   :  { %11319 = vmatpush1.bf16.msra.mxu0 %v14162_v23  ;;  %v14237_v23 = vld [vmem:[%s20021_s5 + $0xbd8] ss:$36 sps:$4 sm:$0xff]  }
 0x49b   :  { %11483 = vmatpush1.bf16.msra.mxu1 %v14165_v32  ;;  %11320 = vmatprep.subr.bf16.mxu0 %v14170_v35  ;;  %v14245_v32 = vld [vmem:[%s20021_s5 + $0xc24] ss:$36 sps:$4 sm:$0xff]   ;;  %v14240_v35 = vld [vmem:[%s20021_s5 + $0xc18] ss:$36 sps:$4 sm:$0xff]  }
 0x49c   :  { %11484 = vmatprep.subr.bf16.mxu1 %v14173_v36  ;;  %v14243_v36 = vld [vmem:[%s20021_s5 + $0xc20] ss:$36 sps:$4 sm:$0xff]  }
 0x49e   :  { %11321 = vmatpush1.bf16.msra.mxu0 %v14168_v21  ;;  %v14248_v21 = vld [vmem:[%s20021_s5 + $0xc64] ss:$36 sps:$4 sm:$0xff]  }
 0x49f   :  { %11485 = vmatpush1.bf16.msra.mxu1 %v14171_v49  ;;  %11331 = vmatprep.subr.bf16.mxu0 %v14176_v38  ;;  %v14246_v49 = vld [vmem:[%s20021_s5 + $0xc60] ss:$36 sps:$4 sm:$0xff]   ;;  %v14249_v38 = vld [vmem:[%s20021_s5 + $0xc68] ss:$36 sps:$4 sm:$0xff]  }
 0x4a0   :  { %11495 = vmatprep.subr.bf16.mxu1 %v14179_v40  ;;  %v14254_v40 = vld [vmem:[%s20021_s5 + $0xcac] ss:$36 sps:$4 sm:$0xff]  }
 0x4a1   :  { %11323 = vmatmul.mubr.bf16.vlgmr.msra.gmra.mrb[16].mxu0 %v18588_v34 }
 0x4a2   :  { %11487 = vmatmul.mubr.bf16.vlgmr.msra.gmra.mrb[16].mxu1 %v18588_v34  ;;  %11332 = vmatpush1.bf16.msra.mxu0 %v14174_v9  ;;  %v14257_v9 = vld [vmem:[%s20021_s5 + $0xcb4] ss:$36 sps:$4 sm:$0xff]  }
 0x4a3   :  { %11496 = vmatpush1.bf16.msra.mxu1 %v14177_v41  ;;  %11333 = vmatprep.subr.bf16.mxu0 %v14182_v42  ;;  %v14252_v41 = vld [vmem:[%s20021_s5 + $0xca8] ss:$36 sps:$4 sm:$0xff]   ;;  %v14255_v42 = vld [vmem:[%s20021_s5 + $0xcb0] ss:$36 sps:$4 sm:$0xff]  }
 0x4a4   :  { %11497 = vmatprep.subr.bf16.mxu1 %v14185_v43  ;;  %v14260_v43 = vld [vmem:[%s20021_s5 + $0xcf4] ss:$36 sps:$4 sm:$0xff]  }
 0x4a6   :  { %11334 = vmatpush1.bf16.msra.mxu0 %v14180_v18  ;;  %v14263_v18 = vld [vmem:[%s20021_s5 + $0xcfc] ss:$36 sps:$4 sm:$0xff]  }
 0x4a7   :  { %11498 = vmatpush1.bf16.msra.mxu1 %v14183_v55  ;;  %11335 = vmatprep.subr.bf16.mxu0 %v14188_v24  ;;  %v14258_v55 = vld [vmem:[%s20021_s5 + $0xcf0] ss:$36 sps:$4 sm:$0xff]   ;;  %v14261_v24 = vld [vmem:[%s20021_s5 + $0xcf8] ss:$36 sps:$4 sm:$0xff]  }
 0x4a8   :  { %11499 = vmatprep.subr.bf16.mxu1 %v14191_v44  ;;  %v14266_v44 = vld [vmem:[%s20021_s5 + $0xd3c] ss:$36 sps:$4 sm:$0xff]  }
 0x4aa   :  { %11336 = vmatpush1.bf16.msra.mxu0 %v14186_v50  ;;  %v14269_v50 = vld [vmem:[%s20021_s5 + $0xd44] ss:$36 sps:$4 sm:$0xff]  }
 0x4ab   :  { %11500 = vmatpush1.bf16.msra.mxu1 %v14189_v51  ;;  %11337 = vmatprep.subr.bf16.mxu0 %v14194_v52  ;;  %v14264_v51 = vld [vmem:[%s20021_s5 + $0xd38] ss:$36 sps:$4 sm:$0xff]   ;;  %v14267_v52 = vld [vmem:[%s20021_s5 + $0xd40] ss:$36 sps:$4 sm:$0xff]  }
 0x4ac   :  { %11501 = vmatprep.subr.bf16.mxu1 %v14197_v3  ;;  %v14272_v3 = vld [vmem:[%s20021_s5 + $0xd84] ss:$36 sps:$4 sm:$0xff]  }
 0x4ae   :  { %11338 = vmatpush1.bf16.msra.mxu0 %v14192_v4  ;;  %v14275_v4 = vld [vmem:[%s20021_s5 + $0xd8c] ss:$36 sps:$4 sm:$0xff]  }
 0x4af   :  { %11502 = vmatpush1.bf16.msra.mxu1 %v14195_v11  ;;  %11339 = vmatprep.subr.bf16.mxu0 %v14200_v54  ;;  %v4363_v11 = vrot.slane %v18155_v39, %v17151_v48  ;;  %v4367_v54 = vrot.slane %v18155_v39, %v17154_v45 }
 0x4b0   :  { %11503 = vmatprep.subr.bf16.mxu1 %v14203_v58  ;;  %v4375_v58 = vrot.slane %v18155_v39, %v17157_v46  ;;  %v14270_v39 = vld [vmem:[%s20021_s5 + $0xd80] ss:$36 sps:$4 sm:$0xff]  }
 0x4b2   :  { %11340 = vmatpush1.bf16.msra.mxu0 %v14198_v26 }
 0x4b3   :  { %11504 = vmatpush1.bf16.msra.mxu1 %v14201_v59  ;;  %11341 = vmatprep.subr.bf16.mxu0 %v14206_v56 }
 0x4b4   :  { %11505 = vmatprep.subr.bf16.mxu1 %v14209_v13 }
 0x4b6   :  { %11342 = vmatpush1.bf16.msra.mxu0 %v14204_v62 }
 0x4b7   :  { %11506 = vmatpush1.bf16.msra.mxu1 %v14207_v63  ;;  %11343 = vmatprep.subr.bf16.mxu0 %v14212_v0 }
 0x4b8   :  { %11507 = vmatprep.subr.bf16.mxu1 %v14215_v61 }
 0x4ba   :  { %11344 = vmatpush1.bf16.msra.mxu0 %v14210_v2 }
 0x4bb   :  { %11508 = vmatpush1.bf16.msra.mxu1 %v14213_v5  ;;  %11345 = vmatprep.subr.bf16.mxu0 %v14218_v6 }
 0x4bc   :  { %11509 = vmatprep.subr.bf16.mxu1 %v14221_v17 }
 0x4be   :  { %11346 = vmatpush1.bf16.msra.mxu0 %v14216_v7 }
 0x4bf   :  { %11510 = vmatpush1.bf16.msra.mxu1 %v14219_v47  ;;  %11347 = vmatprep.subr.bf16.mxu0 %v14224_v10 }
 0x4c0   :  { %11511 = vmatprep.subr.bf16.mxu1 %v14227_v16  ;;  %v14273_v16 = vld [vmem:[%s20021_s5 + $0xd88] ss:$36 sps:$4 sm:$0xff]  }
 0x4c2   :  { %11348 = vmatpush1.bf16.msra.mxu0 %v14222_v57 }
 0x4c3   :  { %11512 = vmatpush1.bf16.msra.mxu1 %v14225_v14  ;;  %11349 = vmatprep.subr.bf16.mxu0 %v14230_v19  ;;  %v14278_v14 = vld [vmem:[%s20021_s5 + $0xdcc] ss:$36 sps:$4 sm:$0xff]   ;;  %v14281_v19 = vld [vmem:[%s20021_s5 + $0xdd4] ss:$36 sps:$4 sm:$0xff]  }
 0x4c4   :  { %11513 = vmatprep.subr.bf16.mxu1 %v14233_v20 }
 0x4c6   :  { %11350 = vmatpush1.bf16.msra.mxu0 %v14228_v12  ;;  %v14276_v12 = vld [vmem:[%s20021_s5 + $0xdc8] ss:$36 sps:$4 sm:$0xff]  }
 0x4c7   :  { %11514 = vmatpush1.bf16.msra.mxu1 %v14231_v25  ;;  %11351 = vmatprep.subr.bf16.mxu0 %v14236_v1  ;;  %v14279_v25 = vld [vmem:[%s20021_s5 + $0xdd0] ss:$36 sps:$4 sm:$0xff]  }
 0x4c8   :  { %11515 = vmatprep.subr.bf16.mxu1 %v14239_v28  ;;  %v14284_v1 = vld [vmem:[%s20021_s5 + $0xe14] ss:$36 sps:$4 sm:$0xff]   ;;  %v14287_v28 = vld [vmem:[%s20021_s5 + $0xe1c] ss:$36 sps:$4 sm:$0xff]  }
 0x4ca   :  { %11352 = vmatpush1.bf16.msra.mxu0 %v14234_v30  ;;  %v14282_v30 = vld [vmem:[%s20021_s5 + $0xe10] ss:$36 sps:$4 sm:$0xff]  }
 0x4cb   :  { %11516 = vmatpush1.bf16.msra.mxu1 %v14237_v23  ;;  %11353 = vmatprep.subr.bf16.mxu0 %v14242_v31  ;;  %v14285_v23 = vld [vmem:[%s20021_s5 + $0xe18] ss:$36 sps:$4 sm:$0xff]  }
 0x4cc   :  { %11517 = vmatprep.subr.bf16.mxu1 %v14245_v32  ;;  %v14290_v31 = vld [vmem:[%s20021_s5 + $0xe5c] ss:$36 sps:$4 sm:$0xff]   ;;  %v14293_v32 = vld [vmem:[%s20021_s5 + $0xe64] ss:$36 sps:$4 sm:$0xff]  }
 0x4ce   :  { %11354 = vmatpush1.bf16.msra.mxu0 %v14240_v35  ;;  %v14288_v35 = vld [vmem:[%s20021_s5 + $0xe58] ss:$36 sps:$4 sm:$0xff]  }
 0x4cf   :  { %11518 = vmatpush1.bf16.msra.mxu1 %v14243_v36  ;;  %11355 = vmatprep.subr.bf16.mxu0 %v14248_v21  ;;  %v14291_v36 = vld [vmem:[%s20021_s5 + $0xe60] ss:$36 sps:$4 sm:$0xff]  }
 0x4d0   :  { %11519 = vmatprep.subr.bf16.mxu1 %v14251_v37  ;;  %v14296_v21 = vld [vmem:[%s20021_s5 + $0xea4] ss:$36 sps:$4 sm:$0xff]   ;;  %v14299_v37 = vld [vmem:[%s20021_s5 + $0xeac] ss:$36 sps:$4 sm:$0xff]  }
 0x4d2   :  { %11356 = vmatpush1.bf16.msra.mxu0 %v14246_v49  ;;  %v14294_v49 = vld [vmem:[%s20021_s5 + $0xea0] ss:$36 sps:$4 sm:$0xff]  }
 0x4d3   :  { %11520 = vmatpush1.bf16.msra.mxu1 %v14249_v38  ;;  %11357 = vmatprep.subr.bf16.mxu0 %v14254_v40  ;;  %v14297_v38 = vld [vmem:[%s20021_s5 + $0xea8] ss:$36 sps:$4 sm:$0xff]  }
 0x4d4   :  { %11521 = vmatprep.subr.bf16.mxu1 %v14257_v9  ;;  %v14302_v40 = vld [vmem:[%s20021_s5 + $0xeec] ss:$36 sps:$4 sm:$0xff]   ;;  %v14305_v9 = vld [vmem:[%s20021_s5 + $0xef4] ss:$36 sps:$4 sm:$0xff]  }
 0x4d6   :  { %11358 = vmatpush1.bf16.msra.mxu0 %v14252_v41  ;;  %v14300_v41 = vld [vmem:[%s20021_s5 + $0xee8] ss:$36 sps:$4 sm:$0xff]  }
 0x4d7   :  { %11522 = vmatpush1.bf16.msra.mxu1 %v14255_v42  ;;  %11359 = vmatprep.subr.bf16.mxu0 %v14260_v43  ;;  %v14303_v42 = vld [vmem:[%s20021_s5 + $0xef0] ss:$36 sps:$4 sm:$0xff]  }
 0x4d8   :  { %11523 = vmatprep.subr.bf16.mxu1 %v14263_v18  ;;  %v14308_v43 = vld [vmem:[%s20021_s5 + $0xf34] ss:$36 sps:$4 sm:$0xff]   ;;  %v14311_v18 = vld [vmem:[%s20021_s5 + $0xf3c] ss:$36 sps:$4 sm:$0xff]  }
 0x4da   :  { %11360 = vmatpush1.bf16.msra.mxu0 %v14258_v55  ;;  %v14306_v55 = vld [vmem:[%s20021_s5 + $0xf30] ss:$36 sps:$4 sm:$0xff]  }
 0x4db   :  { %11524 = vmatpush1.bf16.msra.mxu1 %v14261_v24  ;;  %11361 = vmatprep.subr.bf16.mxu0 %v14266_v44  ;;  %v14309_v24 = vld [vmem:[%s20021_s5 + $0xf38] ss:$36 sps:$4 sm:$0xff]  }
 0x4dc   :  { %11525 = vmatprep.subr.bf16.mxu1 %v14269_v50  ;;  %v14314_v44 = vld [vmem:[%s20021_s5 + $0xf7c] ss:$36 sps:$4 sm:$0xff]   ;;  %v14317_v50 = vld [vmem:[%s20021_s5 + $0xf84] ss:$36 sps:$4 sm:$0xff]  }
 0x4de   :  { %11362 = vmatpush1.bf16.msra.mxu0 %v14264_v51  ;;  %v14312_v51 = vld [vmem:[%s20021_s5 + $0xf78] ss:$36 sps:$4 sm:$0xff]  }
 0x4df   :  { %11526 = vmatpush1.bf16.msra.mxu1 %v14267_v52  ;;  %11372 = vmatprep.subr.bf16.mxu0 %v14272_v3  ;;  %v14315_v52 = vld [vmem:[%s20021_s5 + $0xf80] ss:$36 sps:$4 sm:$0xff]  }
 0x4e0   :  { %11536 = vmatprep.subr.bf16.mxu1 %v14275_v4  ;;  %v14320_v3 = vld [vmem:[%s20021_s5 + $0xfc4] ss:$36 sps:$4 sm:$0xff]   ;;  %v14323_v4 = vld [vmem:[%s20021_s5 + $0xfcc] ss:$36 sps:$4 sm:$0xff]  }
 0x4f4   :  { %v7429_v26 = vpop.f32.mrb[12].mxu0 }
 0x4f5   :  { %v13825_v59 = vadd.f32 %v7429_v26, %v4363_v11  ;;  %v18787_v56 = vpop.f32.mrb[12].mxu1  ;;  %v7431_v13 = vpop.f32.mrb[13].mxu0  ;;  %v14318_v11 = vld [vmem:[%s20021_s5 + $0xfc0] ss:$36 sps:$4 sm:$0xff]   ;;  %v14329_v26 = vld [vmem:[%s20021_s5 + $0x1014] ss:$36 sps:$4 sm:$0xff]  }
 0x4f6   :  { %v13826_v62 = vadd.f32 %v7431_v13, %v4367_v54  ;;  %v7595_v63 = vpop.f32.mrb[13].mxu1  ;;  %v7433_v0 = vpop.f32.mrb[14].mxu0  ;;  %v14321_v54 = vld [vmem:[%s20021_s5 + $0xfc8] ss:$36 sps:$4 sm:$0xff]   ;;  %v14327_v13 = vld [vmem:[%s20021_s5 + $0x1010] ss:$36 sps:$4 sm:$0xff]  }
 0x4f7   :  { %v7604_v61 = vmax.f32 %v13825_v59, 0.0  ;;  %v13828_v2 = vadd.f32 %v7595_v63, %v4375_v58  ;;  %v7597_v5 = vpop.f32.mrb[14].mxu1  ;;  %v7434_v6 = vpop.f32.mrb[15].mxu0  ;;  %v14326_v58 = vld [vmem:[%s20021_s5 + $0x100c] ss:$36 sps:$4 sm:$0xff]  }
 0x4f8   :  { %v7605_v17 = vmax.f32 %v13826_v62, 0.0  ;;  %v7598_v7 = vpop.f32.mrb[15].mxu1  ;;  %v14324_v59 = vld [vmem:[%s20021_s5 + $0x1008] ss:$36 sps:$4 sm:$0xff]   ;;  %v14332_v62 = vld [vmem:[%s20021_s5 + $0x1054] ss:$36 sps:$4 sm:$0xff]  }
 0x4f9   :  { %v7607_v47 = vmax.f32 %v13828_v2, 0.0  ;;  %v18797_v57 = vpack.c.bf16 %v7604_v61, %v7604_v61  ;;  %v14335_v63 = vld [vmem:[%s20021_s5 + $0x105c] ss:$36 sps:$4 sm:$0xff]   ;;  %v14330_v0 = vld [vmem:[%s20021_s5 + $0x1050] ss:$36 sps:$4 sm:$0xff]  }
 0x4fa   :  { %v18789_v10 = vpack.c.bf16 %v7605_v17, %v7605_v17  ;;  %v14333_v61 = vld [vmem:[%s20021_s5 + $0x1058] ss:$36 sps:$4 sm:$0xff]   ;;  %v14341_v5 = vld [vmem:[%s20021_s5 + $0x10a4] ss:$36 sps:$4 sm:$0xff]  }
 0x4fb   :  { %v18807_v20 = vpack.c.bf16 %v7607_v47, %v7607_v47  ;;  %v14338_v2 = vld [vmem:[%s20021_s5 + $0x109c] ss:$36 sps:$4 sm:$0xff]   ;;  %v14344_v7 = vld [vmem:[%s20021_s5 + $0x10e4] ss:$36 sps:$4 sm:$0xff]   ;;  %v14347_v47 = vld [vmem:[%s20021_s5 + $0x10ec] ss:$36 sps:$4 sm:$0xff]  }
 0x4fc   :  { %11363 = vmatprep.mubr.bf16.mxu0 %v18789_v10  ;;  %11527 = vmatprep.mubr.bf16.mxu1 %v18789_v10  ;;  %v14336_v6 = vld [vmem:[%s20021_s5 + $0x1098] ss:$36 sps:$4 sm:$0xff]   ;;  %v14339_v17 = vld [vmem:[%s20021_s5 + $0x10a0] ss:$36 sps:$4 sm:$0xff]  }
 0x4fd   :  { %11364 = vmatmul.mubr.bf16.vlgmr.msra.gmra.mrb[16].mxu0 %v18797_v57  ;;  %11528 = vmatmul.mubr.bf16.vlgmr.msra.gmra.mrb[16].mxu1 %v18797_v57 }
 0x4fe   :  { %11373 = vmatpush1.bf16.msra.mxu0 %v14270_v39  ;;  %11537 = vmatpush1.bf16.msra.mxu1 %v14273_v16  ;;  %v14342_v39 = vld [vmem:[%s20021_s5 + $0x10e0] ss:$36 sps:$4 sm:$0xff]   ;;  %v14345_v16 = vld [vmem:[%s20021_s5 + $0x10e8] ss:$36 sps:$4 sm:$0xff]  }
 0x4ff   :  { %11404 = vmatprep.mubr.bf16.mxu0 %v18807_v20  ;;  %11568 = vmatprep.mubr.bf16.mxu1 %v18807_v20 }
 0x500   :  { %11374 = vmatprep.subr.bf16.mxu0 %v14278_v14  ;;  %11538 = vmatprep.subr.bf16.mxu1 %v14281_v19  ;;  %v14350_v14 = vld [vmem:[%s20021_s5 + $0x112c] ss:$36 sps:$4 sm:$0xff]   ;;  %v14353_v19 = vld [vmem:[%s20021_s5 + $0x1134] ss:$36 sps:$4 sm:$0xff]  }
 0x502   :  { %11375 = vmatpush1.bf16.msra.mxu0 %v14276_v12  ;;  %11539 = vmatpush1.bf16.msra.mxu1 %v14279_v25  ;;  %v14348_v12 = vld [vmem:[%s20021_s5 + $0x1128] ss:$36 sps:$4 sm:$0xff]   ;;  %v14351_v25 = vld [vmem:[%s20021_s5 + $0x1130] ss:$36 sps:$4 sm:$0xff]  }
 0x503   :  { %11376 = vmatprep.subr.bf16.mxu0 %v14284_v1  ;;  %11540 = vmatprep.subr.bf16.mxu1 %v14287_v28  ;;  %v14833_v1 = vld [vmem:[%s20020_s4] sm:$0xff] }
 0x504   :  { %v4371_v28 = vrot.slane %v14833_v1, %v17341_v8  ;;  %v14422_v1 = vld [vmem:[%s20021_s5 + $0x29c] ss:$36 sps:$4 sm:$0xff]  }
 0x506   :  { %11377 = vmatpush1.bf16.msra.mxu0 %v14282_v30  ;;  %11541 = vmatpush1.bf16.msra.mxu1 %v14285_v23  ;;  %v14356_v30 = vld [vmem:[%s20021_s5 + $0x1174] ss:$36 sps:$4 sm:$0xff]   ;;  %v14359_v23 = vld [vmem:[%s20021_s5 + $0x117c] ss:$36 sps:$4 sm:$0xff]  }
 0x507   :  { %11378 = vmatprep.subr.bf16.mxu0 %v14290_v31  ;;  %11542 = vmatprep.subr.bf16.mxu1 %v14293_v32  ;;  %v14354_v31 = vld [vmem:[%s20021_s5 + $0x1170] ss:$36 sps:$4 sm:$0xff]   ;;  %v14357_v32 = vld [vmem:[%s20021_s5 + $0x1178] ss:$36 sps:$4 sm:$0xff]  }
 0x50a   :  { %11379 = vmatpush1.bf16.msra.mxu0 %v14288_v35  ;;  %11543 = vmatpush1.bf16.msra.mxu1 %v14291_v36  ;;  %v13827_v35 = vadd.f32 %v18787_v56, %v4371_v28  ;;  %v14362_v36 = vld [vmem:[%s20021_s5 + $0x11bc] ss:$36 sps:$4 sm:$0xff]   ;;  %v14425_v28 = vld [vmem:[%s20021_s5 + $0x2a4] ss:$36 sps:$4 sm:$0xff]  }
 0x50b   :  { %11380 = vmatprep.subr.bf16.mxu0 %v14296_v21  ;;  %11544 = vmatprep.subr.bf16.mxu1 %v14299_v37  ;;  %v14365_v21 = vld [vmem:[%s20021_s5 + $0x11c4] ss:$36 sps:$4 sm:$0xff]   ;;  %v14360_v37 = vld [vmem:[%s20021_s5 + $0x11b8] ss:$36 sps:$4 sm:$0xff]  }
 0x50c   :  { %v14363_v56 = vld [vmem:[%s20021_s5 + $0x11c0] ss:$36 sps:$4 sm:$0xff]  }
 0x50e   :  { %11381 = vmatpush1.bf16.msra.mxu0 %v14294_v49  ;;  %11545 = vmatpush1.bf16.msra.mxu1 %v14297_v38  ;;  %v7606_v49 = vmax.f32 %v13827_v35, 0.0  ;;  %v14368_v38 = vld [vmem:[%s20021_s5 + $0x14] ss:$36 sps:$4 sm:$0xff]   ;;  %v14426_v35 = vld [vmem:[%s20021_s5 + $0x2e0] ss:$36 sps:$4 sm:$0xff]  }
 0x50f   :  { %11382 = vmatprep.subr.bf16.mxu0 %v14302_v40  ;;  %11546 = vmatprep.subr.bf16.mxu1 %v14305_v9  ;;  %v14371_v40 = vld [vmem:[%s20021_s5 + $0x1c] ss:$36 sps:$4 sm:$0xff]   ;;  %v14366_v9 = vld [vmem:[%s20021_s5 + $0x10] ss:$36 sps:$4 sm:$0xff]  }
 0x512   :  { %11383 = vmatpush1.bf16.msra.mxu0 %v14300_v41  ;;  %11547 = vmatpush1.bf16.msra.mxu1 %v14303_v42  ;;  %v19001_v41 = vpack.c.bf16 %v7606_v49, %v7606_v49  ;;  %v14369_v42 = vld [vmem:[%s20021_s5 + $0x18] ss:$36 sps:$4 sm:$0xff]   ;;  %v14435_v49 = vld [vmem:[%s20021_s5 + $0x330] ss:$36 sps:$4 sm:$0xff]  }
 0x513   :  { %11384 = vmatprep.subr.bf16.mxu0 %v14308_v43  ;;  %11548 = vmatprep.subr.bf16.mxu1 %v14311_v18  ;;  %v14374_v43 = vld [vmem:[%s20021_s5 + $0x5c] ss:$36 sps:$4 sm:$0xff]   ;;  %v14377_v18 = vld [vmem:[%s20021_s5 + $0x64] ss:$36 sps:$4 sm:$0xff]  }
 0x516   :  { %11385 = vmatpush1.bf16.msra.mxu0 %v14306_v55  ;;  %11549 = vmatpush1.bf16.msra.mxu1 %v14309_v24  ;;  %v14372_v55 = vld [vmem:[%s20021_s5 + $0x58] ss:$36 sps:$4 sm:$0xff]   ;;  %v14375_v24 = vld [vmem:[%s20021_s5 + $0x60] ss:$36 sps:$4 sm:$0xff]  }
 0x517   :  { %11386 = vmatprep.subr.bf16.mxu0 %v14314_v44  ;;  %11550 = vmatprep.subr.bf16.mxu1 %v14317_v50  ;;  %v14380_v44 = vld [vmem:[%s20021_s5 + $0xa4] ss:$36 sps:$4 sm:$0xff]   ;;  %v14383_v50 = vld [vmem:[%s20021_s5 + $0xac] ss:$36 sps:$4 sm:$0xff]  }
 0x51a   :  { %11387 = vmatpush1.bf16.msra.mxu0 %v14312_v51  ;;  %11551 = vmatpush1.bf16.msra.mxu1 %v14315_v52  ;;  %v14378_v51 = vld [vmem:[%s20021_s5 + $0xa0] ss:$36 sps:$4 sm:$0xff]   ;;  %v14381_v52 = vld [vmem:[%s20021_s5 + $0xa8] ss:$36 sps:$4 sm:$0xff]  }
 0x51b   :  { %11388 = vmatprep.subr.bf16.mxu0 %v14320_v3  ;;  %11552 = vmatprep.subr.bf16.mxu1 %v14323_v4  ;;  %v14386_v3 = vld [vmem:[%s20021_s5 + $0xec] ss:$36 sps:$4 sm:$0xff]   ;;  %v14389_v4 = vld [vmem:[%s20021_s5 + $0xf4] ss:$36 sps:$4 sm:$0xff]  }
 0x51e   :  { %11389 = vmatpush1.bf16.msra.mxu0 %v14318_v11  ;;  %11553 = vmatpush1.bf16.msra.mxu1 %v14321_v54  ;;  %v14384_v11 = vld [vmem:[%s20021_s5 + $0xe8] ss:$36 sps:$4 sm:$0xff]   ;;  %v14387_v54 = vld [vmem:[%s20021_s5 + $0xf0] ss:$36 sps:$4 sm:$0xff]  }
 0x51f   :  { %11390 = vmatprep.subr.bf16.mxu0 %v14326_v58  ;;  %11554 = vmatprep.subr.bf16.mxu1 %v14329_v26  ;;  %v14392_v58 = vld [vmem:[%s20021_s5 + $0x134] ss:$36 sps:$4 sm:$0xff]   ;;  %v14395_v26 = vld [vmem:[%s20021_s5 + $0x13c] ss:$36 sps:$4 sm:$0xff]  }
 0x522   :  { %11391 = vmatpush1.bf16.msra.mxu0 %v14324_v59  ;;  %11555 = vmatpush1.bf16.msra.mxu1 %v14327_v13  ;;  %v14390_v59 = vld [vmem:[%s20021_s5 + $0x130] ss:$36 sps:$4 sm:$0xff]   ;;  %v14393_v13 = vld [vmem:[%s20021_s5 + $0x138] ss:$36 sps:$4 sm:$0xff]  }
 0x523   :  { %11392 = vmatprep.subr.bf16.mxu0 %v14332_v62  ;;  %11556 = vmatprep.subr.bf16.mxu1 %v14335_v63  ;;  %v14398_v62 = vld [vmem:[%s20021_s5 + $0x17c] ss:$36 sps:$4 sm:$0xff]   ;;  %v14401_v63 = vld [vmem:[%s20021_s5 + $0x184] ss:$36 sps:$4 sm:$0xff]  }
 0x526   :  { %11393 = vmatpush1.bf16.msra.mxu0 %v14330_v0  ;;  %11557 = vmatpush1.bf16.msra.mxu1 %v14333_v61  ;;  %v14396_v0 = vld [vmem:[%s20021_s5 + $0x178] ss:$36 sps:$4 sm:$0xff]   ;;  %v14399_v61 = vld [vmem:[%s20021_s5 + $0x180] ss:$36 sps:$4 sm:$0xff]  }
 0x527   :  { %11394 = vmatprep.subr.bf16.mxu0 %v14338_v2  ;;  %11558 = vmatprep.subr.bf16.mxu1 %v14341_v5  ;;  %v14404_v2 = vld [vmem:[%s20021_s5 + $0x1c4] ss:$36 sps:$4 sm:$0xff]   ;;  %v14407_v5 = vld [vmem:[%s20021_s5 + $0x1cc] ss:$36 sps:$4 sm:$0xff]  }
 0x52a   :  { %11395 = vmatpush1.bf16.msra.mxu0 %v14336_v6  ;;  %11559 = vmatpush1.bf16.msra.mxu1 %v14339_v17  ;;  %v14402_v6 = vld [vmem:[%s20021_s5 + $0x1c0] ss:$36 sps:$4 sm:$0xff]   ;;  %v14405_v17 = vld [vmem:[%s20021_s5 + $0x1c8] ss:$36 sps:$4 sm:$0xff]  }
 0x52b   :  { %11396 = vmatprep.subr.bf16.mxu0 %v14344_v7  ;;  %11560 = vmatprep.subr.bf16.mxu1 %v14347_v47  ;;  %v14410_v7 = vld [vmem:[%s20021_s5 + $0x20c] ss:$36 sps:$4 sm:$0xff]   ;;  %v14413_v47 = vld [vmem:[%s20021_s5 + $0x214] ss:$36 sps:$4 sm:$0xff]  }
 0x52e   :  { %11397 = vmatpush1.bf16.msra.mxu0 %v14342_v39  ;;  %11561 = vmatpush1.bf16.msra.mxu1 %v14345_v16  ;;  %v14408_v39 = vld [vmem:[%s20021_s5 + $0x208] ss:$36 sps:$4 sm:$0xff]   ;;  %v14411_v16 = vld [vmem:[%s20021_s5 + $0x210] ss:$36 sps:$4 sm:$0xff]  }
 0x52f   :  { %11398 = vmatprep.subr.bf16.mxu0 %v14350_v14  ;;  %11562 = vmatprep.subr.bf16.mxu1 %v14353_v19  ;;  %v14416_v14 = vld [vmem:[%s20021_s5 + $0x254] ss:$36 sps:$4 sm:$0xff]   ;;  %v14419_v19 = vld [vmem:[%s20021_s5 + $0x25c] ss:$36 sps:$4 sm:$0xff]  }
 0x532   :  { %11399 = vmatpush1.bf16.msra.mxu0 %v14348_v12  ;;  %11563 = vmatpush1.bf16.msra.mxu1 %v14351_v25  ;;  %v14414_v12 = vld [vmem:[%s20021_s5 + $0x250] ss:$36 sps:$4 sm:$0xff]   ;;  %v14417_v25 = vld [vmem:[%s20021_s5 + $0x258] ss:$36 sps:$4 sm:$0xff]  }
 0x533   :  { %11400 = vmatprep.subr.bf16.mxu0 %v14356_v30  ;;  %11564 = vmatprep.subr.bf16.mxu1 %v14359_v23  ;;  %v14420_v30 = vld [vmem:[%s20021_s5 + $0x298] ss:$36 sps:$4 sm:$0xff]   ;;  %v14423_v23 = vld [vmem:[%s20021_s5 + $0x2a0] ss:$36 sps:$4 sm:$0xff]  }
 0x536   :  { %11401 = vmatpush1.bf16.msra.mxu0 %v14354_v31  ;;  %11565 = vmatpush1.bf16.msra.mxu1 %v14357_v32  ;;  %v14428_v31 = vld [vmem:[%s20021_s5 + $0x2e4] ss:$36 sps:$4 sm:$0xff]   ;;  %v14431_v32 = vld [vmem:[%s20021_s5 + $0x2ec] ss:$36 sps:$4 sm:$0xff]  }
 0x537   :  { %11402 = vmatprep.subr.bf16.mxu0 %v14362_v36  ;;  %11566 = vmatprep.subr.bf16.mxu1 %v14365_v21  ;;  %v14429_v36 = vld [vmem:[%s20021_s5 + $0x2e8] ss:$36 sps:$4 sm:$0xff]  }
 0x538   :  { %v14434_v21 = vld [vmem:[%s20021_s5 + $0x32c] ss:$36 sps:$4 sm:$0xff]  }
 0x53a   :  { %11403 = vmatpush1.bf16.msra.mxu0 %v14360_v37  ;;  %11567 = vmatpush1.bf16.msra.mxu1 %v14363_v56  ;;  %v14437_v37 = vld [vmem:[%s20021_s5 + $0x334] ss:$36 sps:$4 sm:$0xff]   ;;  %v14432_v56 = vld [vmem:[%s20021_s5 + $0x328] ss:$36 sps:$4 sm:$0xff]  }
 0x53b   :  { %11577 = vmatprep.subr.bf16.mxu0 %v14368_v38  ;;  %11741 = vmatprep.subr.bf16.mxu1 %v14371_v40  ;;  %v14440_v38 = vld [vmem:[%s20021_s5 + $0x374] ss:$36 sps:$4 sm:$0xff]   ;;  %v14443_v40 = vld [vmem:[%s20021_s5 + $0x37c] ss:$36 sps:$4 sm:$0xff]  }
 0x53d   :  { %11405 = vmatmul.mubr.bf16.vlgmr.msra.gmra.mrb[16].mxu0 %v19001_v41  ;;  %11569 = vmatmul.mubr.bf16.vlgmr.msra.gmra.mrb[16].mxu1 %v19001_v41 }
 0x53e   :  { %11578 = vmatpush1.bf16.msra.mxu0 %v14366_v9  ;;  %11609 = vmatprep.mubr.bf16.mxu0 %v18187_v60  ;;  %v14438_v9 = vld [vmem:[%s20021_s5 + $0x370] ss:$36 sps:$4 sm:$0xff]  }
 0x53f   :  { %11742 = vmatpush1.bf16.msra.mxu1 %v14369_v42  ;;  %11773 = vmatprep.mubr.bf16.mxu1 %v18187_v60  ;;  %v14441_v42 = vld [vmem:[%s20021_s5 + $0x378] ss:$36 sps:$4 sm:$0xff]  }
 0x540   :  { %11579 = vmatprep.subr.bf16.mxu0 %v14374_v43  ;;  %11743 = vmatprep.subr.bf16.mxu1 %v14377_v18  ;;  %v14446_v43 = vld [vmem:[%s20021_s5 + $0x3bc] ss:$36 sps:$4 sm:$0xff]   ;;  %v14449_v18 = vld [vmem:[%s20021_s5 + $0x3c4] ss:$36 sps:$4 sm:$0xff]  }
 0x542   :  { %11580 = vmatpush1.bf16.msra.mxu0 %v14372_v55  ;;  %v14444_v55 = vld [vmem:[%s20021_s5 + $0x3b8] ss:$36 sps:$4 sm:$0xff]  }
 0x543   :  { %11744 = vmatpush1.bf16.msra.mxu1 %v14375_v24  ;;  %11581 = vmatprep.subr.bf16.mxu0 %v14380_v44  ;;  %v14447_v24 = vld [vmem:[%s20021_s5 + $0x3c0] ss:$36 sps:$4 sm:$0xff]  }
 0x544   :  { %11745 = vmatprep.subr.bf16.mxu1 %v14383_v50  ;;  %v14452_v44 = vld [vmem:[%s20021_s5 + $0x404] ss:$36 sps:$4 sm:$0xff]   ;;  %v14455_v50 = vld [vmem:[%s20021_s5 + $0x40c] ss:$36 sps:$4 sm:$0xff]  }
 0x546   :  { %11582 = vmatpush1.bf16.msra.mxu0 %v14378_v51  ;;  %v14450_v51 = vld [vmem:[%s20021_s5 + $0x400] ss:$36 sps:$4 sm:$0xff]  }
 0x547   :  { %11746 = vmatpush1.bf16.msra.mxu1 %v14381_v52  ;;  %11583 = vmatprep.subr.bf16.mxu0 %v14386_v3  ;;  %v14453_v52 = vld [vmem:[%s20021_s5 + $0x408] ss:$36 sps:$4 sm:$0xff]  }
 0x548   :  { %11747 = vmatprep.subr.bf16.mxu1 %v14389_v4  ;;  %v14458_v3 = vld [vmem:[%s20021_s5 + $0x44c] ss:$36 sps:$4 sm:$0xff]   ;;  %v14461_v4 = vld [vmem:[%s20021_s5 + $0x454] ss:$36 sps:$4 sm:$0xff]  }
 0x54a   :  { %11584 = vmatpush1.bf16.msra.mxu0 %v14384_v11  ;;  %v14456_v11 = vld [vmem:[%s20021_s5 + $0x448] ss:$36 sps:$4 sm:$0xff]  }
 0x54b   :  { %11748 = vmatpush1.bf16.msra.mxu1 %v14387_v54  ;;  %11585 = vmatprep.subr.bf16.mxu0 %v14392_v58  ;;  %v14459_v54 = vld [vmem:[%s20021_s5 + $0x450] ss:$36 sps:$4 sm:$0xff]  }
 0x54c   :  { %11749 = vmatprep.subr.bf16.mxu1 %v14395_v26  ;;  %v14464_v58 = vld [vmem:[%s20021_s5 + $0x494] ss:$36 sps:$4 sm:$0xff]   ;;  %v14467_v26 = vld [vmem:[%s20021_s5 + $0x49c] ss:$36 sps:$4 sm:$0xff]  }
 0x54e   :  { %11586 = vmatpush1.bf16.msra.mxu0 %v14390_v59  ;;  %v14462_v59 = vld [vmem:[%s20021_s5 + $0x490] ss:$36 sps:$4 sm:$0xff]  }
 0x54f   :  { %11750 = vmatpush1.bf16.msra.mxu1 %v14393_v13  ;;  %11587 = vmatprep.subr.bf16.mxu0 %v14398_v62  ;;  %v14465_v13 = vld [vmem:[%s20021_s5 + $0x498] ss:$36 sps:$4 sm:$0xff]  }
 0x550   :  { %11751 = vmatprep.subr.bf16.mxu1 %v14401_v63  ;;  %v14470_v62 = vld [vmem:[%s20021_s5 + $0x4dc] ss:$36 sps:$4 sm:$0xff]   ;;  %v14473_v63 = vld [vmem:[%s20021_s5 + $0x4e4] ss:$36 sps:$4 sm:$0xff]  }
 0x552   :  { %11588 = vmatpush1.bf16.msra.mxu0 %v14396_v0  ;;  %v14468_v0 = vld [vmem:[%s20021_s5 + $0x4d8] ss:$36 sps:$4 sm:$0xff]  }
 0x553   :  { %11752 = vmatpush1.bf16.msra.mxu1 %v14399_v61  ;;  %11589 = vmatprep.subr.bf16.mxu0 %v14404_v2  ;;  %v14471_v61 = vld [vmem:[%s20021_s5 + $0x4e0] ss:$36 sps:$4 sm:$0xff]  }
 0x554   :  { %11753 = vmatprep.subr.bf16.mxu1 %v14407_v5  ;;  %v14476_v2 = vld [vmem:[%s20021_s5 + $0x524] ss:$36 sps:$4 sm:$0xff]   ;;  %v14479_v5 = vld [vmem:[%s20021_s5 + $0x52c] ss:$36 sps:$4 sm:$0xff]  }
 0x556   :  { %11590 = vmatpush1.bf16.msra.mxu0 %v14402_v6  ;;  %v14474_v6 = vld [vmem:[%s20021_s5 + $0x520] ss:$36 sps:$4 sm:$0xff]  }
 0x557   :  { %11754 = vmatpush1.bf16.msra.mxu1 %v14405_v17  ;;  %11591 = vmatprep.subr.bf16.mxu0 %v14410_v7  ;;  %v14477_v17 = vld [vmem:[%s20021_s5 + $0x528] ss:$36 sps:$4 sm:$0xff]  }
 0x558   :  { %11755 = vmatprep.subr.bf16.mxu1 %v14413_v47  ;;  %v14482_v7 = vld [vmem:[%s20021_s5 + $0x56c] ss:$36 sps:$4 sm:$0xff]   ;;  %v14485_v47 = vld [vmem:[%s20021_s5 + $0x574] ss:$36 sps:$4 sm:$0xff]  }
 0x55a   :  { %11592 = vmatpush1.bf16.msra.mxu0 %v14408_v39  ;;  %v14480_v39 = vld [vmem:[%s20021_s5 + $0x568] ss:$36 sps:$4 sm:$0xff]  }
 0x55b   :  { %11756 = vmatpush1.bf16.msra.mxu1 %v14411_v16  ;;  %11593 = vmatprep.subr.bf16.mxu0 %v14416_v14  ;;  %v14483_v16 = vld [vmem:[%s20021_s5 + $0x570] ss:$36 sps:$4 sm:$0xff]  }
 0x55c   :  { %11757 = vmatprep.subr.bf16.mxu1 %v14419_v19  ;;  %v14488_v14 = vld [vmem:[%s20021_s5 + $0x5b4] ss:$36 sps:$4 sm:$0xff]   ;;  %v14491_v19 = vld [vmem:[%s20021_s5 + $0x5bc] ss:$36 sps:$4 sm:$0xff]  }
 0x55e   :  { %11594 = vmatpush1.bf16.msra.mxu0 %v14414_v12  ;;  %v14486_v12 = vld [vmem:[%s20021_s5 + $0x5b0] ss:$36 sps:$4 sm:$0xff]  }
 0x55f   :  { %11758 = vmatpush1.bf16.msra.mxu1 %v14417_v25  ;;  %11595 = vmatprep.subr.bf16.mxu0 %v14422_v1  ;;  %v14489_v25 = vld [vmem:[%s20021_s5 + $0x5b8] ss:$36 sps:$4 sm:$0xff]  }
 0x560   :  { %11759 = vmatprep.subr.bf16.mxu1 %v14425_v28  ;;  %v14494_v1 = vld [vmem:[%s20021_s5 + $0x5fc] ss:$36 sps:$4 sm:$0xff]   ;;  %v14497_v28 = vld [vmem:[%s20021_s5 + $0x604] ss:$36 sps:$4 sm:$0xff]  }
 0x562   :  { %11596 = vmatpush1.bf16.msra.mxu0 %v14420_v30  ;;  %v14492_v30 = vld [vmem:[%s20021_s5 + $0x5f8] ss:$36 sps:$4 sm:$0xff]  }
 0x563   :  { %11760 = vmatpush1.bf16.msra.mxu1 %v14423_v23  ;;  %11597 = vmatprep.subr.bf16.mxu0 %v14428_v31  ;;  %v14495_v23 = vld [vmem:[%s20021_s5 + $0x600] ss:$36 sps:$4 sm:$0xff]  }
 0x564   :  { %11761 = vmatprep.subr.bf16.mxu1 %v14431_v32  ;;  %v14500_v31 = vld [vmem:[%s20021_s5 + $0x644] ss:$36 sps:$4 sm:$0xff]   ;;  %v14503_v32 = vld [vmem:[%s20021_s5 + $0x64c] ss:$36 sps:$4 sm:$0xff]  }
 0x566   :  { %11598 = vmatpush1.bf16.msra.mxu0 %v14426_v35  ;;  %v14498_v35 = vld [vmem:[%s20021_s5 + $0x640] ss:$36 sps:$4 sm:$0xff]  }
 0x567   :  { %11762 = vmatpush1.bf16.msra.mxu1 %v14429_v36  ;;  %11599 = vmatprep.subr.bf16.mxu0 %v14434_v21  ;;  %v14501_v36 = vld [vmem:[%s20021_s5 + $0x648] ss:$36 sps:$4 sm:$0xff]  }
 0x568   :  { %11763 = vmatprep.subr.bf16.mxu1 %v14437_v37  ;;  %v14506_v21 = vld [vmem:[%s20021_s5 + $0x68c] ss:$36 sps:$4 sm:$0xff]   ;;  %v14509_v37 = vld [vmem:[%s20021_s5 + $0x694] ss:$36 sps:$4 sm:$0xff]  }
 0x56a   :  { %11600 = vmatpush1.bf16.msra.mxu0 %v14432_v56  ;;  %v14504_v56 = vld [vmem:[%s20021_s5 + $0x688] ss:$36 sps:$4 sm:$0xff]  }
 0x56b   :  { %11764 = vmatpush1.bf16.msra.mxu1 %v14435_v49  ;;  %11601 = vmatprep.subr.bf16.mxu0 %v14440_v38  ;;  %v14507_v49 = vld [vmem:[%s20021_s5 + $0x690] ss:$36 sps:$4 sm:$0xff]  }
 0x56c   :  { %11765 = vmatprep.subr.bf16.mxu1 %v14443_v40  ;;  %v14512_v38 = vld [vmem:[%s20021_s5 + $0x6d4] ss:$36 sps:$4 sm:$0xff]   ;;  %v14515_v40 = vld [vmem:[%s20021_s5 + $0x6dc] ss:$36 sps:$4 sm:$0xff]  }
 0x56e   :  { %11602 = vmatpush1.bf16.msra.mxu0 %v14438_v9  ;;  %v14510_v9 = vld [vmem:[%s20021_s5 + $0x6d0] ss:$36 sps:$4 sm:$0xff]  }
 0x56f   :  { %11766 = vmatpush1.bf16.msra.mxu1 %v14441_v42  ;;  %11603 = vmatprep.subr.bf16.mxu0 %v14446_v43  ;;  %v14513_v42 = vld [vmem:[%s20021_s5 + $0x6d8] ss:$36 sps:$4 sm:$0xff]  }
 0x570   :  { %11767 = vmatprep.subr.bf16.mxu1 %v14449_v18  ;;  %v14518_v43 = vld [vmem:[%s20021_s5 + $0x71c] ss:$36 sps:$4 sm:$0xff]   ;;  %v14521_v18 = vld [vmem:[%s20021_s5 + $0x724] ss:$36 sps:$4 sm:$0xff]  }
 0x572   :  { %11604 = vmatpush1.bf16.msra.mxu0 %v14444_v55  ;;  %v14516_v55 = vld [vmem:[%s20021_s5 + $0x718] ss:$36 sps:$4 sm:$0xff]  }
 0x573   :  { %11768 = vmatpush1.bf16.msra.mxu1 %v14447_v24  ;;  %11605 = vmatprep.subr.bf16.mxu0 %v14452_v44  ;;  %v14519_v24 = vld [vmem:[%s20021_s5 + $0x720] ss:$36 sps:$4 sm:$0xff]  }
 0x574   :  { %11769 = vmatprep.subr.bf16.mxu1 %v14455_v50  ;;  %v14524_v44 = vld [vmem:[%s20021_s5 + $0x764] ss:$36 sps:$4 sm:$0xff]   ;;  %v14527_v50 = vld [vmem:[%s20021_s5 + $0x76c] ss:$36 sps:$4 sm:$0xff]  }
 0x576   :  { %11606 = vmatpush1.bf16.msra.mxu0 %v14450_v51  ;;  %v14522_v51 = vld [vmem:[%s20021_s5 + $0x760] ss:$36 sps:$4 sm:$0xff]  }
 0x577   :  { %11770 = vmatpush1.bf16.msra.mxu1 %v14453_v52  ;;  %11607 = vmatprep.subr.bf16.mxu0 %v14458_v3  ;;  %v14525_v52 = vld [vmem:[%s20021_s5 + $0x768] ss:$36 sps:$4 sm:$0xff]  }
 0x578   :  { %11771 = vmatprep.subr.bf16.mxu1 %v14461_v4  ;;  %v14530_v3 = vld [vmem:[%s20021_s5 + $0x7ac] ss:$36 sps:$4 sm:$0xff]   ;;  %v14533_v4 = vld [vmem:[%s20021_s5 + $0x7b4] ss:$36 sps:$4 sm:$0xff]  }
 0x57a   :  { %11608 = vmatpush1.bf16.msra.mxu0 %v14456_v11  ;;  %v14528_v11 = vld [vmem:[%s20021_s5 + $0x7a8] ss:$36 sps:$4 sm:$0xff]  }
 0x57b   :  { %11772 = vmatpush1.bf16.msra.mxu1 %v14459_v54  ;;  %11618 = vmatprep.subr.bf16.mxu0 %v14464_v58  ;;  %v14531_v54 = vld [vmem:[%s20021_s5 + $0x7b0] ss:$36 sps:$4 sm:$0xff]  }
 0x57c   :  { %11782 = vmatprep.subr.bf16.mxu1 %v14467_v26  ;;  %v14536_v58 = vld [vmem:[%s20021_s5 + $0x7f4] ss:$36 sps:$4 sm:$0xff]   ;;  %v14539_v26 = vld [vmem:[%s20021_s5 + $0x7fc] ss:$36 sps:$4 sm:$0xff]  }
 0x57d   :  { %11610 = vmatmul.mubr.bf16.vlgmr.msra.gmra.mrb[20].mxu0 %v18385_v22 }
 0x57e   :  { %11774 = vmatmul.mubr.bf16.vlgmr.msra.gmra.mrb[20].mxu1 %v18385_v22  ;;  %11619 = vmatpush1.bf16.msra.mxu0 %v14462_v59  ;;  %v14534_v59 = vld [vmem:[%s20021_s5 + $0x7f0] ss:$36 sps:$4 sm:$0xff]  }
 0x57f   :  { %11650 = vmatprep.mubr.bf16.mxu0 %v18393_v27  ;;  %11783 = vmatpush1.bf16.msra.mxu1 %v14465_v13  ;;  %v14537_v13 = vld [vmem:[%s20021_s5 + $0x7f8] ss:$36 sps:$4 sm:$0xff]  }
 0x580   :  { %11814 = vmatprep.mubr.bf16.mxu1 %v18393_v27  ;;  %11620 = vmatprep.subr.bf16.mxu0 %v14470_v62  ;;  %v14542_v62 = vld [vmem:[%s20021_s5 + $0x83c] ss:$36 sps:$4 sm:$0xff]  }
 0x581   :  { %11784 = vmatprep.subr.bf16.mxu1 %v14473_v63  ;;  %v14545_v63 = vld [vmem:[%s20021_s5 + $0x844] ss:$36 sps:$4 sm:$0xff]  }
 0x582   :  { %11621 = vmatpush1.bf16.msra.mxu0 %v14468_v0  ;;  %v14540_v0 = vld [vmem:[%s20021_s5 + $0x838] ss:$36 sps:$4 sm:$0xff]  }
 0x583   :  { %11785 = vmatpush1.bf16.msra.mxu1 %v14471_v61  ;;  %11622 = vmatprep.subr.bf16.mxu0 %v14476_v2  ;;  %v14543_v61 = vld [vmem:[%s20021_s5 + $0x840] ss:$36 sps:$4 sm:$0xff]  }
 0x584   :  { %11786 = vmatprep.subr.bf16.mxu1 %v14479_v5  ;;  %v14548_v2 = vld [vmem:[%s20021_s5 + $0x884] ss:$36 sps:$4 sm:$0xff]   ;;  %v14551_v5 = vld [vmem:[%s20021_s5 + $0x88c] ss:$36 sps:$4 sm:$0xff]  }
 0x586   :  { %11623 = vmatpush1.bf16.msra.mxu0 %v14474_v6  ;;  %v14546_v6 = vld [vmem:[%s20021_s5 + $0x880] ss:$36 sps:$4 sm:$0xff]  }
 0x587   :  { %11787 = vmatpush1.bf16.msra.mxu1 %v14477_v17  ;;  %11624 = vmatprep.subr.bf16.mxu0 %v14482_v7  ;;  %v14549_v17 = vld [vmem:[%s20021_s5 + $0x888] ss:$36 sps:$4 sm:$0xff]  }
 0x588   :  { %11788 = vmatprep.subr.bf16.mxu1 %v14485_v47  ;;  %v14554_v7 = vld [vmem:[%s20021_s5 + $0x8cc] ss:$36 sps:$4 sm:$0xff]   ;;  %v14557_v47 = vld [vmem:[%s20021_s5 + $0x8d4] ss:$36 sps:$4 sm:$0xff]  }
 0x58a   :  { %11625 = vmatpush1.bf16.msra.mxu0 %v14480_v39  ;;  %v14552_v39 = vld [vmem:[%s20021_s5 + $0x8c8] ss:$36 sps:$4 sm:$0xff]  }
 0x58b   :  { %11789 = vmatpush1.bf16.msra.mxu1 %v14483_v16  ;;  %11626 = vmatprep.subr.bf16.mxu0 %v14488_v14  ;;  %v14555_v16 = vld [vmem:[%s20021_s5 + $0x8d0] ss:$36 sps:$4 sm:$0xff]  }
 0x58c   :  { %11790 = vmatprep.subr.bf16.mxu1 %v14491_v19  ;;  %v14560_v14 = vld [vmem:[%s20021_s5 + $0x914] ss:$36 sps:$4 sm:$0xff]   ;;  %v14563_v19 = vld [vmem:[%s20021_s5 + $0x91c] ss:$36 sps:$4 sm:$0xff]  }
 0x58e   :  { %11627 = vmatpush1.bf16.msra.mxu0 %v14486_v12  ;;  %v14558_v12 = vld [vmem:[%s20021_s5 + $0x910] ss:$36 sps:$4 sm:$0xff]  }
 0x58f   :  { %11791 = vmatpush1.bf16.msra.mxu1 %v14489_v25  ;;  %11628 = vmatprep.subr.bf16.mxu0 %v14494_v1  ;;  %v14561_v25 = vld [vmem:[%s20021_s5 + $0x918] ss:$36 sps:$4 sm:$0xff]  }
 0x590   :  { %11792 = vmatprep.subr.bf16.mxu1 %v14497_v28  ;;  %v14566_v1 = vld [vmem:[%s20021_s5 + $0x95c] ss:$36 sps:$4 sm:$0xff]   ;;  %v14569_v28 = vld [vmem:[%s20021_s5 + $0x964] ss:$36 sps:$4 sm:$0xff]  }
 0x592   :  { %11629 = vmatpush1.bf16.msra.mxu0 %v14492_v30  ;;  %v14564_v30 = vld [vmem:[%s20021_s5 + $0x958] ss:$36 sps:$4 sm:$0xff]  }
 0x593   :  { %11793 = vmatpush1.bf16.msra.mxu1 %v14495_v23  ;;  %11630 = vmatprep.subr.bf16.mxu0 %v14500_v31  ;;  %v14567_v23 = vld [vmem:[%s20021_s5 + $0x960] ss:$36 sps:$4 sm:$0xff]  }
 0x594   :  { %11794 = vmatprep.subr.bf16.mxu1 %v14503_v32  ;;  %v14572_v31 = vld [vmem:[%s20021_s5 + $0x9a4] ss:$36 sps:$4 sm:$0xff]   ;;  %v14575_v32 = vld [vmem:[%s20021_s5 + $0x9ac] ss:$36 sps:$4 sm:$0xff]  }
 0x596   :  { %11631 = vmatpush1.bf16.msra.mxu0 %v14498_v35  ;;  %v14570_v35 = vld [vmem:[%s20021_s5 + $0x9a0] ss:$36 sps:$4 sm:$0xff]  }
 0x597   :  { %11795 = vmatpush1.bf16.msra.mxu1 %v14501_v36  ;;  %11632 = vmatprep.subr.bf16.mxu0 %v14506_v21  ;;  %v14573_v36 = vld [vmem:[%s20021_s5 + $0x9a8] ss:$36 sps:$4 sm:$0xff]  }
 0x598   :  { %11796 = vmatprep.subr.bf16.mxu1 %v14509_v37  ;;  %v14578_v21 = vld [vmem:[%s20021_s5 + $0x9ec] ss:$36 sps:$4 sm:$0xff]   ;;  %v14581_v37 = vld [vmem:[%s20021_s5 + $0x9f4] ss:$36 sps:$4 sm:$0xff]  }
 0x59a   :  { %11633 = vmatpush1.bf16.msra.mxu0 %v14504_v56  ;;  %v14576_v56 = vld [vmem:[%s20021_s5 + $0x9e8] ss:$36 sps:$4 sm:$0xff]  }
 0x59b   :  { %11797 = vmatpush1.bf16.msra.mxu1 %v14507_v49  ;;  %11634 = vmatprep.subr.bf16.mxu0 %v14512_v38  ;;  %v14579_v49 = vld [vmem:[%s20021_s5 + $0x9f0] ss:$36 sps:$4 sm:$0xff]  }
 0x59c   :  { %11798 = vmatprep.subr.bf16.mxu1 %v14515_v40  ;;  %v14584_v38 = vld [vmem:[%s20021_s5 + $0xa34] ss:$36 sps:$4 sm:$0xff]   ;;  %v14587_v40 = vld [vmem:[%s20021_s5 + $0xa3c] ss:$36 sps:$4 sm:$0xff]  }
 0x59e   :  { %11635 = vmatpush1.bf16.msra.mxu0 %v14510_v9  ;;  %v14582_v9 = vld [vmem:[%s20021_s5 + $0xa30] ss:$36 sps:$4 sm:$0xff]  }
 0x59f   :  { %11799 = vmatpush1.bf16.msra.mxu1 %v14513_v42  ;;  %11636 = vmatprep.subr.bf16.mxu0 %v14518_v43  ;;  %v14585_v42 = vld [vmem:[%s20021_s5 + $0xa38] ss:$36 sps:$4 sm:$0xff]  }
 0x5a0   :  { %11800 = vmatprep.subr.bf16.mxu1 %v14521_v18  ;;  %v14590_v43 = vld [vmem:[%s20021_s5 + $0xa7c] ss:$36 sps:$4 sm:$0xff]   ;;  %v14593_v18 = vld [vmem:[%s20021_s5 + $0xa84] ss:$36 sps:$4 sm:$0xff]  }
 0x5a2   :  { %11637 = vmatpush1.bf16.msra.mxu0 %v14516_v55  ;;  %v14588_v55 = vld [vmem:[%s20021_s5 + $0xa78] ss:$36 sps:$4 sm:$0xff]  }
 0x5a3   :  { %11801 = vmatpush1.bf16.msra.mxu1 %v14519_v24  ;;  %11638 = vmatprep.subr.bf16.mxu0 %v14524_v44  ;;  %v14591_v24 = vld [vmem:[%s20021_s5 + $0xa80] ss:$36 sps:$4 sm:$0xff]  }
 0x5a4   :  { %11802 = vmatprep.subr.bf16.mxu1 %v14527_v50  ;;  %v14596_v44 = vld [vmem:[%s20021_s5 + $0xac4] ss:$36 sps:$4 sm:$0xff]   ;;  %v14599_v50 = vld [vmem:[%s20021_s5 + $0xacc] ss:$36 sps:$4 sm:$0xff]  }
 0x5a6   :  { %11639 = vmatpush1.bf16.msra.mxu0 %v14522_v51  ;;  %v14594_v51 = vld [vmem:[%s20021_s5 + $0xac0] ss:$36 sps:$4 sm:$0xff]  }
 0x5a7   :  { %11803 = vmatpush1.bf16.msra.mxu1 %v14525_v52  ;;  %11640 = vmatprep.subr.bf16.mxu0 %v14530_v3  ;;  %v14597_v52 = vld [vmem:[%s20021_s5 + $0xac8] ss:$36 sps:$4 sm:$0xff]  }
 0x5a8   :  { %11804 = vmatprep.subr.bf16.mxu1 %v14533_v4  ;;  %v14602_v3 = vld [vmem:[%s20021_s5 + $0xb0c] ss:$36 sps:$4 sm:$0xff]   ;;  %v14605_v4 = vld [vmem:[%s20021_s5 + $0xb14] ss:$36 sps:$4 sm:$0xff]  }
 0x5aa   :  { %11641 = vmatpush1.bf16.msra.mxu0 %v14528_v11  ;;  %v14600_v11 = vld [vmem:[%s20021_s5 + $0xb08] ss:$36 sps:$4 sm:$0xff]  }
 0x5ab   :  { %11805 = vmatpush1.bf16.msra.mxu1 %v14531_v54  ;;  %11642 = vmatprep.subr.bf16.mxu0 %v14536_v58  ;;  %v14603_v54 = vld [vmem:[%s20021_s5 + $0xb10] ss:$36 sps:$4 sm:$0xff]  }
 0x5ac   :  { %11806 = vmatprep.subr.bf16.mxu1 %v14539_v26  ;;  %v14608_v58 = vld [vmem:[%s20021_s5 + $0xb54] ss:$36 sps:$4 sm:$0xff]   ;;  %v14611_v26 = vld [vmem:[%s20021_s5 + $0xb5c] ss:$36 sps:$4 sm:$0xff]  }
 0x5ae   :  { %11643 = vmatpush1.bf16.msra.mxu0 %v14534_v59  ;;  %v14606_v59 = vld [vmem:[%s20021_s5 + $0xb50] ss:$36 sps:$4 sm:$0xff]  }
 0x5af   :  { %11807 = vmatpush1.bf16.msra.mxu1 %v14537_v13  ;;  %11644 = vmatprep.subr.bf16.mxu0 %v14542_v62  ;;  %v14609_v13 = vld [vmem:[%s20021_s5 + $0xb58] ss:$36 sps:$4 sm:$0xff]  }
 0x5b0   :  { %11808 = vmatprep.subr.bf16.mxu1 %v14545_v63  ;;  %v14614_v62 = vld [vmem:[%s20021_s5 + $0xb9c] ss:$36 sps:$4 sm:$0xff]   ;;  %v14617_v63 = vld [vmem:[%s20021_s5 + $0xba4] ss:$36 sps:$4 sm:$0xff]  }
 0x5b2   :  { %11645 = vmatpush1.bf16.msra.mxu0 %v14540_v0  ;;  %v14612_v0 = vld [vmem:[%s20021_s5 + $0xb98] ss:$36 sps:$4 sm:$0xff]  }
 0x5b3   :  { %11809 = vmatpush1.bf16.msra.mxu1 %v14543_v61  ;;  %11646 = vmatprep.subr.bf16.mxu0 %v14548_v2  ;;  %v14615_v61 = vld [vmem:[%s20021_s5 + $0xba0] ss:$36 sps:$4 sm:$0xff]  }
 0x5b4   :  { %11810 = vmatprep.subr.bf16.mxu1 %v14551_v5  ;;  %v14620_v2 = vld [vmem:[%s20021_s5 + $0xbe4] ss:$36 sps:$4 sm:$0xff]   ;;  %v14623_v5 = vld [vmem:[%s20021_s5 + $0xbec] ss:$36 sps:$4 sm:$0xff]  }
 0x5b6   :  { %11647 = vmatpush1.bf16.msra.mxu0 %v14546_v6  ;;  %v14618_v6 = vld [vmem:[%s20021_s5 + $0xbe0] ss:$36 sps:$4 sm:$0xff]  }
 0x5b7   :  { %11811 = vmatpush1.bf16.msra.mxu1 %v14549_v17  ;;  %11648 = vmatprep.subr.bf16.mxu0 %v14554_v7  ;;  %v14621_v17 = vld [vmem:[%s20021_s5 + $0xbe8] ss:$36 sps:$4 sm:$0xff]  }
 0x5b8   :  { %11812 = vmatprep.subr.bf16.mxu1 %v14557_v47  ;;  %v14626_v7 = vld [vmem:[%s20021_s5 + $0xc2c] ss:$36 sps:$4 sm:$0xff]   ;;  %v14629_v47 = vld [vmem:[%s20021_s5 + $0xc34] ss:$36 sps:$4 sm:$0xff]  }
 0x5ba   :  { %11649 = vmatpush1.bf16.msra.mxu0 %v14552_v39  ;;  %v14624_v39 = vld [vmem:[%s20021_s5 + $0xc28] ss:$36 sps:$4 sm:$0xff]  }
 0x5bb   :  { %11813 = vmatpush1.bf16.msra.mxu1 %v14555_v16  ;;  %11659 = vmatprep.subr.bf16.mxu0 %v14560_v14  ;;  %v14627_v16 = vld [vmem:[%s20021_s5 + $0xc30] ss:$36 sps:$4 sm:$0xff]  }
 0x5bc   :  { %11823 = vmatprep.subr.bf16.mxu1 %v14563_v19  ;;  %v14632_v14 = vld [vmem:[%s20021_s5 + $0xc74] ss:$36 sps:$4 sm:$0xff]   ;;  %v14635_v19 = vld [vmem:[%s20021_s5 + $0xc7c] ss:$36 sps:$4 sm:$0xff]  }
 0x5bd   :  { %11651 = vmatmul.mubr.bf16.vlgmr.msra.gmra.mrb[20].mxu0 %v18588_v34 }
 0x5be   :  { %11815 = vmatmul.mubr.bf16.vlgmr.msra.gmra.mrb[20].mxu1 %v18588_v34  ;;  %11660 = vmatpush1.bf16.msra.mxu0 %v14558_v12  ;;  %v14630_v12 = vld [vmem:[%s20021_s5 + $0xc70] ss:$36 sps:$4 sm:$0xff]  }
 0x5bf   :  { %11691 = vmatprep.mubr.bf16.mxu0 %v18789_v10  ;;  %11824 = vmatpush1.bf16.msra.mxu1 %v14561_v25  ;;  %v14633_v25 = vld [vmem:[%s20021_s5 + $0xc78] ss:$36 sps:$4 sm:$0xff]  }
 0x5c0   :  { %11855 = vmatprep.mubr.bf16.mxu1 %v18789_v10  ;;  %11661 = vmatprep.subr.bf16.mxu0 %v14566_v1  ;;  %v14638_v1 = vld [vmem:[%s20021_s5 + $0xcbc] ss:$36 sps:$4 sm:$0xff]  }
 0x5c1   :  { %11825 = vmatprep.subr.bf16.mxu1 %v14569_v28  ;;  %v14641_v28 = vld [vmem:[%s20021_s5 + $0xcc4] ss:$36 sps:$4 sm:$0xff]  }
 0x5c2   :  { %11662 = vmatpush1.bf16.msra.mxu0 %v14564_v30  ;;  %v14636_v30 = vld [vmem:[%s20021_s5 + $0xcb8] ss:$36 sps:$4 sm:$0xff]  }
 0x5c3   :  { %11826 = vmatpush1.bf16.msra.mxu1 %v14567_v23  ;;  %11663 = vmatprep.subr.bf16.mxu0 %v14572_v31  ;;  %v14639_v23 = vld [vmem:[%s20021_s5 + $0xcc0] ss:$36 sps:$4 sm:$0xff]  }
 0x5c4   :  { %11827 = vmatprep.subr.bf16.mxu1 %v14575_v32  ;;  %v14644_v31 = vld [vmem:[%s20021_s5 + $0xd04] ss:$36 sps:$4 sm:$0xff]   ;;  %v14647_v32 = vld [vmem:[%s20021_s5 + $0xd0c] ss:$36 sps:$4 sm:$0xff]  }
 0x5c6   :  { %11664 = vmatpush1.bf16.msra.mxu0 %v14570_v35  ;;  %v14642_v35 = vld [vmem:[%s20021_s5 + $0xd00] ss:$36 sps:$4 sm:$0xff]  }
 0x5c7   :  { %11828 = vmatpush1.bf16.msra.mxu1 %v14573_v36  ;;  %11665 = vmatprep.subr.bf16.mxu0 %v14578_v21  ;;  %v14645_v36 = vld [vmem:[%s20021_s5 + $0xd08] ss:$36 sps:$4 sm:$0xff]  }
 0x5c8   :  { %11829 = vmatprep.subr.bf16.mxu1 %v14581_v37  ;;  %v14650_v21 = vld [vmem:[%s20021_s5 + $0xd4c] ss:$36 sps:$4 sm:$0xff]   ;;  %v14653_v37 = vld [vmem:[%s20021_s5 + $0xd54] ss:$36 sps:$4 sm:$0xff]  }
 0x5ca   :  { %11666 = vmatpush1.bf16.msra.mxu0 %v14576_v56  ;;  %v14648_v56 = vld [vmem:[%s20021_s5 + $0xd48] ss:$36 sps:$4 sm:$0xff]  }
 0x5cb   :  { %11830 = vmatpush1.bf16.msra.mxu1 %v14579_v49  ;;  %11667 = vmatprep.subr.bf16.mxu0 %v14584_v38  ;;  %v14651_v49 = vld [vmem:[%s20021_s5 + $0xd50] ss:$36 sps:$4 sm:$0xff]  }
 0x5cc   :  { %11831 = vmatprep.subr.bf16.mxu1 %v14587_v40  ;;  %v14656_v38 = vld [vmem:[%s20021_s5 + $0xd94] ss:$36 sps:$4 sm:$0xff]   ;;  %v14659_v40 = vld [vmem:[%s20021_s5 + $0xd9c] ss:$36 sps:$4 sm:$0xff]  }
 0x5ce   :  { %11668 = vmatpush1.bf16.msra.mxu0 %v14582_v9  ;;  %v14654_v9 = vld [vmem:[%s20021_s5 + $0xd90] ss:$36 sps:$4 sm:$0xff]  }
 0x5cf   :  { %11832 = vmatpush1.bf16.msra.mxu1 %v14585_v42  ;;  %11669 = vmatprep.subr.bf16.mxu0 %v14590_v43  ;;  %v14657_v42 = vld [vmem:[%s20021_s5 + $0xd98] ss:$36 sps:$4 sm:$0xff]  }
 0x5d0   :  { %11833 = vmatprep.subr.bf16.mxu1 %v14593_v18  ;;  %v14662_v43 = vld [vmem:[%s20021_s5 + $0xddc] ss:$36 sps:$4 sm:$0xff]   ;;  %v14665_v18 = vld [vmem:[%s20021_s5 + $0xde4] ss:$36 sps:$4 sm:$0xff]  }
 0x5d2   :  { %11670 = vmatpush1.bf16.msra.mxu0 %v14588_v55  ;;  %v14660_v55 = vld [vmem:[%s20021_s5 + $0xdd8] ss:$36 sps:$4 sm:$0xff]  }
 0x5d3   :  { %11834 = vmatpush1.bf16.msra.mxu1 %v14591_v24  ;;  %11671 = vmatprep.subr.bf16.mxu0 %v14596_v44  ;;  %v14663_v24 = vld [vmem:[%s20021_s5 + $0xde0] ss:$36 sps:$4 sm:$0xff]  }
 0x5d4   :  { %11835 = vmatprep.subr.bf16.mxu1 %v14599_v50  ;;  %v14668_v44 = vld [vmem:[%s20021_s5 + $0xe24] ss:$36 sps:$4 sm:$0xff]   ;;  %v14671_v50 = vld [vmem:[%s20021_s5 + $0xe2c] ss:$36 sps:$4 sm:$0xff]  }
 0x5d6   :  { %11672 = vmatpush1.bf16.msra.mxu0 %v14594_v51  ;;  %v14666_v51 = vld [vmem:[%s20021_s5 + $0xe20] ss:$36 sps:$4 sm:$0xff]  }
 0x5d7   :  { %11836 = vmatpush1.bf16.msra.mxu1 %v14597_v52  ;;  %11673 = vmatprep.subr.bf16.mxu0 %v14602_v3  ;;  %v14669_v52 = vld [vmem:[%s20021_s5 + $0xe28] ss:$36 sps:$4 sm:$0xff]  }
 0x5d8   :  { %11837 = vmatprep.subr.bf16.mxu1 %v14605_v4  ;;  %v14674_v3 = vld [vmem:[%s20021_s5 + $0xe6c] ss:$36 sps:$4 sm:$0xff]   ;;  %v14677_v4 = vld [vmem:[%s20021_s5 + $0xe74] ss:$36 sps:$4 sm:$0xff]  }
 0x5da   :  { %11674 = vmatpush1.bf16.msra.mxu0 %v14600_v11  ;;  %v14672_v11 = vld [vmem:[%s20021_s5 + $0xe68] ss:$36 sps:$4 sm:$0xff]  }
 0x5db   :  { %11838 = vmatpush1.bf16.msra.mxu1 %v14603_v54  ;;  %11675 = vmatprep.subr.bf16.mxu0 %v14608_v58  ;;  %v14675_v54 = vld [vmem:[%s20021_s5 + $0xe70] ss:$36 sps:$4 sm:$0xff]  }
 0x5dc   :  { %11839 = vmatprep.subr.bf16.mxu1 %v14611_v26  ;;  %v14680_v58 = vld [vmem:[%s20021_s5 + $0xeb4] ss:$36 sps:$4 sm:$0xff]   ;;  %v14683_v26 = vld [vmem:[%s20021_s5 + $0xebc] ss:$36 sps:$4 sm:$0xff]  }
 0x5de   :  { %11676 = vmatpush1.bf16.msra.mxu0 %v14606_v59  ;;  %v14678_v59 = vld [vmem:[%s20021_s5 + $0xeb0] ss:$36 sps:$4 sm:$0xff]  }
 0x5df   :  { %11840 = vmatpush1.bf16.msra.mxu1 %v14609_v13  ;;  %11677 = vmatprep.subr.bf16.mxu0 %v14614_v62  ;;  %v19646_v13 = vld [vmem:[%s20022_s6] sm:$0xff]  ;;  %v14681_v62 = vld [vmem:[%s20021_s5 + $0xeb8] ss:$36 sps:$4 sm:$0xff]  }
 0x5e0   :  { %11841 = vmatprep.subr.bf16.mxu1 %v14617_v63  ;;  %v14686_v63 = vld [vmem:[%s20021_s5 + $0xefc] ss:$36 sps:$4 sm:$0xff]  }
 0x5e2   :  { %11678 = vmatpush1.bf16.msra.mxu0 %v14612_v0  ;;  %v14689_v0 = vld [vmem:[%s20021_s5 + $0xf04] ss:$36 sps:$4 sm:$0xff]  }
 0x5e3   :  { %11842 = vmatpush1.bf16.msra.mxu1 %v14615_v61  ;;  %11679 = vmatprep.subr.bf16.mxu0 %v14620_v2  ;;  %v8263_v61 = vrot.slane %v19646_v13, %v16701_v29  ;;  %v8271_v2 = vrot.slane %v19646_v13, %v16913_v53  ;;  %v14687_v29 = vld [vmem:[%s20021_s5 + $0xf00] ss:$36 sps:$4 sm:$0xff]  }
 0x5e4   :  { %11843 = vmatprep.subr.bf16.mxu1 %v14623_v5  ;;  %v8267_v5 = vrot.slane %v19646_v13, %v16498_v15  ;;  %v14692_v53 = vld [vmem:[%s20021_s5 + $0xf44] ss:$36 sps:$4 sm:$0xff]   ;;  %v14695_v15 = vld [vmem:[%s20021_s5 + $0xf4c] ss:$36 sps:$4 sm:$0xff]  }
 0x5e6   :  { %11680 = vmatpush1.bf16.msra.mxu0 %v14618_v6  ;;  %v8275_v6 = vrot.slane %v19646_v13, %v16710_v33 }
 0x5e7   :  { %11844 = vmatpush1.bf16.msra.mxu1 %v14621_v17  ;;  %11681 = vmatprep.subr.bf16.mxu0 %v14626_v7  ;;  %v14684_v17 = vld [vmem:[%s20021_s5 + $0xef8] ss:$36 sps:$4 sm:$0xff]  }
 0x5e8   :  { %11845 = vmatprep.subr.bf16.mxu1 %v14629_v47 }
 0x5ea   :  { %11682 = vmatpush1.bf16.msra.mxu0 %v14624_v39 }
 0x5eb   :  { %11846 = vmatpush1.bf16.msra.mxu1 %v14627_v16  ;;  %11683 = vmatprep.subr.bf16.mxu0 %v14632_v14 }
 0x5ec   :  { %11847 = vmatprep.subr.bf16.mxu1 %v14635_v19 }
 0x5ee   :  { %11684 = vmatpush1.bf16.msra.mxu0 %v14630_v12 }
 0x5ef   :  { %11848 = vmatpush1.bf16.msra.mxu1 %v14633_v25  ;;  %11685 = vmatprep.subr.bf16.mxu0 %v14638_v1 }
 0x5f0   :  { %11849 = vmatprep.subr.bf16.mxu1 %v14641_v28  ;;  %v14690_v28 = vld [vmem:[%s20021_s5 + $0xf40] ss:$36 sps:$4 sm:$0xff]  }
 0x5f2   :  { %11686 = vmatpush1.bf16.msra.mxu0 %v14636_v30  ;;  %v14693_v30 = vld [vmem:[%s20021_s5 + $0xf48] ss:$36 sps:$4 sm:$0xff]  }
 0x5f3   :  { %11850 = vmatpush1.bf16.msra.mxu1 %v14639_v23  ;;  %11687 = vmatprep.subr.bf16.mxu0 %v14644_v31 }
 0x5f4   :  { %11851 = vmatprep.subr.bf16.mxu1 %v14647_v32 }
 0x5f6   :  { %11688 = vmatpush1.bf16.msra.mxu0 %v14642_v35 }
 0x5f7   :  { %11852 = vmatpush1.bf16.msra.mxu1 %v14645_v36  ;;  %11689 = vmatprep.subr.bf16.mxu0 %v14650_v21  ;;  %v14698_v36 = vld [vmem:[%s20021_s5 + $0xf8c] ss:$36 sps:$4 sm:$0xff]  }
 0x5f8   :  { %11853 = vmatprep.subr.bf16.mxu1 %v14653_v37 }
 0x5fa   :  { %11690 = vmatpush1.bf16.msra.mxu0 %v14648_v56  ;;  %v14701_v56 = vld [vmem:[%s20021_s5 + $0xf94] ss:$36 sps:$4 sm:$0xff]  }
 0x5fb   :  { %11854 = vmatpush1.bf16.msra.mxu1 %v14651_v49  ;;  %11700 = vmatprep.subr.bf16.mxu0 %v14656_v38  ;;  %v14696_v49 = vld [vmem:[%s20021_s5 + $0xf88] ss:$36 sps:$4 sm:$0xff]   ;;  %v14699_v38 = vld [vmem:[%s20021_s5 + $0xf90] ss:$36 sps:$4 sm:$0xff]  }
 0x5fc   :  { %11864 = vmatprep.subr.bf16.mxu1 %v14659_v40  ;;  %v14704_v40 = vld [vmem:[%s20021_s5 + $0xfd4] ss:$36 sps:$4 sm:$0xff]  }
 0x5fd   :  { %11692 = vmatmul.mubr.bf16.vlgmr.msra.gmra.mrb[20].mxu0 %v18797_v57 }
 0x5fe   :  { %11856 = vmatmul.mubr.bf16.vlgmr.msra.gmra.mrb[20].mxu1 %v18797_v57  ;;  %11701 = vmatpush1.bf16.msra.mxu0 %v14654_v9  ;;  %v14707_v9 = vld [vmem:[%s20021_s5 + $0xfdc] ss:$36 sps:$4 sm:$0xff]  }
 0x5ff   :  { %11732 = vmatprep.mubr.bf16.mxu0 %v18807_v20  ;;  %11865 = vmatpush1.bf16.msra.mxu1 %v14657_v42  ;;  %v14702_v42 = vld [vmem:[%s20021_s5 + $0xfd0] ss:$36 sps:$4 sm:$0xff]  }
 0x600   :  { %11896 = vmatprep.mubr.bf16.mxu1 %v18807_v20  ;;  %11702 = vmatprep.subr.bf16.mxu0 %v14662_v43  ;;  %v14705_v43 = vld [vmem:[%s20021_s5 + $0xfd8] ss:$36 sps:$4 sm:$0xff]  }
 0x601   :  { %11866 = vmatprep.subr.bf16.mxu1 %v14665_v18  ;;  %v14710_v18 = vld [vmem:[%s20021_s5 + $0x101c] ss:$36 sps:$4 sm:$0xff]  }
 0x602   :  { %11703 = vmatpush1.bf16.msra.mxu0 %v14660_v55  ;;  %v14713_v55 = vld [vmem:[%s20021_s5 + $0x1024] ss:$36 sps:$4 sm:$0xff]  }
 0x603   :  { %11867 = vmatpush1.bf16.msra.mxu1 %v14663_v24  ;;  %11704 = vmatprep.subr.bf16.mxu0 %v14668_v44  ;;  %v14708_v24 = vld [vmem:[%s20021_s5 + $0x1018] ss:$36 sps:$4 sm:$0xff]  }
 0x604   :  { %11868 = vmatprep.subr.bf16.mxu1 %v14671_v50  ;;  %v14711_v50 = vld [vmem:[%s20021_s5 + $0x1020] ss:$36 sps:$4 sm:$0xff]  }
 0x606   :  { %11705 = vmatpush1.bf16.msra.mxu0 %v14666_v51  ;;  %v14716_v51 = vld [vmem:[%s20021_s5 + $0x1064] ss:$36 sps:$4 sm:$0xff]  }
 0x607   :  { %11869 = vmatpush1.bf16.msra.mxu1 %v14669_v52  ;;  %11706 = vmatprep.subr.bf16.mxu0 %v14674_v3 }
 0x608   :  { %11870 = vmatprep.subr.bf16.mxu1 %v14677_v4  ;;  %v14719_v4 = vld [vmem:[%s20021_s5 + $0x106c] ss:$36 sps:$4 sm:$0xff]  }
 0x60a   :  { %11707 = vmatpush1.bf16.msra.mxu0 %v14672_v11 }
 0x60b   :  { %11871 = vmatpush1.bf16.msra.mxu1 %v14675_v54  ;;  %11708 = vmatprep.subr.bf16.mxu0 %v14680_v58 }
 0x60c   :  { %11872 = vmatprep.subr.bf16.mxu1 %v14683_v26 }
 0x60e   :  { %11709 = vmatpush1.bf16.msra.mxu0 %v14678_v59 }
 0x60f   :  { %11873 = vmatpush1.bf16.msra.mxu1 %v14681_v62  ;;  %11710 = vmatprep.subr.bf16.mxu0 %v14686_v63  ;;  %v14714_v62 = vld [vmem:[%s20021_s5 + $0x1060] ss:$36 sps:$4 sm:$0xff]  }
 0x610   :  { %v11406_v7 = vpop.f32.mrb[16].mxu0  ;;  %v11570_v47 = vpop.f32.mrb[16].mxu1  ;;  %11874 = vmatprep.subr.bf16.mxu1 %v14689_v0 }
 0x611   :  { %v13829_v33 = vadd.f32 %v11406_v7, %v8263_v61  ;;  %v13831_v39 = vadd.f32 %v11570_v47, %v8271_v2  ;;  %v11408_v16 = vpop.f32.mrb[17].mxu0  ;;  %v11572_v14 = vpop.f32.mrb[17].mxu1  ;;  %v14717_v61 = vld [vmem:[%s20021_s5 + $0x1068] ss:$36 sps:$4 sm:$0xff]   ;;  %v14728_v7 = vld [vmem:[%s20021_s5 + $0x10f4] ss:$36 sps:$4 sm:$0xff]  }
 0x612   :  { %v13830_v19 = vadd.f32 %v11408_v16, %v8267_v5  ;;  %v13832_v12 = vadd.f32 %v11572_v14, %v8275_v6  ;;  %v11410_v25 = vpop.f32.mrb[18].mxu0  ;;  %v11574_v1 = vpop.f32.mrb[18].mxu1  ;;  %11711 = vmatpush1.bf16.msra.mxu0 %v14684_v17  ;;  %v14722_v2 = vld [vmem:[%s20021_s5 + $0x10ac] ss:$36 sps:$4 sm:$0xff]   ;;  %v14725_v6 = vld [vmem:[%s20021_s5 + $0x10b4] ss:$36 sps:$4 sm:$0xff]  }
 0x613   :  { %v12065_v23 = vmul.f32 0.5, %v13829_v33  ;;  %v12067_v31 = vmul.f32 0.5, %v13831_v39  ;;  %11875 = vmatpush1.bf16.msra.mxu1 %v14687_v29  ;;  %v11411_v32 = vpop.f32.mrb[19].mxu0  ;;  %v11575_v35 = vpop.f32.mrb[19].mxu1  ;;  %11712 = vmatprep.subr.bf16.mxu0 %v14692_v53  ;;  %v14720_v29 = vld [vmem:[%s20021_s5 + $0x10a8] ss:$36 sps:$4 sm:$0xff]  }
 0x614   :  { %v12066_v21 = vmul.f32 0.5, %v13830_v19  ;;  %v12068_v37 = vmul.f32 0.5, %v13832_v12  ;;  %11876 = vmatprep.subr.bf16.mxu1 %v14695_v15  ;;  %v14723_v53 = vld [vmem:[%s20021_s5 + $0x10b0] ss:$36 sps:$4 sm:$0xff]   ;;  %v14731_v47 = vld [vmem:[%s20021_s5 + $0x10fc] ss:$36 sps:$4 sm:$0xff]  }
 0x615   :  { %14814 = vtanh.f32 %v12065_v23  ;;  %v14726_v15 = vld [vmem:[%s20021_s5 + $0x10f0] ss:$36 sps:$4 sm:$0xff]   ;;  %v14729_v33 = vld [vmem:[%s20021_s5 + $0x10f8] ss:$36 sps:$4 sm:$0xff]   ;;  %v14737_v16 = vld [vmem:[%s20021_s5 + $0x1144] ss:$36 sps:$4 sm:$0xff]  }
 0x616   :  { %14816 = vtanh.f32 %v12067_v31  ;;  %11713 = vmatpush1.bf16.msra.mxu0 %v14690_v28  ;;  %v14734_v39 = vld [vmem:[%s20021_s5 + $0x113c] ss:$36 sps:$4 sm:$0xff]   ;;  %v14740_v12 = vld [vmem:[%s20021_s5 + $0x1184] ss:$36 sps:$4 sm:$0xff]   ;;  %v14743_v25 = vld [vmem:[%s20021_s5 + $0x118c] ss:$36 sps:$4 sm:$0xff]  }
 0x617   :  { %14818 = vtanh.f32 %v12066_v21  ;;  %11877 = vmatpush1.bf16.msra.mxu1 %v14693_v30  ;;  %11714 = vmatprep.subr.bf16.mxu0 %v14698_v36  ;;  %v14732_v14 = vld [vmem:[%s20021_s5 + $0x1138] ss:$36 sps:$4 sm:$0xff]   ;;  %v14735_v19 = vld [vmem:[%s20021_s5 + $0x1140] ss:$36 sps:$4 sm:$0xff]   ;;  %v14741_v28 = vld [vmem:[%s20021_s5 + $0x1188] ss:$36 sps:$4 sm:$0xff]  }
 0x618   :  { %14820 = vtanh.f32 %v12068_v37  ;;  %11878 = vmatprep.subr.bf16.mxu1 %v14701_v56  ;;  %v14738_v1 = vld [vmem:[%s20021_s5 + $0x1180] ss:$36 sps:$4 sm:$0xff]   ;;  %v14746_v30 = vld [vmem:[%s20021_s5 + $0x11cc] ss:$36 sps:$4 sm:$0xff]   ;;  %v14749_v23 = vld [vmem:[%s20021_s5 + $0x11d4] ss:$36 sps:$4 sm:$0xff]  }
 0x619   :  { %v14744_v31 = vld [vmem:[%s20021_s5 + $0x11c8] ss:$36 sps:$4 sm:$0xff]   ;;  %v14747_v32 = vld [vmem:[%s20021_s5 + $0x11d0] ss:$36 sps:$4 sm:$0xff]   ;;  %v14750_v35 = vld [vmem:[%s20021_s5 + $0x260] ss:$36 sps:$4 sm:$0xff]  }
 0x61a   :  { %11715 = vmatpush1.bf16.msra.mxu0 %v14696_v49  ;;  %v14751_v36 = vld [vmem:[%s20021_s5 + $0x6e0] ss:$36 sps:$4 sm:$0xff]   ;;  %v14754_v56 = vld [vmem:[%s20021_s5 + $0x2a8] ss:$36 sps:$4 sm:$0xff]  }
 0x61b   :  { %11879 = vmatpush1.bf16.msra.mxu1 %v14699_v38  ;;  %11716 = vmatprep.subr.bf16.mxu0 %v14704_v40  ;;  %v14752_v21 = vld [vmem:[%s20021_s5 + $0x20] ss:$36 sps:$4 sm:$0xff]   ;;  %v14755_v49 = vld [vmem:[%s20021_s5 + $0x728] ss:$36 sps:$4 sm:$0xff]  }
 0x61c   :  { %11880 = vmatprep.subr.bf16.mxu1 %v14707_v9  ;;  %v14753_v37 = vld [vmem:[%s20021_s5 + $0x4a0] ss:$36 sps:$4 sm:$0xff]   ;;  %v14756_v38 = vld [vmem:[%s20021_s5 + $0x68] ss:$36 sps:$4 sm:$0xff]   ;;  %v14758_v9 = vld [vmem:[%s20021_s5 + $0x2f0] ss:$36 sps:$4 sm:$0xff]  }
 0x61d   :  { %v14757_v40 = vld [vmem:[%s20021_s5 + $0x4e8] ss:$36 sps:$4 sm:$0xff]  }
 0x61e   :  { %11717 = vmatpush1.bf16.msra.mxu0 %v14702_v42  ;;  %v14759_v42 = vld [vmem:[%s20021_s5 + $0x770] ss:$36 sps:$4 sm:$0xff]  }
 0x61f   :  { %v14815_v44 = vpop.eup %14814  ;;  %11881 = vmatpush1.bf16.msra.mxu1 %v14705_v43  ;;  %11718 = vmatprep.subr.bf16.mxu0 %v14710_v18  ;;  %v14761_v43 = vld [vmem:[%s20021_s5 + $0x530] ss:$36 sps:$4 sm:$0xff]   ;;  %v14763_v18 = vld [vmem:[%s20021_s5 + $0x7b8] ss:$36 sps:$4 sm:$0xff]  }
 0x620   :  { %v14817_v52 = vpop.eup %14816  ;;  %v12083_v3 = vmul.f32 0.5, %v14815_v44  ;;  %11882 = vmatprep.subr.bf16.mxu1 %v14713_v55  ;;  %v14764_v55 = vld [vmem:[%s20021_s5 + $0xf8] ss:$36 sps:$4 sm:$0xff]   ;;  %v14766_v44 = vld [vmem:[%s20021_s5 + $0x380] ss:$36 sps:$4 sm:$0xff]  }
 0x621   :  { %v14819_v11 = vpop.eup %14818  ;;  %v12085_v54 = vmul.f32 0.5, %v14817_v52  ;;  %v14769_v52 = vld [vmem:[%s20021_s5 + $0x5c0] ss:$36 sps:$4 sm:$0xff]  }
 0x622   :  { %v14821_v58 = vpop.eup %14820  ;;  %v12092_v26 = vadd.f32 0.5, %v12083_v3  ;;  %v12084_v59 = vmul.f32 0.5, %v14819_v11  ;;  %11719 = vmatpush1.bf16.msra.mxu0 %v14708_v24  ;;  %v14765_v24 = vld [vmem:[%s20021_s5 + $0x578] ss:$36 sps:$4 sm:$0xff]   ;;  %v14770_v3 = vld [vmem:[%s20021_s5 + $0x3c8] ss:$36 sps:$4 sm:$0xff]  }
 0x623   :  { %v12094_v63 = vadd.f32 0.5, %v12085_v54  ;;  %v12086_v0 = vmul.f32 0.5, %v14821_v58  ;;  %11883 = vmatpush1.bf16.msra.mxu1 %v14711_v50  ;;  %11720 = vmatprep.subr.bf16.mxu0 %v14716_v51  ;;  %v14767_v50 = vld [vmem:[%s20021_s5 + $0x800] ss:$36 sps:$4 sm:$0xff]   ;;  %v14772_v11 = vld [vmem:[%s20021_s5 + $0x188] ss:$36 sps:$4 sm:$0xff]  }
 0x624   :  { %12101 = vst [vmem:[#allocation2] sm:$0xff] %v12092_v26  ;;  %v12093_v5 = vadd.f32 0.5, %v12084_v59  ;;  %11884 = vmatprep.subr.bf16.mxu1 %v14719_v4  ;;  %v14768_v51 = vld [vmem:[%s20021_s5 + $0x140] ss:$36 sps:$4 sm:$0xff]   ;;  %v14771_v4 = vld [vmem:[%s20021_s5 + $0x848] ss:$36 sps:$4 sm:$0xff]  }
 0x625   :  { %12103 = vst [vmem:[#allocation2 + $0x10] sm:$0xff] %v12094_v63  ;;  %v12095_v17 = vadd.f32 0.5, %v12086_v0  ;;  %v14773_v54 = vld [vmem:[%s20021_s5 + $0x608] ss:$36 sps:$4 sm:$0xff]   ;;  %v14774_v58 = vld [vmem:[%s20021_s5 + $0x410] ss:$36 sps:$4 sm:$0xff]  }
 0x626   :  { %12102 = vst [vmem:[#allocation2 + $0x8] sm:$0xff] %v12093_v5  ;;  %11721 = vmatpush1.bf16.msra.mxu0 %v14714_v62  ;;  %v14775_v26 = vld [vmem:[%s20021_s5 + $0x890] ss:$36 sps:$4 sm:$0xff]   ;;  %v14778_v63 = vld [vmem:[%s20021_s5 + $0x458] ss:$36 sps:$4 sm:$0xff]  }
 0x627   :  { %12104 = vst [vmem:[#allocation2 + $0x18] sm:$0xff] %v12095_v17  ;;  %11885 = vmatpush1.bf16.msra.mxu1 %v14717_v61  ;;  %11722 = vmatprep.subr.bf16.mxu0 %v14722_v2  ;;  %v14776_v59 = vld [vmem:[%s20021_s5 + $0x1d0] ss:$36 sps:$4 sm:$0xff]   ;;  %v14779_v0 = vld [vmem:[%s20021_s5 + $0x8d8] ss:$36 sps:$4 sm:$0xff]  }
 0x628   :  { %11886 = vmatprep.subr.bf16.mxu1 %v14725_v6  ;;  %v14777_v62 = vld [vmem:[%s20021_s5 + $0x650] ss:$36 sps:$4 sm:$0xff]   ;;  %v14780_v61 = vld [vmem:[%s20021_s5 + $0x218] ss:$36 sps:$4 sm:$0xff]   ;;  %v14782_v5 = vld [vmem:[%s20021_s5 + $0xb60] ss:$36 sps:$4 sm:$0xff]  }
 0x629   :  { %v14781_v2 = vld [vmem:[%s20021_s5 + $0x698] ss:$36 sps:$4 sm:$0xff]   ;;  %v14783_v6 = vld [vmem:[%s20021_s5 + $0xfe0] ss:$36 sps:$4 sm:$0xff]  }
 0x62a   :  { %11723 = vmatpush1.bf16.msra.mxu0 %v14720_v29  ;;  %v14784_v17 = vld [vmem:[%s20021_s5 + $0x920] ss:$36 sps:$4 sm:$0xff]  }
 0x62b   :  { %11887 = vmatpush1.bf16.msra.mxu1 %v14723_v53  ;;  %11724 = vmatprep.subr.bf16.mxu0 %v14728_v7  ;;  %v14785_v29 = vld [vmem:[%s20021_s5 + $0xda0] ss:$36 sps:$4 sm:$0xff]   ;;  %v14786_v53 = vld [vmem:[%s20021_s5 + $0xba8] ss:$36 sps:$4 sm:$0xff]  }
 0x62c   :  { %11888 = vmatprep.subr.bf16.mxu1 %v14731_v47  ;;  %v14787_v7 = vld [vmem:[%s20021_s5 + $0x1028] ss:$36 sps:$4 sm:$0xff]  }
 0x62d   :  { %v14788_v47 = vld [vmem:[%s20021_s5 + $0x968] ss:$36 sps:$4 sm:$0xff]  }
 0x62e   :  { %11725 = vmatpush1.bf16.msra.mxu0 %v14726_v15  ;;  %v14789_v15 = vld [vmem:[%s20021_s5 + $0xde8] ss:$36 sps:$4 sm:$0xff]  }
 0x62f   :  { %11889 = vmatpush1.bf16.msra.mxu1 %v14729_v33  ;;  %11726 = vmatprep.subr.bf16.mxu0 %v14734_v39  ;;  %v14793_v33 = vld [vmem:[%s20021_s5 + $0xe30] ss:$36 sps:$4 sm:$0xff]   ;;  %v14795_v39 = vld [vmem:[%s20021_s5 + $0x10b8] ss:$36 sps:$4 sm:$0xff]  }
 0x630   :  { %11890 = vmatprep.subr.bf16.mxu1 %v14737_v16  ;;  %v14796_v16 = vld [vmem:[%s20021_s5 + $0x9f8] ss:$36 sps:$4 sm:$0xff]  }
 0x632   :  { %11727 = vmatpush1.bf16.msra.mxu0 %v14732_v14  ;;  %v14797_v14 = vld [vmem:[%s20021_s5 + $0xe78] ss:$36 sps:$4 sm:$0xff]  }
 0x633   :  { %11891 = vmatpush1.bf16.msra.mxu1 %v14735_v19  ;;  %11728 = vmatprep.subr.bf16.mxu0 %v14740_v12  ;;  %v14798_v19 = vld [vmem:[%s20021_s5 + $0xc80] ss:$36 sps:$4 sm:$0xff]  }
 0x634   :  { %11892 = vmatprep.subr.bf16.mxu1 %v14743_v25  ;;  %v14799_v12 = vld [vmem:[%s20021_s5 + $0x1100] ss:$36 sps:$4 sm:$0xff]  }
 0x635   :  { %v14800_v25 = vld [vmem:[%s20021_s5 + $0xa40] ss:$36 sps:$4 sm:$0xff]  }
 0x636   :  { %11729 = vmatpush1.bf16.msra.mxu0 %v14738_v1  ;;  %v14801_v1 = vld [vmem:[%s20021_s5 + $0xec0] ss:$36 sps:$4 sm:$0xff]  }
 0x637   :  { %11893 = vmatpush1.bf16.msra.mxu1 %v14741_v28  ;;  %11730 = vmatprep.subr.bf16.mxu0 %v14746_v30  ;;  %v14802_v28 = vld [vmem:[%s20021_s5 + $0xcc8] ss:$36 sps:$4 sm:$0xff]  }
 0x638   :  { %11894 = vmatprep.subr.bf16.mxu1 %v14749_v23  ;;  %v14803_v30 = vld [vmem:[%s20021_s5 + $0x1148] ss:$36 sps:$4 sm:$0xff]  }
 0x639   :  { %v14804_v23 = vld [vmem:[%s20021_s5 + $0xa88] ss:$36 sps:$4 sm:$0xff]  }
 0x63a   :  { %11731 = vmatpush1.bf16.msra.mxu0 %v14744_v31  ;;  %v14805_v31 = vld [vmem:[%s20021_s5 + $0xf08] ss:$36 sps:$4 sm:$0xff]  }
 0x63b   :  { %11895 = vmatpush1.bf16.msra.mxu1 %v14747_v32  ;;  %13725 = vmatprep.subr.bf16.mxu0 %v14750_v35  ;;  %v14806_v32 = vld [vmem:[%s20021_s5 + $0xd10] ss:$36 sps:$4 sm:$0xff]  }
 0x63c   :  { %13747 = vmatprep.subr.bf16.mxu1 %v14751_v36  ;;  %v14807_v35 = vld [vmem:[%s20021_s5 + $0x1190] ss:$36 sps:$4 sm:$0xff]  }
 0x63d   :  { %11733 = vmatmul.mubr.bf16.vlgmr.msra.gmra.mrb[20].mxu0 %v19001_v41  ;;  %v14808_v36 = vld [vmem:[%s20021_s5 + $0xad0] ss:$36 sps:$4 sm:$0xff]  }
 0x63e   :  { %11897 = vmatmul.mubr.bf16.vlgmr.msra.gmra.mrb[20].mxu1 %v19001_v41  ;;  %13726 = vmatpush3.bf16.msra.mxu0 %v14752_v21  ;;  %v14809_v21 = vld [vmem:[%s20021_s5 + $0xf50] ss:$36 sps:$4 sm:$0xff]  }
 0x63f   :  { %11937 = vmatprep.mubr.bf16.mxu0 %v18187_v60  ;;  %13748 = vmatpush3.bf16.msra.mxu1 %v14753_v37  ;;  %v14760_v60 = vld [vmem:[%s20021_s5 + $0xb0] ss:$36 sps:$4 sm:$0xff]   ;;  %v14810_v37 = vld [vmem:[%s20021_s5 + $0xd58] ss:$36 sps:$4 sm:$0xff]  }
 0x640   :  { %11977 = vmatprep.mubr.bf16.mxu1 %v18393_v27  ;;  %13727 = vmatprep.subr.bf16.mxu0 %v14754_v56  ;;  %v14762_v27 = vld [vmem:[%s20021_s5 + $0x338] ss:$36 sps:$4 sm:$0xff]  }
 0x641   :  { %13749 = vmatprep.subr.bf16.mxu1 %v14755_v49  ;;  %v14811_v56 = vld [vmem:[%s20021_s5 + $0x11d8] ss:$36 sps:$4 sm:$0xff]  }
 0x642   :  { %13728 = vmatpush3.bf16.msra.mxu0 %v14756_v38  ;;  %v14812_v49 = vld [vmem:[%s20021_s5 + $0xb18] ss:$36 sps:$4 sm:$0xff]  }
 0x643   :  { %13750 = vmatpush3.bf16.msra.mxu1 %v14757_v40  ;;  %13729 = vmatprep.subr.bf16.mxu0 %v14758_v9  ;;  %v14813_v38 = vld [vmem:[%s20021_s5 + $0xf98] ss:$36 sps:$4 sm:$0xff]   ;;  %v8279_v40 = vrot.slane %v19646_v13, %v17151_v48  ;;  %v8287_v9 = vrot.slane %v19646_v13, %v17341_v8 }
 0x644   :  { %13751 = vmatprep.subr.bf16.mxu1 %v14759_v42  ;;  %v8283_v42 = vrot.slane %v19646_v13, %v17154_v45 }
 0x646   :  { %13730 = vmatpush3.bf16.msra.mxu0 %v14760_v60  ;;  %v8291_v60 = vrot.slane %v19646_v13, %v17157_v46 }
 0x647   :  { %13752 = vmatpush3.bf16.msra.mxu1 %v14761_v43  ;;  %13731 = vmatprep.subr.bf16.mxu0 %v14762_v27 }
 0x648   :  { %13753 = vmatprep.subr.bf16.mxu1 %v14763_v18 }
 0x64a   :  { %13732 = vmatpush3.bf16.msra.mxu0 %v14764_v55 }
 0x64b   :  { %13754 = vmatpush3.bf16.msra.mxu1 %v14765_v24  ;;  %13733 = vmatprep.subr.bf16.mxu0 %v14766_v44 }
 0x64c   :  { %13755 = vmatprep.subr.bf16.mxu1 %v14767_v50 }
 0x64e   :  { %13734 = vmatpush3.bf16.msra.mxu0 %v14768_v51 }
 0x64f   :  { %13756 = vmatpush3.bf16.msra.mxu1 %v14769_v52  ;;  %13735 = vmatprep.subr.bf16.mxu0 %v14770_v3 }
 0x650   :  { %13757 = vmatprep.subr.bf16.mxu1 %v14771_v4 }
 0x652   :  { %13736 = vmatpush3.bf16.msra.mxu0 %v14772_v11 }
 0x653   :  { %13758 = vmatpush3.bf16.msra.mxu1 %v14773_v54  ;;  %13737 = vmatprep.subr.bf16.mxu0 %v14774_v58 }
 0x654   :  { %13759 = vmatprep.subr.bf16.mxu1 %v14775_v26 }
 0x656   :  { %13738 = vmatpush3.bf16.msra.mxu0 %v14776_v59 }
 0x657   :  { %13760 = vmatpush3.bf16.msra.mxu1 %v14777_v62  ;;  %13739 = vmatprep.subr.bf16.mxu0 %v14778_v63 }
 0x658   :  { %13761 = vmatprep.subr.bf16.mxu1 %v14779_v0 }
 0x65a   :  { %13740 = vmatpush3.bf16.msra.mxu0 %v14780_v61 }
 0x65b   :  { %13762 = vmatpush3.bf16.msra.mxu1 %v14781_v2  ;;  %13769 = vmatprep.subr.bf16.mxu0 %v14782_v5 }
 0x65c   :  { %13791 = vmatprep.subr.bf16.mxu1 %v14783_v6 }
 0x65d   :  { %11938 = vmatmul.mubr.bf16.vlgmr.msra.gmra.mrb[24].mxu0 %v18385_v22  ;;  %v14790_v22 = vld [vmem:[%s20021_s5 + $0xbf0] ss:$36 sps:$4 sm:$0xff]  }
 0x65e   :  { %11978 = vmatmul.mubr.bf16.vlgmr.msra.gmra.mrb[24].mxu1 %v18588_v34  ;;  %13770 = vmatpush3.bf16.msra.mxu0 %v14784_v17  ;;  %v14791_v34 = vld [vmem:[%s20021_s5 + $0x1070] ss:$36 sps:$4 sm:$0xff]   ;;  %v13148_v17 = vld [vmem:[%s20022_s6 + $0x8] ss:$0 sm:$0xff]  ;;  %s14858_s6 = smov [#allocation2]  }
 0x65f   :  { %12017 = vmatprep.mubr.bf16.mxu0 %v18789_v10  ;;  %13792 = vmatpush3.bf16.msra.mxu1 %v14785_v29  ;;  %v14792_v10 = vld [vmem:[%s20021_s5 + $0x9b0] ss:$36 sps:$4 sm:$0xff]   ;;  %s12116_s12 = sshll.u32 %s14858_s6, 4  ;;  %s12117_s12 = int_to_ptr.vmem [resolvable:$true] %s12116_s12 }
 0x660   :  { %12057 = vmatprep.mubr.bf16.mxu1 %v18807_v20  ;;  %13771 = vmatprep.subr.bf16.mxu0 %v14786_v53  ;;  %v14794_v20 = vld [vmem:[%s20021_s5 + $0xc38] ss:$36 sps:$4 sm:$0xff]   ;;  %s14834_s0 = scalar_lea.vmem %s12117_s12, 1152  ;;  %p14839_p1 = scmp.lt.s32.totalorder %s12117_s12, %s12117_s12 }
 0x661   :  { %13793 = vmatprep.subr.bf16.mxu1 %v14787_v7  ;;  %p14835_p0 = scmp.ne.s32.totalorder %s12117_s12, %s14834_s0  ;;  %p14840_p2 = scmp.lt.s32.totalorder %s14834_s0, %s14834_s0 }
 0x662   :  { %13772 = vmatpush3.bf16.msra.mxu0 %v14788_v47 }
 0x663   :  { %13794 = vmatpush3.bf16.msra.mxu1 %v14789_v15  ;;  %13773 = vmatprep.subr.bf16.mxu0 %v14790_v22  ;;  %p14841_p3 = por %p14840_p2, %p14839_p1 }
 0x664   :  { %13795 = vmatprep.subr.bf16.mxu1 %v14791_v34 }
 0x665   :  { %p14842_p4 = pnand %p14841_p3, %p14835_p0 }
 0x666   :  { %13774 = vmatpush3.bf16.msra.mxu0 %v14792_v10 }
 0x667   :  { %13796 = vmatpush3.bf16.msra.mxu1 %v14793_v33  ;;  %13775 = vmatprep.subr.bf16.mxu0 %v14794_v20 }
 0x668   :  { %13797 = vmatprep.subr.bf16.mxu1 %v14795_v39 }
 0x66a   :  { %13776 = vmatpush3.bf16.msra.mxu0 %v14796_v16 }
 0x66b   :  { %13798 = vmatpush3.bf16.msra.mxu1 %v14797_v14  ;;  %13777 = vmatprep.subr.bf16.mxu0 %v14798_v19 }
 0x66c   :  { %13799 = vmatprep.subr.bf16.mxu1 %v14799_v12 }
 0x66e   :  { %13778 = vmatpush3.bf16.msra.mxu0 %v14800_v25 }
 0x66f   :  { %13800 = vmatpush3.bf16.msra.mxu1 %v14801_v1  ;;  %13779 = vmatprep.subr.bf16.mxu0 %v14802_v28 }
 0x670   :  { %13801 = vmatprep.subr.bf16.mxu1 %v14803_v30 }
 0x672   :  { %13780 = vmatpush3.bf16.msra.mxu0 %v14804_v23 }
 0x673   :  { %13802 = vmatpush3.bf16.msra.mxu1 %v14805_v31  ;;  %13781 = vmatprep.subr.bf16.mxu0 %v14806_v32 }
 0x674   :  { %13803 = vmatprep.subr.bf16.mxu1 %v14807_v35 }
 0x676   :  { %13782 = vmatpush3.bf16.msra.mxu0 %v14808_v36 }
 0x677   :  { %13804 = vmatpush3.bf16.msra.mxu1 %v14809_v21  ;;  %13783 = vmatprep.subr.bf16.mxu0 %v14810_v37 }
 0x678   :  { %13805 = vmatprep.subr.bf16.mxu1 %v14811_v56 }
 0x67a   :  { %13784 = vmatpush3.bf16.msra.mxu0 %v14812_v49 }
 0x67b   :  { %13806 = vmatpush3.bf16.msra.mxu1 %v14813_v38 }
 0x67d   :  { %12018 = vmatmul.mubr.bf16.vlgmr.msra.gmra.mrb[28].mxu0 %v18797_v57 }
 0x67e   :  { %12058 = vmatmul.mubr.bf16.vlgmr.msra.gmra.mrb[28].mxu1 %v19001_v41 }
 0x710   :  { %v11734_v43 = vpop.f32.mrb[20].mxu0 }
 0x711   :  { %v13833_v27 = vadd.f32 %v11734_v43, %v8279_v40  ;;  %v11898_v18 = vpop.f32.mrb[20].mxu1  ;;  %v11736_v55 = vpop.f32.mrb[21].mxu0 }
 0x712   :  { %v13835_v24 = vadd.f32 %v11898_v18, %v8287_v9  ;;  %v13834_v57 = vadd.f32 %v11736_v55, %v8283_v42  ;;  %v11900_v44 = vpop.f32.mrb[21].mxu1  ;;  %v11738_v41 = vpop.f32.mrb[22].mxu0 }
 0x713   :  { %v12069_v50 = vmul.f32 0.5, %v13833_v27  ;;  %v13836_v51 = vadd.f32 %v11900_v44, %v8291_v60  ;;  %v11902_v48 = vpop.f32.mrb[22].mxu1  ;;  %v11739_v52 = vpop.f32.mrb[23].mxu0 }
 0x714   :  { %v12071_v3 = vmul.f32 0.5, %v13835_v24  ;;  %v12070_v8 = vmul.f32 0.5, %v13834_v57  ;;  %v11903_v4 = vpop.f32.mrb[23].mxu1 }
 0x715   :  { %14822 = vtanh.f32 %v12069_v50  ;;  %v12072_v45 = vmul.f32 0.5, %v13836_v51 }
 0x716   :  { %14824 = vtanh.f32 %v12071_v3 }
 0x717   :  { %14826 = vtanh.f32 %v12070_v8 }
 0x718   :  { %14828 = vtanh.f32 %v12072_v45 }
 0x71f   :  { %v14823_v46 = vpop.eup %14822 }
 0x720   :  { %v14825_v13 = vpop.eup %14824  ;;  %v12087_v11 = vmul.f32 0.5, %v14823_v46 }
 0x721   :  { %v14827_v54 = vpop.eup %14826  ;;  %v12089_v58 = vmul.f32 0.5, %v14825_v13 }
 0x722   :  { %v14829_v26 = vpop.eup %14828  ;;  %v12096_v59 = vadd.f32 0.5, %v12087_v11  ;;  %v12088_v62 = vmul.f32 0.5, %v14827_v54 }
 0x723   :  { %v12098_v63 = vadd.f32 0.5, %v12089_v58  ;;  %v12090_v0 = vmul.f32 0.5, %v14829_v26 }
 0x724   :  { %12105 = vst [vmem:[#allocation2 + $0x20] sm:$0xff] %v12096_v59  ;;  %v12097_v61 = vadd.f32 0.5, %v12088_v62 }
 0x725   :  { %12107 = vst [vmem:[#allocation2 + $0x30] sm:$0xff] %v12098_v63  ;;  %v12099_v2 = vadd.f32 0.5, %v12090_v0 }
 0x726   :  { %12106 = vst [vmem:[#allocation2 + $0x28] sm:$0xff] %v12097_v61 }
 0x727   :  { %12108 = vst [vmem:[#allocation2 + $0x38] sm:$0xff] %v12099_v2 }
 0x730   :  { %v13741_v5 = vpop.f32.mrb[24].mxu0 }
 0x731   :  { %v13763_v6 = vpop.f32.mrb[24].mxu1  ;;  %v13742_v29 = vpop.f32.mrb[25].mxu0 }
 0x732   :  { %v13743_v53 = vadd.f32 %v13742_v29, %v13741_v5  ;;  %v13764_v7 = vpop.f32.mrb[25].mxu1  ;;  %v13744_v47 = vpop.f32.mrb[26].mxu0 }
 0x733   :  { %v13765_v15 = vadd.f32 %v13764_v7, %v13763_v6  ;;  %v13766_v22 = vpop.f32.mrb[26].mxu1  ;;  %v13745_v34 = vpop.f32.mrb[27].mxu0 }
 0x734   :  { %v11940_v10 = vadd.f32 %v13743_v53, %v13148_v17  ;;  %v13767_v33 = vpop.f32.mrb[27].mxu1 }
 0x736   :  { %v11980_v20 = vadd.f32 %v13765_v15, %v11940_v10 }
 0x750   :  { %v13785_v39 = vpop.f32.mrb[28].mxu0 }
 0x751   :  { %v13807_v16 = vpop.f32.mrb[28].mxu1  ;;  %v13786_v14 = vpop.f32.mrb[29].mxu0 }
 0x752   :  { %v13787_v19 = vadd.f32 %v13786_v14, %v13785_v39  ;;  %v13808_v12 = vpop.f32.mrb[29].mxu1  ;;  %v13788_v25 = vpop.f32.mrb[30].mxu0 }
 0x753   :  { %v13809_v1 = vadd.f32 %v13808_v12, %v13807_v16  ;;  %v13810_v28 = vpop.f32.mrb[30].mxu1  ;;  %v13789_v30 = vpop.f32.mrb[31].mxu0 }
 0x754   :  { %v12020_v23 = vadd.f32 %v13787_v19, %v11980_v20  ;;  %v13811_v31 = vpop.f32.mrb[31].mxu1 }
 0x756   :  { %v12060_v32 = vadd.f32 %v13809_v1, %v12020_v23 }
 0x758   :  { %v12073_v35 = vmul.f32 0.5, %v12060_v32 }
 0x75a   :  { %14830 = vtanh.f32 %v12073_v35 }
 0x764   :  { %v14831_v36 = vpop.eup %14830 }
 0x765   :  { %v12091_v21 = vmul.f32 0.5, %v14831_v36 }
 0x767   :  { %v12100_v37 = vadd.f32 0.5, %v12091_v21 }
 0x769   :  { %12109 = vst [vmem:[#allocation2 + $0x40] sm:$0xff] %v12100_v37 }
 0x76a   :  { %14845 = shalt.err (!%p14842_p4)
}
 0x76b   :  { %s14846_s1 = scalar_lea.hbm %s20023_s7, 1152 }
 0x76c   :  { %p14847_p5 = scmp.ne.s32.totalorder %s20023_s7, %s14846_s1  ;;  %p14850_p6 = scmp.lt.u32.totalorder %s14846_s1, %s20023_s7 }
 0x76e   :  { %p14852_p7 = pnand %p14850_p6, %p14847_p5 }
 0x770   :  { %14855 = shalt.err (!%p14852_p7)
}
 0x771   :  { %12119 = dma.vmem_to_hbm [thread:$0]  %s12117_s12, 1152, %s20023_s7, [#allocation3]  }
 0x772   :  { %14856 = dma.done.wait [#allocation3], 1152  }
 0x773   :  { %14857 = vsyncadd [#allocation3], 4294966144 }
 0x774   :  { %12123 = vsyncpa [#allocation3], 1 }

</bundles_post_ra>
